<compile_context>
chip_gen: v6e
topology: v6e:2x2x1
jax: 0.10.0
libtpu: 0.0.40
codegen_flags: <defaults>
</compile_context>

<pallas_src>
import functools
import math

import jax
import jax.numpy as jnp
from jax.experimental import pallas as pl
from jax.experimental.pallas import tpu as pltpu

# Leave headroom under v7x's 64 MiB physical VMEM; plenty for these tiles.
_VMEM_LIMIT_BYTES = 48 * 1024 * 1024

_TM_PREF = 256
_TN_PREF = 512
_TK_PREF = 2048

_BN_EPS = 1e-5
_LRELU_SLOPE = 0.2


def _pad_up(n, m):
    return ((n + m - 1) // m) * m


def _pick_tile(dim, preferred, align):
    """Largest tile <= preferred that is a multiple of `align` and divides
    `dim`; falls back to the full dimension (always a legal block)."""
    if dim <= preferred:
        return dim
    t = (preferred // align) * align
    while t >= align:
        if dim % t == 0:
            return t
        t -= align
    # TODO(synk): fallback returns the full dimension; an awkward, very large M
    # could exceed the VMEM budget (robustness cliff, not hit by conv shapes).
    return dim


def _pick_matmul_tiles(M, Cout, K, *, allow_split_m=True):
    tm = _pick_tile(M, _TM_PREF, 16)        # 16: native bf16 sublane packing
    tn = _pick_tile(Cout, _TN_PREF, 128)
    tk = _pick_tile(K, _TK_PREF, 128)
    # v7x megacore: keep >=2 'parallel' grid tiles so the 2nd TensorCore works.
    if (M // tm) * (Cout // tn) < 2:
        if tn % 256 == 0:
            tn //= 2
        elif allow_split_m and tm % 32 == 0:
            tm //= 2
    return tm, tn, tk


def _lrelu(z):
    return jnp.where(z > 0, z, _LRELU_SLOPE * z)


# ----------------------------------------------------------------------------
# Kernel 1: tiled matmul, f32 accumulator, fused activation (no BN)
# ----------------------------------------------------------------------------
def _matmul_act_kernel(x_ref, w_ref, o_ref, acc_ref, *, act):
    @pl.when(pl.program_id(2) == 0)
    def _init():
        acc_ref[...] = jnp.zeros_like(acc_ref)

    acc_ref[...] += jnp.dot(x_ref[...], w_ref[...],
                            preferred_element_type=jnp.float32)

    @pl.when(pl.program_id(2) == pl.num_programs(2) - 1)
    def _finalize():
        y = acc_ref[...]
        if act == "lrelu":
            y = _lrelu(y)
        elif act == "sigmoid":
            y = jax.nn.sigmoid(y)
        o_ref[...] = y.astype(o_ref.dtype)


def matmul_act(x, w, *, act, out_dtype):
    M, K = x.shape
    K2, Cout = w.shape
    assert K == K2
    tm, tn, tk = _pick_matmul_tiles(M, Cout, K)
    grid = (M // tm, Cout // tn, K // tk)
    return pl.pallas_call(
        functools.partial(_matmul_act_kernel, act=act),
        out_shape=jax.ShapeDtypeStruct((M, Cout), out_dtype),
        grid_spec=pltpu.PrefetchScalarGridSpec(
            num_scalar_prefetch=0,
            grid=grid,
            in_specs=[
                pl.BlockSpec((tm, tk), lambda i, j, k: (i, k)),
                pl.BlockSpec((tk, tn), lambda i, j, k: (k, j)),
            ],
            out_specs=pl.BlockSpec((tm, tn), lambda i, j, k: (i, j)),
            scratch_shapes=[pltpu.VMEM((tm, tn), jnp.float32)],
        ),
        compiler_params=pltpu.CompilerParams(
            dimension_semantics=("parallel", "parallel", "arbitrary"),
            vmem_limit_bytes=_VMEM_LIMIT_BYTES),
    )(x, w)


# ----------------------------------------------------------------------------
# Kernel 2: matmul that also emits per-M-tile BN partial stats (sum, sumsq)
# ----------------------------------------------------------------------------
def _matmul_bn_stats_kernel(x_ref, w_ref, o_ref, stats_ref, acc_ref):
    @pl.when(pl.program_id(2) == 0)
    def _init():
        acc_ref[...] = jnp.zeros_like(acc_ref)

    acc_ref[...] += jnp.dot(x_ref[...], w_ref[...],
                            preferred_element_type=jnp.float32)

    @pl.when(pl.program_id(2) == pl.num_programs(2) - 1)
    def _finalize():
        y = acc_ref[...]
        o_ref[...] = y.astype(o_ref.dtype)                 # bf16 conv output
        s = jnp.sum(y, axis=0, keepdims=True)              # (1, tn) exact f32
        sq = jnp.sum(y * y, axis=0, keepdims=True)
        fill = jnp.zeros((6, s.shape[1]), jnp.float32)     # pad to 8 sublanes
        stats_ref[...] = jnp.concatenate([s, sq, fill], axis=0)[None]


def matmul_bn_stats(x, w, *, tm, tn, tk):
    M, K = x.shape
    _, Cout = w.shape
    n_mt = M // tm
    grid = (n_mt, Cout // tn, K // tk)
    return pl.pallas_call(
        _matmul_bn_stats_kernel,
        out_shape=(
            jax.ShapeDtypeStruct((M, Cout), jnp.bfloat16),
            jax.ShapeDtypeStruct((n_mt, 8, Cout), jnp.float32),
        ),
        grid_spec=pltpu.PrefetchScalarGridSpec(
            num_scalar_prefetch=0,
            grid=grid,
            in_specs=[
                pl.BlockSpec((tm, tk), lambda i, j, k: (i, k)),
                pl.BlockSpec((tk, tn), lambda i, j, k: (k, j)),
            ],
            out_specs=(
                pl.BlockSpec((tm, tn), lambda i, j, k: (i, j)),
                pl.BlockSpec((1, 8, tn), lambda i, j, k: (i, 0, j)),
            ),
            scratch_shapes=[pltpu.VMEM((tm, tn), jnp.float32)],
        ),
        compiler_params=pltpu.CompilerParams(
            dimension_semantics=("parallel", "parallel", "arbitrary"),
            vmem_limit_bytes=_VMEM_LIMIT_BYTES),
    )(x, w)


# ----------------------------------------------------------------------------
# Kernel 3: matmul with BN stats + normalize + LeakyReLU fully fused
#           (valid when the whole M dimension fits in one tile)
# ----------------------------------------------------------------------------
def _matmul_bn_fused_kernel(x_ref, w_ref, g_ref, b_ref, o_ref, acc_ref):
    @pl.when(pl.program_id(2) == 0)
    def _init():
        acc_ref[...] = jnp.zeros_like(acc_ref)

    acc_ref[...] += jnp.dot(x_ref[...], w_ref[...],
                            preferred_element_type=jnp.float32)

    @pl.when(pl.program_id(2) == pl.num_programs(2) - 1)
    def _finalize():
        y = acc_ref[...]
        mean = jnp.mean(y, axis=0, keepdims=True)
        var = jnp.maximum(jnp.mean(y * y, axis=0, keepdims=True) - mean * mean,
                          0.0)
        scale = g_ref[...] * jax.lax.rsqrt(var + _BN_EPS)
        shift = b_ref[...] - mean * scale
        o_ref[...] = _lrelu(y * scale + shift).astype(o_ref.dtype)


def matmul_bn_fused(x, w, gamma, beta, *, tn, tk):
    M, K = x.shape
    _, Cout = w.shape
    grid = (1, Cout // tn, K // tk)
    return pl.pallas_call(
        _matmul_bn_fused_kernel,
        out_shape=jax.ShapeDtypeStruct((M, Cout), jnp.bfloat16),
        grid_spec=pltpu.PrefetchScalarGridSpec(
            num_scalar_prefetch=0,
            grid=grid,
            in_specs=[
                pl.BlockSpec((M, tk), lambda i, j, k: (0, k)),
                pl.BlockSpec((tk, tn), lambda i, j, k: (k, j)),
                pl.BlockSpec((1, tn), lambda i, j, k: (0, j)),
                pl.BlockSpec((1, tn), lambda i, j, k: (0, j)),
            ],
            out_specs=pl.BlockSpec((M, tn), lambda i, j, k: (0, j)),
            scratch_shapes=[pltpu.VMEM((M, tn), jnp.float32)],
        ),
        compiler_params=pltpu.CompilerParams(
            dimension_semantics=("parallel", "parallel", "arbitrary"),
            vmem_limit_bytes=_VMEM_LIMIT_BYTES),
    )(x, w, gamma, beta)


# ----------------------------------------------------------------------------
# Kernel 4: lane-dense elementwise BN (folded scale/shift) + LeakyReLU(0.2)
# ----------------------------------------------------------------------------
def _bn_lrelu_kernel(y_ref, scale_ref, shift_ref, o_ref):
    y = y_ref[...].astype(jnp.float32)
    z = y * scale_ref[...] + shift_ref[...]
    o_ref[...] = _lrelu(z).astype(o_ref.dtype)


def bn_lrelu(y, scale, shift):
    M, Cout = y.shape
    tm = _pick_tile(M, 512, 16)
    tn = _pick_tile(Cout, 1024, 128)
    if (M // tm) * (Cout // tn) < 2:        # keep >=2 tiles for megacore
        if tm % 32 == 0:
            tm //= 2
        elif tn % 256 == 0:
            tn //= 2
    grid = (M // tm, Cout // tn)
    return pl.pallas_call(
        _bn_lrelu_kernel,
        out_shape=jax.ShapeDtypeStruct((M, Cout), jnp.bfloat16),
        grid_spec=pltpu.PrefetchScalarGridSpec(
            num_scalar_prefetch=0,
            grid=grid,
            in_specs=[
                pl.BlockSpec((tm, tn), lambda i, j: (i, j)),
                pl.BlockSpec((1, tn), lambda i, j: (0, j)),
                pl.BlockSpec((1, tn), lambda i, j: (0, j)),
            ],
            out_specs=pl.BlockSpec((tm, tn), lambda i, j: (i, j)),
        ),
        compiler_params=pltpu.CompilerParams(
            dimension_semantics=("parallel", "parallel"),
            vmem_limit_bytes=_VMEM_LIMIT_BYTES),
    )(y, scale, shift)


# ----------------------------------------------------------------------------
# conv + BatchNorm(batch stats) + LeakyReLU dispatcher
# ----------------------------------------------------------------------------
def conv_bn_lrelu(patches, w, gamma, beta):
    M, K = patches.shape
    _, Cout = w.shape
    tm = _pick_tile(M, _TM_PREF, 16)
    if tm == M:
        # Whole M in one tile: single fully-fused kernel, bf16 output,
        # no extra HBM passes and no separate kernel launch.
        _, tn, tk = _pick_matmul_tiles(M, Cout, K, allow_split_m=False)
        return matmul_bn_fused(patches, w, gamma, beta, tn=tn, tk=tk)

    tm, tn, tk = _pick_matmul_tiles(M, Cout, K)
    y, stats = matmul_bn_stats(patches, w, tm=tm, tn=tn, tk=tk)
    # Tiny [Mt, Cout] partials reduced in XLA (one pass; exact f32 sums).
    inv_m = 1.0 / float(M)
    mean = stats[:, 0, :].sum(axis=0) * inv_m
    msq = stats[:, 1, :].sum(axis=0) * inv_m
    var = jnp.maximum(msq - mean * mean, 0.0)           # keep in f32
    scale = gamma[0] * jax.lax.rsqrt(var + _BN_EPS)     # fold BN -> 1 mul
    shift = beta[0] - mean * scale                      #           + 1 add
    return bn_lrelu(y, scale[None, :], shift[None, :])


# ----------------------------------------------------------------------------
# Glue: im2col patch extraction (NHWC, bf16 in -> bf16 patches)
# ----------------------------------------------------------------------------
# TODO(synk): fold the k*k taps into the matmul's K grid axis (memory_space=
# pl.ANY + manual strided DMA of the padded NHWC input) so patches never
# materialize at ~k*k x size in HBM.
def im2col(x, ksize, stride, pad):
    N, H, W, C = x.shape
    if pad:
        x = jnp.pad(x, ((0, 0), (pad, pad), (pad, pad), (0, 0)))
    Hp, Wp = x.shape[1], x.shape[2]
    Ho = (Hp - ksize) // stride + 1
    Wo = (Wp - ksize) // stride + 1
    cols = []
    for kh in range(ksize):
        for kw in range(ksize):
            cols.append(
                x[:, kh:kh + stride * (Ho - 1) + 1:stride,
                     kw:kw + stride * (Wo - 1) + 1:stride, :])
    patches = jnp.stack(cols, axis=3)                    # [N, Ho, Wo, k*k, C]
    patches = patches.reshape(N * Ho * Wo, ksize * ksize * C)
    return patches, Ho, Wo


# ----------------------------------------------------------------------------
# Parameters: lane-dense, pre-laid-out bf16 matmul weights
# ----------------------------------------------------------------------------
# (ksize, stride, pad, use_bn, activation) per conv layer
_LAYER_CFGS = [
    (4, 2, 1, False, "lrelu"),
    (4, 2, 1, True,  "lrelu"),
    (4, 2, 1, True,  "lrelu"),
    (4, 2, 1, True,  "lrelu"),
    (4, 2, 1, True,  "lrelu"),
    (2, 1, 0, False, "sigmoid"),
]


def init_params(key, nc, ndf):
    torch_shapes = [
        (ndf,      2 * nc,   4, 4),
        (ndf * 2,  ndf,      4, 4),
        (ndf * 4,  ndf * 2,  4, 4),
        (ndf * 8,  ndf * 4,  4, 4),
        (ndf * 16, ndf * 8,  4, 4),
        (1,        ndf * 16, 2, 2),
    ]
    params = []
    prev_cout_pad = None
    for (cout, cin, kh, kw) in torch_shapes:
        key, sub = jax.random.split(key)
        w = jax.random.normal(sub, (cout, cin, kh, kw), jnp.float32) * 0.05
        kk = kh * kw
        # Lane-dense outputs: every layer's Cout padded to a multiple of 128
        # (padded channels stay exactly zero through BN/LeakyReLU); the next
        # layer's input-channel padding matches this layer's output padding.
        cout_pad = _pad_up(cout, 128)
        if prev_cout_pad is None:
            cin_pad = _pad_up(cin, 128 // math.gcd(kk, 128))  # lane-align K
        else:
            cin_pad = prev_cout_pad
        w = jnp.pad(w, ((0, cout_pad - cout), (0, cin_pad - cin), (0, 0), (0, 0)))
        # Pre-reshape to matmul layout [(kh,kw,cin) x cout] and cast bf16 once.
        w_mat = jnp.transpose(w, (2, 3, 1, 0)).reshape(kk * cin_pad, cout_pad)
        params.append({
            "w": w_mat.astype(jnp.bfloat16),
            "gamma": jnp.ones((1, cout_pad), jnp.float32),   # BN weight init
            "beta": jnp.zeros((1, cout_pad), jnp.float32),   # BN bias init
        })
        prev_cout_pad = cout_pad
    return params


# ----------------------------------------------------------------------------
# Discriminator forward
# ----------------------------------------------------------------------------
def discriminator_forward(params, inp, truth):
    # API boundary matches PyTorch: NCHW inputs, torch.cat along channels.
    x = jnp.concatenate([inp, truth], axis=1)
    x = jnp.transpose(x, (0, 2, 3, 1)).astype(jnp.bfloat16)   # NHWC, bf16
    N = x.shape[0]

    for p, (k, s, pad, use_bn, act) in zip(params, _LAYER_CFGS):
        kk = k * k
        K_w, cout_pad = p["w"].shape
        cin_pad = K_w // kk
        if x.shape[-1] < cin_pad:
            x = jnp.pad(x, ((0, 0), (0, 0), (0, 0), (0, cin_pad - x.shape[-1])))

        patches, Ho, Wo = im2col(x, k, s, pad)           # bf16 [M, K]

        if use_bn:
            y = conv_bn_lrelu(patches, p["w"], p["gamma"], p["beta"])
        else:
            out_dtype = jnp.float32 if act == "sigmoid" else jnp.bfloat16
            y = matmul_act(patches, p["w"], act=act, out_dtype=out_dtype)

        x = y.reshape(N, Ho, Wo, cout_pad)

    # Final layer: Ho = Wo = 1, real Cout = 1 (lane-padded to 128 in-kernel).
    out = x[:, :, :, :1]                                 # [N, 1, 1, 1]
    return jnp.transpose(out, (0, 3, 1, 2))              # NHWC -> NCHW


# ----------------------------------------------------------------------------
# Main
# ----------------------------------------------------------------------------
if __name__ == "__main__":
    # The 5 stride-2 convs + final 2x2 conv imply a 64x64 spatial input;
    # ndf scaled down from 512 -> 16 for a small, fast test.
    NC = 3
    NDF = 16
    BATCH = 2
    H = W = 64

    key = jax.random.PRNGKey(0)
    k_par, k_in, k_tr = jax.random.split(key, 3)

    params = init_params(k_par, NC, NDF)
    inp = jax.random.normal(k_in, (BATCH, NC, H, W), jnp.float32)
    truth = jax.random.normal(k_tr, (BATCH, NC, H, W), jnp.float32)

    fwd = jax.jit(discriminator_forward)
    out = jax.block_until_ready(fwd(params, inp, truth))

    assert out.shape == (BATCH, 1, 1, 1), out.shape
    assert bool(jnp.all((out >= 0.0) & (out <= 1.0)))    # sigmoid output range
    print("KERNEL_OK")
</pallas_src>

<mosaic_0001>
module attributes {stable_mosaic.version = 11 : i64} {
  func.func @_matmul_act_kernel(%arg0: i32, %arg1: i32, %arg2: i32, %arg3: memref<256x128xbf16, #tpu.memory_space<vmem>>, %arg4: memref<128x128xbf16, #tpu.memory_space<vmem>>, %arg5: memref<256x128xbf16, #tpu.memory_space<vmem>>, %arg6: memref<256x128xf32, #tpu.memory_space<vmem>>) attributes {dimension_semantics = [#tpu.dimension_semantics<parallel>, #tpu.dimension_semantics<parallel>, #tpu.dimension_semantics<arbitrary>], iteration_bounds = array<i64: 8, 1, 1>, scalar_prefetch = 0 : i64, scratch_operands = 1 : i64, tpu.core_type = #tpu.core_type<tc>, window_params = [{transform_indices = @transform_0, window_bounds = array<i64: 256, 128>}, {transform_indices = @transform_1, window_bounds = array<i64: 128, 128>}, {transform_indices = @transform_2, window_bounds = array<i64: 256, 128>}]} {
    %c0_i32 = arith.constant 0 : i32
    %0 = arith.cmpi eq, %arg2, %c0_i32 : i32
    %1 = arith.extui %0 : i1 to i32
    %c0_i32_0 = arith.constant 0 : i32
    %2 = arith.cmpi ne, %1, %c0_i32_0 : i32
    scf.if %2 {
      %cst_10 = arith.constant 0.000000e+00 : f32
      %12 = vector.broadcast %cst_10 : f32 to vector<256x128xf32>
      %c0_11 = arith.constant 0 : index
      %c0_12 = arith.constant 0 : index
      %13 = vector.load %arg6[%c0_11, %c0_12] : memref<256x128xf32, #tpu.memory_space<vmem>>, vector<256x128xf32>
      tpu.vector_store %arg6[%c0_11, %c0_12], %12 {strides = array<i32>} : memref<256x128xf32, #tpu.memory_space<vmem>>, vector<256x128xf32>,
    } else {
    }
    %c0 = arith.constant 0 : index
    %c0_1 = arith.constant 0 : index
    %3 = vector.load %arg6[%c0, %c0_1] : memref<256x128xf32, #tpu.memory_space<vmem>>, vector<256x128xf32>
    %c0_2 = arith.constant 0 : index
    %c0_3 = arith.constant 0 : index
    %4 = vector.load %arg3[%c0_2, %c0_3] : memref<256x128xbf16, #tpu.memory_space<vmem>>, vector<256x128xbf16>
    %c0_4 = arith.constant 0 : index
    %c0_5 = arith.constant 0 : index
    %5 = vector.load %arg4[%c0_4, %c0_5] : memref<128x128xbf16, #tpu.memory_space<vmem>>, vector<128x128xbf16>
    %cst = arith.constant dense<0.000000e+00> : vector<256x128xf32>
    %6 = tpu.matmul %4, %5, %cst {dimension_numbers = #tpu.dot_dimension_numbers<[1], [0], [0], [1], [0, 0, 1, 1], [], []>} : vector<256x128xbf16>, vector<128x128xbf16>, vector<256x128xf32> -> vector<256x128xf32>
    %7 = arith.addf %3, %6 : vector<256x128xf32>
    %c0_6 = arith.constant 0 : index
    %c0_7 = arith.constant 0 : index
    %8 = vector.load %arg6[%c0_6, %c0_7] : memref<256x128xf32, #tpu.memory_space<vmem>>, vector<256x128xf32>
    tpu.vector_store %arg6[%c0_6, %c0_7], %7 {strides = array<i32>} : memref<256x128xf32, #tpu.memory_space<vmem>>, vector<256x128xf32>,
    %c0_i32_8 = arith.constant 0 : i32
    %9 = arith.cmpi eq, %arg2, %c0_i32_8 : i32
    %10 = arith.extui %9 : i1 to i32
    %c0_i32_9 = arith.constant 0 : i32
    %11 = arith.cmpi ne, %10, %c0_i32_9 : i32
    scf.if %11 {
      %c0_10 = arith.constant 0 : index
      %c0_11 = arith.constant 0 : index
      %12 = vector.load %arg6[%c0_10, %c0_11] : memref<256x128xf32, #tpu.memory_space<vmem>>, vector<256x128xf32>
      %cst_12 = arith.constant 0.000000e+00 : f32
      %13 = vector.broadcast %cst_12 : f32 to vector<256x128xf32>
      %14 = arith.cmpf ogt, %12, %13 : vector<256x128xf32>
      %cst_13 = arith.constant 2.000000e-01 : f32
      %15 = vector.broadcast %cst_13 : f32 to vector<256x128xf32>
      %16 = arith.mulf %15, %12 : vector<256x128xf32>
      %17 = arith.select %14, %12, %16 : vector<256x128xi1>, vector<256x128xf32>
      %18 = arith.truncf %17 : vector<256x128xf32> to vector<256x128xbf16>
      %c0_14 = arith.constant 0 : index
      %c0_15 = arith.constant 0 : index
      %19 = vector.load %arg5[%c0_14, %c0_15] : memref<256x128xbf16, #tpu.memory_space<vmem>>, vector<256x128xbf16>
      tpu.vector_store %arg5[%c0_14, %c0_15], %18 {strides = array<i32>} : memref<256x128xbf16, #tpu.memory_space<vmem>>, vector<256x128xbf16>,
    } else {
    }
    return
  }
  func.func @transform_0(%arg0: i32, %arg1: i32, %arg2: i32) -> (i32, i32) {
    %c0_i32 = arith.constant 0 : i32
    return %arg0, %arg2 : i32, i32
  }
  func.func @transform_1(%arg0: i32, %arg1: i32, %arg2: i32) -> (i32, i32) {
    %c0_i32 = arith.constant 0 : i32
    return %arg2, %arg1 : i32, i32
  }
  func.func @transform_2(%arg0: i32, %arg1: i32, %arg2: i32) -> (i32, i32) {
    %c0_i32 = arith.constant 0 : i32
    return %arg0, %arg1 : i32, i32
  }
}

module attributes {stable_mosaic.version = 11 : i64} {
  func.func @_matmul_bn_stats_kernel(%arg0: i32, %arg1: i32, %arg2: i32, %arg3: memref<256x2048xbf16, #tpu.memory_space<vmem>>, %arg4: memref<2048x128xbf16, #tpu.memory_space<vmem>>, %arg5: memref<256x128xbf16, #tpu.memory_space<vmem>>, %arg6: memref<1x8x128xf32, #tpu.memory_space<vmem>>, %arg7: memref<256x128xf32, #tpu.memory_space<vmem>>) attributes {dimension_semantics = [#tpu.dimension_semantics<parallel>, #tpu.dimension_semantics<parallel>, #tpu.dimension_semantics<arbitrary>], iteration_bounds = array<i64: 2, 1, 1>, scalar_prefetch = 0 : i64, scratch_operands = 1 : i64, tpu.core_type = #tpu.core_type<tc>, window_params = [{transform_indices = @transform_0, window_bounds = array<i64: 256, 2048>}, {transform_indices = @transform_1, window_bounds = array<i64: 2048, 128>}, {transform_indices = @transform_2, window_bounds = array<i64: 256, 128>}, {transform_indices = @transform_3, window_bounds = array<i64: 1, 8, 128>}]} {
    %c0_i32 = arith.constant 0 : i32
    %0 = arith.cmpi eq, %arg2, %c0_i32 : i32
    %1 = arith.extui %0 : i1 to i32
    %c0_i32_0 = arith.constant 0 : i32
    %2 = arith.cmpi ne, %1, %c0_i32_0 : i32
    scf.if %2 {
      %cst_10 = arith.constant 0.000000e+00 : f32
      %12 = vector.broadcast %cst_10 : f32 to vector<256x128xf32>
      %c0_11 = arith.constant 0 : index
      %c0_12 = arith.constant 0 : index
      %13 = vector.load %arg7[%c0_11, %c0_12] : memref<256x128xf32, #tpu.memory_space<vmem>>, vector<256x128xf32>
      tpu.vector_store %arg7[%c0_11, %c0_12], %12 {strides = array<i32>} : memref<256x128xf32, #tpu.memory_space<vmem>>, vector<256x128xf32>,
    } else {
    }
    %c0 = arith.constant 0 : index
    %c0_1 = arith.constant 0 : index
    %3 = vector.load %arg7[%c0, %c0_1] : memref<256x128xf32, #tpu.memory_space<vmem>>, vector<256x128xf32>
    %c0_2 = arith.constant 0 : index
    %c0_3 = arith.constant 0 : index
    %4 = vector.load %arg3[%c0_2, %c0_3] : memref<256x2048xbf16, #tpu.memory_space<vmem>>, vector<256x2048xbf16>
    %c0_4 = arith.constant 0 : index
    %c0_5 = arith.constant 0 : index
    %5 = vector.load %arg4[%c0_4, %c0_5] : memref<2048x128xbf16, #tpu.memory_space<vmem>>, vector<2048x128xbf16>
    %cst = arith.constant dense<0.000000e+00> : vector<256x128xf32>
    %6 = tpu.matmul %4, %5, %cst {dimension_numbers = #tpu.dot_dimension_numbers<[1], [0], [0], [1], [0, 0, 1, 1], [], []>} : vector<256x2048xbf16>, vector<2048x128xbf16>, vector<256x128xf32> -> vector<256x128xf32>
    %7 = arith.addf %3, %6 : vector<256x128xf32>
    %c0_6 = arith.constant 0 : index
    %c0_7 = arith.constant 0 : index
    %8 = vector.load %arg7[%c0_6, %c0_7] : memref<256x128xf32, #tpu.memory_space<vmem>>, vector<256x128xf32>
    tpu.vector_store %arg7[%c0_6, %c0_7], %7 {strides = array<i32>} : memref<256x128xf32, #tpu.memory_space<vmem>>, vector<256x128xf32>,
    %c0_i32_8 = arith.constant 0 : i32
    %9 = arith.cmpi eq, %arg2, %c0_i32_8 : i32
    %10 = arith.extui %9 : i1 to i32
    %c0_i32_9 = arith.constant 0 : i32
    %11 = arith.cmpi ne, %10, %c0_i32_9 : i32
    scf.if %11 {
      %c0_10 = arith.constant 0 : index
      %c0_11 = arith.constant 0 : index
      %12 = vector.load %arg7[%c0_10, %c0_11] : memref<256x128xf32, #tpu.memory_space<vmem>>, vector<256x128xf32>
      %13 = arith.truncf %12 : vector<256x128xf32> to vector<256x128xbf16>
      %c0_12 = arith.constant 0 : index
      %c0_13 = arith.constant 0 : index
      %14 = vector.load %arg5[%c0_12, %c0_13] : memref<256x128xbf16, #tpu.memory_space<vmem>>, vector<256x128xbf16>
      tpu.vector_store %arg5[%c0_12, %c0_13], %13 {strides = array<i32>} : memref<256x128xbf16, #tpu.memory_space<vmem>>, vector<256x128xbf16>,
      %cst_14 = arith.constant dense<0.000000e+00> : vector<128xf32>
      %15 = vector.multi_reduction <add>, %12, %cst_14 [0] : vector<256x128xf32> to vector<128xf32>
      %16 = vector.shape_cast %15 : vector<128xf32> to vector<1x128xf32>
      %17 = arith.mulf %12, %12 : vector<256x128xf32>
      %cst_15 = arith.constant dense<0.000000e+00> : vector<128xf32>
      %18 = vector.multi_reduction <add>, %17, %cst_15 [0] : vector<256x128xf32> to vector<128xf32>
      %19 = vector.shape_cast %18 : vector<128xf32> to vector<1x128xf32>
      %cst_16 = arith.constant 0.000000e+00 : f32
      %20 = vector.broadcast %cst_16 : f32 to vector<6x128xf32>
      %21 = tpu.concatenate %16, %19, %20 in 0 : vector<1x128xf32>, vector<1x128xf32>, vector<6x128xf32> -> vector<8x128xf32>
      %22 = vector.shape_cast %21 : vector<8x128xf32> to vector<1x8x128xf32>
      %c0_17 = arith.constant 0 : index
      %c0_18 = arith.constant 0 : index
      %c0_19 = arith.constant 0 : index
      %23 = vector.load %arg6[%c0_17, %c0_18, %c0_19] : memref<1x8x128xf32, #tpu.memory_space<vmem>>, vector<1x8x128xf32>
      tpu.vector_store %arg6[%c0_17, %c0_18, %c0_19], %22 {strides = array<i32>} : memref<1x8x128xf32, #tpu.memory_space<vmem>>, vector<1x8x128xf32>,
    } else {
    }
    return
  }
  func.func @transform_0(%arg0: i32, %arg1: i32, %arg2: i32) -> (i32, i32) {
    %c0_i32 = arith.constant 0 : i32
    return %arg0, %arg2 : i32, i32
  }
  func.func @transform_1(%arg0: i32, %arg1: i32, %arg2: i32) -> (i32, i32) {
    %c0_i32 = arith.constant 0 : i32
    return %arg2, %arg1 : i32, i32
  }
  func.func @transform_2(%arg0: i32, %arg1: i32, %arg2: i32) -> (i32, i32) {
    %c0_i32 = arith.constant 0 : i32
    return %arg0, %arg1 : i32, i32
  }
  func.func @transform_3(%arg0: i32, %arg1: i32, %arg2: i32) -> (i32, i32, i32) {
    %c0_i32 = arith.constant 0 : i32
    %c0_i32_0 = arith.constant 0 : i32
    return %arg0, %c0_i32, %arg1 : i32, i32, i32
  }
}

module attributes {stable_mosaic.version = 11 : i64} {
  func.func @_bn_lrelu_kernel(%arg0: i32, %arg1: i32, %arg2: memref<256x128xbf16, #tpu.memory_space<vmem>>, %arg3: memref<1x128xf32, #tpu.memory_space<vmem>>, %arg4: memref<1x128xf32, #tpu.memory_space<vmem>>, %arg5: memref<256x128xbf16, #tpu.memory_space<vmem>>) attributes {dimension_semantics = [#tpu.dimension_semantics<parallel>, #tpu.dimension_semantics<parallel>], iteration_bounds = array<i64: 2, 1>, scalar_prefetch = 0 : i64, scratch_operands = 0 : i64, tpu.core_type = #tpu.core_type<tc>, window_params = [{transform_indices = @transform_0, window_bounds = array<i64: 256, 128>}, {transform_indices = @transform_1, window_bounds = array<i64: 1, 128>}, {transform_indices = @transform_2, window_bounds = array<i64: 1, 128>}, {transform_indices = @transform_3, window_bounds = array<i64: 256, 128>}]} {
    %c0 = arith.constant 0 : index
    %c0_0 = arith.constant 0 : index
    %0 = vector.load %arg2[%c0, %c0_0] : memref<256x128xbf16, #tpu.memory_space<vmem>>, vector<256x128xbf16>
    %1 = arith.extf %0 : vector<256x128xbf16> to vector<256x128xf32>
    %c0_1 = arith.constant 0 : index
    %c0_2 = arith.constant 0 : index
    %2 = vector.load %arg3[%c0_1, %c0_2] : memref<1x128xf32, #tpu.memory_space<vmem>>, vector<1x128xf32>
    %3 = vector.broadcast %2 : vector<1x128xf32> to vector<256x128xf32>
    %4 = arith.mulf %1, %3 : vector<256x128xf32>
    %c0_3 = arith.constant 0 : index
    %c0_4 = arith.constant 0 : index
    %5 = vector.load %arg4[%c0_3, %c0_4] : memref<1x128xf32, #tpu.memory_space<vmem>>, vector<1x128xf32>
    %6 = vector.broadcast %5 : vector<1x128xf32> to vector<256x128xf32>
    %7 = arith.addf %4, %6 : vector<256x128xf32>
    %cst = arith.constant 0.000000e+00 : f32
    %8 = vector.broadcast %cst : f32 to vector<256x128xf32>
    %9 = arith.cmpf ogt, %7, %8 : vector<256x128xf32>
    %cst_5 = arith.constant 2.000000e-01 : f32
    %10 = vector.broadcast %cst_5 : f32 to vector<256x128xf32>
    %11 = arith.mulf %10, %7 : vector<256x128xf32>
    %12 = arith.select %9, %7, %11 : vector<256x128xi1>, vector<256x128xf32>
    %13 = arith.truncf %12 : vector<256x128xf32> to vector<256x128xbf16>
    %c0_6 = arith.constant 0 : index
    %c0_7 = arith.constant 0 : index
    %14 = vector.load %arg5[%c0_6, %c0_7] : memref<256x128xbf16, #tpu.memory_space<vmem>>, vector<256x128xbf16>
    tpu.vector_store %arg5[%c0_6, %c0_7], %13 {strides = array<i32>} : memref<256x128xbf16, #tpu.memory_space<vmem>>, vector<256x128xbf16>,
    return
  }
  func.func @transform_0(%arg0: i32, %arg1: i32) -> (i32, i32) {
    %c0_i32 = arith.constant 0 : i32
    return %arg0, %arg1 : i32, i32
  }
  func.func @transform_1(%arg0: i32, %arg1: i32) -> (i32, i32) {
    %c0_i32 = arith.constant 0 : i32
    %c0_i32_0 = arith.constant 0 : i32
    return %c0_i32, %arg1 : i32, i32
  }
  func.func @transform_2(%arg0: i32, %arg1: i32) -> (i32, i32) {
    %c0_i32 = arith.constant 0 : i32
    %c0_i32_0 = arith.constant 0 : i32
    return %c0_i32, %arg1 : i32, i32
  }
  func.func @transform_3(%arg0: i32, %arg1: i32) -> (i32, i32) {
    %c0_i32 = arith.constant 0 : i32
    return %arg0, %arg1 : i32, i32
  }
}

module attributes {stable_mosaic.version = 11 : i64} {
  func.func @_matmul_bn_fused_kernel(%arg0: i32, %arg1: i32, %arg2: i32, %arg3: memref<128x2048xbf16, #tpu.memory_space<vmem>>, %arg4: memref<2048x128xbf16, #tpu.memory_space<vmem>>, %arg5: memref<1x128xf32, #tpu.memory_space<vmem>>, %arg6: memref<1x128xf32, #tpu.memory_space<vmem>>, %arg7: memref<128x128xbf16, #tpu.memory_space<vmem>>, %arg8: memref<128x128xf32, #tpu.memory_space<vmem>>) attributes {dimension_semantics = [#tpu.dimension_semantics<parallel>, #tpu.dimension_semantics<parallel>, #tpu.dimension_semantics<arbitrary>], iteration_bounds = array<i64: 1, 1, 1>, scalar_prefetch = 0 : i64, scratch_operands = 1 : i64, tpu.core_type = #tpu.core_type<tc>, window_params = [{transform_indices = @transform_0, window_bounds = array<i64: 128, 2048>}, {transform_indices = @transform_1, window_bounds = array<i64: 2048, 128>}, {transform_indices = @transform_2, window_bounds = array<i64: 1, 128>}, {transform_indices = @transform_3, window_bounds = array<i64: 1, 128>}, {transform_indices = @transform_4, window_bounds = array<i64: 128, 128>}]} {
    %c0_i32 = arith.constant 0 : i32
    %0 = arith.cmpi eq, %arg2, %c0_i32 : i32
    %1 = arith.extui %0 : i1 to i32
    %c0_i32_0 = arith.constant 0 : i32
    %2 = arith.cmpi ne, %1, %c0_i32_0 : i32
    scf.if %2 {
      %cst_10 = arith.constant 0.000000e+00 : f32
      %12 = vector.broadcast %cst_10 : f32 to vector<128x128xf32>
      %c0_11 = arith.constant 0 : index
      %c0_12 = arith.constant 0 : index
      %13 = vector.load %arg8[%c0_11, %c0_12] : memref<128x128xf32, #tpu.memory_space<vmem>>, vector<128x128xf32>
      tpu.vector_store %arg8[%c0_11, %c0_12], %12 {strides = array<i32>} : memref<128x128xf32, #tpu.memory_space<vmem>>, vector<128x128xf32>,
    } else {
    }
    %c0 = arith.constant 0 : index
    %c0_1 = arith.constant 0 : index
    %3 = vector.load %arg8[%c0, %c0_1] : memref<128x128xf32, #tpu.memory_space<vmem>>, vector<128x128xf32>
    %c0_2 = arith.constant 0 : index
    %c0_3 = arith.constant 0 : index
    %4 = vector.load %arg3[%c0_2, %c0_3] : memref<128x2048xbf16, #tpu.memory_space<vmem>>, vector<128x2048xbf16>
    %c0_4 = arith.constant 0 : index
    %c0_5 = arith.constant 0 : index
    %5 = vector.load %arg4[%c0_4, %c0_5] : memref<2048x128xbf16, #tpu.memory_space<vmem>>, vector<2048x128xbf16>
    %cst = arith.constant dense<0.000000e+00> : vector<128x128xf32>
    %6 = tpu.matmul %4, %5, %cst {dimension_numbers = #tpu.dot_dimension_numbers<[1], [0], [0], [1], [0, 0, 1, 1], [], []>} : vector<128x2048xbf16>, vector<2048x128xbf16>, vector<128x128xf32> -> vector<128x128xf32>
    %7 = arith.addf %3, %6 : vector<128x128xf32>
    %c0_6 = arith.constant 0 : index
    %c0_7 = arith.constant 0 : index
    %8 = vector.load %arg8[%c0_6, %c0_7] : memref<128x128xf32, #tpu.memory_space<vmem>>, vector<128x128xf32>
    tpu.vector_store %arg8[%c0_6, %c0_7], %7 {strides = array<i32>} : memref<128x128xf32, #tpu.memory_space<vmem>>, vector<128x128xf32>,
    %c0_i32_8 = arith.constant 0 : i32
    %9 = arith.cmpi eq, %arg2, %c0_i32_8 : i32
    %10 = arith.extui %9 : i1 to i32
    %c0_i32_9 = arith.constant 0 : i32
    %11 = arith.cmpi ne, %10, %c0_i32_9 : i32
    scf.if %11 {
      %c0_10 = arith.constant 0 : index
      %c0_11 = arith.constant 0 : index
      %12 = vector.load %arg8[%c0_10, %c0_11] : memref<128x128xf32, #tpu.memory_space<vmem>>, vector<128x128xf32>
      %cst_12 = arith.constant dense<0.000000e+00> : vector<128xf32>
      %13 = vector.multi_reduction <add>, %12, %cst_12 [0] : vector<128x128xf32> to vector<128xf32>
      %14 = vector.shape_cast %13 : vector<128xf32> to vector<1x128xf32>
      %cst_13 = arith.constant 1.280000e+02 : f32
      %15 = vector.broadcast %cst_13 : f32 to vector<1x128xf32>
      %16 = arith.divf %14, %15 : vector<1x128xf32>
      %17 = arith.mulf %12, %12 : vector<128x128xf32>
      %cst_14 = arith.constant dense<0.000000e+00> : vector<128xf32>
      %18 = vector.multi_reduction <add>, %17, %cst_14 [0] : vector<128x128xf32> to vector<128xf32>
      %19 = vector.shape_cast %18 : vector<128xf32> to vector<1x128xf32>
      %cst_15 = arith.constant 1.280000e+02 : f32
      %20 = vector.broadcast %cst_15 : f32 to vector<1x128xf32>
      %21 = arith.divf %19, %20 : vector<1x128xf32>
      %22 = arith.mulf %16, %16 : vector<1x128xf32>
      %23 = arith.subf %21, %22 : vector<1x128xf32>
      %cst_16 = arith.constant 0.000000e+00 : f32
      %24 = vector.broadcast %cst_16 : f32 to vector<1x128xf32>
      %25 = arith.maximumf %23, %24 : vector<1x128xf32>
      %c0_17 = arith.constant 0 : index
      %c0_18 = arith.constant 0 : index
      %26 = vector.load %arg5[%c0_17, %c0_18] : memref<1x128xf32, #tpu.memory_space<vmem>>, vector<1x128xf32>
      %cst_19 = arith.constant 9.99999974E-6 : f32
      %27 = vector.broadcast %cst_19 : f32 to vector<1x128xf32>
      %28 = arith.addf %25, %27 : vector<1x128xf32>
      %29 = math.rsqrt %28 : vector<1x128xf32>
      %30 = arith.mulf %26, %29 : vector<1x128xf32>
      %c0_20 = arith.constant 0 : index
      %c0_21 = arith.constant 0 : index
      %31 = vector.load %arg6[%c0_20, %c0_21] : memref<1x128xf32, #tpu.memory_space<vmem>>, vector<1x128xf32>
      %32 = arith.mulf %16, %30 : vector<1x128xf32>
      %33 = arith.subf %31, %32 : vector<1x128xf32>
      %34 = vector.broadcast %30 : vector<1x128xf32> to vector<128x128xf32>
      %35 = arith.mulf %12, %34 : vector<128x128xf32>
      %36 = vector.broadcast %33 : vector<1x128xf32> to vector<128x128xf32>
      %37 = arith.addf %35, %36 : vector<128x128xf32>
      %cst_22 = arith.constant 0.000000e+00 : f32
      %38 = vector.broadcast %cst_22 : f32 to vector<128x128xf32>
      %39 = arith.cmpf ogt, %37, %38 : vector<128x128xf32>
      %cst_23 = arith.constant 2.000000e-01 : f32
      %40 = vector.broadcast %cst_23 : f32 to vector<128x128xf32>
      %41 = arith.mulf %40, %37 : vector<128x128xf32>
      %42 = arith.select %39, %37, %41 : vector<128x128xi1>, vector<128x128xf32>
      %43 = arith.truncf %42 : vector<128x128xf32> to vector<128x128xbf16>
      %c0_24 = arith.constant 0 : index
      %c0_25 = arith.constant 0 : index
      %44 = vector.load %arg7[%c0_24, %c0_25] : memref<128x128xbf16, #tpu.memory_space<vmem>>, vector<128x128xbf16>
      tpu.vector_store %arg7[%c0_24, %c0_25], %43 {strides = array<i32>} : memref<128x128xbf16, #tpu.memory_space<vmem>>, vector<128x128xbf16>,
    } else {
    }
    return
  }
  func.func @transform_0(%arg0: i32, %arg1: i32, %arg2: i32) -> (i32, i32) {
    %c0_i32 = arith.constant 0 : i32
    %c0_i32_0 = arith.constant 0 : i32
    return %c0_i32, %arg2 : i32, i32
  }
  func.func @transform_1(%arg0: i32, %arg1: i32, %arg2: i32) -> (i32, i32) {
    %c0_i32 = arith.constant 0 : i32
    return %arg2, %arg1 : i32, i32
  }
  func.func @transform_2(%arg0: i32, %arg1: i32, %arg2: i32) -> (i32, i32) {
    %c0_i32 = arith.constant 0 : i32
    %c0_i32_0 = arith.constant 0 : i32
    return %c0_i32, %arg1 : i32, i32
  }
  func.func @transform_3(%arg0: i32, %arg1: i32, %arg2: i32) -> (i32, i32) {
    %c0_i32 = arith.constant 0 : i32
    %c0_i32_0 = arith.constant 0 : i32
    return %c0_i32, %arg1 : i32, i32
  }
  func.func @transform_4(%arg0: i32, %arg1: i32, %arg2: i32) -> (i32, i32) {
    %c0_i32 = arith.constant 0 : i32
    %c0_i32_0 = arith.constant 0 : i32
    return %c0_i32, %arg1 : i32, i32
  }
}

module attributes {stable_mosaic.version = 11 : i64} {
  func.func @_matmul_bn_fused_kernel(%arg0: i32, %arg1: i32, %arg2: i32, %arg3: memref<32x2048xbf16, #tpu.memory_space<vmem>>, %arg4: memref<2048x128xbf16, #tpu.memory_space<vmem>>, %arg5: memref<1x128xf32, #tpu.memory_space<vmem>>, %arg6: memref<1x128xf32, #tpu.memory_space<vmem>>, %arg7: memref<32x128xbf16, #tpu.memory_space<vmem>>, %arg8: memref<32x128xf32, #tpu.memory_space<vmem>>) attributes {dimension_semantics = [#tpu.dimension_semantics<parallel>, #tpu.dimension_semantics<parallel>, #tpu.dimension_semantics<arbitrary>], iteration_bounds = array<i64: 1, 1, 1>, scalar_prefetch = 0 : i64, scratch_operands = 1 : i64, tpu.core_type = #tpu.core_type<tc>, window_params = [{transform_indices = @transform_0, window_bounds = array<i64: 32, 2048>}, {transform_indices = @transform_1, window_bounds = array<i64: 2048, 128>}, {transform_indices = @transform_2, window_bounds = array<i64: 1, 128>}, {transform_indices = @transform_3, window_bounds = array<i64: 1, 128>}, {transform_indices = @transform_4, window_bounds = array<i64: 32, 128>}]} {
    %c0_i32 = arith.constant 0 : i32
    %0 = arith.cmpi eq, %arg2, %c0_i32 : i32
    %1 = arith.extui %0 : i1 to i32
    %c0_i32_0 = arith.constant 0 : i32
    %2 = arith.cmpi ne, %1, %c0_i32_0 : i32
    scf.if %2 {
      %cst_10 = arith.constant 0.000000e+00 : f32
      %12 = vector.broadcast %cst_10 : f32 to vector<32x128xf32>
      %c0_11 = arith.constant 0 : index
      %c0_12 = arith.constant 0 : index
      %13 = vector.load %arg8[%c0_11, %c0_12] : memref<32x128xf32, #tpu.memory_space<vmem>>, vector<32x128xf32>
      tpu.vector_store %arg8[%c0_11, %c0_12], %12 {strides = array<i32>} : memref<32x128xf32, #tpu.memory_space<vmem>>, vector<32x128xf32>,
    } else {
    }
    %c0 = arith.constant 0 : index
    %c0_1 = arith.constant 0 : index
    %3 = vector.load %arg8[%c0, %c0_1] : memref<32x128xf32, #tpu.memory_space<vmem>>, vector<32x128xf32>
    %c0_2 = arith.constant 0 : index
    %c0_3 = arith.constant 0 : index
    %4 = vector.load %arg3[%c0_2, %c0_3] : memref<32x2048xbf16, #tpu.memory_space<vmem>>, vector<32x2048xbf16>
    %c0_4 = arith.constant 0 : index
    %c0_5 = arith.constant 0 : index
    %5 = vector.load %arg4[%c0_4, %c0_5] : memref<2048x128xbf16, #tpu.memory_space<vmem>>, vector<2048x128xbf16>
    %cst = arith.constant dense<0.000000e+00> : vector<32x128xf32>
    %6 = tpu.matmul %4, %5, %cst {dimension_numbers = #tpu.dot_dimension_numbers<[1], [0], [0], [1], [0, 0, 1, 1], [], []>} : vector<32x2048xbf16>, vector<2048x128xbf16>, vector<32x128xf32> -> vector<32x128xf32>
    %7 = arith.addf %3, %6 : vector<32x128xf32>
    %c0_6 = arith.constant 0 : index
    %c0_7 = arith.constant 0 : index
    %8 = vector.load %arg8[%c0_6, %c0_7] : memref<32x128xf32, #tpu.memory_space<vmem>>, vector<32x128xf32>
    tpu.vector_store %arg8[%c0_6, %c0_7], %7 {strides = array<i32>} : memref<32x128xf32, #tpu.memory_space<vmem>>, vector<32x128xf32>,
    %c0_i32_8 = arith.constant 0 : i32
    %9 = arith.cmpi eq, %arg2, %c0_i32_8 : i32
    %10 = arith.extui %9 : i1 to i32
    %c0_i32_9 = arith.constant 0 : i32
    %11 = arith.cmpi ne, %10, %c0_i32_9 : i32
    scf.if %11 {
      %c0_10 = arith.constant 0 : index
      %c0_11 = arith.constant 0 : index
      %12 = vector.load %arg8[%c0_10, %c0_11] : memref<32x128xf32, #tpu.memory_space<vmem>>, vector<32x128xf32>
      %cst_12 = arith.constant dense<0.000000e+00> : vector<128xf32>
      %13 = vector.multi_reduction <add>, %12, %cst_12 [0] : vector<32x128xf32> to vector<128xf32>
      %14 = vector.shape_cast %13 : vector<128xf32> to vector<1x128xf32>
      %cst_13 = arith.constant 3.200000e+01 : f32
      %15 = vector.broadcast %cst_13 : f32 to vector<1x128xf32>
      %16 = arith.divf %14, %15 : vector<1x128xf32>
      %17 = arith.mulf %12, %12 : vector<32x128xf32>
      %cst_14 = arith.constant dense<0.000000e+00> : vector<128xf32>
      %18 = vector.multi_reduction <add>, %17, %cst_14 [0] : vector<32x128xf32> to vector<128xf32>
      %19 = vector.shape_cast %18 : vector<128xf32> to vector<1x128xf32>
      %cst_15 = arith.constant 3.200000e+01 : f32
      %20 = vector.broadcast %cst_15 : f32 to vector<1x128xf32>
      %21 = arith.divf %19, %20 : vector<1x128xf32>
      %22 = arith.mulf %16, %16 : vector<1x128xf32>
      %23 = arith.subf %21, %22 : vector<1x128xf32>
      %cst_16 = arith.constant 0.000000e+00 : f32
      %24 = vector.broadcast %cst_16 : f32 to vector<1x128xf32>
      %25 = arith.maximumf %23, %24 : vector<1x128xf32>
      %c0_17 = arith.constant 0 : index
      %c0_18 = arith.constant 0 : index
      %26 = vector.load %arg5[%c0_17, %c0_18] : memref<1x128xf32, #tpu.memory_space<vmem>>, vector<1x128xf32>
      %cst_19 = arith.constant 9.99999974E-6 : f32
      %27 = vector.broadcast %cst_19 : f32 to vector<1x128xf32>
      %28 = arith.addf %25, %27 : vector<1x128xf32>
      %29 = math.rsqrt %28 : vector<1x128xf32>
      %30 = arith.mulf %26, %29 : vector<1x128xf32>
      %c0_20 = arith.constant 0 : index
      %c0_21 = arith.constant 0 : index
      %31 = vector.load %arg6[%c0_20, %c0_21] : memref<1x128xf32, #tpu.memory_space<vmem>>, vector<1x128xf32>
      %32 = arith.mulf %16, %30 : vector<1x128xf32>
      %33 = arith.subf %31, %32 : vector<1x128xf32>
      %34 = vector.broadcast %30 : vector<1x128xf32> to vector<32x128xf32>
      %35 = arith.mulf %12, %34 : vector<32x128xf32>
      %36 = vector.broadcast %33 : vector<1x128xf32> to vector<32x128xf32>
      %37 = arith.addf %35, %36 : vector<32x128xf32>
      %cst_22 = arith.constant 0.000000e+00 : f32
      %38 = vector.broadcast %cst_22 : f32 to vector<32x128xf32>
      %39 = arith.cmpf ogt, %37, %38 : vector<32x128xf32>
      %cst_23 = arith.constant 2.000000e-01 : f32
      %40 = vector.broadcast %cst_23 : f32 to vector<32x128xf32>
      %41 = arith.mulf %40, %37 : vector<32x128xf32>
      %42 = arith.select %39, %37, %41 : vector<32x128xi1>, vector<32x128xf32>
      %43 = arith.truncf %42 : vector<32x128xf32> to vector<32x128xbf16>
      %c0_24 = arith.constant 0 : index
      %c0_25 = arith.constant 0 : index
      %44 = vector.load %arg7[%c0_24, %c0_25] : memref<32x128xbf16, #tpu.memory_space<vmem>>, vector<32x128xbf16>
      tpu.vector_store %arg7[%c0_24, %c0_25], %43 {strides = array<i32>} : memref<32x128xbf16, #tpu.memory_space<vmem>>, vector<32x128xbf16>,
    } else {
    }
    return
  }
  func.func @transform_0(%arg0: i32, %arg1: i32, %arg2: i32) -> (i32, i32) {
    %c0_i32 = arith.constant 0 : i32
    %c0_i32_0 = arith.constant 0 : i32
    return %c0_i32, %arg2 : i32, i32
  }
  func.func @transform_1(%arg0: i32, %arg1: i32, %arg2: i32) -> (i32, i32) {
    %c0_i32 = arith.constant 0 : i32
    return %arg2, %arg1 : i32, i32
  }
  func.func @transform_2(%arg0: i32, %arg1: i32, %arg2: i32) -> (i32, i32) {
    %c0_i32 = arith.constant 0 : i32
    %c0_i32_0 = arith.constant 0 : i32
    return %c0_i32, %arg1 : i32, i32
  }
  func.func @transform_3(%arg0: i32, %arg1: i32, %arg2: i32) -> (i32, i32) {
    %c0_i32 = arith.constant 0 : i32
    %c0_i32_0 = arith.constant 0 : i32
    return %c0_i32, %arg1 : i32, i32
  }
  func.func @transform_4(%arg0: i32, %arg1: i32, %arg2: i32) -> (i32, i32) {
    %c0_i32 = arith.constant 0 : i32
    %c0_i32_0 = arith.constant 0 : i32
    return %c0_i32, %arg1 : i32, i32
  }
}

module attributes {stable_mosaic.version = 11 : i64} {
  func.func @_matmul_bn_fused_kernel(%arg0: i32, %arg1: i32, %arg2: i32, %arg3: memref<8x2048xbf16, #tpu.memory_space<vmem>>, %arg4: memref<2048x128xbf16, #tpu.memory_space<vmem>>, %arg5: memref<1x128xf32, #tpu.memory_space<vmem>>, %arg6: memref<1x128xf32, #tpu.memory_space<vmem>>, %arg7: memref<8x128xbf16, #tpu.memory_space<vmem>>, %arg8: memref<8x128xf32, #tpu.memory_space<vmem>>) attributes {dimension_semantics = [#tpu.dimension_semantics<parallel>, #tpu.dimension_semantics<parallel>, #tpu.dimension_semantics<arbitrary>], iteration_bounds = array<i64: 1, 2, 1>, scalar_prefetch = 0 : i64, scratch_operands = 1 : i64, tpu.core_type = #tpu.core_type<tc>, window_params = [{transform_indices = @transform_0, window_bounds = array<i64: 8, 2048>}, {transform_indices = @transform_1, window_bounds = array<i64: 2048, 128>}, {transform_indices = @transform_2, window_bounds = array<i64: 1, 128>}, {transform_indices = @transform_3, window_bounds = array<i64: 1, 128>}, {transform_indices = @transform_4, window_bounds = array<i64: 8, 128>}]} {
    %c0_i32 = arith.constant 0 : i32
    %0 = arith.cmpi eq, %arg2, %c0_i32 : i32
    %1 = arith.extui %0 : i1 to i32
    %c0_i32_0 = arith.constant 0 : i32
    %2 = arith.cmpi ne, %1, %c0_i32_0 : i32
    scf.if %2 {
      %cst_10 = arith.constant 0.000000e+00 : f32
      %12 = vector.broadcast %cst_10 : f32 to vector<8x128xf32>
      %c0_11 = arith.constant 0 : index
      %c0_12 = arith.constant 0 : index
      %13 = vector.load %arg8[%c0_11, %c0_12] : memref<8x128xf32, #tpu.memory_space<vmem>>, vector<8x128xf32>
      tpu.vector_store %arg8[%c0_11, %c0_12], %12 {strides = array<i32>} : memref<8x128xf32, #tpu.memory_space<vmem>>, vector<8x128xf32>,
    } else {
    }
    %c0 = arith.constant 0 : index
    %c0_1 = arith.constant 0 : index
    %3 = vector.load %arg8[%c0, %c0_1] : memref<8x128xf32, #tpu.memory_space<vmem>>, vector<8x128xf32>
    %c0_2 = arith.constant 0 : index
    %c0_3 = arith.constant 0 : index
    %4 = vector.load %arg3[%c0_2, %c0_3] : memref<8x2048xbf16, #tpu.memory_space<vmem>>, vector<8x2048xbf16>
    %c0_4 = arith.constant 0 : index
    %c0_5 = arith.constant 0 : index
    %5 = vector.load %arg4[%c0_4, %c0_5] : memref<2048x128xbf16, #tpu.memory_space<vmem>>, vector<2048x128xbf16>
    %cst = arith.constant dense<0.000000e+00> : vector<8x128xf32>
    %6 = tpu.matmul %4, %5, %cst {dimension_numbers = #tpu.dot_dimension_numbers<[1], [0], [0], [1], [0, 0, 1, 1], [], []>} : vector<8x2048xbf16>, vector<2048x128xbf16>, vector<8x128xf32> -> vector<8x128xf32>
    %7 = arith.addf %3, %6 : vector<8x128xf32>
    %c0_6 = arith.constant 0 : index
    %c0_7 = arith.constant 0 : index
    %8 = vector.load %arg8[%c0_6, %c0_7] : memref<8x128xf32, #tpu.memory_space<vmem>>, vector<8x128xf32>
    tpu.vector_store %arg8[%c0_6, %c0_7], %7 {strides = array<i32>} : memref<8x128xf32, #tpu.memory_space<vmem>>, vector<8x128xf32>,
    %c0_i32_8 = arith.constant 0 : i32
    %9 = arith.cmpi eq, %arg2, %c0_i32_8 : i32
    %10 = arith.extui %9 : i1 to i32
    %c0_i32_9 = arith.constant 0 : i32
    %11 = arith.cmpi ne, %10, %c0_i32_9 : i32
    scf.if %11 {
      %c0_10 = arith.constant 0 : index
      %c0_11 = arith.constant 0 : index
      %12 = vector.load %arg8[%c0_10, %c0_11] : memref<8x128xf32, #tpu.memory_space<vmem>>, vector<8x128xf32>
      %cst_12 = arith.constant dense<0.000000e+00> : vector<128xf32>
      %13 = vector.multi_reduction <add>, %12, %cst_12 [0] : vector<8x128xf32> to vector<128xf32>
      %14 = vector.shape_cast %13 : vector<128xf32> to vector<1x128xf32>
      %cst_13 = arith.constant 8.000000e+00 : f32
      %15 = vector.broadcast %cst_13 : f32 to vector<1x128xf32>
      %16 = arith.divf %14, %15 : vector<1x128xf32>
      %17 = arith.mulf %12, %12 : vector<8x128xf32>
      %cst_14 = arith.constant dense<0.000000e+00> : vector<128xf32>
      %18 = vector.multi_reduction <add>, %17, %cst_14 [0] : vector<8x128xf32> to vector<128xf32>
      %19 = vector.shape_cast %18 : vector<128xf32> to vector<1x128xf32>
      %cst_15 = arith.constant 8.000000e+00 : f32
      %20 = vector.broadcast %cst_15 : f32 to vector<1x128xf32>
      %21 = arith.divf %19, %20 : vector<1x128xf32>
      %22 = arith.mulf %16, %16 : vector<1x128xf32>
      %23 = arith.subf %21, %22 : vector<1x128xf32>
      %cst_16 = arith.constant 0.000000e+00 : f32
      %24 = vector.broadcast %cst_16 : f32 to vector<1x128xf32>
      %25 = arith.maximumf %23, %24 : vector<1x128xf32>
      %c0_17 = arith.constant 0 : index
      %c0_18 = arith.constant 0 : index
      %26 = vector.load %arg5[%c0_17, %c0_18] : memref<1x128xf32, #tpu.memory_space<vmem>>, vector<1x128xf32>
      %cst_19 = arith.constant 9.99999974E-6 : f32
      %27 = vector.broadcast %cst_19 : f32 to vector<1x128xf32>
      %28 = arith.addf %25, %27 : vector<1x128xf32>
      %29 = math.rsqrt %28 : vector<1x128xf32>
      %30 = arith.mulf %26, %29 : vector<1x128xf32>
      %c0_20 = arith.constant 0 : index
      %c0_21 = arith.constant 0 : index
      %31 = vector.load %arg6[%c0_20, %c0_21] : memref<1x128xf32, #tpu.memory_space<vmem>>, vector<1x128xf32>
      %32 = arith.mulf %16, %30 : vector<1x128xf32>
      %33 = arith.subf %31, %32 : vector<1x128xf32>
      %34 = vector.broadcast %30 : vector<1x128xf32> to vector<8x128xf32>
      %35 = arith.mulf %12, %34 : vector<8x128xf32>
      %36 = vector.broadcast %33 : vector<1x128xf32> to vector<8x128xf32>
      %37 = arith.addf %35, %36 : vector<8x128xf32>
      %cst_22 = arith.constant 0.000000e+00 : f32
      %38 = vector.broadcast %cst_22 : f32 to vector<8x128xf32>
      %39 = arith.cmpf ogt, %37, %38 : vector<8x128xf32>
      %cst_23 = arith.constant 2.000000e-01 : f32
      %40 = vector.broadcast %cst_23 : f32 to vector<8x128xf32>
      %41 = arith.mulf %40, %37 : vector<8x128xf32>
      %42 = arith.select %39, %37, %41 : vector<8x128xi1>, vector<8x128xf32>
      %43 = arith.truncf %42 : vector<8x128xf32> to vector<8x128xbf16>
      %c0_24 = arith.constant 0 : index
      %c0_25 = arith.constant 0 : index
      %44 = vector.load %arg7[%c0_24, %c0_25] : memref<8x128xbf16, #tpu.memory_space<vmem>>, vector<8x128xbf16>
      tpu.vector_store %arg7[%c0_24, %c0_25], %43 {strides = array<i32>} : memref<8x128xbf16, #tpu.memory_space<vmem>>, vector<8x128xbf16>,
    } else {
    }
    return
  }
  func.func @transform_0(%arg0: i32, %arg1: i32, %arg2: i32) -> (i32, i32) {
    %c0_i32 = arith.constant 0 : i32
    %c0_i32_0 = arith.constant 0 : i32
    return %c0_i32, %arg2 : i32, i32
  }
  func.func @transform_1(%arg0: i32, %arg1: i32, %arg2: i32) -> (i32, i32) {
    %c0_i32 = arith.constant 0 : i32
    return %arg2, %arg1 : i32, i32
  }
  func.func @transform_2(%arg0: i32, %arg1: i32, %arg2: i32) -> (i32, i32) {
    %c0_i32 = arith.constant 0 : i32
    %c0_i32_0 = arith.constant 0 : i32
    return %c0_i32, %arg1 : i32, i32
  }
  func.func @transform_3(%arg0: i32, %arg1: i32, %arg2: i32) -> (i32, i32) {
    %c0_i32 = arith.constant 0 : i32
    %c0_i32_0 = arith.constant 0 : i32
    return %c0_i32, %arg1 : i32, i32
  }
  func.func @transform_4(%arg0: i32, %arg1: i32, %arg2: i32) -> (i32, i32) {
    %c0_i32 = arith.constant 0 : i32
    %c0_i32_0 = arith.constant 0 : i32
    return %c0_i32, %arg1 : i32, i32
  }
}

module attributes {stable_mosaic.version = 11 : i64} {
  func.func @_matmul_act_kernel(%arg0: i32, %arg1: i32, %arg2: i32, %arg3: memref<2x1024xbf16, #tpu.memory_space<vmem>>, %arg4: memref<1024x128xbf16, #tpu.memory_space<vmem>>, %arg5: memref<2x128xf32, #tpu.memory_space<vmem>>, %arg6: memref<2x128xf32, #tpu.memory_space<vmem>>) attributes {dimension_semantics = [#tpu.dimension_semantics<parallel>, #tpu.dimension_semantics<parallel>, #tpu.dimension_semantics<arbitrary>], iteration_bounds = array<i64: 1, 1, 1>, scalar_prefetch = 0 : i64, scratch_operands = 1 : i64, tpu.core_type = #tpu.core_type<tc>, window_params = [{transform_indices = @transform_0, window_bounds = array<i64: 2, 1024>}, {transform_indices = @transform_1, window_bounds = array<i64: 1024, 128>}, {transform_indices = @transform_2, window_bounds = array<i64: 2, 128>}]} {
    %c0_i32 = arith.constant 0 : i32
    %0 = arith.cmpi eq, %arg2, %c0_i32 : i32
    %1 = arith.extui %0 : i1 to i32
    %c0_i32_0 = arith.constant 0 : i32
    %2 = arith.cmpi ne, %1, %c0_i32_0 : i32
    scf.if %2 {
      %cst_10 = arith.constant 0.000000e+00 : f32
      %12 = vector.broadcast %cst_10 : f32 to vector<2x128xf32>
      %c0_11 = arith.constant 0 : index
      %c0_12 = arith.constant 0 : index
      %13 = vector.load %arg6[%c0_11, %c0_12] : memref<2x128xf32, #tpu.memory_space<vmem>>, vector<2x128xf32>
      tpu.vector_store %arg6[%c0_11, %c0_12], %12 {strides = array<i32>} : memref<2x128xf32, #tpu.memory_space<vmem>>, vector<2x128xf32>,
    } else {
    }
    %c0 = arith.constant 0 : index
    %c0_1 = arith.constant 0 : index
    %3 = vector.load %arg6[%c0, %c0_1] : memref<2x128xf32, #tpu.memory_space<vmem>>, vector<2x128xf32>
    %c0_2 = arith.constant 0 : index
    %c0_3 = arith.constant 0 : index
    %4 = vector.load %arg3[%c0_2, %c0_3] : memref<2x1024xbf16, #tpu.memory_space<vmem>>, vector<2x1024xbf16>
    %c0_4 = arith.constant 0 : index
    %c0_5 = arith.constant 0 : index
    %5 = vector.load %arg4[%c0_4, %c0_5] : memref<1024x128xbf16, #tpu.memory_space<vmem>>, vector<1024x128xbf16>
    %cst = arith.constant dense<0.000000e+00> : vector<2x128xf32>
    %6 = tpu.matmul %4, %5, %cst {dimension_numbers = #tpu.dot_dimension_numbers<[1], [0], [0], [1], [0, 0, 1, 1], [], []>} : vector<2x1024xbf16>, vector<1024x128xbf16>, vector<2x128xf32> -> vector<2x128xf32>
    %7 = arith.addf %3, %6 : vector<2x128xf32>
    %c0_6 = arith.constant 0 : index
    %c0_7 = arith.constant 0 : index
    %8 = vector.load %arg6[%c0_6, %c0_7] : memref<2x128xf32, #tpu.memory_space<vmem>>, vector<2x128xf32>
    tpu.vector_store %arg6[%c0_6, %c0_7], %7 {strides = array<i32>} : memref<2x128xf32, #tpu.memory_space<vmem>>, vector<2x128xf32>,
    %c0_i32_8 = arith.constant 0 : i32
    %9 = arith.cmpi eq, %arg2, %c0_i32_8 : i32
    %10 = arith.extui %9 : i1 to i32
    %c0_i32_9 = arith.constant 0 : i32
    %11 = arith.cmpi ne, %10, %c0_i32_9 : i32
    scf.if %11 {
      %c0_10 = arith.constant 0 : index
      %c0_11 = arith.constant 0 : index
      %12 = vector.load %arg6[%c0_10, %c0_11] : memref<2x128xf32, #tpu.memory_space<vmem>>, vector<2x128xf32>
      %13 = arith.negf %12 : vector<2x128xf32>
      %14 = math.exp %13 : vector<2x128xf32>
      %cst_12 = arith.constant 1.000000e+00 : f32
      %15 = vector.broadcast %cst_12 : f32 to vector<2x128xf32>
      %16 = arith.addf %15, %14 : vector<2x128xf32>
      %17 = arith.divf %15, %16 : vector<2x128xf32>
      %c0_13 = arith.constant 0 : index
      %c0_14 = arith.constant 0 : index
      %18 = vector.load %arg5[%c0_13, %c0_14] : memref<2x128xf32, #tpu.memory_space<vmem>>, vector<2x128xf32>
      tpu.vector_store %arg5[%c0_13, %c0_14], %17 {strides = array<i32>} : memref<2x128xf32, #tpu.memory_space<vmem>>, vector<2x128xf32>,
    } else {
    }
    return
  }
  func.func @transform_0(%arg0: i32, %arg1: i32, %arg2: i32) -> (i32, i32) {
    %c0_i32 = arith.constant 0 : i32
    return %arg0, %arg2 : i32, i32
  }
  func.func @transform_1(%arg0: i32, %arg1: i32, %arg2: i32) -> (i32, i32) {
    %c0_i32 = arith.constant 0 : i32
    return %arg2, %arg1 : i32, i32
  }
  func.func @transform_2(%arg0: i32, %arg1: i32, %arg2: i32) -> (i32, i32) {
    %c0_i32 = arith.constant 0 : i32
    return %arg0, %arg1 : i32, i32
  }
}

</mosaic_0001>

<bundles_post_ra>
// kernel: discriminator_forward.7
= control target key start
LH: loop header
LB: loop body
LE: loop exit
PB: predicated region body
PF: predicated region fallthrough
CT: control target
= control target key end

     0   :  { %s1464_s9 = smov 0   ;;  %s1466_s10 = smov 0   ;;  %s1569_s0 = inlined_call_operand.vmem [shape: bf16[2048,128], index: 0, kind: input, shape index: {}]   ;;  %s1570_s1 = inlined_call_operand.vmem [shape: bf16[128,128], index: 1, kind: input, shape index: {}]   ;;  %s1571_s2 = inlined_call_operand.vmem [shape: bf16[2048,128], index: 2, kind: output, shape index: {}]  }
   0x1   :  { %s1468_s11 = smov 0  }
   0x2 LB: > { %s31_s12 = sadd.s32 1, %s1443_s10  ;;  %p1099_p0 = scmp.ge.s32.totalorder %s1447_s11, 1  ;;  %s1447_s11 = sphi %s1468_s11, %s12_s11   ;;  %s1443_s10 = sphi %s1466_s10, %s1573_s10   ;;  %s1439_s9 = sphi %s1464_s9, %s1572_s9  }
   0x3   : > { %p33_p1 = scmp.ge.s32.totalorder %s31_s12, 8  ;;  %p155_p2 = scmp.lt.s32.totalorder %s1447_s11, 9 }
   0x5   : > { %s1575_s12 = smov (%p33_p1, %s31_s12), 0  ;;  %p156_p3 = pnand %p1099_p0, %p155_p2 }
   0x6   : > { %s1100_s15 = sshll.u32 (!%p156_p3), %s1439_s9, 5 }
   0x7   : > { %159 = sbr.rel (%p156_p3) target bundleno = 275 (0x113), region = 28  ;;  %p192_p4 = scmp.lt.s32.totalorder (!%p156_p3), %s1100_s15, 255 }
   0xc   : > { %v1401_v0 = vld [vmem:[%s1570_s1 + $0x38] sm:$0xff]   ;;  %v1402_v1 = vld [vmem:[%s1570_s1 + $0x30] sm:$0xff]   ;;  %s1577_s15 = smov (!%p192_p4, %s1100_s15), 255  ;;  %v1403_v2 = vld [vmem:[%s1570_s1 + $0x28] sm:$0xff]  }
   0xd   : > { %1313 = vmatprep.subr.bf16.mxu0 %v1401_v0  ;;  %1361 = vmatprep.subr.bf16.mxu1 %v1401_v0  ;;  %s1101_s20 = sshll.u32 %s1577_s15, 2  ;;  %v1404_v3 = vld [vmem:[%s1570_s1 + $0x20] sm:$0xff]   ;;  %v1405_v6 = vld [vmem:[%s1570_s1 + $0x18] sm:$0xff]   ;;  %v1406_v7 = vld [vmem:[%s1570_s1 + $0x10] sm:$0xff]  }
   0xe   : > { %1314 = vmatpush3.bf16.msra.mxu0 %v1401_v0  ;;  %1369 = vmatpush3.bf16.msra.mxu1 %v1401_v0  ;;  %s1499_s23 = scalar_lea.vmem %s1569_s0, %s1101_s20  ;;  %v1407_v8 = vld [vmem:[%s1570_s1 + $0x8] sm:$0xff]   ;;  %v1408_v9 = vld [vmem:[%s1570_s1] sm:$0xff]   ;;  %s1537_s8 = scalar_lea.vmem %s1571_s2, %s1101_s20 }
   0xf   : > { %1315 = vmatprep.subr.bf16.mxu0 %v1402_v1  ;;  %1362 = vmatprep.subr.bf16.mxu1 %v1402_v1  ;;  %v1409_v4 = vld [vmem:[%s1499_s23] sm:$0xff]   ;;  %v1411_v10 = vld [vmem:[%s1499_s23 + $0x8] sm:$0xff]   ;;  %v1413_v12 = vld [vmem:[%s1499_s23 + $0x10] sm:$0xff]  }
  0x10   : > { %v1410_v5 = vld [vmem:[%s1499_s23 + $0x40] sm:$0xff]   ;;  %1329 = vmatprep.mubr.bf16.mxu0 %v1409_v4  ;;  %v1412_v11 = vld [vmem:[%s1499_s23 + $0x48] sm:$0xff]   ;;  %v1414_v13 = vld [vmem:[%s1499_s23 + $0x50] sm:$0xff]  }
  0x11   : > { %1345 = vmatprep.mubr.bf16.mxu1 %v1410_v5  ;;  %v1415_v14 = vld [vmem:[%s1499_s23 + $0x18] sm:$0xff]   ;;  %v1417_v16 = vld [vmem:[%s1499_s23 + $0x20] sm:$0xff]   ;;  %v1419_v18 = vld [vmem:[%s1499_s23 + $0x28] sm:$0xff]  }
  0x12   : > { %1316 = vmatpush3.bf16.msra.mxu0 %v1402_v1  ;;  %1370 = vmatpush3.bf16.msra.mxu1 %v1402_v1  ;;  %v1416_v15 = vld [vmem:[%s1499_s23 + $0x58] sm:$0xff]   ;;  %v1418_v17 = vld [vmem:[%s1499_s23 + $0x60] sm:$0xff]   ;;  %v1420_v19 = vld [vmem:[%s1499_s23 + $0x68] sm:$0xff]  }
  0x13   : > { %1317 = vmatprep.subr.bf16.mxu0 %v1403_v2  ;;  %1363 = vmatprep.subr.bf16.mxu1 %v1403_v2  ;;  %v1421_v20 = vld [vmem:[%s1499_s23 + $0x30] sm:$0xff]   ;;  %v1423_v22 = vld [vmem:[%s1499_s23 + $0x38] sm:$0xff]  }
  0x14   : > { %v1422_v21 = vld [vmem:[%s1499_s23 + $0x70] sm:$0xff]   ;;  %v1424_v23 = vld [vmem:[%s1499_s23 + $0x78] sm:$0xff]  }
  0x16   : > { %1318 = vmatpush3.bf16.msra.mxu0 %v1403_v2  ;;  %1371 = vmatpush3.bf16.msra.mxu1 %v1403_v2 }
  0x17   : > { %1319 = vmatprep.subr.bf16.mxu0 %v1404_v3  ;;  %1364 = vmatprep.subr.bf16.mxu1 %v1404_v3 }
  0x1a   : > { %1320 = vmatpush3.bf16.msra.mxu0 %v1404_v3  ;;  %1372 = vmatpush3.bf16.msra.mxu1 %v1404_v3 }
  0x1b   : > { %1321 = vmatprep.subr.bf16.mxu0 %v1405_v6  ;;  %1365 = vmatprep.subr.bf16.mxu1 %v1405_v6 }
  0x1e   : > { %1322 = vmatpush3.bf16.msra.mxu0 %v1405_v6  ;;  %1373 = vmatpush3.bf16.msra.mxu1 %v1405_v6 }
  0x1f   : > { %1323 = vmatprep.subr.bf16.mxu0 %v1406_v7  ;;  %1366 = vmatprep.subr.bf16.mxu1 %v1406_v7 }
  0x22   : > { %1324 = vmatpush3.bf16.msra.mxu0 %v1406_v7  ;;  %1374 = vmatpush3.bf16.msra.mxu1 %v1406_v7 }
  0x23   : > { %1325 = vmatprep.subr.bf16.mxu0 %v1407_v8  ;;  %1367 = vmatprep.subr.bf16.mxu1 %v1407_v8 }
  0x26   : > { %1326 = vmatpush3.bf16.msra.mxu0 %v1407_v8  ;;  %1375 = vmatpush3.bf16.msra.mxu1 %v1407_v8 }
  0x27   : > { %1327 = vmatprep.subr.bf16.mxu0 %v1408_v9  ;;  %1368 = vmatprep.subr.bf16.mxu1 %v1408_v9 }
  0x2a   : > { %1328 = vmatpush3.bf16.msra.mxu0 %v1408_v9  ;;  %1376 = vmatpush3.bf16.msra.mxu1 %v1408_v9 }
  0x2d   : > { %1330 = vmatmul.mubr.bf16.vlgmr.msra.gmra.mxu0 %v1411_v10  ;;  %1346 = vmatmul.mubr.bf16.vlgmr.msra.gmra.mxu1 %v1412_v11 }
  0x2e   : > { %1333 = vmatprep.mubr.bf16.mxu0 %v1413_v12  ;;  %1349 = vmatprep.mubr.bf16.mxu1 %v1414_v13 }
  0x35   : > { %1334 = vmatmul.mubr.bf16.gmra.mxu0 %v1415_v14  ;;  %1350 = vmatmul.mubr.bf16.gmra.mxu1 %v1416_v15 }
  0x36   : > { %1337 = vmatprep.mubr.bf16.mxu0 %v1417_v16  ;;  %1353 = vmatprep.mubr.bf16.mxu1 %v1418_v17 }
  0x3d   : > { %1338 = vmatmul.mubr.bf16.gmra.mxu0 %v1419_v18  ;;  %1354 = vmatmul.mubr.bf16.gmra.mxu1 %v1420_v19 }
  0x3e   : > { %1341 = vmatprep.mubr.bf16.mxu0 %v1421_v20  ;;  %1357 = vmatprep.mubr.bf16.mxu1 %v1422_v21 }
  0x45   : > { %1342 = vmatmul.mubr.bf16.gmra.mxu0 %v1423_v22  ;;  %1358 = vmatmul.mubr.bf16.gmra.mxu1 %v1424_v23 }
  0xed   : > { %v1331_v24 = vpop.f32.mrf.mxu0  ;;  %v1347_v25 = vpop.f32.mrf.mxu1 }
  0xee   : > { %vm741_vm0 = vcmp.gt.f32.partialorder %v1331_v24, 0.0  ;;  %v773_v26 = vmul.f32 0.2, %v1331_v24  ;;  %v789_v27 = vmul.f32 0.2, %v1347_v25  ;;  %vm757_vm1 = vcmp.gt.f32.partialorder %v1347_v25, 0.0 }
  0xef   : > { %v513_v28 = vpop.f32.mrf.mxu0  ;;  %v577_v29 = vpop.f32.mrf.mxu1 }
  0xf0   : > { %v805_v30 = vsel %vm741_vm0, %v1331_v24, %v773_v26  ;;  %v771_v31 = vmul.f32 0.2, %v513_v28  ;;  %vm739_vm2 = vcmp.gt.f32.partialorder %v513_v28, 0.0  ;;  %v821_v35 = vsel %vm757_vm1, %v1347_v25, %v789_v27 }
  0xf1   : > { %v1332_v32 = vpop.f32.mrf.mxu0  ;;  %v1348_v33 = vpop.f32.mrf.mxu1  ;;  %vm755_vm5 = vcmp.gt.f32.partialorder %v577_v29, 0.0  ;;  %v787_v36 = vmul.f32 0.2, %v577_v29 }
  0xf2   : > { %vm742_vm3 = vcmp.gt.f32.partialorder %v1332_v32, 0.0  ;;  %v774_v34 = vmul.f32 0.2, %v1332_v32  ;;  %vm758_vm4 = vcmp.gt.f32.partialorder %v1348_v33, 0.0  ;;  %v790_v37 = vmul.f32 0.2, %v1348_v33 }
  0xf3   : > { %v516_v38 = vpop.f32.mrf.mxu0  ;;  %v580_v39 = vpop.f32.mrf.mxu1  ;;  %v803_v42 = vsel %vm739_vm2, %v513_v28, %v771_v31  ;;  %v819_v51 = vsel %vm755_vm5, %v577_v29, %v787_v36 }
  0xf4   : > { %v806_v40 = vsel %vm742_vm3, %v1332_v32, %v774_v34  ;;  %vm740_vm6 = vcmp.gt.f32.partialorder %v516_v38, 0.0  ;;  %v772_v41 = vmul.f32 0.2, %v516_v38  ;;  %vm756_vm7 = vcmp.gt.f32.partialorder %v580_v39, 0.0 }
  0xf5   : > { %v1202_v43 = vpack.c.bf16 %v806_v40, %v805_v30  ;;  %v822_v44 = vsel %vm758_vm4, %v1348_v33, %v790_v37  ;;  %v788_v45 = vmul.f32 0.2, %v580_v39  ;;  %v1335_v46 = vpop.f32.mrf.mxu0  ;;  %v1351_v47 = vpop.f32.mrf.mxu1 }
  0xf6   : > { %v1242_v48 = vpack.c.bf16 %v822_v44, %v821_v35  ;;  %v804_v49 = vsel %vm740_vm6, %v516_v38, %v772_v41  ;;  %vm745_vm8 = vcmp.gt.f32.partialorder %v1335_v46, 0.0  ;;  %v777_v50 = vmul.f32 0.2, %v1335_v46 }
  0xf7   : > { %1274 = vst [vmem:[%s1537_s8 + $0x8] sm:$0xff] %v1202_v43   ;;  %v1197_v52 = vpack.c.bf16 %v804_v49, %v803_v42  ;;  %v820_v53 = vsel %vm756_vm7, %v580_v39, %v788_v45  ;;  %v793_v54 = vmul.f32 0.2, %v1351_v47  ;;  %v529_v55 = vpop.f32.mrf.mxu0  ;;  %v593_v56 = vpop.f32.mrf.mxu1  ;;  %vm761_vm9 = vcmp.gt.f32.partialorder %v1351_v47, 0.0 }
  0xf8   : > { %1282 = vst [vmem:[%s1537_s8 + $0x48] sm:$0xff] %v1242_v48   ;;  %v1237_v57 = vpack.c.bf16 %v820_v53, %v819_v51  ;;  %v809_v58 = vsel %vm745_vm8, %v1335_v46, %v777_v50  ;;  %v775_v59 = vmul.f32 0.2, %v529_v55  ;;  %vm743_vm10 = vcmp.gt.f32.partialorder %v529_v55, 0.0 }
  0xf9   : > { %1198 = vst [vmem:[%s1537_s8] sm:$0xff] %v1197_v52   ;;  %v1336_v60 = vpop.f32.mrf.mxu0  ;;  %v1352_v61 = vpop.f32.mrf.mxu1  ;;  %v825_v63 = vsel %vm761_vm9, %v1351_v47, %v793_v54  ;;  %vm759_vm13 = vcmp.gt.f32.partialorder %v593_v56, 0.0  ;;  %v791_v0 = vmul.f32 0.2, %v593_v56 }
  0xfa   : > { %1281 = vst [vmem:[%s1537_s8 + $0x40] sm:$0xff] %v1237_v57   ;;  %vm746_vm11 = vcmp.gt.f32.partialorder %v1336_v60, 0.0  ;;  %v778_v62 = vmul.f32 0.2, %v1336_v60  ;;  %vm762_vm12 = vcmp.gt.f32.partialorder %v1352_v61, 0.0  ;;  %v807_v6 = vsel %vm743_vm10, %v529_v55, %v775_v59 }
  0xfb   : > { %v794_v1 = vmul.f32 0.2, %v1352_v61  ;;  %v532_v2 = vpop.f32.mrf.mxu0  ;;  %v596_v3 = vpop.f32.mrf.mxu1  ;;  %v823_v15 = vsel %vm759_vm13, %v593_v56, %v791_v0 }
  0xfc   : > { %v810_v4 = vsel %vm746_vm11, %v1336_v60, %v778_v62  ;;  %vm744_vm14 = vcmp.gt.f32.partialorder %v532_v2, 0.0  ;;  %v776_v5 = vmul.f32 0.2, %v532_v2  ;;  %vm760_vm15 = vcmp.gt.f32.partialorder %v596_v3, 0.0 }
  0xfd   : > { %v1212_v7 = vpack.c.bf16 %v810_v4, %v809_v58  ;;  %v826_v8 = vsel %vm762_vm12, %v1352_v61, %v794_v1  ;;  %v792_v9 = vmul.f32 0.2, %v596_v3  ;;  %v1339_v10 = vpop.f32.mrf.mxu0  ;;  %v1355_v11 = vpop.f32.mrf.mxu1 }
  0xfe   : > { %v1252_v12 = vpack.c.bf16 %v826_v8, %v825_v63  ;;  %v808_v13 = vsel %vm744_vm14, %v532_v2, %v776_v5  ;;  %vm749_vm0 = vcmp.gt.f32.partialorder %v1339_v10, 0.0  ;;  %v781_v14 = vmul.f32 0.2, %v1339_v10 }
  0xff   : > { %1276 = vst [vmem:[%s1537_s8 + $0x18] sm:$0xff] %v1212_v7   ;;  %v1207_v16 = vpack.c.bf16 %v808_v13, %v807_v6  ;;  %v824_v17 = vsel %vm760_vm15, %v596_v3, %v792_v9  ;;  %v797_v18 = vmul.f32 0.2, %v1355_v11  ;;  %v545_v19 = vpop.f32.mrf.mxu0  ;;  %v609_v20 = vpop.f32.mrf.mxu1  ;;  %vm765_vm1 = vcmp.gt.f32.partialorder %v1355_v11, 0.0 }
 0x100   : > { %1284 = vst [vmem:[%s1537_s8 + $0x58] sm:$0xff] %v1252_v12   ;;  %v1247_v21 = vpack.c.bf16 %v824_v17, %v823_v15  ;;  %v813_v22 = vsel %vm749_vm0, %v1339_v10, %v781_v14  ;;  %v779_v23 = vmul.f32 0.2, %v545_v19  ;;  %vm747_vm2 = vcmp.gt.f32.partialorder %v545_v19, 0.0 }
 0x101   : > { %1275 = vst [vmem:[%s1537_s8 + $0x10] sm:$0xff] %v1207_v16   ;;  %v1340_v24 = vpop.f32.mrf.mxu0  ;;  %v1356_v25 = vpop.f32.mrf.mxu1  ;;  %v829_v27 = vsel %vm765_vm1, %v1355_v11, %v797_v18  ;;  %vm763_vm5 = vcmp.gt.f32.partialorder %v609_v20, 0.0  ;;  %v795_v28 = vmul.f32 0.2, %v609_v20 }
 0x102   : > { %1283 = vst [vmem:[%s1537_s8 + $0x50] sm:$0xff] %v1247_v21   ;;  %vm750_vm3 = vcmp.gt.f32.partialorder %v1340_v24, 0.0  ;;  %v782_v26 = vmul.f32 0.2, %v1340_v24  ;;  %vm766_vm4 = vcmp.gt.f32.partialorder %v1356_v25, 0.0  ;;  %v811_v34 = vsel %vm747_vm2, %v545_v19, %v779_v23 }
 0x103   : > { %v798_v29 = vmul.f32 0.2, %v1356_v25  ;;  %v548_v30 = vpop.f32.mrf.mxu0  ;;  %v612_v31 = vpop.f32.mrf.mxu1  ;;  %v827_v43 = vsel %vm763_vm5, %v609_v20, %v795_v28 }
 0x104   : > { %v814_v32 = vsel %vm750_vm3, %v1340_v24, %v782_v26  ;;  %vm748_vm6 = vcmp.gt.f32.partialorder %v548_v30, 0.0  ;;  %v780_v33 = vmul.f32 0.2, %v548_v30  ;;  %vm764_vm7 = vcmp.gt.f32.partialorder %v612_v31, 0.0 }
 0x105   : > { %v1222_v35 = vpack.c.bf16 %v814_v32, %v813_v22  ;;  %v830_v36 = vsel %vm766_vm4, %v1356_v25, %v798_v29  ;;  %v796_v37 = vmul.f32 0.2, %v612_v31  ;;  %v1343_v38 = vpop.f32.mrf.mxu0  ;;  %v1359_v39 = vpop.f32.mrf.mxu1 }
 0x106   : > { %v1262_v40 = vpack.c.bf16 %v830_v36, %v829_v27  ;;  %v812_v41 = vsel %vm748_vm6, %v548_v30, %v780_v33  ;;  %vm753_vm8 = vcmp.gt.f32.partialorder %v1343_v38, 0.0  ;;  %v785_v42 = vmul.f32 0.2, %v1343_v38 }
 0x107   : > { %1278 = vst [vmem:[%s1537_s8 + $0x28] sm:$0xff] %v1222_v35   ;;  %v1217_v44 = vpack.c.bf16 %v812_v41, %v811_v34  ;;  %v828_v45 = vsel %vm764_vm7, %v612_v31, %v796_v37  ;;  %v561_v46 = vpop.f32.mrf.mxu0  ;;  %v625_v47 = vpop.f32.mrf.mxu1  ;;  %vm769_vm9 = vcmp.gt.f32.partialorder %v1359_v39, 0.0  ;;  %v801_v50 = vmul.f32 0.2, %v1359_v39 }
 0x108   : > { %1286 = vst [vmem:[%s1537_s8 + $0x68] sm:$0xff] %v1262_v40   ;;  %v1257_v48 = vpack.c.bf16 %v828_v45, %v827_v43  ;;  %v817_v49 = vsel %vm753_vm8, %v1343_v38, %v785_v42  ;;  %v783_v53 = vmul.f32 0.2, %v561_v46  ;;  %vm751_vm12 = vcmp.gt.f32.partialorder %v561_v46, 0.0 }
 0x109   : > { %1277 = vst [vmem:[%s1537_s8 + $0x20] sm:$0xff] %v1217_v44   ;;  %v1344_v51 = vpop.f32.mrf.mxu0  ;;  %v1360_v52 = vpop.f32.mrf.mxu1  ;;  %vm767_vm13 = vcmp.gt.f32.partialorder %v625_v47, 0.0  ;;  %v799_v55 = vmul.f32 0.2, %v625_v47  ;;  %v833_v61 = vsel %vm769_vm9, %v1359_v39, %v801_v50 }
 0x10a   : > { %1285 = vst [vmem:[%s1537_s8 + $0x60] sm:$0xff] %v1257_v48   ;;  %vm754_vm10 = vcmp.gt.f32.partialorder %v1344_v51, 0.0  ;;  %v786_v54 = vmul.f32 0.2, %v1344_v51  ;;  %vm770_vm11 = vcmp.gt.f32.partialorder %v1360_v52, 0.0  ;;  %v815_v1 = vsel %vm751_vm12, %v561_v46, %v783_v53 }
 0x10b   : > { %v802_v56 = vmul.f32 0.2, %v1360_v52  ;;  %v564_v57 = vpop.f32.mrf.mxu0  ;;  %v628_v58 = vpop.f32.mrf.mxu1  ;;  %v831_v4 = vsel %vm767_vm13, %v625_v47, %v799_v55 }
 0x10c   : > { %v818_v59 = vsel %vm754_vm10, %v1344_v51, %v786_v54  ;;  %vm752_vm14 = vcmp.gt.f32.partialorder %v564_v57, 0.0  ;;  %v784_v60 = vmul.f32 0.2, %v564_v57  ;;  %vm768_vm15 = vcmp.gt.f32.partialorder %v628_v58, 0.0 }
 0x10d   : > { %v1232_v62 = vpack.c.bf16 %v818_v59, %v817_v49  ;;  %v834_v63 = vsel %vm770_vm11, %v1360_v52, %v802_v56  ;;  %v800_v0 = vmul.f32 0.2, %v628_v58 }
 0x10e   : > { %v1272_v2 = vpack.c.bf16 %v834_v63, %v833_v61  ;;  %v816_v3 = vsel %vm752_vm14, %v564_v57, %v784_v60 }
 0x10f   : > { %1280 = vst [vmem:[%s1537_s8 + $0x38] sm:$0xff] %v1232_v62   ;;  %v1227_v5 = vpack.c.bf16 %v816_v3, %v815_v1  ;;  %v832_v6 = vsel %vm768_vm15, %v628_v58, %v800_v0 }
 0x110   : > { %1288 = vst [vmem:[%s1537_s8 + $0x78] sm:$0xff] %v1272_v2   ;;  %v1267_v7 = vpack.c.bf16 %v832_v6, %v831_v4 }
 0x111   : > { %1279 = vst [vmem:[%s1537_s8 + $0x30] sm:$0xff] %v1227_v5  }
 0x112   : > { %1287 = vst [vmem:[%s1537_s8 + $0x70] sm:$0xff] %v1267_v7  }
 0x113 PF: > { %s12_s11 = sadd.s32 1, %s1447_s11   ;;  %s1572_s9 = smov %s1443_s10 }
 0x114   : > { %p9_p5 = scmp.ge.s32.totalorder %s12_s11, 10   ;;  %s1573_s10 = smov %s1575_s12 }
 0x116   :  { %11 = sbr.rel (!%p9_p5) target bundleno = 2 (0x2), region = 69 }

// kernel: discriminator_forward.8
= control target key start
LH: loop header
LB: loop body
LE: loop exit
PB: predicated region body
PF: predicated region fallthrough
CT: control target
= control target key end

     0   :  { %s6352_s12 = smov 0   ;;  %s6354_s13 = smov 0   ;;  %s7393_s0 = inlined_call_operand.vmem [shape: bf16[512,2048], index: 0, kind: input, shape index: {}]   ;;  %s7394_s1 = inlined_call_operand.vmem [shape: bf16[2048,128], index: 1, kind: input, shape index: {}]   ;;  %s7395_s2 = inlined_call_operand.vmem [shape: bf16[512,128], index: 2, kind: output, shape index: {0}]   ;;  %s7396_s3 = inlined_call_operand.vmem [shape: f32[2,8,128], index: 3, kind: output, shape index: {1}]  }
   0x1   :  { %s6356_s14 = smov 0  }
   0x2 LB: > { %s33_s15 = sadd.s32 1, %s6326_s13  ;;  %p4707_p0 = scmp.ge.s32.totalorder %s6330_s14, 1  ;;  %s6330_s14 = sphi %s6356_s14, %s14_s14   ;;  %s6326_s13 = sphi %s6354_s13, %s7398_s13   ;;  %s6322_s12 = sphi %s6352_s12, %s7397_s12  }
   0x3   : > { %p35_p1 = scmp.ge.s32.totalorder %s33_s15, 2  ;;  %p188_p2 = scmp.lt.s32.totalorder %s6330_s14, 3 }
   0x5   : > { %s7400_s15 = smov (%p35_p1, %s33_s15), 0  ;;  %p189_p3 = pnand %p4707_p0, %p188_p2 }
   0x6   : > { %s4708_s25 = sshll.u32 (!%p189_p3), %s6322_s12, 5  ;;  %p265_p5 = scmp.lt.s32.totalorder (!%p189_p3), %s6322_s12, 1 }
   0x7   : > { %192 = sbr.rel (%p189_p3) target bundleno = 774 (0x306), region = 28  ;;  %p237_p4 = scmp.lt.s32.totalorder (!%p189_p3), %s4708_s25, 63 }
   0xc   : > { %v6180_v0 = vld [vmem:[%s7394_s1 + $0x78] sm:$0xff]   ;;  %v6184_v4 = vld [vmem:[%s7394_s1 + $0x70] sm:$0xff]   ;;  %v6188_v8 = vld [vmem:[%s7394_s1 + $0x68] sm:$0xff]   ;;  %s7402_s25 = smov (!%p237_p4, %s4708_s25), 63  ;;  %s7404_s12 = smov (!%p265_p5, %s6322_s12), 1  ;;  %vm4554_vm0 = vcmask 1040384  }
   0xd   : > { %v6181_v1 = vld [vmem:[%s7394_s1 + $0xf8] sm:$0xff]   ;;  %5260 = vmatprep.subr.bf16.mxu0 %v6180_v0  ;;  %v6185_v5 = vld [vmem:[%s7394_s1 + $0xf0] sm:$0xff]   ;;  %v6189_v9 = vld [vmem:[%s7394_s1 + $0xe8] sm:$0xff]   ;;  %s5132_s26 = sshll.u32 %s7402_s25, 6  ;;  %vm4556_vm1 = vcmask 1041408  }
   0xe   : > { %v6182_v2 = vld [vmem:[%s7394_s1 + $0x38] sm:$0xff]   ;;  %5372 = vmatprep.subr.bf16.mxu1 %v6181_v1  ;;  %v6186_v6 = vld [vmem:[%s7394_s1 + $0x30] sm:$0xff]   ;;  %v6190_v10 = vld [vmem:[%s7394_s1 + $0x28] sm:$0xff]   ;;  %s6469_s8 = scalar_lea.vmem %s7393_s0, %s5132_s26 }
   0xf   : > { %v6183_v3 = vld [vmem:[%s7394_s1 + $0xb8] sm:$0xff]   ;;  %5261 = vmatpush3.bf16.msra.mxu0 %v6182_v2  ;;  %v6187_v7 = vld [vmem:[%s7394_s1 + $0xb0] sm:$0xff]   ;;  %v6191_v11 = vld [vmem:[%s7394_s1 + $0xa8] sm:$0xff]  }
  0x10   : > { %5373 = vmatpush3.bf16.msra.mxu1 %v6183_v3  ;;  %5262 = vmatprep.subr.bf16.mxu0 %v6184_v4  ;;  %v6192_v12 = vld [vmem:[%s7394_s1 + $0x60] sm:$0xff]   ;;  %v6196_v16 = vld [vmem:[%s7394_s1 + $0x58] sm:$0xff]   ;;  %v6200_v20 = vld [vmem:[%s7394_s1 + $0x50] sm:$0xff]  }
  0x11   : > { %5374 = vmatprep.subr.bf16.mxu1 %v6185_v5  ;;  %v6193_v13 = vld [vmem:[%s7394_s1 + $0xe0] sm:$0xff]   ;;  %v6197_v17 = vld [vmem:[%s7394_s1 + $0xd8] sm:$0xff]   ;;  %v6201_v21 = vld [vmem:[%s7394_s1 + $0xd0] sm:$0xff]  }
  0x12   : > { %v6194_v14 = vld [vmem:[%s7394_s1 + $0x20] sm:$0xff]   ;;  %v6198_v18 = vld [vmem:[%s7394_s1 + $0x18] sm:$0xff]   ;;  %v6202_v22 = vld [vmem:[%s7394_s1 + $0x10] sm:$0xff]  }
  0x13   : > { %5263 = vmatpush3.bf16.msra.mxu0 %v6186_v6  ;;  %v6195_v15 = vld [vmem:[%s7394_s1 + $0xa0] sm:$0xff]   ;;  %v6199_v19 = vld [vmem:[%s7394_s1 + $0x98] sm:$0xff]   ;;  %v6203_v23 = vld [vmem:[%s7394_s1 + $0x90] sm:$0xff]  }
  0x14   : > { %5375 = vmatpush3.bf16.msra.mxu1 %v6187_v7  ;;  %5264 = vmatprep.subr.bf16.mxu0 %v6188_v8  ;;  %v6204_v24 = vld [vmem:[%s7394_s1 + $0x48] sm:$0xff]   ;;  %v6208_v28 = vld [vmem:[%s7394_s1 + $0x40] sm:$0xff]   ;;  %v6212_v40 = vld [vmem:[%s7394_s1 + $0x178] sm:$0xff]  }
  0x15   : > { %5376 = vmatprep.subr.bf16.mxu1 %v6189_v9  ;;  %v6205_v25 = vld [vmem:[%s7394_s1 + $0xc8] sm:$0xff]   ;;  %v6209_v29 = vld [vmem:[%s7394_s1 + $0xc0] sm:$0xff]   ;;  %v6213_v41 = vld [vmem:[%s7394_s1 + $0x138] sm:$0xff]  }
  0x16   : > { %v6206_v26 = vld [vmem:[%s7394_s1 + $0x8] sm:$0xff]   ;;  %v6210_v30 = vld [vmem:[%s7394_s1] sm:$0xff]   ;;  %v6214_v42 = vld [vmem:[%s7394_s1 + $0x1f8] sm:$0xff]  }
  0x17   : > { %5265 = vmatpush3.bf16.msra.mxu0 %v6190_v10  ;;  %v6207_v27 = vld [vmem:[%s7394_s1 + $0x88] sm:$0xff]   ;;  %v6211_v31 = vld [vmem:[%s7394_s1 + $0x80] sm:$0xff]   ;;  %v6215_v43 = vld [vmem:[%s7394_s1 + $0x1b8] sm:$0xff]  }
  0x18   : > { %5377 = vmatpush3.bf16.msra.mxu1 %v6191_v11  ;;  %5266 = vmatprep.subr.bf16.mxu0 %v6192_v12  ;;  %v341_v32 = vld [vmem:[%s6469_s8] sm:$0xff]  ;;  %v342_v34 = vld [vmem:[%s6469_s8 + $0x8] sm:$0xff]  ;;  %v6216_v55 = vld [vmem:[%s7394_s1 + $0x170] sm:$0xff]  }
  0x19   : > { %5378 = vmatprep.subr.bf16.mxu1 %v6193_v13  ;;  %v349_v33 = vld [vmem:[%s6469_s8 + $0x40] sm:$0xff]  ;;  %v350_v37 = vld [vmem:[%s6469_s8 + $0x48] sm:$0xff]  ;;  %v6217_v58 = vld [vmem:[%s7394_s1 + $0x130] sm:$0xff]  }
  0x1a   : > { %v4714_v35 = vcombine.low %v341_v32, %v349_v33  ;;  %v4715_v36 = vcombine.high %v341_v32, %v349_v33  ;;  %v4716_v38 = vcombine.low %v342_v34, %v350_v37  ;;  %v4717_v39 = vcombine.high %v342_v34, %v350_v37  ;;  %v357_v44 = vld [vmem:[%s6469_s8 + $0x80] sm:$0xff]  ;;  %v358_v47 = vld [vmem:[%s6469_s8 + $0x88] sm:$0xff]  ;;  %v6218_v60 = vld [vmem:[%s7394_s1 + $0x1f0] sm:$0xff]  }
  0x1b   : > { %5267 = vmatpush3.bf16.msra.mxu0 %v6194_v14  ;;  %v365_v45 = vld [vmem:[%s6469_s8 + $0xc0] sm:$0xff]  ;;  %v366_v48 = vld [vmem:[%s6469_s8 + $0xc8] sm:$0xff]  ;;  %v6219_v61 = vld [vmem:[%s7394_s1 + $0x1b0] sm:$0xff]  }
  0x1c   : > { %5379 = vmatpush3.bf16.msra.mxu1 %v6195_v15  ;;  %5268 = vmatprep.subr.bf16.mxu0 %v6196_v16  ;;  %v4731_v46 = vcombine.high %v357_v44, %v365_v45  ;;  %v373_v49 = vld [vmem:[%s6469_s8 + $0x100] sm:$0xff]  ;;  %v4733_v50 = vcombine.high %v358_v47, %v366_v48  ;;  %v374_v52 = vld [vmem:[%s6469_s8 + $0x108] sm:$0xff]  ;;  %v4730_v54 = vcombine.low %v357_v44, %v365_v45  ;;  %v6232_v34 = vld [vmem:[%s7394_s1 + $0x150] sm:$0xff]  }
  0x1d   : > { %5380 = vmatprep.subr.bf16.mxu1 %v6197_v17  ;;  %2933 = vmatprep.mubr.bf16.mxu0 %v4715_v36  ;;  %v381_v51 = vld [vmem:[%s6469_s8 + $0x140] sm:$0xff]  ;;  %v382_v53 = vld [vmem:[%s6469_s8 + $0x148] sm:$0xff]  ;;  %v4732_v56 = vcombine.low %v358_v47, %v366_v48  ;;  %v6233_v36 = vld [vmem:[%s7394_s1 + $0x110] sm:$0xff]  }
  0x1e   : > { %3094 = vmatprep.mubr.bf16.mxu1 %v4717_v39  ;;  %v4747_v57 = vcombine.high %v373_v49, %v381_v51  ;;  %v4749_v59 = vcombine.high %v374_v52, %v382_v53  ;;  %v389_v62 = vld [vmem:[%s6469_s8 + $0x180] sm:$0xff]  ;;  %v390_v0 = vld [vmem:[%s6469_s8 + $0x188] sm:$0xff]  ;;  %v4746_v3 = vcombine.low %v373_v49, %v381_v51  ;;  %v4748_v5 = vcombine.low %v374_v52, %v382_v53  ;;  %v6234_v37 = vld [vmem:[%s7394_s1 + $0x1d0] sm:$0xff]  }
  0x1f   : > { %5269 = vmatpush3.bf16.msra.mxu0 %v6198_v18  ;;  %v397_v63 = vld [vmem:[%s6469_s8 + $0x1c0] sm:$0xff]  ;;  %v398_v1 = vld [vmem:[%s6469_s8 + $0x1c8] sm:$0xff]  ;;  %v6235_v39 = vld [vmem:[%s7394_s1 + $0x190] sm:$0xff]  }
  0x20   : > { %5381 = vmatpush3.bf16.msra.mxu1 %v6199_v19  ;;  %5270 = vmatprep.subr.bf16.mxu0 %v6200_v20  ;;  %v6220_v2 = vld [vmem:[%s7394_s1 + $0x168] sm:$0xff]   ;;  %v4763_v6 = vcombine.high %v389_v62, %v397_v63  ;;  %v4765_v8 = vcombine.high %v390_v0, %v398_v1  ;;  %v405_v10 = vld [vmem:[%s6469_s8 + $0x200] sm:$0xff]  ;;  %v4762_v16 = vcombine.low %v389_v62, %v397_v63 }
  0x21   : > { %5382 = vmatprep.subr.bf16.mxu1 %v6201_v21  ;;  %v6221_v4 = vld [vmem:[%s7394_s1 + $0x128] sm:$0xff]   ;;  %v413_v11 = vld [vmem:[%s6469_s8 + $0x240] sm:$0xff]  ;;  %v4764_v18 = vcombine.low %v390_v0, %v398_v1 }
  0x22   : > { %v6222_v7 = vld [vmem:[%s7394_s1 + $0x1e8] sm:$0xff]   ;;  %v6224_v14 = vld [vmem:[%s7394_s1 + $0x160] sm:$0xff]   ;;  %v4779_v19 = vcombine.high %v405_v10, %v413_v11 }
  0x23   : > { %5271 = vmatpush3.bf16.msra.mxu0 %v6202_v22  ;;  %v6223_v9 = vld [vmem:[%s7394_s1 + $0x1a8] sm:$0xff]   ;;  %v6225_v15 = vld [vmem:[%s7394_s1 + $0x120] sm:$0xff]  }
  0x24   : > { %5383 = vmatpush3.bf16.msra.mxu1 %v6203_v23  ;;  %5272 = vmatprep.subr.bf16.mxu0 %v6204_v24  ;;  %v406_v12 = vld [vmem:[%s6469_s8 + $0x208] sm:$0xff]  ;;  %v6226_v17 = vld [vmem:[%s7394_s1 + $0x1e0] sm:$0xff]   ;;  %v6228_v24 = vld [vmem:[%s7394_s1 + $0x158] sm:$0xff]  }
  0x25   : > { %5384 = vmatprep.subr.bf16.mxu1 %v6205_v25  ;;  %v414_v13 = vld [vmem:[%s6469_s8 + $0x248] sm:$0xff]  ;;  %v6227_v20 = vld [vmem:[%s7394_s1 + $0x1a0] sm:$0xff]  }
  0x26   : > { %v4781_v21 = vcombine.high %v406_v12, %v414_v13  ;;  %v421_v22 = vld [vmem:[%s6469_s8 + $0x280] sm:$0xff]  ;;  %v422_v25 = vld [vmem:[%s6469_s8 + $0x288] sm:$0xff] }
  0x27   : > { %5273 = vmatpush3.bf16.msra.mxu0 %v6206_v26  ;;  %v429_v23 = vld [vmem:[%s6469_s8 + $0x2c0] sm:$0xff]  ;;  %v430_v26 = vld [vmem:[%s6469_s8 + $0x2c8] sm:$0xff] }
  0x28   : > { %5385 = vmatpush3.bf16.msra.mxu1 %v6207_v27  ;;  %5274 = vmatprep.subr.bf16.mxu0 %v6208_v28  ;;  %v6229_v27 = vld [vmem:[%s7394_s1 + $0x118] sm:$0xff]   ;;  %v4795_v32 = vcombine.high %v421_v22, %v429_v23  ;;  %v4797_v33 = vcombine.high %v422_v25, %v430_v26  ;;  %v6237_v47 = vld [vmem:[%s7394_s1 + $0x108] sm:$0xff]   ;;  %v461_v51 = vld [vmem:[%s6469_s8 + $0x3c0] sm:$0xff] }
  0x29   : > { %5386 = vmatprep.subr.bf16.mxu1 %v6209_v29  ;;  %v6230_v28 = vld [vmem:[%s7394_s1 + $0x1d8] sm:$0xff]   ;;  %v6238_v48 = vld [vmem:[%s7394_s1 + $0x1c8] sm:$0xff]   ;;  %v469_v62 = vld [vmem:[%s6469_s8 + $0x400] sm:$0xff] }
  0x2a   : > { %v6231_v29 = vld [vmem:[%s7394_s1 + $0x198] sm:$0xff]   ;;  %v6239_v49 = vld [vmem:[%s7394_s1 + $0x188] sm:$0xff]   ;;  %v477_v63 = vld [vmem:[%s6469_s8 + $0x440] sm:$0xff] }
  0x2b   : > { %5275 = vmatpush3.bf16.msra.mxu0 %v6210_v30  ;;  %v4778_v30 = vcombine.low %v405_v10, %v413_v11  ;;  %v454_v52 = vld [vmem:[%s6469_s8 + $0x388] sm:$0xff] }
  0x2c   : > { %5387 = vmatpush3.bf16.msra.mxu1 %v6211_v31  ;;  %5484 = vmatprep.subr.bf16.mxu0 %v6212_v40  ;;  %v4780_v31 = vcombine.low %v406_v12, %v414_v13  ;;  %v438_v40 = vld [vmem:[%s6469_s8 + $0x308] sm:$0xff]  ;;  %v4842_v12 = vcombine.low %v469_v62, %v477_v63 }
  0x2d   : > { %5596 = vmatprep.subr.bf16.mxu1 %v6214_v42  ;;  %v4794_v42 = vcombine.low %v421_v22, %v429_v23  ;;  %v462_v53 = vld [vmem:[%s6469_s8 + $0x3c8] sm:$0xff] }
  0x2e   : > { %2934 = vmatmul.mubr.bf16.vlgmr.msra.gmra.mxu0 %v4714_v35  ;;  %v437_v35 = vld [vmem:[%s6469_s8 + $0x300] sm:$0xff]  ;;  %v470_v0 = vld [vmem:[%s6469_s8 + $0x408] sm:$0xff] }
  0x2f   : > { %3095 = vmatmul.mubr.bf16.vlgmr.msra.gmra.mxu1 %v4716_v38  ;;  %5485 = vmatpush3.bf16.msra.mxu0 %v6213_v41  ;;  %v445_v38 = vld [vmem:[%s6469_s8 + $0x340] sm:$0xff]  ;;  %v446_v41 = vld [vmem:[%s6469_s8 + $0x348] sm:$0xff] }
  0x30   : > { %5597 = vmatpush3.bf16.msra.mxu1 %v6215_v43  ;;  %2941 = vmatprep.mubr.bf16.mxu0 %v4731_v46  ;;  %v4796_v43 = vcombine.low %v422_v25, %v430_v26  ;;  %v4811_v44 = vcombine.high %v437_v35, %v445_v38  ;;  %v4813_v45 = vcombine.high %v438_v40, %v446_v41  ;;  %v6236_v46 = vld [vmem:[%s7394_s1 + $0x148] sm:$0xff]   ;;  %v525_v25 = vld [vmem:[%s6469_s8 + $0x5c0] sm:$0xff] }
  0x31   : > { %3102 = vmatprep.mubr.bf16.mxu1 %v4733_v50  ;;  %5486 = vmatprep.subr.bf16.mxu0 %v6216_v55  ;;  %v453_v50 = vld [vmem:[%s6469_s8 + $0x380] sm:$0xff]  ;;  %v478_v1 = vld [vmem:[%s6469_s8 + $0x448] sm:$0xff] }
  0x32   : > { %5598 = vmatprep.subr.bf16.mxu1 %v6218_v60  ;;  %v6240_v55 = vld [vmem:[%s7394_s1 + $0x140] sm:$0xff]   ;;  %v486_v10 = vld [vmem:[%s6469_s8 + $0x488] sm:$0xff]  ;;  %v4844_v13 = vcombine.low %v470_v0, %v478_v1 }
  0x33   : > { %5487 = vmatpush3.bf16.msra.mxu0 %v6217_v58  ;;  %v6241_v58 = vld [vmem:[%s7394_s1 + $0x100] sm:$0xff]   ;;  %v494_v11 = vld [vmem:[%s6469_s8 + $0x4c8] sm:$0xff] }
  0x34   : > { %5599 = vmatpush3.bf16.msra.mxu1 %v6219_v61  ;;  %5488 = vmatprep.subr.bf16.mxu0 %v6220_v2  ;;  %v6242_v60 = vld [vmem:[%s7394_s1 + $0x1c0] sm:$0xff]   ;;  %v6244_v2 = vld [vmem:[%s7394_s1 + $0x278] sm:$0xff]   ;;  %v518_v26 = vld [vmem:[%s6469_s8 + $0x588] sm:$0xff] }
  0x35   : > { %5600 = vmatprep.subr.bf16.mxu1 %v6222_v7  ;;  %v6243_v61 = vld [vmem:[%s7394_s1 + $0x180] sm:$0xff]   ;;  %v4845_v7 = vcombine.high %v470_v0, %v478_v1  ;;  %v343_v0 = vld [vmem:[%s6469_s8 + $0x10] sm:$0xff] }
  0x36   : > { %2942 = vmatmul.mubr.bf16.gmra.mxu0 %v4730_v54  ;;  %v4810_v54 = vcombine.low %v437_v35, %v445_v38  ;;  %v542_v35 = vld [vmem:[%s6469_s8 + $0x648] sm:$0xff]  ;;  %v351_v1 = vld [vmem:[%s6469_s8 + $0x50] sm:$0xff] }
  0x37   : > { %3103 = vmatmul.mubr.bf16.gmra.mxu1 %v4732_v56  ;;  %2949 = vmatprep.mubr.bf16.mxu0 %v4747_v57  ;;  %v4812_v56 = vcombine.low %v438_v40, %v446_v41  ;;  %v4827_v57 = vcombine.high %v453_v50, %v461_v51  ;;  %v549_v40 = vld [vmem:[%s6469_s8 + $0x680] sm:$0xff] }
  0x38   : > { %3110 = vmatprep.mubr.bf16.mxu1 %v4749_v59  ;;  %5489 = vmatpush3.bf16.msra.mxu0 %v6221_v4  ;;  %v4829_v59 = vcombine.high %v454_v52, %v462_v53  ;;  %v4828_v4 = vcombine.low %v454_v52, %v462_v53  ;;  %v557_v41 = vld [vmem:[%s6469_s8 + $0x6c0] sm:$0xff] }
  0x39   : > { %5601 = vmatpush3.bf16.msra.mxu1 %v6223_v9  ;;  %5490 = vmatprep.subr.bf16.mxu0 %v6224_v14  ;;  %v493_v9 = vld [vmem:[%s6469_s8 + $0x4c0] sm:$0xff]  ;;  %v4922_v52 = vcombine.low %v549_v40, %v557_v41 }
  0x3a   : > { %5602 = vmatprep.subr.bf16.mxu1 %v6226_v17  ;;  %v509_v17 = vld [vmem:[%s6469_s8 + $0x540] sm:$0xff] }
  0x3c   : > { %5491 = vmatpush3.bf16.msra.mxu0 %v6225_v15  ;;  %v4861_v15 = vcombine.high %v486_v10, %v494_v11 }
  0x3d   : > { %5603 = vmatpush3.bf16.msra.mxu1 %v6227_v20  ;;  %5492 = vmatprep.subr.bf16.mxu0 %v6228_v24  ;;  %v517_v24 = vld [vmem:[%s6469_s8 + $0x580] sm:$0xff] }
  0x3e   : > { %2950 = vmatmul.mubr.bf16.gmra.mxu0 %v4746_v3  ;;  %5604 = vmatprep.subr.bf16.mxu1 %v6230_v28  ;;  %v4826_v3 = vcombine.low %v453_v50, %v461_v51  ;;  %v566_v50 = vld [vmem:[%s6469_s8 + $0x708] sm:$0xff] }
  0x3f   : > { %3111 = vmatmul.mubr.bf16.gmra.mxu1 %v4748_v5  ;;  %2957 = vmatprep.mubr.bf16.mxu0 %v4763_v6  ;;  %v4843_v5 = vcombine.high %v469_v62, %v477_v63  ;;  %v6246_v6 = vld [vmem:[%s7394_s1 + $0x2f8] sm:$0xff]   ;;  %v574_v51 = vld [vmem:[%s6469_s8 + $0x748] sm:$0xff] }
  0x40   : > { %3118 = vmatprep.mubr.bf16.mxu1 %v4765_v8  ;;  %5493 = vmatpush3.bf16.msra.mxu0 %v6229_v27  ;;  %v485_v8 = vld [vmem:[%s6469_s8 + $0x480] sm:$0xff]  ;;  %v526_v27 = vld [vmem:[%s6469_s8 + $0x5c8] sm:$0xff] }
  0x41   : > { %5605 = vmatpush3.bf16.msra.mxu1 %v6231_v29  ;;  %5494 = vmatprep.subr.bf16.mxu0 %v6232_v34  ;;  %v4859_v14 = vcombine.high %v485_v8, %v493_v9  ;;  %v4858_v20 = vcombine.low %v485_v8, %v493_v9  ;;  %v534_v34 = vld [vmem:[%s6469_s8 + $0x608] sm:$0xff]  ;;  %v359_v8 = vld [vmem:[%s6469_s8 + $0x90] sm:$0xff] }
  0x42   : > { %5606 = vmatprep.subr.bf16.mxu1 %v6234_v37  ;;  %v4892_v37 = vcombine.low %v518_v26, %v526_v27  ;;  %v367_v9 = vld [vmem:[%s6469_s8 + $0xd0] sm:$0xff] }
  0x44   : > { %5495 = vmatpush3.bf16.msra.mxu0 %v6233_v36  ;;  %v4890_v36 = vcombine.low %v517_v24, %v525_v25 }
  0x45   : > { %5607 = vmatpush3.bf16.msra.mxu1 %v6235_v39  ;;  %5496 = vmatprep.subr.bf16.mxu0 %v6236_v46  ;;  %v4909_v39 = vcombine.high %v534_v34, %v542_v35  ;;  %v4923_v46 = vcombine.high %v549_v40, %v557_v41  ;;  %v400_v40 = vld [vmem:[%s6469_s8 + $0x1d8] sm:$0xff]  ;;  %v6259_v41 = vld [vmem:[%s7394_s1 + $0x2a0] sm:$0xff]  }
  0x46   : > { %2958 = vmatmul.mubr.bf16.gmra.mxu0 %v4762_v16  ;;  %5608 = vmatprep.subr.bf16.mxu1 %v6238_v48  ;;  %v501_v16 = vld [vmem:[%s6469_s8 + $0x500] sm:$0xff] }
  0x47   : > { %3119 = vmatmul.mubr.bf16.gmra.mxu1 %v4764_v18  ;;  %2965 = vmatprep.mubr.bf16.mxu0 %v4779_v19  ;;  %v502_v18 = vld [vmem:[%s6469_s8 + $0x508] sm:$0xff]  ;;  %v4875_v22 = vcombine.high %v501_v16, %v509_v17  ;;  %v4874_v28 = vcombine.low %v501_v16, %v509_v17  ;;  %v565_v48 = vld [vmem:[%s6469_s8 + $0x700] sm:$0xff]  ;;  %v4735_v16 = vcombine.high %v359_v8, %v367_v9 }
  0x48   : > { %3126 = vmatprep.mubr.bf16.mxu1 %v4781_v21  ;;  %5497 = vmatpush3.bf16.msra.mxu0 %v6237_v47  ;;  %v510_v19 = vld [vmem:[%s6469_s8 + $0x548] sm:$0xff]  ;;  %v4860_v21 = vcombine.low %v486_v10, %v494_v11  ;;  %v4718_v10 = vcombine.low %v343_v0, %v351_v1  ;;  %v360_v11 = vld [vmem:[%s6469_s8 + $0x98] sm:$0xff] }
  0x49   : > { %5609 = vmatpush3.bf16.msra.mxu1 %v6239_v49  ;;  %5498 = vmatprep.subr.bf16.mxu0 %v6240_v55  ;;  %v4877_v23 = vcombine.high %v502_v18, %v510_v19  ;;  %v4876_v29 = vcombine.low %v502_v18, %v510_v19  ;;  %v573_v49 = vld [vmem:[%s6469_s8 + $0x740] sm:$0xff]  ;;  %v4941_v55 = vcombine.high %v566_v50, %v574_v51  ;;  %v6248_v18 = vld [vmem:[%s7394_s1 + $0x270] sm:$0xff]  }
  0x4a   : > { %5610 = vmatprep.subr.bf16.mxu1 %v6242_v60  ;;  %v4938_v60 = vcombine.low %v565_v48, %v573_v49  ;;  %v6250_v19 = vld [vmem:[%s7394_s1 + $0x2f0] sm:$0xff]  }
  0x4c   : > { %5499 = vmatpush3.bf16.msra.mxu0 %v6241_v58  ;;  %v582_v58 = vld [vmem:[%s6469_s8 + $0x788] sm:$0xff] }
  0x4d   : > { %5611 = vmatpush3.bf16.msra.mxu1 %v6243_v61  ;;  %5708 = vmatprep.subr.bf16.mxu0 %v6244_v2  ;;  %v4940_v61 = vcombine.low %v566_v50, %v574_v51  ;;  %v344_v2 = vld [vmem:[%s6469_s8 + $0x18] sm:$0xff]  ;;  %v6264_v50 = vld [vmem:[%s7394_s1 + $0x250] sm:$0xff]  }
  0x4e   : > { %2966 = vmatmul.mubr.bf16.gmra.mxu0 %v4778_v30  ;;  %5820 = vmatprep.subr.bf16.mxu1 %v6246_v6  ;;  %v4891_v30 = vcombine.high %v517_v24, %v525_v25  ;;  %v4719_v6 = vcombine.high %v343_v0, %v351_v1  ;;  %v6252_v24 = vld [vmem:[%s7394_s1 + $0x268] sm:$0xff]   ;;  %v376_v25 = vld [vmem:[%s6469_s8 + $0x118] sm:$0xff]  ;;  %v6266_v51 = vld [vmem:[%s7394_s1 + $0x2d0] sm:$0xff]  }
  0x4f   : > { %3127 = vmatmul.mubr.bf16.gmra.mxu1 %v4780_v31  ;;  %2973 = vmatprep.mubr.bf16.mxu0 %v4795_v32  ;;  %v4893_v31 = vcombine.high %v518_v26, %v526_v27  ;;  %v533_v32 = vld [vmem:[%s6469_s8 + $0x600] sm:$0xff]  ;;  %v384_v26 = vld [vmem:[%s6469_s8 + $0x158] sm:$0xff]  ;;  %v6254_v27 = vld [vmem:[%s7394_s1 + $0x2e8] sm:$0xff]  }
  0x50   : > { %3134 = vmatprep.mubr.bf16.mxu1 %v4797_v33  ;;  %v541_v33 = vld [vmem:[%s6469_s8 + $0x640] sm:$0xff]  ;;  %v6269_v0 = vld [vmem:[%s7394_s1 + $0x208] sm:$0xff]  }
  0x51   : > { %v4907_v38 = vcombine.high %v533_v32, %v541_v33  ;;  %v6271_v1 = vld [vmem:[%s7394_s1 + $0x288] sm:$0xff]  }
  0x56   : > { %2974 = vmatmul.mubr.bf16.gmra.mxu0 %v4794_v42  ;;  %v550_v42 = vld [vmem:[%s6469_s8 + $0x688] sm:$0xff] }
  0x57   : > { %3135 = vmatmul.mubr.bf16.gmra.mxu1 %v4796_v43  ;;  %2981 = vmatprep.mubr.bf16.mxu0 %v4811_v44  ;;  %v558_v43 = vld [vmem:[%s6469_s8 + $0x6c8] sm:$0xff]  ;;  %v4906_v44 = vcombine.low %v533_v32, %v541_v33 }
  0x58   : > { %3142 = vmatprep.mubr.bf16.mxu1 %v4813_v45  ;;  %v4908_v45 = vcombine.low %v534_v34, %v542_v35  ;;  %v4925_v47 = vcombine.high %v550_v42, %v558_v43  ;;  %v4924_v53 = vcombine.low %v550_v42, %v558_v43  ;;  %v6253_v32 = vld [vmem:[%s7394_s1 + $0x228] sm:$0xff]   ;;  %v6256_v34 = vld [vmem:[%s7394_s1 + $0x260] sm:$0xff]   ;;  %v6260_v42 = vld [vmem:[%s7394_s1 + $0x258] sm:$0xff]  }
  0x59   : > { %v6255_v33 = vld [vmem:[%s7394_s1 + $0x2a8] sm:$0xff]   ;;  %v6258_v35 = vld [vmem:[%s7394_s1 + $0x2e0] sm:$0xff]  }
  0x5e   : > { %2982 = vmatmul.mubr.bf16.gmra.mxu0 %v4810_v54  ;;  %v4939_v54 = vcombine.high %v565_v48, %v573_v49  ;;  %v6261_v48 = vld [vmem:[%s7394_s1 + $0x218] sm:$0xff]  }
  0x5f   : > { %3143 = vmatmul.mubr.bf16.gmra.mxu1 %v4812_v56  ;;  %2989 = vmatprep.mubr.bf16.mxu0 %v4827_v57  ;;  %v581_v56 = vld [vmem:[%s6469_s8 + $0x780] sm:$0xff]  ;;  %v6263_v49 = vld [vmem:[%s7394_s1 + $0x298] sm:$0xff]  }
  0x60   : > { %3150 = vmatprep.mubr.bf16.mxu1 %v4829_v59  ;;  %v589_v57 = vld [vmem:[%s6469_s8 + $0x7c0] sm:$0xff]  ;;  %v590_v59 = vld [vmem:[%s6469_s8 + $0x7c8] sm:$0xff] }
  0x61   : > { %v4955_v62 = vcombine.high %v581_v56, %v589_v57  ;;  %v4957_v63 = vcombine.high %v582_v58, %v590_v59 }
  0x66   : > { %2990 = vmatmul.mubr.bf16.gmra.mxu0 %v4826_v3  ;;  %v352_v3 = vld [vmem:[%s6469_s8 + $0x58] sm:$0xff] }
  0x67   : > { %3151 = vmatmul.mubr.bf16.gmra.mxu1 %v4828_v4  ;;  %2997 = vmatprep.mubr.bf16.mxu0 %v4843_v5  ;;  %v4954_v4 = vcombine.low %v581_v56, %v589_v57  ;;  %v4956_v5 = vcombine.low %v582_v58, %v590_v59  ;;  %v416_v56 = vld [vmem:[%s6469_s8 + $0x258] sm:$0xff]  ;;  %v6267_v57 = vld [vmem:[%s7394_s1 + $0x290] sm:$0xff]   ;;  %v6268_v58 = vld [vmem:[%s7394_s1 + $0x248] sm:$0xff]  }
  0x68   : > { %3158 = vmatprep.mubr.bf16.mxu1 %v4845_v7  ;;  %v4721_v7 = vcombine.high %v344_v2, %v352_v3 }
  0x6e   : > { %2998 = vmatmul.mubr.bf16.gmra.mxu0 %v4842_v12  ;;  %v368_v12 = vld [vmem:[%s6469_s8 + $0xd8] sm:$0xff] }
  0x6f   : > { %3159 = vmatmul.mubr.bf16.gmra.mxu1 %v4844_v13  ;;  %3005 = vmatprep.mubr.bf16.mxu0 %v4859_v14  ;;  %v4720_v13 = vcombine.low %v344_v2, %v352_v3  ;;  %v6245_v14 = vld [vmem:[%s7394_s1 + $0x238] sm:$0xff]   ;;  %v4737_v17 = vcombine.high %v360_v11, %v368_v12  ;;  %v6272_v2 = vld [vmem:[%s7394_s1 + $0x240] sm:$0xff]  }
  0x70   : > { %3166 = vmatprep.mubr.bf16.mxu1 %v4861_v15  ;;  %v6247_v15 = vld [vmem:[%s7394_s1 + $0x2b8] sm:$0xff]   ;;  %v6274_v3 = vld [vmem:[%s7394_s1 + $0x2c0] sm:$0xff]  }
  0x76   : > { %3006 = vmatmul.mubr.bf16.gmra.mxu0 %v4858_v20  ;;  %v375_v20 = vld [vmem:[%s6469_s8 + $0x110] sm:$0xff] }
  0x77   : > { %3167 = vmatmul.mubr.bf16.gmra.mxu1 %v4860_v21  ;;  %3013 = vmatprep.mubr.bf16.mxu0 %v4875_v22  ;;  %v6249_v21 = vld [vmem:[%s7394_s1 + $0x230] sm:$0xff]  }
  0x78   : > { %3174 = vmatprep.mubr.bf16.mxu1 %v4877_v23  ;;  %v383_v22 = vld [vmem:[%s6469_s8 + $0x150] sm:$0xff] }
  0x79   : > { %v6251_v23 = vld [vmem:[%s7394_s1 + $0x2b0] sm:$0xff]   ;;  %v4750_v43 = vcombine.low %v375_v20, %v383_v22 }
  0x7e   : > { %3014 = vmatmul.mubr.bf16.gmra.mxu0 %v4874_v28  ;;  %v4734_v28 = vcombine.low %v359_v8, %v367_v9  ;;  %v432_v8 = vld [vmem:[%s6469_s8 + $0x2d8] sm:$0xff]  ;;  %v6275_v9 = vld [vmem:[%s7394_s1 + $0x280] sm:$0xff]  }
  0x7f   : > { %3175 = vmatmul.mubr.bf16.gmra.mxu1 %v4876_v29  ;;  %3021 = vmatprep.mubr.bf16.mxu0 %v4891_v30  ;;  %v4736_v29 = vcombine.low %v360_v11, %v368_v12  ;;  %v4751_v30 = vcombine.high %v375_v20, %v383_v22  ;;  %v6278_v12 = vld [vmem:[%s7394_s1 + $0x3f8] sm:$0xff]  }
  0x80   : > { %3182 = vmatprep.mubr.bf16.mxu1 %v4893_v31  ;;  %v4753_v31 = vcombine.high %v376_v25, %v384_v26 }
  0x86   : > { %3022 = vmatmul.mubr.bf16.gmra.mxu0 %v4890_v36  ;;  %v391_v36 = vld [vmem:[%s6469_s8 + $0x190] sm:$0xff] }
  0x87   : > { %3183 = vmatmul.mubr.bf16.gmra.mxu1 %v4892_v37  ;;  %3029 = vmatprep.mubr.bf16.mxu0 %v4907_v38  ;;  %v399_v37 = vld [vmem:[%s6469_s8 + $0x1d0] sm:$0xff]  ;;  %v392_v38 = vld [vmem:[%s6469_s8 + $0x198] sm:$0xff] }
  0x88   : > { %3190 = vmatprep.mubr.bf16.mxu1 %v4909_v39  ;;  %v6257_v39 = vld [vmem:[%s7394_s1 + $0x220] sm:$0xff]   ;;  %v4766_v59 = vcombine.low %v391_v36, %v399_v37 }
  0x8e   : > { %3030 = vmatmul.mubr.bf16.gmra.mxu0 %v4906_v44  ;;  %v6262_v44 = vld [vmem:[%s7394_s1 + $0x2d8] sm:$0xff]  }
  0x8f   : > { %3191 = vmatmul.mubr.bf16.gmra.mxu1 %v4908_v45  ;;  %3037 = vmatprep.mubr.bf16.mxu0 %v4923_v46  ;;  %v4752_v45 = vcombine.low %v376_v25, %v384_v26  ;;  %v4767_v46 = vcombine.high %v391_v36, %v399_v37  ;;  %v463_v25 = vld [vmem:[%s6469_s8 + $0x3d0] sm:$0xff]  ;;  %v456_v26 = vld [vmem:[%s6469_s8 + $0x398] sm:$0xff] }
  0x90   : > { %3198 = vmatprep.mubr.bf16.mxu1 %v4925_v47  ;;  %v4769_v47 = vcombine.high %v392_v38, %v400_v40 }
  0x96   : > { %3038 = vmatmul.mubr.bf16.gmra.mxu0 %v4922_v52  ;;  %v407_v52 = vld [vmem:[%s6469_s8 + $0x210] sm:$0xff] }
  0x97   : > { %3199 = vmatmul.mubr.bf16.gmra.mxu1 %v4924_v53  ;;  %3045 = vmatprep.mubr.bf16.mxu0 %v4939_v54  ;;  %v415_v53 = vld [vmem:[%s6469_s8 + $0x250] sm:$0xff]  ;;  %v408_v54 = vld [vmem:[%s6469_s8 + $0x218] sm:$0xff] }
  0x98   : > { %3206 = vmatprep.mubr.bf16.mxu1 %v4941_v55  ;;  %v6265_v55 = vld [vmem:[%s7394_s1 + $0x210] sm:$0xff]   ;;  %v4782_v11 = vcombine.low %v407_v52, %v415_v53 }
  0x9e   : > { %3046 = vmatmul.mubr.bf16.gmra.mxu0 %v4938_v60  ;;  %v6270_v60 = vld [vmem:[%s7394_s1 + $0x2c8] sm:$0xff]  }
  0x9f   : > { %3207 = vmatmul.mubr.bf16.gmra.mxu1 %v4940_v61  ;;  %3053 = vmatprep.mubr.bf16.mxu0 %v4955_v62  ;;  %v4768_v61 = vcombine.low %v392_v38, %v400_v40  ;;  %v4783_v62 = vcombine.high %v407_v52, %v415_v53  ;;  %v487_v40 = vld [vmem:[%s6469_s8 + $0x490] sm:$0xff] }
  0xa0   : > { %3214 = vmatprep.mubr.bf16.mxu1 %v4957_v63  ;;  %v4785_v63 = vcombine.high %v408_v54, %v416_v56  ;;  %v511_v52 = vld [vmem:[%s6469_s8 + $0x550] sm:$0xff] }
  0xa6   : > { %3054 = vmatmul.mubr.bf16.gmra.mxu0 %v4954_v4  ;;  %v423_v4 = vld [vmem:[%s6469_s8 + $0x290] sm:$0xff] }
  0xa7   : > { %3215 = vmatmul.mubr.bf16.gmra.mxu1 %v4956_v5  ;;  %3255 = vmatprep.mubr.bf16.mxu0 %v4719_v6  ;;  %v431_v5 = vld [vmem:[%s6469_s8 + $0x2d0] sm:$0xff]  ;;  %v424_v6 = vld [vmem:[%s6469_s8 + $0x298] sm:$0xff] }
  0xa8   : > { %3416 = vmatprep.mubr.bf16.mxu1 %v4721_v7  ;;  %v6273_v7 = vld [vmem:[%s7394_s1 + $0x200] sm:$0xff]   ;;  %v4798_v20 = vcombine.low %v423_v4, %v431_v5 }
  0xae   : > { %3256 = vmatmul.mubr.bf16.vlgmr.msra.gmra.mxu0 %v4718_v10  ;;  %v6276_v10 = vld [vmem:[%s7394_s1 + $0x378] sm:$0xff]  }
  0xaf   : > { %3417 = vmatmul.mubr.bf16.vlgmr.msra.gmra.mxu1 %v4720_v13  ;;  %5709 = vmatpush3.bf16.msra.mxu0 %v6245_v14  ;;  %v4784_v13 = vcombine.low %v408_v54, %v416_v56  ;;  %v4799_v14 = vcombine.high %v423_v4, %v431_v5  ;;  %v512_v56 = vld [vmem:[%s6469_s8 + $0x558] sm:$0xff] }
  0xb0   : > { %5821 = vmatpush3.bf16.msra.mxu1 %v6247_v15  ;;  %3263 = vmatprep.mubr.bf16.mxu0 %v4735_v16  ;;  %v4801_v15 = vcombine.high %v424_v6, %v432_v8  ;;  %v439_v16 = vld [vmem:[%s6469_s8 + $0x310] sm:$0xff] }
  0xb1   : > { %3424 = vmatprep.mubr.bf16.mxu1 %v4737_v17  ;;  %5710 = vmatprep.subr.bf16.mxu0 %v6248_v18  ;;  %v447_v17 = vld [vmem:[%s6469_s8 + $0x350] sm:$0xff]  ;;  %v440_v18 = vld [vmem:[%s6469_s8 + $0x318] sm:$0xff] }
  0xb2   : > { %5822 = vmatprep.subr.bf16.mxu1 %v6250_v19  ;;  %v448_v19 = vld [vmem:[%s6469_s8 + $0x358] sm:$0xff]  ;;  %v4815_v22 = vcombine.high %v439_v16, %v447_v17 }
  0xb3   : > { %5711 = vmatpush3.bf16.msra.mxu0 %v6249_v21  ;;  %v4800_v21 = vcombine.low %v424_v6, %v432_v8 }
  0xb4   : > { %5823 = vmatpush3.bf16.msra.mxu1 %v6251_v23  ;;  %5712 = vmatprep.subr.bf16.mxu0 %v6252_v24  ;;  %v4817_v23 = vcombine.high %v440_v18, %v448_v19  ;;  %v455_v24 = vld [vmem:[%s6469_s8 + $0x390] sm:$0xff] }
  0xb5   : > { %5824 = vmatprep.subr.bf16.mxu1 %v6254_v27  ;;  %v464_v27 = vld [vmem:[%s6469_s8 + $0x3d8] sm:$0xff]  ;;  %v4830_v36 = vcombine.low %v455_v24, %v463_v25 }
  0xb6   : > { %3264 = vmatmul.mubr.bf16.gmra.mxu0 %v4734_v28  ;;  %v4814_v28 = vcombine.low %v439_v16, %v447_v17  ;;  %v4832_v37 = vcombine.low %v456_v26, %v464_v27 }
  0xb7   : > { %3425 = vmatmul.mubr.bf16.gmra.mxu1 %v4736_v29  ;;  %3271 = vmatprep.mubr.bf16.mxu0 %v4751_v30  ;;  %v4816_v29 = vcombine.low %v440_v18, %v448_v19  ;;  %v4831_v30 = vcombine.high %v455_v24, %v463_v25 }
  0xb8   : > { %3432 = vmatprep.mubr.bf16.mxu1 %v4753_v31  ;;  %5713 = vmatpush3.bf16.msra.mxu0 %v6253_v32  ;;  %v4833_v31 = vcombine.high %v456_v26, %v464_v27  ;;  %v471_v32 = vld [vmem:[%s6469_s8 + $0x410] sm:$0xff] }
  0xb9   : > { %5825 = vmatpush3.bf16.msra.mxu1 %v6255_v33  ;;  %5714 = vmatprep.subr.bf16.mxu0 %v6256_v34  ;;  %v479_v33 = vld [vmem:[%s6469_s8 + $0x450] sm:$0xff]  ;;  %v472_v34 = vld [vmem:[%s6469_s8 + $0x418] sm:$0xff] }
  0xba   : > { %5826 = vmatprep.subr.bf16.mxu1 %v6258_v35  ;;  %v480_v35 = vld [vmem:[%s6469_s8 + $0x458] sm:$0xff]  ;;  %v4847_v38 = vcombine.high %v471_v32, %v479_v33 }
  0xbc   : > { %5715 = vmatpush3.bf16.msra.mxu0 %v6257_v39  ;;  %v4849_v39 = vcombine.high %v472_v34, %v480_v35 }
  0xbd   : > { %5827 = vmatpush3.bf16.msra.mxu1 %v6259_v41  ;;  %5716 = vmatprep.subr.bf16.mxu0 %v6260_v42  ;;  %v495_v41 = vld [vmem:[%s6469_s8 + $0x4d0] sm:$0xff]  ;;  %v488_v42 = vld [vmem:[%s6469_s8 + $0x498] sm:$0xff] }
  0xbe   : > { %3272 = vmatmul.mubr.bf16.gmra.mxu0 %v4750_v43  ;;  %5828 = vmatprep.subr.bf16.mxu1 %v6262_v44  ;;  %v496_v43 = vld [vmem:[%s6469_s8 + $0x4d8] sm:$0xff]  ;;  %v4846_v44 = vcombine.low %v471_v32, %v479_v33  ;;  %v543_v32 = vld [vmem:[%s6469_s8 + $0x650] sm:$0xff] }
  0xbf   : > { %3433 = vmatmul.mubr.bf16.gmra.mxu1 %v4752_v45  ;;  %3279 = vmatprep.mubr.bf16.mxu0 %v4767_v46  ;;  %v4848_v45 = vcombine.low %v472_v34, %v480_v35  ;;  %v4863_v46 = vcombine.high %v487_v40, %v495_v41  ;;  %v536_v35 = vld [vmem:[%s6469_s8 + $0x618] sm:$0xff] }
  0xc0   : > { %3440 = vmatprep.mubr.bf16.mxu1 %v4769_v47  ;;  %5717 = vmatpush3.bf16.msra.mxu0 %v6261_v48  ;;  %v4865_v47 = vcombine.high %v488_v42, %v496_v43 }
  0xc1   : > { %5829 = vmatpush3.bf16.msra.mxu1 %v6263_v49  ;;  %5718 = vmatprep.subr.bf16.mxu0 %v6264_v50 }
  0xc2   : > { %5830 = vmatprep.subr.bf16.mxu1 %v6266_v51  ;;  %v503_v51 = vld [vmem:[%s6469_s8 + $0x510] sm:$0xff] }
  0xc3   : > { %v4878_v17 = vcombine.low %v503_v51, %v511_v52 }
  0xc4   : > { %5719 = vmatpush3.bf16.msra.mxu0 %v6265_v55  ;;  %v504_v55 = vld [vmem:[%s6469_s8 + $0x518] sm:$0xff] }
  0xc5   : > { %5831 = vmatpush3.bf16.msra.mxu1 %v6267_v57  ;;  %5720 = vmatprep.subr.bf16.mxu0 %v6268_v58  ;;  %v4880_v19 = vcombine.low %v504_v55, %v512_v56 }
  0xc6   : > { %3280 = vmatmul.mubr.bf16.gmra.mxu0 %v4766_v59  ;;  %5832 = vmatprep.subr.bf16.mxu1 %v6270_v60  ;;  %v4862_v59 = vcombine.low %v487_v40, %v495_v41 }
  0xc7   : > { %3441 = vmatmul.mubr.bf16.gmra.mxu1 %v4768_v61  ;;  %3287 = vmatprep.mubr.bf16.mxu0 %v4783_v62  ;;  %v4864_v61 = vcombine.low %v488_v42, %v496_v43  ;;  %v4879_v62 = vcombine.high %v503_v51, %v511_v52 }
  0xc8   : > { %3448 = vmatprep.mubr.bf16.mxu1 %v4785_v63  ;;  %5721 = vmatpush3.bf16.msra.mxu0 %v6269_v0 }
  0xc9   : > { %5833 = vmatpush3.bf16.msra.mxu1 %v6271_v1  ;;  %5722 = vmatprep.subr.bf16.mxu0 %v6272_v2  ;;  %v4881_v1 = vcombine.high %v504_v55, %v512_v56 }
  0xca   : > { %5834 = vmatprep.subr.bf16.mxu1 %v6274_v3 }
  0xcc   : > { %5723 = vmatpush3.bf16.msra.mxu0 %v6273_v7 }
  0xcd   : > { %5835 = vmatpush3.bf16.msra.mxu1 %v6275_v9  ;;  %5932 = vmatprep.subr.bf16.mxu0 %v6276_v10  ;;  %v519_v9 = vld [vmem:[%s6469_s8 + $0x590] sm:$0xff] }
  0xce   : > { %3288 = vmatmul.mubr.bf16.gmra.mxu0 %v4782_v11  ;;  %6044 = vmatprep.subr.bf16.mxu1 %v6278_v12  ;;  %v527_v10 = vld [vmem:[%s6469_s8 + $0x5d0] sm:$0xff] }
  0xcf   : > { %3449 = vmatmul.mubr.bf16.gmra.mxu1 %v4784_v13  ;;  %3295 = vmatprep.mubr.bf16.mxu0 %v4799_v14  ;;  %v520_v13 = vld [vmem:[%s6469_s8 + $0x598] sm:$0xff] }
  0xd0   : > { %3456 = vmatprep.mubr.bf16.mxu1 %v4801_v15  ;;  %v528_v14 = vld [vmem:[%s6469_s8 + $0x5d8] sm:$0xff] }
  0xd1   : > { %v4896_v41 = vcombine.low %v520_v13, %v528_v14 }
  0xd6   : > { %3296 = vmatmul.mubr.bf16.gmra.mxu0 %v4798_v20  ;;  %v4895_v20 = vcombine.high %v519_v9, %v527_v10 }
  0xd7   : > { %3457 = vmatmul.mubr.bf16.gmra.mxu1 %v4800_v21  ;;  %3303 = vmatprep.mubr.bf16.mxu0 %v4815_v22 }
  0xd8   : > { %3464 = vmatprep.mubr.bf16.mxu1 %v4817_v23  ;;  %v4897_v23 = vcombine.high %v520_v13, %v528_v14  ;;  %v567_v13 = vld [vmem:[%s6469_s8 + $0x710] sm:$0xff] }
  0xd9   : > { %v575_v14 = vld [vmem:[%s6469_s8 + $0x750] sm:$0xff] }
  0xde   : > { %3304 = vmatmul.mubr.bf16.gmra.mxu0 %v4814_v28 }
  0xdf   : > { %3465 = vmatmul.mubr.bf16.gmra.mxu1 %v4816_v29  ;;  %3311 = vmatprep.mubr.bf16.mxu0 %v4831_v30 }
  0xe0   : > { %3472 = vmatprep.mubr.bf16.mxu1 %v4833_v31  ;;  %v535_v31 = vld [vmem:[%s6469_s8 + $0x610] sm:$0xff] }
  0xe1   : > { %v4911_v42 = vcombine.high %v535_v31, %v543_v32 }
  0xe6   : > { %3312 = vmatmul.mubr.bf16.gmra.mxu0 %v4830_v36  ;;  %v544_v36 = vld [vmem:[%s6469_s8 + $0x658] sm:$0xff] }
  0xe7   : > { %3473 = vmatmul.mubr.bf16.gmra.mxu1 %v4832_v37  ;;  %3319 = vmatprep.mubr.bf16.mxu0 %v4847_v38 }
  0xe8   : > { %3480 = vmatprep.mubr.bf16.mxu1 %v4849_v39  ;;  %v4894_v39 = vcombine.low %v519_v9, %v527_v10 }
  0xee   : > { %v5276_v48 = vpop.f32.mrf.mxu0  ;;  %3320 = vmatmul.mubr.bf16.gmra.mxu0 %v4846_v44 }
  0xef   : > { %v5388_v49 = vpop.f32.mrf.mxu1  ;;  %3481 = vmatmul.mubr.bf16.gmra.mxu1 %v4848_v45  ;;  %3327 = vmatprep.mubr.bf16.mxu0 %v4863_v46  ;;  %v4913_v45 = vcombine.high %v536_v35, %v544_v36 }
  0xf0   : > { %v5277_v50 = vpop.f32.mrf.mxu0  ;;  %3488 = vmatprep.mubr.bf16.mxu1 %v4865_v47 }
  0xf1   : > { %v5278_v53 = vadd.f32 %v5277_v50, %v5276_v48  ;;  %v5389_v54 = vpop.f32.mrf.mxu1 }
  0xf2   : > { %v5390_v57 = vadd.f32 %v5389_v54, %v5388_v49  ;;  %v5279_v58 = vpop.f32.mrf.mxu0  ;;  %v559_v54 = vld [vmem:[%s6469_s8 + $0x6d0] sm:$0xff] }
  0xf3   : > { %v5391_v60 = vpop.f32.mrf.mxu1 }
  0xf4   : > { %v6783_v63 = vadd.f32 %v5390_v57, %v5278_v53  ;;  %v5280_v0 = vpop.f32.mrf.mxu0  ;;  %v551_v53 = vld [vmem:[%s6469_s8 + $0x690] sm:$0xff]  ;;  %v552_v57 = vld [vmem:[%s6469_s8 + $0x698] sm:$0xff] }
  0xf5   : > { %v5281_v2 = vadd.f32 %v5280_v0, %v5279_v58  ;;  %v5392_v3 = vpop.f32.mrf.mxu1  ;;  %v560_v58 = vld [vmem:[%s6469_s8 + $0x6d8] sm:$0xff]  ;;  %v4912_v0 = vcombine.low %v536_v35, %v544_v36 }
  0xf6   : > { %v5393_v4 = vadd.f32 %v5392_v3, %v5391_v60  ;;  %v5282_v5 = vpop.f32.mrf.mxu0  ;;  %3328 = vmatmul.mubr.bf16.gmra.mxu0 %v4862_v59 }
  0xf7   : > { %v5394_v6 = vpop.f32.mrf.mxu1  ;;  %3489 = vmatmul.mubr.bf16.gmra.mxu1 %v4864_v61  ;;  %3335 = vmatprep.mubr.bf16.mxu0 %v4879_v62  ;;  %v4910_v61 = vcombine.low %v535_v31, %v543_v32 }
  0xf8   : > { %v6785_v7 = vadd.f32 %v5393_v4, %v5281_v2  ;;  %v5283_v8 = vpop.f32.mrf.mxu0  ;;  %3496 = vmatprep.mubr.bf16.mxu1 %v4881_v1  ;;  %v4927_v1 = vcombine.high %v551_v53, %v559_v54  ;;  %v4929_v4 = vcombine.high %v552_v57, %v560_v58 }
  0xf9   : > { %v5284_v11 = vadd.f32 %v5283_v8, %v5282_v5  ;;  %v5395_v12 = vpop.f32.mrf.mxu1 }
  0xfa   : > { %v5396_v15 = vadd.f32 %v5395_v12, %v5394_v6  ;;  %v5285_v16 = vpop.f32.mrf.mxu0 }
  0xfb   : > { %v5397_v18 = vpop.f32.mrf.mxu1 }
  0xfc   : > { %v6791_v21 = vadd.f32 %v5396_v15, %v5284_v11  ;;  %v5286_v22 = vpop.f32.mrf.mxu0 }
  0xfd   : > { %v5287_v24 = vadd.f32 %v5286_v22, %v5285_v16  ;;  %v5398_v25 = vpop.f32.mrf.mxu1  ;;  %v4926_v22 = vcombine.low %v551_v53, %v559_v54 }
  0xfe   : > { %v5399_v26 = vadd.f32 %v5398_v25, %v5397_v18  ;;  %v5288_v27 = vpop.f32.mrf.mxu0  ;;  %3336 = vmatmul.mubr.bf16.gmra.mxu0 %v4878_v17  ;;  %v568_v17 = vld [vmem:[%s6469_s8 + $0x718] sm:$0xff]  ;;  %v4943_v25 = vcombine.high %v567_v13, %v575_v14 }
  0xff   : > { %v5400_v28 = vpop.f32.mrf.mxu1  ;;  %3497 = vmatmul.mubr.bf16.gmra.mxu1 %v4880_v19  ;;  %3343 = vmatprep.mubr.bf16.mxu0 %v4895_v20  ;;  %v576_v18 = vld [vmem:[%s6469_s8 + $0x758] sm:$0xff] }
 0x100   : > { %v6793_v29 = vadd.f32 %v5399_v26, %v5287_v24  ;;  %v5289_v30 = vpop.f32.mrf.mxu0  ;;  %3504 = vmatprep.mubr.bf16.mxu1 %v4897_v23  ;;  %v4928_v24 = vcombine.low %v552_v57, %v560_v58 }
 0x101   : > { %v5290_v33 = vadd.f32 %v5289_v30, %v5288_v27  ;;  %v5401_v34 = vpop.f32.mrf.mxu1 }
 0x102   : > { %v5402_v37 = vadd.f32 %v5401_v34, %v5400_v28  ;;  %v5291_v38 = vpop.f32.mrf.mxu0  ;;  %v4945_v28 = vcombine.high %v568_v17, %v576_v18 }
 0x103   : > { %v5403_v40 = vpop.f32.mrf.mxu1 }
 0x104   : > { %v6799_v43 = vadd.f32 %v5402_v37, %v5290_v33  ;;  %v5292_v44 = vpop.f32.mrf.mxu0  ;;  %v583_v37 = vld [vmem:[%s6469_s8 + $0x790] sm:$0xff] }
 0x105   : > { %v5293_v46 = vadd.f32 %v5292_v44, %v5291_v38  ;;  %v5404_v47 = vpop.f32.mrf.mxu1  ;;  %v591_v38 = vld [vmem:[%s6469_s8 + $0x7d0] sm:$0xff] }
 0x106   : > { %v5405_v48 = vadd.f32 %v5404_v47, %v5403_v40  ;;  %v5294_v49 = vpop.f32.mrf.mxu0  ;;  %3344 = vmatmul.mubr.bf16.gmra.mxu0 %v4894_v39 }
 0x107   : > { %v5406_v50 = vpop.f32.mrf.mxu1  ;;  %3505 = vmatmul.mubr.bf16.gmra.mxu1 %v4896_v41  ;;  %3351 = vmatprep.mubr.bf16.mxu0 %v4911_v42  ;;  %v584_v41 = vld [vmem:[%s6469_s8 + $0x798] sm:$0xff] }
 0x108   : > { %v6801_v51 = vadd.f32 %v5405_v48, %v5293_v46  ;;  %v5295_v52 = vpop.f32.mrf.mxu0  ;;  %3512 = vmatprep.mubr.bf16.mxu1 %v4913_v45  ;;  %v592_v42 = vld [vmem:[%s6469_s8 + $0x7d8] sm:$0xff]  ;;  %v4942_v46 = vcombine.low %v567_v13, %v575_v14  ;;  %v4944_v48 = vcombine.low %v568_v17, %v576_v18 }
 0x109   : > { %v5296_v55 = vadd.f32 %v5295_v52, %v5294_v49  ;;  %v5407_v56 = vpop.f32.mrf.mxu1  ;;  %v4959_v49 = vcombine.high %v583_v37, %v591_v38  ;;  %v4961_v53 = vcombine.high %v584_v41, %v592_v42 }
 0x10a   : > { %v5408_v59 = vadd.f32 %v5407_v56, %v5406_v50  ;;  %v5297_v60 = vpop.f32.mrf.mxu0 }
 0x10b   : > { %v5409_v62 = vpop.f32.mrf.mxu1 }
 0x10c   : > { %v6807_v2 = vadd.f32 %v5408_v59, %v5296_v55  ;;  %v5298_v3 = vpop.f32.mrf.mxu0 }
 0x10d   : > { %v5299_v5 = vadd.f32 %v5298_v3, %v5297_v60  ;;  %v5410_v6 = vpop.f32.mrf.mxu1  ;;  %v346_v3 = vld [vmem:[%s6469_s8 + $0x28] sm:$0xff] }
 0x10e   : > { %v5411_v8 = vadd.f32 %v5410_v6, %v5409_v62  ;;  %v5300_v9 = vpop.f32.mrf.mxu0  ;;  %3352 = vmatmul.mubr.bf16.gmra.mxu0 %v4910_v61  ;;  %v345_v61 = vld [vmem:[%s6469_s8 + $0x20] sm:$0xff] }
 0x10f   : > { %v5412_v10 = vpop.f32.mrf.mxu1  ;;  %3513 = vmatmul.mubr.bf16.gmra.mxu1 %v4912_v0  ;;  %3359 = vmatprep.mubr.bf16.mxu0 %v4927_v1  ;;  %v353_v62 = vld [vmem:[%s6469_s8 + $0x60] sm:$0xff] }
 0x110   : > { %v6809_v11 = vadd.f32 %v5411_v8, %v5299_v5  ;;  %v5301_v12 = vpop.f32.mrf.mxu0  ;;  %3520 = vmatprep.mubr.bf16.mxu1 %v4929_v4  ;;  %v354_v4 = vld [vmem:[%s6469_s8 + $0x68] sm:$0xff]  ;;  %v4958_v8 = vcombine.low %v583_v37, %v591_v38  ;;  %v6277_v38 = vld [vmem:[%s7394_s1 + $0x338] sm:$0xff]  }
 0x111   : > { %v5302_v15 = vadd.f32 %v5301_v12, %v5300_v9  ;;  %v5413_v16 = vpop.f32.mrf.mxu1  ;;  %v4723_v12 = vcombine.high %v345_v61, %v353_v62  ;;  %v4724_v37 = vcombine.low %v346_v3, %v354_v4 }
 0x112   : > { %v5414_v19 = vadd.f32 %v5413_v16, %v5412_v10  ;;  %v5303_v20 = vpop.f32.mrf.mxu0  ;;  %v4960_v10 = vcombine.low %v584_v41, %v592_v42  ;;  %v6279_v41 = vld [vmem:[%s7394_s1 + $0x3b8] sm:$0xff]  }
 0x113   : > { %v5415_v23 = vpop.f32.mrf.mxu1 }
 0x114   : > { %v6815_v26 = vadd.f32 %v5414_v19, %v5302_v15  ;;  %v5304_v27 = vpop.f32.mrf.mxu0  ;;  %v4725_v15 = vcombine.high %v346_v3, %v354_v4  ;;  %v6874_v3 = vld [vmem:[%s6469_s8 + $0x168] sm:$0xff] }
 0x115   : > { %v5305_v30 = vadd.f32 %v5304_v27, %v5303_v20  ;;  %v5416_v31 = vpop.f32.mrf.mxu1  ;;  %v361_v27 = vld [vmem:[%s6469_s8 + $0xa0] sm:$0xff]  ;;  %v6286_v4 = vld [vmem:[%s7394_s1 + $0x3e8] sm:$0xff]  }
 0x116   : > { %v5417_v32 = vadd.f32 %v5416_v31, %v5415_v23  ;;  %v5306_v33 = vpop.f32.mrf.mxu0  ;;  %3360 = vmatmul.mubr.bf16.gmra.mxu0 %v4926_v22 }
 0x117   : > { %v5418_v34 = vpop.f32.mrf.mxu1  ;;  %3521 = vmatmul.mubr.bf16.gmra.mxu1 %v4928_v24  ;;  %3367 = vmatprep.mubr.bf16.mxu0 %v4943_v25 }
 0x118   : > { %v6817_v35 = vadd.f32 %v5417_v32, %v5305_v30  ;;  %v5307_v36 = vpop.f32.mrf.mxu0  ;;  %3528 = vmatprep.mubr.bf16.mxu1 %v4945_v28  ;;  %v369_v28 = vld [vmem:[%s6469_s8 + $0xe0] sm:$0xff]  ;;  %v4722_v32 = vcombine.low %v345_v61, %v353_v62  ;;  %v6284_v61 = vld [vmem:[%s7394_s1 + $0x368] sm:$0xff]  }
 0x119   : > { %v5308_v39 = vadd.f32 %v5307_v36, %v5306_v33  ;;  %v5419_v40 = vpop.f32.mrf.mxu1  ;;  %v362_v33 = vld [vmem:[%s6469_s8 + $0xa8] sm:$0xff]  ;;  %v4739_v42 = vcombine.high %v361_v27, %v369_v28 }
 0x11a   : > { %v5420_v44 = vadd.f32 %v5419_v40, %v5418_v34  ;;  %v5309_v45 = vpop.f32.mrf.mxu0  ;;  %v370_v34 = vld [vmem:[%s6469_s8 + $0xe8] sm:$0xff] }
 0x11b   : > { %v5421_v47 = vpop.f32.mrf.mxu1 }
 0x11c   : > { %v6823_v50 = vadd.f32 %v5420_v44, %v5308_v39  ;;  %v5310_v52 = vpop.f32.mrf.mxu0 }
 0x11d   : > { %v5311_v54 = vadd.f32 %v5310_v52, %v5309_v45  ;;  %v5422_v55 = vpop.f32.mrf.mxu1  ;;  %v6282_v52 = vld [vmem:[%s7394_s1 + $0x3f0] sm:$0xff]  }
 0x11e   : > { %v5423_v56 = vadd.f32 %v5422_v55, %v5421_v47  ;;  %v5312_v57 = vpop.f32.mrf.mxu0  ;;  %3368 = vmatmul.mubr.bf16.gmra.mxu0 %v4942_v46  ;;  %v4741_v46 = vcombine.high %v362_v33, %v370_v34  ;;  %v6280_v47 = vld [vmem:[%s7394_s1 + $0x370] sm:$0xff]  }
 0x11f   : > { %v5424_v58 = vpop.f32.mrf.mxu1  ;;  %3529 = vmatmul.mubr.bf16.gmra.mxu1 %v4944_v48  ;;  %3375 = vmatprep.mubr.bf16.mxu0 %v4959_v49  ;;  %v6281_v55 = vld [vmem:[%s7394_s1 + $0x330] sm:$0xff]  }
 0x120   : > { %v6825_v59 = vadd.f32 %v5423_v56, %v5311_v54  ;;  %v5313_v60 = vpop.f32.mrf.mxu0  ;;  %3536 = vmatprep.mubr.bf16.mxu1 %v4961_v53  ;;  %v6854_v54 = vld [vmem:[%s6469_s8 + $0x120] sm:$0xff] }
 0x121   : > { %v5314_v0 = vadd.f32 %v5313_v60, %v5312_v57  ;;  %v5425_v1 = vpop.f32.mrf.mxu1  ;;  %v6283_v60 = vld [vmem:[%s7394_s1 + $0x3b0] sm:$0xff]  }
 0x122   : > { %v5426_v5 = vadd.f32 %v5425_v1, %v5424_v58  ;;  %v5315_v6 = vpop.f32.mrf.mxu0  ;;  %v6862_v58 = vld [vmem:[%s6469_s8 + $0x160] sm:$0xff]  ;;  %v6871_v1 = vld [vmem:[%s6469_s8 + $0x128] sm:$0xff] }
 0x123   : > { %v5427_v9 = vpop.f32.mrf.mxu1 }
 0x124   : > { %v6831_v13 = vadd.f32 %v5426_v5, %v5314_v0  ;;  %v5316_v14 = vpop.f32.mrf.mxu0 }
 0x125   : > { %v5317_v16 = vadd.f32 %v5316_v14, %v5315_v6  ;;  %v5428_v17 = vpop.f32.mrf.mxu1 }
 0x126   : > { %v5429_v18 = vadd.f32 %v5428_v17, %v5427_v9  ;;  %v5318_v19 = vpop.f32.mrf.mxu0  ;;  %3376 = vmatmul.mubr.bf16.gmra.mxu0 %v4958_v8  ;;  %v4738_v8 = vcombine.low %v361_v27, %v369_v28  ;;  %v6285_v17 = vld [vmem:[%s7394_s1 + $0x328] sm:$0xff]   ;;  %v6290_v27 = vld [vmem:[%s7394_s1 + $0x3e0] sm:$0xff]  }
 0x127   : > { %v5430_v20 = vpop.f32.mrf.mxu1  ;;  %3537 = vmatmul.mubr.bf16.gmra.mxu1 %v4960_v10  ;;  %3577 = vmatprep.mubr.bf16.mxu0 %v4723_v12  ;;  %v4740_v10 = vcombine.low %v362_v33, %v370_v34  ;;  %v4755_v12 = vcombine.high %v6854_v54, %v6862_v58  ;;  %v6903_v33 = vld [vmem:[%s6469_s8 + $0x1e0] sm:$0xff]  ;;  %v6906_v34 = vld [vmem:[%s6469_s8 + $0x1a8] sm:$0xff] }
 0x128   : > { %v6833_v22 = vadd.f32 %v5429_v18, %v5317_v16  ;;  %v5319_v23 = vpop.f32.mrf.mxu0  ;;  %3738 = vmatprep.mubr.bf16.mxu1 %v4725_v15  ;;  %v4757_v16 = vcombine.high %v6871_v1, %v6874_v3 }
 0x129   : > { %v5320_v24 = vadd.f32 %v5319_v23, %v5318_v19  ;;  %v5431_v25 = vpop.f32.mrf.mxu1  ;;  %v6288_v23 = vld [vmem:[%s7394_s1 + $0x360] sm:$0xff]  }
 0x12a   : > { %v5432_v30 = vadd.f32 %v5431_v25, %v5430_v20  ;;  %v5321_v31 = vpop.f32.mrf.mxu0  ;;  %v6287_v20 = vld [vmem:[%s7394_s1 + $0x3a8] sm:$0xff]  }
 0x12b   : > { %v5433_v36 = vpop.f32.mrf.mxu1 }
 0x12c   : > { %v6842_v39 = vadd.f32 %v5432_v30, %v5320_v24  ;;  %v5322_v40 = vpop.f32.mrf.mxu0  ;;  %v6898_v30 = vld [vmem:[%s6469_s8 + $0x1a0] sm:$0xff] }
 0x12d   : > { %v5323_v44 = vadd.f32 %v5322_v40, %v5321_v31  ;;  %v5434_v45 = vpop.f32.mrf.mxu1  ;;  %v6912_v40 = vld [vmem:[%s6469_s8 + $0x1e8] sm:$0xff] }
 0x12e   : > { %v5435_v48 = vadd.f32 %v5434_v45, %v5433_v36  ;;  %v5324_v49 = vpop.f32.mrf.mxu0  ;;  %3578 = vmatmul.mubr.bf16.vlgmr.msra.gmra.mxu0 %v4722_v32  ;;  %v6289_v36 = vld [vmem:[%s7394_s1 + $0x320] sm:$0xff]  }
 0x12f   : > { %v5436_v53 = vpop.f32.mrf.mxu1  ;;  %3739 = vmatmul.mubr.bf16.vlgmr.msra.gmra.mxu1 %v4724_v37  ;;  %5933 = vmatpush3.bf16.msra.mxu0 %v6277_v38 }
 0x130   : > { %v6859_v56 = vadd.f32 %v5435_v48, %v5323_v44  ;;  %v5325_v57 = vpop.f32.mrf.mxu0  ;;  %6045 = vmatpush3.bf16.msra.mxu1 %v6279_v41  ;;  %3585 = vmatprep.mubr.bf16.mxu0 %v4739_v42  ;;  %v6291_v41 = vld [vmem:[%s7394_s1 + $0x3a0] sm:$0xff]   ;;  %v6292_v42 = vld [vmem:[%s7394_s1 + $0x358] sm:$0xff]  }
 0x131   : > { %v5326_v62 = vadd.f32 %v5325_v57, %v5324_v49  ;;  %v5437_v0 = vpop.f32.mrf.mxu1  ;;  %3746 = vmatprep.mubr.bf16.mxu1 %v4741_v46  ;;  %5934 = vmatprep.subr.bf16.mxu0 %v6280_v47  ;;  %v4754_v46 = vcombine.low %v6854_v54, %v6862_v58  ;;  %v6294_v47 = vld [vmem:[%s7394_s1 + $0x3d8] sm:$0xff]   ;;  %v4756_v49 = vcombine.low %v6871_v1, %v6874_v3  ;;  %v6298_v3 = vld [vmem:[%s7394_s1 + $0x3d0] sm:$0xff]  }
 0x132   : > { %v5438_v5 = vadd.f32 %v5437_v0, %v5436_v53  ;;  %v5327_v6 = vpop.f32.mrf.mxu0  ;;  %6046 = vmatprep.subr.bf16.mxu1 %v6282_v52  ;;  %v4771_v52 = vcombine.high %v6898_v30, %v6903_v33  ;;  %v4773_v57 = vcombine.high %v6906_v34, %v6912_v40  ;;  %v6293_v54 = vld [vmem:[%s7394_s1 + $0x318] sm:$0xff]  }
 0x133   : > { %v5439_v9 = vpop.f32.mrf.mxu1  ;;  %5935 = vmatpush3.bf16.msra.mxu0 %v6281_v55 }
 0x134   : > { %v6881_v14 = vadd.f32 %v5438_v5, %v5326_v62  ;;  %v5328_v15 = vpop.f32.mrf.mxu0  ;;  %6047 = vmatpush3.bf16.msra.mxu1 %v6283_v60  ;;  %5936 = vmatprep.subr.bf16.mxu0 %v6284_v61  ;;  %v6295_v61 = vld [vmem:[%s7394_s1 + $0x398] sm:$0xff]   ;;  %v6296_v62 = vld [vmem:[%s7394_s1 + $0x350] sm:$0xff]   ;;  %v6946_v5 = vld [vmem:[%s6469_s8 + $0x220] sm:$0xff] }
 0x135   : > { %v5329_v18 = vadd.f32 %v5328_v15, %v5327_v6  ;;  %v5440_v19 = vpop.f32.mrf.mxu1  ;;  %6048 = vmatprep.subr.bf16.mxu1 %v6286_v4 }
 0x136   : > { %v5441_v24 = vadd.f32 %v5440_v19, %v5439_v9  ;;  %v5330_v25 = vpop.f32.mrf.mxu0  ;;  %3586 = vmatmul.mubr.bf16.gmra.mxu0 %v4738_v8  ;;  %v6951_v9 = vld [vmem:[%s6469_s8 + $0x260] sm:$0xff]  ;;  %v6300_v19 = vld [vmem:[%s7394_s1 + $0x348] sm:$0xff]  }
 0x137   : > { %v5442_v28 = vpop.f32.mrf.mxu1  ;;  %3747 = vmatmul.mubr.bf16.gmra.mxu1 %v4740_v10  ;;  %3593 = vmatprep.mubr.bf16.mxu0 %v4755_v12  ;;  %v6954_v10 = vld [vmem:[%s6469_s8 + $0x228] sm:$0xff]  ;;  %v6297_v12 = vld [vmem:[%s7394_s1 + $0x310] sm:$0xff]  }
 0x138   : > { %v6900_v31 = vadd.f32 %v5441_v24, %v5329_v18  ;;  %v5331_v32 = vpop.f32.mrf.mxu0  ;;  %3754 = vmatprep.mubr.bf16.mxu1 %v4757_v16  ;;  %5937 = vmatpush3.bf16.msra.mxu0 %v6285_v17  ;;  %v6960_v17 = vld [vmem:[%s6469_s8 + $0x268] sm:$0xff]  ;;  %v6299_v18 = vld [vmem:[%s7394_s1 + $0x390] sm:$0xff]   ;;  %v4770_v24 = vcombine.low %v6898_v30, %v6903_v33 }
 0x139   : > { %v5332_v37 = vadd.f32 %v5331_v32, %v5330_v25  ;;  %v5443_v38 = vpop.f32.mrf.mxu1  ;;  %6049 = vmatpush3.bf16.msra.mxu1 %v6287_v20  ;;  %5938 = vmatprep.subr.bf16.mxu0 %v6288_v23  ;;  %v6302_v25 = vld [vmem:[%s7394_s1 + $0x3c8] sm:$0xff]   ;;  %v4787_v32 = vcombine.high %v6946_v5, %v6951_v9 }
 0x13a   : > { %v5444_v44 = vadd.f32 %v5443_v38, %v5442_v28  ;;  %v5333_v45 = vpop.f32.mrf.mxu0  ;;  %6050 = vmatprep.subr.bf16.mxu1 %v6290_v27  ;;  %v4772_v28 = vcombine.low %v6906_v34, %v6912_v40  ;;  %v4789_v38 = vcombine.high %v6954_v10, %v6960_v17  ;;  %v6301_v30 = vld [vmem:[%s7394_s1 + $0x308] sm:$0xff]   ;;  %v6304_v40 = vld [vmem:[%s7394_s1 + $0x340] sm:$0xff]  }
 0x13b   : > { %v5445_v48 = vpop.f32.mrf.mxu1  ;;  %v6303_v34 = vld [vmem:[%s7394_s1 + $0x388] sm:$0xff]  }
 0x13c   : > { %v6929_v53 = vadd.f32 %v5444_v44, %v5332_v37  ;;  %v5334_v55 = vpop.f32.mrf.mxu0  ;;  %5939 = vmatpush3.bf16.msra.mxu0 %v6289_v36 }
 0x13d   : > { %v5335_v58 = vadd.f32 %v5334_v55, %v5333_v45  ;;  %v5446_v60 = vpop.f32.mrf.mxu1  ;;  %6051 = vmatpush3.bf16.msra.mxu1 %v6291_v41  ;;  %5940 = vmatprep.subr.bf16.mxu0 %v6292_v42  ;;  %v6306_v45 = vld [vmem:[%s7394_s1 + $0x3c0] sm:$0xff]  }
 0x13e   : > { %v5447_v0 = vadd.f32 %v5446_v60, %v5445_v48  ;;  %v5336_v1 = vpop.f32.mrf.mxu0  ;;  %3594 = vmatmul.mubr.bf16.gmra.mxu0 %v4754_v46  ;;  %6052 = vmatprep.subr.bf16.mxu1 %v6294_v47  ;;  %v6305_v55 = vld [vmem:[%s7394_s1 + $0x300] sm:$0xff]   ;;  %v434_v60 = vld [vmem:[%s6469_s8 + $0x2e8] sm:$0xff] }
 0x13f   : > { %v5448_v4 = vpop.f32.mrf.mxu1  ;;  %3755 = vmatmul.mubr.bf16.gmra.mxu1 %v4756_v49  ;;  %3601 = vmatprep.mubr.bf16.mxu0 %v4771_v52  ;;  %v425_v49 = vld [vmem:[%s6469_s8 + $0x2a0] sm:$0xff] }
 0x140   : > { %v6948_v6 = vadd.f32 %v5447_v0, %v5335_v58  ;;  %v5337_v8 = vpop.f32.mrf.mxu0  ;;  %3762 = vmatprep.mubr.bf16.mxu1 %v4773_v57  ;;  %5941 = vmatpush3.bf16.msra.mxu0 %v6293_v54  ;;  %v433_v52 = vld [vmem:[%s6469_s8 + $0x2e0] sm:$0xff]  ;;  %v426_v58 = vld [vmem:[%s6469_s8 + $0x2a8] sm:$0xff] }
 0x141   : > { %v5338_v15 = vadd.f32 %v5337_v8, %v5336_v1  ;;  %v5449_v16 = vpop.f32.mrf.mxu1  ;;  %6053 = vmatpush3.bf16.msra.mxu1 %v6295_v61  ;;  %5942 = vmatprep.subr.bf16.mxu0 %v6296_v62  ;;  %v6307_v61 = vld [vmem:[%s7394_s1 + $0x380] sm:$0xff]   ;;  %v4786_v1 = vcombine.low %v6946_v5, %v6951_v9  ;;  %v4803_v8 = vcombine.high %v425_v49, %v433_v52 }
 0x142   : > { %v5450_v20 = vadd.f32 %v5449_v16, %v5448_v4  ;;  %v5339_v23 = vpop.f32.mrf.mxu0  ;;  %6054 = vmatprep.subr.bf16.mxu1 %v6298_v3  ;;  %v4788_v4 = vcombine.low %v6954_v10, %v6960_v17  ;;  %v4805_v16 = vcombine.high %v426_v58, %v434_v60 }
 0x143   : > { %v5451_v27 = vpop.f32.mrf.mxu1 }
 0x144   : > { %v6977_v36 = vadd.f32 %v5450_v20, %v5338_v15  ;;  %v5340_v37 = vpop.f32.mrf.mxu0  ;;  %5943 = vmatpush3.bf16.msra.mxu0 %v6297_v12 }
 0x145   : > { %v5341_v33 = vadd.f32 %v5340_v37, %v5339_v23  ;;  %v5452_v41 = vpop.f32.mrf.mxu1  ;;  %6055 = vmatpush3.bf16.msra.mxu1 %v6299_v18  ;;  %5944 = vmatprep.subr.bf16.mxu0 %v6300_v19  ;;  %v441_v23 = vld [vmem:[%s6469_s8 + $0x320] sm:$0xff] }
 0x146   : > { %v5453_v42 = vadd.f32 %v5452_v41, %v5451_v27  ;;  %v5342_v44 = vpop.f32.mrf.mxu0  ;;  %3602 = vmatmul.mubr.bf16.gmra.mxu0 %v4770_v24  ;;  %6056 = vmatprep.subr.bf16.mxu1 %v6302_v25  ;;  %v449_v24 = vld [vmem:[%s6469_s8 + $0x360] sm:$0xff]  ;;  %v4804_v41 = vcombine.low %v426_v58, %v434_v60 }
 0x147   : > { %v5454_v46 = vpop.f32.mrf.mxu1  ;;  %3763 = vmatmul.mubr.bf16.gmra.mxu1 %v4772_v28  ;;  %3609 = vmatprep.mubr.bf16.mxu0 %v4787_v32  ;;  %v442_v28 = vld [vmem:[%s6469_s8 + $0x328] sm:$0xff]  ;;  %v465_v58 = vld [vmem:[%s6469_s8 + $0x3e0] sm:$0xff] }
 0x148   : > { %v6993_v47 = vadd.f32 %v5453_v42, %v5341_v33  ;;  %v5343_v48 = vpop.f32.mrf.mxu0  ;;  %3770 = vmatprep.mubr.bf16.mxu1 %v4789_v38  ;;  %5945 = vmatpush3.bf16.msra.mxu0 %v6301_v30  ;;  %v450_v32 = vld [vmem:[%s6469_s8 + $0x368] sm:$0xff]  ;;  %v4802_v30 = vcombine.low %v425_v49, %v433_v52 }
 0x149   : > { %v5344_v57 = vadd.f32 %v5343_v48, %v5342_v44  ;;  %v5455_v54 = vpop.f32.mrf.mxu1  ;;  %6057 = vmatpush3.bf16.msra.mxu1 %v6303_v34  ;;  %5946 = vmatprep.subr.bf16.mxu0 %v6304_v40  ;;  %v4819_v34 = vcombine.high %v441_v23, %v449_v24  ;;  %v4821_v44 = vcombine.high %v442_v28, %v450_v32 }
 0x14a   : > { %v5456_v62 = vadd.f32 %v5455_v54, %v5454_v46  ;;  %v5345_v0 = vpop.f32.mrf.mxu0  ;;  %6058 = vmatprep.subr.bf16.mxu1 %v6306_v45  ;;  %v457_v54 = vld [vmem:[%s6469_s8 + $0x3a0] sm:$0xff] }
 0x14b   : > { %v5457_v3 = vpop.f32.mrf.mxu1 }
 0x14c   : > { %v7009_v12 = vadd.f32 %v5456_v62, %v5344_v57  ;;  %v5346_v15 = vpop.f32.mrf.mxu0  ;;  %5947 = vmatpush3.bf16.msra.mxu0 %v6305_v55  ;;  %v458_v62 = vld [vmem:[%s6469_s8 + $0x3a8] sm:$0xff] }
 0x14d   : > { %v5347_v18 = vadd.f32 %v5346_v15, %v5345_v0  ;;  %v5458_v19 = vpop.f32.mrf.mxu1  ;;  %6059 = vmatpush3.bf16.msra.mxu1 %v6307_v61  ;;  %v466_v0 = vld [vmem:[%s6469_s8 + $0x3e8] sm:$0xff]  ;;  %v4820_v15 = vcombine.low %v442_v28, %v450_v32  ;;  %v473_v28 = vld [vmem:[%s6469_s8 + $0x420] sm:$0xff] }
 0x14e   : > { %v5459_v20 = vadd.f32 %v5458_v19, %v5457_v3  ;;  %v5348_v5 = vpop.f32.mrf.mxu0  ;;  %3610 = vmatmul.mubr.bf16.gmra.mxu0 %v4786_v1  ;;  %v481_v32 = vld [vmem:[%s6469_s8 + $0x460] sm:$0xff] }
 0x14f   : > { %v5460_v9 = vpop.f32.mrf.mxu1  ;;  %3771 = vmatmul.mubr.bf16.gmra.mxu1 %v4788_v4  ;;  %3617 = vmatprep.mubr.bf16.mxu0 %v4803_v8  ;;  %v4818_v4 = vcombine.low %v441_v23, %v449_v24 }
 0x150   : > { %v7011_v10 = vadd.f32 %v5459_v20, %v5347_v18  ;;  %v5349_v17 = vpop.f32.mrf.mxu0  ;;  %3778 = vmatprep.mubr.bf16.mxu1 %v4805_v16  ;;  %v4835_v16 = vcombine.high %v457_v54, %v465_v58  ;;  %v4837_v20 = vcombine.high %v458_v62, %v466_v0 }
 0x151   : > { %v5350_v25 = vadd.f32 %v5349_v17, %v5348_v5  ;;  %v5461_v27 = vpop.f32.mrf.mxu1 }
 0x152   : > { %v5462_v37 = vadd.f32 %v5461_v27, %v5460_v9  ;;  %v5351_v38 = vpop.f32.mrf.mxu0 }
 0x153   : > { %v5463_v33 = vpop.f32.mrf.mxu1 }
 0x154   : > { %v7017_v40 = vadd.f32 %v5462_v37, %v5350_v25  ;;  %v5352_v42 = vpop.f32.mrf.mxu0 }
 0x155   : > { %v5353_v45 = vadd.f32 %v5352_v42, %v5351_v38  ;;  %v5464_v46 = vpop.f32.mrf.mxu1  ;;  %v4834_v42 = vcombine.low %v457_v54, %v465_v58 }
 0x156   : > { %v5465_v48 = vadd.f32 %v5464_v46, %v5463_v33  ;;  %v5354_v55 = vpop.f32.mrf.mxu0  ;;  %3618 = vmatmul.mubr.bf16.gmra.mxu0 %v4802_v30  ;;  %v474_v30 = vld [vmem:[%s6469_s8 + $0x428] sm:$0xff]  ;;  %v4851_v46 = vcombine.high %v473_v28, %v481_v32 }
 0x157   : > { %v5466_v57 = vpop.f32.mrf.mxu1  ;;  %3779 = vmatmul.mubr.bf16.gmra.mxu1 %v4804_v41  ;;  %3625 = vmatprep.mubr.bf16.mxu0 %v4819_v34  ;;  %v482_v33 = vld [vmem:[%s6469_s8 + $0x468] sm:$0xff] }
 0x158   : > { %v7019_v49 = vadd.f32 %v5465_v48, %v5353_v45  ;;  %v5355_v52 = vpop.f32.mrf.mxu0  ;;  %3786 = vmatprep.mubr.bf16.mxu1 %v4821_v44  ;;  %v4836_v45 = vcombine.low %v458_v62, %v466_v0  ;;  %v489_v62 = vld [vmem:[%s6469_s8 + $0x4a0] sm:$0xff] }
 0x159   : > { %v5356_v60 = vadd.f32 %v5355_v52, %v5354_v55  ;;  %v5467_v61 = vpop.f32.mrf.mxu1  ;;  %v497_v0 = vld [vmem:[%s6469_s8 + $0x4e0] sm:$0xff] }
 0x15a   : > { %v5468_v1 = vadd.f32 %v5467_v61, %v5466_v57  ;;  %v5357_v3 = vpop.f32.mrf.mxu0  ;;  %v4853_v57 = vcombine.high %v474_v30, %v482_v33 }
 0x15b   : > { %v5469_v8 = vpop.f32.mrf.mxu1 }
 0x15c   : > { %v7025_v18 = vadd.f32 %v5468_v1, %v5356_v60  ;;  %v5358_v19 = vpop.f32.mrf.mxu0 }
 0x15d   : > { %v5359_v5 = vadd.f32 %v5358_v19, %v5357_v3  ;;  %v5470_v9 = vpop.f32.mrf.mxu1 }
 0x15e   : > { %v5471_v17 = vadd.f32 %v5470_v9, %v5469_v8  ;;  %v5360_v25 = vpop.f32.mrf.mxu0  ;;  %3626 = vmatmul.mubr.bf16.gmra.mxu0 %v4818_v4 }
 0x15f   : > { %v5472_v27 = vpop.f32.mrf.mxu1  ;;  %3787 = vmatmul.mubr.bf16.gmra.mxu1 %v4820_v15  ;;  %3633 = vmatprep.mubr.bf16.mxu0 %v4835_v16  ;;  %v490_v15 = vld [vmem:[%s6469_s8 + $0x4a8] sm:$0xff] }
 0x160   : > { %v7027_v23 = vadd.f32 %v5471_v17, %v5359_v5  ;;  %v5361_v24 = vpop.f32.mrf.mxu0  ;;  %3794 = vmatprep.mubr.bf16.mxu1 %v4837_v20  ;;  %v498_v16 = vld [vmem:[%s6469_s8 + $0x4e8] sm:$0xff]  ;;  %v4850_v5 = vcombine.low %v473_v28, %v481_v32  ;;  %v4852_v17 = vcombine.low %v474_v30, %v482_v33  ;;  %v505_v30 = vld [vmem:[%s6469_s8 + $0x520] sm:$0xff] }
 0x161   : > { %v5362_v37 = vadd.f32 %v5361_v24, %v5360_v25  ;;  %v5473_v38 = vpop.f32.mrf.mxu1  ;;  %v4867_v25 = vcombine.high %v489_v62, %v497_v0  ;;  %v513_v33 = vld [vmem:[%s6469_s8 + $0x560] sm:$0xff] }
 0x162   : > { %v5474_v41 = vadd.f32 %v5473_v38, %v5472_v27  ;;  %v5363_v34 = vpop.f32.mrf.mxu0 }
 0x163   : > { %v5475_v44 = vpop.f32.mrf.mxu1 }
 0x164   : > { %v7033_v48 = vadd.f32 %v5474_v41, %v5362_v37  ;;  %v5364_v55 = vpop.f32.mrf.mxu0  ;;  %v4869_v37 = vcombine.high %v490_v15, %v498_v16 }
 0x165   : > { %v5365_v52 = vadd.f32 %v5364_v55, %v5363_v34  ;;  %v5476_v60 = vpop.f32.mrf.mxu1  ;;  %v506_v55 = vld [vmem:[%s6469_s8 + $0x528] sm:$0xff] }
 0x166   : > { %v5477_v61 = vadd.f32 %v5476_v60, %v5475_v44  ;;  %v5366_v1 = vpop.f32.mrf.mxu0  ;;  %3634 = vmatmul.mubr.bf16.gmra.mxu0 %v4834_v42 }
 0x167   : > { %v5478_v3 = vpop.f32.mrf.mxu1  ;;  %3795 = vmatmul.mubr.bf16.gmra.mxu1 %v4836_v45  ;;  %3641 = vmatprep.mubr.bf16.mxu0 %v4851_v46 }
 0x168   : > { %v7035_v54 = vadd.f32 %v5477_v61, %v5365_v52  ;;  %v5367_v58 = vpop.f32.mrf.mxu0  ;;  %3802 = vmatprep.mubr.bf16.mxu1 %v4853_v57  ;;  %v514_v57 = vld [vmem:[%s6469_s8 + $0x568] sm:$0xff]  ;;  %v4866_v61 = vcombine.low %v489_v62, %v497_v0 }
 0x169   : > { %v5368_v4 = vadd.f32 %v5367_v58, %v5366_v1  ;;  %v5479_v8 = vpop.f32.mrf.mxu1  ;;  %v4868_v58 = vcombine.low %v490_v15, %v498_v16  ;;  %v521_v15 = vld [vmem:[%s6469_s8 + $0x5a0] sm:$0xff] }
 0x16a   : > { %v5480_v19 = vadd.f32 %v5479_v8, %v5478_v3  ;;  %v5369_v20 = vpop.f32.mrf.mxu0  ;;  %v529_v16 = vld [vmem:[%s6469_s8 + $0x5e0] sm:$0xff] }
 0x16b   : > { %v5481_v9 = vpop.f32.mrf.mxu1 }
 0x16c   : > { %v7041_v27 = vadd.f32 %v5480_v19, %v5368_v4  ;;  %v5370_v24 = vpop.f32.mrf.mxu0  ;;  %v4883_v4 = vcombine.high %v505_v30, %v513_v33  ;;  %v4885_v19 = vcombine.high %v506_v55, %v514_v57 }
 0x16d   : > { %v5371_v38 = vadd.f32 %v5370_v24, %v5369_v20  ;;  %v5482_v41 = vpop.f32.mrf.mxu1 }
 0x16e   : > { %v5483_v34 = vadd.f32 %v5482_v41, %v5481_v9  ;;  %v5500_v42 = vpop.f32.mrf.mxu0  ;;  %3642 = vmatmul.mubr.bf16.gmra.mxu0 %v4850_v5  ;;  %v522_v41 = vld [vmem:[%s6469_s8 + $0x5a8] sm:$0xff] }
 0x16f   : > { %v5612_v44 = vpop.f32.mrf.mxu1  ;;  %3803 = vmatmul.mubr.bf16.gmra.mxu1 %v4852_v17  ;;  %3649 = vmatprep.mubr.bf16.mxu0 %v4867_v25 }
 0x170   : > { %v7043_v28 = vadd.f32 %v5483_v34, %v5371_v38  ;;  %v5501_v32 = vpop.f32.mrf.mxu0  ;;  %3810 = vmatprep.mubr.bf16.mxu1 %v4869_v37  ;;  %v530_v34 = vld [vmem:[%s6469_s8 + $0x5e8] sm:$0xff] }
 0x171   : > { %v5502_v45 = vadd.f32 %v5501_v32, %v5500_v42  ;;  %v5613_v46 = vpop.f32.mrf.mxu1  ;;  %v4882_v32 = vcombine.low %v505_v30, %v513_v33 }
 0x172   : > { %v5614_v52 = vadd.f32 %v5613_v46, %v5612_v44  ;;  %v5503_v60 = vpop.f32.mrf.mxu0 }
 0x173   : > { %v3258_v1 = vadd.f32 %v5502_v45, %v6783_v63  ;;  %v5615_v3 = vpop.f32.mrf.mxu1 }
 0x174   : > { %v5504_v8 = vpop.f32.mrf.mxu0 }
 0x175   : > { %v7050_v20 = vadd.f32 %v5614_v52, %v3258_v1  ;;  %v5505_v5 = vadd.f32 %v5504_v8, %v5503_v60  ;;  %v5616_v9 = vpop.f32.mrf.mxu1  ;;  %v4899_v52 = vcombine.high %v521_v15, %v529_v16 }
 0x176   : > { %v5617_v17 = vadd.f32 %v5616_v9, %v5615_v3  ;;  %v5506_v25 = vpop.f32.mrf.mxu0  ;;  %3650 = vmatmul.mubr.bf16.gmra.mxu0 %v4866_v61  ;;  %v4901_v61 = vcombine.high %v522_v41, %v530_v34 }
 0x177   : > { %v3261_v62 = vadd.f32 %v5505_v5, %v6785_v7  ;;  %v5618_v0 = vpop.f32.mrf.mxu1  ;;  %3811 = vmatmul.mubr.bf16.gmra.mxu1 %v4868_v58  ;;  %3657 = vmatprep.mubr.bf16.mxu0 %v4883_v4  ;;  %v4884_v7 = vcombine.low %v506_v55, %v514_v57  ;;  %v537_v55 = vld [vmem:[%s6469_s8 + $0x620] sm:$0xff] }
 0x178   : > { %v5507_v63 = vpop.f32.mrf.mxu0  ;;  %3818 = vmatprep.mubr.bf16.mxu1 %v4885_v19  ;;  %v545_v57 = vld [vmem:[%s6469_s8 + $0x660] sm:$0xff] }
 0x179   : > { %v7055_v24 = vadd.f32 %v5617_v17, %v3261_v62  ;;  %v5508_v37 = vadd.f32 %v5507_v63, %v5506_v25  ;;  %v5619_v38 = vpop.f32.mrf.mxu1  ;;  %v538_v17 = vld [vmem:[%s6469_s8 + $0x628] sm:$0xff]  ;;  %v4898_v63 = vcombine.low %v521_v15, %v529_v16 }
 0x17a   : > { %v5620_v42 = vadd.f32 %v5619_v38, %v5618_v0  ;;  %v5509_v44 = vpop.f32.mrf.mxu0  ;;  %v546_v25 = vld [vmem:[%s6469_s8 + $0x668] sm:$0xff] }
 0x17b   : > { %v3266_v45 = vadd.f32 %v5508_v37, %v6791_v21  ;;  %v5621_v46 = vpop.f32.mrf.mxu1 }
 0x17c   : > { %v5510_v60 = vpop.f32.mrf.mxu0 }
 0x17d   : > { %v7060_v1 = vadd.f32 %v5620_v42, %v3266_v45  ;;  %v5511_v3 = vadd.f32 %v5510_v60, %v5509_v44  ;;  %v5622_v58 = vpop.f32.mrf.mxu1  ;;  %v4915_v42 = vcombine.high %v537_v55, %v545_v57 }
 0x17e   : > { %v5623_v4 = vadd.f32 %v5622_v58, %v5621_v46  ;;  %v5512_v8 = vpop.f32.mrf.mxu0  ;;  %3658 = vmatmul.mubr.bf16.gmra.mxu0 %v4882_v32  ;;  %v4917_v32 = vcombine.high %v538_v17, %v546_v25 }
 0x17f   : > { %v3269_v30 = vadd.f32 %v5511_v3, %v6793_v29  ;;  %v5624_v33 = vpop.f32.mrf.mxu1  ;;  %3819 = vmatmul.mubr.bf16.gmra.mxu1 %v4884_v7  ;;  %3665 = vmatprep.mubr.bf16.mxu0 %v4899_v52  ;;  %v4900_v29 = vcombine.low %v522_v41, %v530_v34  ;;  %v553_v41 = vld [vmem:[%s6469_s8 + $0x6a0] sm:$0xff] }
 0x180   : > { %v5513_v21 = vpop.f32.mrf.mxu0  ;;  %3826 = vmatprep.mubr.bf16.mxu1 %v4901_v61  ;;  %v561_v34 = vld [vmem:[%s6469_s8 + $0x6e0] sm:$0xff] }
 0x181   : > { %v7065_v19 = vadd.f32 %v5623_v4, %v3269_v30  ;;  %v5514_v5 = vadd.f32 %v5513_v21, %v5512_v8  ;;  %v5625_v9 = vpop.f32.mrf.mxu1  ;;  %v554_v4 = vld [vmem:[%s6469_s8 + $0x6a8] sm:$0xff]  ;;  %v4914_v21 = vcombine.low %v537_v55, %v545_v57 }
 0x182   : > { %v5626_v62 = vadd.f32 %v5625_v9, %v5624_v33  ;;  %v5515_v0 = vpop.f32.mrf.mxu0  ;;  %v562_v8 = vld [vmem:[%s6469_s8 + $0x6e8] sm:$0xff] }
 0x183   : > { %v3274_v37 = vadd.f32 %v5514_v5, %v6799_v43  ;;  %v5627_v38 = vpop.f32.mrf.mxu1 }
 0x184   : > { %v5516_v44 = vpop.f32.mrf.mxu0 }
 0x185   : > { %v7070_v45 = vadd.f32 %v5626_v62, %v3274_v37  ;;  %v5517_v46 = vadd.f32 %v5516_v44, %v5515_v0  ;;  %v5628_v7 = vpop.f32.mrf.mxu1  ;;  %v4931_v62 = vcombine.high %v553_v41, %v561_v34 }
 0x186   : > { %v5629_v52 = vadd.f32 %v5628_v7, %v5627_v38  ;;  %v5518_v60 = vpop.f32.mrf.mxu0  ;;  %3666 = vmatmul.mubr.bf16.gmra.mxu0 %v4898_v63  ;;  %v4933_v63 = vcombine.high %v554_v4, %v562_v8 }
 0x187   : > { %v3277_v15 = vadd.f32 %v5517_v46, %v6801_v51  ;;  %v5630_v16 = vpop.f32.mrf.mxu1  ;;  %3827 = vmatmul.mubr.bf16.gmra.mxu1 %v4900_v29  ;;  %3673 = vmatprep.mubr.bf16.mxu0 %v4915_v42  ;;  %v4916_v51 = vcombine.low %v538_v17, %v546_v25  ;;  %v569_v17 = vld [vmem:[%s6469_s8 + $0x720] sm:$0xff] }
 0x188   : > { %v5519_v43 = vpop.f32.mrf.mxu0  ;;  %3834 = vmatprep.mubr.bf16.mxu1 %v4917_v32  ;;  %v577_v25 = vld [vmem:[%s6469_s8 + $0x760] sm:$0xff] }
 0x189   : > { %v7075_v61 = vadd.f32 %v5629_v52, %v3277_v15  ;;  %v5520_v3 = vadd.f32 %v5519_v43, %v5518_v60  ;;  %v5631_v58 = vpop.f32.mrf.mxu1  ;;  %v570_v52 = vld [vmem:[%s6469_s8 + $0x728] sm:$0xff]  ;;  %v4930_v43 = vcombine.low %v553_v41, %v561_v34 }
 0x18a   : > { %v5632_v30 = vadd.f32 %v5631_v58, %v5630_v16  ;;  %v5521_v33 = vpop.f32.mrf.mxu0  ;;  %v578_v60 = vld [vmem:[%s6469_s8 + $0x768] sm:$0xff] }
 0x18b   : > { %v3282_v5 = vadd.f32 %v5520_v3, %v6807_v2  ;;  %v5633_v9 = vpop.f32.mrf.mxu1 }
 0x18c   : > { %v5522_v0 = vpop.f32.mrf.mxu0 }
 0x18d   : > { %v7080_v37 = vadd.f32 %v5632_v30, %v3282_v5  ;;  %v5523_v38 = vadd.f32 %v5522_v0, %v5521_v33  ;;  %v5634_v29 = vpop.f32.mrf.mxu1  ;;  %v4947_v30 = vcombine.high %v569_v17, %v577_v25 }
 0x18e   : > { %v5635_v42 = vadd.f32 %v5634_v29, %v5633_v9  ;;  %v5524_v44 = vpop.f32.mrf.mxu0  ;;  %3674 = vmatmul.mubr.bf16.gmra.mxu0 %v4914_v21  ;;  %v4949_v21 = vcombine.high %v570_v52, %v578_v60 }
 0x18f   : > { %v3285_v55 = vadd.f32 %v5523_v38, %v6809_v11  ;;  %v5636_v57 = vpop.f32.mrf.mxu1  ;;  %3835 = vmatmul.mubr.bf16.gmra.mxu1 %v4916_v51  ;;  %3681 = vmatprep.mubr.bf16.mxu0 %v4931_v62  ;;  %v4932_v11 = vcombine.low %v554_v4, %v562_v8  ;;  %v585_v4 = vld [vmem:[%s6469_s8 + $0x7a0] sm:$0xff] }
 0x190   : > { %v5525_v2 = vpop.f32.mrf.mxu0  ;;  %3842 = vmatprep.mubr.bf16.mxu1 %v4933_v63  ;;  %v593_v8 = vld [vmem:[%s6469_s8 + $0x7e0] sm:$0xff] }
 0x191   : > { %v7085_v32 = vadd.f32 %v5635_v42, %v3285_v55  ;;  %v5526_v46 = vadd.f32 %v5525_v2, %v5524_v44  ;;  %v5637_v7 = vpop.f32.mrf.mxu1  ;;  %v586_v42 = vld [vmem:[%s6469_s8 + $0x7a8] sm:$0xff]  ;;  %v4946_v2 = vcombine.low %v569_v17, %v577_v25 }
 0x192   : > { %v5638_v15 = vadd.f32 %v5637_v7, %v5636_v57  ;;  %v5527_v16 = vpop.f32.mrf.mxu0  ;;  %v594_v44 = vld [vmem:[%s6469_s8 + $0x7e8] sm:$0xff] }
 0x193   : > { %v3290_v3 = vadd.f32 %v5526_v46, %v6815_v26  ;;  %v5639_v58 = vpop.f32.mrf.mxu1 }
 0x194   : > { %v5528_v33 = vpop.f32.mrf.mxu0 }
 0x195   : > { %v7090_v5 = vadd.f32 %v5638_v15, %v3290_v3  ;;  %v5529_v9 = vadd.f32 %v5528_v33, %v5527_v16  ;;  %v5640_v51 = vpop.f32.mrf.mxu1  ;;  %v4963_v15 = vcombine.high %v585_v4, %v593_v8 }
 0x196   : > { %v5641_v62 = vadd.f32 %v5640_v51, %v5639_v58  ;;  %v5530_v0 = vpop.f32.mrf.mxu0  ;;  %3682 = vmatmul.mubr.bf16.gmra.mxu0 %v4930_v43  ;;  %v4965_v43 = vcombine.high %v586_v42, %v594_v44 }
 0x197   : > { %v3293_v41 = vadd.f32 %v5529_v9, %v6817_v35  ;;  %v5642_v34 = vpop.f32.mrf.mxu1  ;;  %3843 = vmatmul.mubr.bf16.gmra.mxu1 %v4932_v11  ;;  %3689 = vmatprep.mubr.bf16.mxu0 %v4947_v30  ;;  %v4948_v35 = vcombine.low %v570_v52, %v578_v60  ;;  %v347_v52 = vld [vmem:[%s6469_s8 + $0x30] sm:$0xff] }
 0x198   : > { %v5531_v26 = vpop.f32.mrf.mxu0  ;;  %3850 = vmatprep.mubr.bf16.mxu1 %v4949_v21  ;;  %v355_v60 = vld [vmem:[%s6469_s8 + $0x70] sm:$0xff] }
 0x199   : > { %v7095_v63 = vadd.f32 %v5641_v62, %v3293_v41  ;;  %v5532_v38 = vadd.f32 %v5531_v26, %v5530_v0  ;;  %v5643_v29 = vpop.f32.mrf.mxu1  ;;  %v348_v62 = vld [vmem:[%s6469_s8 + $0x38] sm:$0xff]  ;;  %v4962_v26 = vcombine.low %v585_v4, %v593_v8 }
 0x19a   : > { %v5644_v55 = vadd.f32 %v5643_v29, %v5642_v34  ;;  %v5533_v57 = vpop.f32.mrf.mxu0  ;;  %v356_v0 = vld [vmem:[%s6469_s8 + $0x78] sm:$0xff] }
 0x19b   : > { %v3298_v46 = vadd.f32 %v5532_v38, %v6823_v50  ;;  %v5645_v7 = vpop.f32.mrf.mxu1 }
 0x19c   : > { %v5534_v16 = vpop.f32.mrf.mxu0 }
 0x19d   : > { %v7100_v3 = vadd.f32 %v5644_v55, %v3298_v46  ;;  %v5535_v58 = vadd.f32 %v5534_v16, %v5533_v57  ;;  %v5646_v11 = vpop.f32.mrf.mxu1  ;;  %v4727_v55 = vcombine.high %v347_v52, %v355_v60 }
 0x19e   : > { %v5647_v30 = vadd.f32 %v5646_v11, %v5645_v7  ;;  %v5536_v33 = vpop.f32.mrf.mxu0  ;;  %3690 = vmatmul.mubr.bf16.gmra.mxu0 %v4946_v2  ;;  %v4729_v2 = vcombine.high %v348_v62, %v356_v0 }
 0x19f   : > { %v3301_v17 = vadd.f32 %v5535_v58, %v6825_v59  ;;  %v5648_v25 = vpop.f32.mrf.mxu1  ;;  %3851 = vmatmul.mubr.bf16.gmra.mxu1 %v4948_v35  ;;  %3697 = vmatprep.mubr.bf16.mxu0 %v4963_v15  ;;  %v4964_v59 = vcombine.low %v586_v42, %v594_v44  ;;  %v363_v42 = vld [vmem:[%s6469_s8 + $0xb0] sm:$0xff] }
 0x1a0   : > { %v5537_v50 = vpop.f32.mrf.mxu0  ;;  %3858 = vmatprep.mubr.bf16.mxu1 %v4965_v43  ;;  %v371_v44 = vld [vmem:[%s6469_s8 + $0xf0] sm:$0xff] }
 0x1a1   : > { %v7105_v21 = vadd.f32 %v5647_v30, %v3301_v17  ;;  %v5538_v9 = vadd.f32 %v5537_v50, %v5536_v33  ;;  %v5649_v51 = vpop.f32.mrf.mxu1  ;;  %v364_v30 = vld [vmem:[%s6469_s8 + $0xb8] sm:$0xff]  ;;  %v4726_v50 = vcombine.low %v347_v52, %v355_v60 }
 0x1a2   : > { %v5650_v41 = vadd.f32 %v5649_v51, %v5648_v25  ;;  %v5539_v34 = vpop.f32.mrf.mxu0  ;;  %v372_v33 = vld [vmem:[%s6469_s8 + $0xf8] sm:$0xff] }
 0x1a3   : > { %v3306_v38 = vadd.f32 %v5538_v9, %v6831_v13  ;;  %v5651_v29 = vpop.f32.mrf.mxu1 }
 0x1a4   : > { %v5540_v57 = vpop.f32.mrf.mxu0 }
 0x1a5   : > { %v7110_v46 = vadd.f32 %v5650_v41, %v3306_v38  ;;  %v5541_v7 = vadd.f32 %v5540_v57, %v5539_v34  ;;  %v5652_v35 = vpop.f32.mrf.mxu1  ;;  %v4743_v41 = vcombine.high %v363_v42, %v371_v44 }
 0x1a6   : > { %v5653_v15 = vadd.f32 %v5652_v35, %v5651_v29  ;;  %v5542_v16 = vpop.f32.mrf.mxu0  ;;  %3698 = vmatmul.mubr.bf16.gmra.mxu0 %v4962_v26  ;;  %v4745_v26 = vcombine.high %v364_v30, %v372_v33 }
 0x1a7   : > { %v3309_v4 = vadd.f32 %v5541_v7, %v6833_v22  ;;  %v5654_v8 = vpop.f32.mrf.mxu1  ;;  %3859 = vmatmul.mubr.bf16.gmra.mxu1 %v4964_v59  ;;  %3899 = vmatprep.mubr.bf16.mxu0 %v4727_v55  ;;  %v4728_v22 = vcombine.low %v348_v62, %v356_v0  ;;  %v379_v62 = vld [vmem:[%s6469_s8 + $0x130] sm:$0xff] }
 0x1a8   : > { %v5543_v13 = vpop.f32.mrf.mxu0  ;;  %4060 = vmatprep.mubr.bf16.mxu1 %v4729_v2  ;;  %v387_v0 = vld [vmem:[%s6469_s8 + $0x170] sm:$0xff] }
 0x1a9   : > { %v7115_v43 = vadd.f32 %v5653_v15, %v3309_v4  ;;  %v5544_v58 = vadd.f32 %v5543_v13, %v5542_v16  ;;  %v5655_v11 = vpop.f32.mrf.mxu1  ;;  %v380_v15 = vld [vmem:[%s6469_s8 + $0x138] sm:$0xff]  ;;  %v4742_v13 = vcombine.low %v363_v42, %v371_v44 }
 0x1aa   : > { %v5656_v17 = vadd.f32 %v5655_v11, %v5654_v8  ;;  %v5545_v25 = vpop.f32.mrf.mxu0  ;;  %v388_v16 = vld [vmem:[%s6469_s8 + $0x178] sm:$0xff] }
 0x1ab   : > { %v3314_v9 = vadd.f32 %v5544_v58, %v6842_v39  ;;  %v5657_v51 = vpop.f32.mrf.mxu1 }
 0x1ac   : > { %v5546_v34 = vpop.f32.mrf.mxu0 }
 0x1ad   : > { %v7120_v38 = vadd.f32 %v5656_v17, %v3314_v9  ;;  %v5547_v29 = vadd.f32 %v5546_v34, %v5545_v25  ;;  %v5658_v59 = vpop.f32.mrf.mxu1  ;;  %v4759_v17 = vcombine.high %v379_v62, %v387_v0 }
 0x1ae   : > { %v5659_v55 = vadd.f32 %v5658_v59, %v5657_v51  ;;  %v5548_v57 = vpop.f32.mrf.mxu0  ;;  %3900 = vmatmul.mubr.bf16.vlgmr.msra.gmra.mxu0 %v4726_v50  ;;  %v4761_v50 = vcombine.high %v380_v15, %v388_v16 }
 0x1af   : > { %v3317_v52 = vadd.f32 %v5547_v29, %v6859_v56  ;;  %v5660_v60 = vpop.f32.mrf.mxu1  ;;  %4061 = vmatmul.mubr.bf16.vlgmr.msra.gmra.mxu1 %v4728_v22  ;;  %3907 = vmatprep.mubr.bf16.mxu0 %v4743_v41  ;;  %v4744_v56 = vcombine.low %v364_v30, %v372_v33  ;;  %v395_v30 = vld [vmem:[%s6469_s8 + $0x1b0] sm:$0xff] }
 0x1b0   : > { %v5549_v39 = vpop.f32.mrf.mxu0  ;;  %4068 = vmatprep.mubr.bf16.mxu1 %v4745_v26  ;;  %v403_v33 = vld [vmem:[%s6469_s8 + $0x1f0] sm:$0xff] }
 0x1b1   : > { %v7125_v2 = vadd.f32 %v5659_v55, %v3317_v52  ;;  %v5550_v7 = vadd.f32 %v5549_v39, %v5548_v57  ;;  %v5661_v35 = vpop.f32.mrf.mxu1  ;;  %v396_v55 = vld [vmem:[%s6469_s8 + $0x1b8] sm:$0xff]  ;;  %v4758_v39 = vcombine.low %v379_v62, %v387_v0 }
 0x1b2   : > { %v5662_v4 = vadd.f32 %v5661_v35, %v5660_v60  ;;  %v5551_v8 = vpop.f32.mrf.mxu0  ;;  %v404_v57 = vld [vmem:[%s6469_s8 + $0x1f8] sm:$0xff] }
 0x1b3   : > { %v3322_v58 = vadd.f32 %v5550_v7, %v6881_v14  ;;  %v5663_v11 = vpop.f32.mrf.mxu1 }
 0x1b4   : > { %v5552_v25 = vpop.f32.mrf.mxu0 }
 0x1b5   : > { %v7130_v9 = vadd.f32 %v5662_v4, %v3322_v58  ;;  %v5553_v51 = vadd.f32 %v5552_v25, %v5551_v8  ;;  %v5664_v22 = vpop.f32.mrf.mxu1  ;;  %v4775_v4 = vcombine.high %v395_v30, %v403_v33 }
 0x1b6   : > { %v5665_v41 = vadd.f32 %v5664_v22, %v5663_v11  ;;  %v5554_v34 = vpop.f32.mrf.mxu0  ;;  %3908 = vmatmul.mubr.bf16.gmra.mxu0 %v4742_v13  ;;  %v4777_v13 = vcombine.high %v396_v55, %v404_v57 }
 0x1b7   : > { %v3325_v42 = vadd.f32 %v5553_v51, %v6900_v31  ;;  %v5666_v44 = vpop.f32.mrf.mxu1  ;;  %4069 = vmatmul.mubr.bf16.gmra.mxu1 %v4744_v56  ;;  %3915 = vmatprep.mubr.bf16.mxu0 %v4759_v17  ;;  %v4760_v31 = vcombine.low %v380_v15, %v388_v16  ;;  %v411_v15 = vld [vmem:[%s6469_s8 + $0x230] sm:$0xff] }
 0x1b8   : > { %v5555_v14 = vpop.f32.mrf.mxu0  ;;  %4076 = vmatprep.mubr.bf16.mxu1 %v4761_v50  ;;  %v419_v16 = vld [vmem:[%s6469_s8 + $0x270] sm:$0xff] }
 0x1b9   : > { %v7135_v26 = vadd.f32 %v5665_v41, %v3325_v42  ;;  %v5556_v29 = vadd.f32 %v5555_v14, %v5554_v34  ;;  %v5667_v59 = vpop.f32.mrf.mxu1  ;;  %v412_v41 = vld [vmem:[%s6469_s8 + $0x238] sm:$0xff]  ;;  %v4774_v14 = vcombine.low %v395_v30, %v403_v33 }
 0x1ba   : > { %v5668_v52 = vadd.f32 %v5667_v59, %v5666_v44  ;;  %v5557_v60 = vpop.f32.mrf.mxu0  ;;  %v420_v34 = vld [vmem:[%s6469_s8 + $0x278] sm:$0xff] }
 0x1bb   : > { %v3330_v7 = vadd.f32 %v5556_v29, %v6929_v53  ;;  %v5669_v35 = vpop.f32.mrf.mxu1 }
 0x1bc   : > { %v5558_v8 = vpop.f32.mrf.mxu0 }
 0x1bd   : > { %v7140_v58 = vadd.f32 %v5668_v52, %v3330_v7  ;;  %v5559_v11 = vadd.f32 %v5558_v8, %v5557_v60  ;;  %v5670_v56 = vpop.f32.mrf.mxu1  ;;  %v4791_v52 = vcombine.high %v411_v15, %v419_v16 }
 0x1be   : > { %v5671_v17 = vadd.f32 %v5670_v56, %v5669_v35  ;;  %v5560_v25 = vpop.f32.mrf.mxu0  ;;  %3916 = vmatmul.mubr.bf16.gmra.mxu0 %v4758_v39  ;;  %v4793_v39 = vcombine.high %v412_v41, %v420_v34 }
 0x1bf   : > { %v3333_v62 = vadd.f32 %v5559_v11, %v6948_v6  ;;  %v5672_v0 = vpop.f32.mrf.mxu1  ;;  %4077 = vmatmul.mubr.bf16.gmra.mxu1 %v4760_v31  ;;  %3923 = vmatprep.mubr.bf16.mxu0 %v4775_v4  ;;  %v4776_v6 = vcombine.low %v396_v55, %v404_v57  ;;  %v427_v55 = vld [vmem:[%s6469_s8 + $0x2b0] sm:$0xff] }
 0x1c0   : > { %v5561_v53 = vpop.f32.mrf.mxu0  ;;  %4084 = vmatprep.mubr.bf16.mxu1 %v4777_v13  ;;  %v435_v57 = vld [vmem:[%s6469_s8 + $0x2f0] sm:$0xff] }
 0x1c1   : > { %v7145_v50 = vadd.f32 %v5671_v17, %v3333_v62  ;;  %v5562_v51 = vadd.f32 %v5561_v53, %v5560_v25  ;;  %v5673_v22 = vpop.f32.mrf.mxu1  ;;  %v428_v17 = vld [vmem:[%s6469_s8 + $0x2b8] sm:$0xff]  ;;  %v4790_v53 = vcombine.low %v411_v15, %v419_v16 }
 0x1c2   : > { %v5674_v42 = vadd.f32 %v5673_v22, %v5672_v0  ;;  %v5563_v44 = vpop.f32.mrf.mxu0  ;;  %v436_v25 = vld [vmem:[%s6469_s8 + $0x2f8] sm:$0xff] }
 0x1c3   : > { %v3338_v29 = vadd.f32 %v5562_v51, %v6977_v36  ;;  %v5675_v59 = vpop.f32.mrf.mxu1 }
 0x1c4   : > { %v5564_v60 = vpop.f32.mrf.mxu0 }
 0x1c5   : > { %v7150_v7 = vadd.f32 %v5674_v42, %v3338_v29  ;;  %v5565_v35 = vadd.f32 %v5564_v60, %v5563_v44  ;;  %v5676_v31 = vpop.f32.mrf.mxu1  ;;  %v4807_v42 = vcombine.high %v427_v55, %v435_v57 }
 0x1c6   : > { %v5677_v4 = vadd.f32 %v5676_v31, %v5675_v59  ;;  %v5566_v8 = vpop.f32.mrf.mxu0  ;;  %3924 = vmatmul.mubr.bf16.gmra.mxu0 %v4774_v14  ;;  %v4809_v14 = vcombine.high %v428_v17, %v436_v25 }
 0x1c7   : > { %v3341_v30 = vadd.f32 %v5565_v35, %v6993_v47  ;;  %v5678_v33 = vpop.f32.mrf.mxu1  ;;  %4085 = vmatmul.mubr.bf16.gmra.mxu1 %v4776_v6  ;;  %3931 = vmatprep.mubr.bf16.mxu0 %v4791_v52  ;;  %v4792_v47 = vcombine.low %v412_v41, %v420_v34  ;;  %v443_v41 = vld [vmem:[%s6469_s8 + $0x330] sm:$0xff] }
 0x1c8   : > { %v5567_v36 = vpop.f32.mrf.mxu0  ;;  %4092 = vmatprep.mubr.bf16.mxu1 %v4793_v39  ;;  %v451_v34 = vld [vmem:[%s6469_s8 + $0x370] sm:$0xff] }
 0x1c9   : > { %v7155_v13 = vadd.f32 %v5677_v4, %v3341_v30  ;;  %v5568_v11 = vadd.f32 %v5567_v36, %v5566_v8  ;;  %v5679_v56 = vpop.f32.mrf.mxu1  ;;  %v444_v4 = vld [vmem:[%s6469_s8 + $0x338] sm:$0xff]  ;;  %v4806_v36 = vcombine.low %v427_v55, %v435_v57 }
 0x1ca   : > { %v5680_v62 = vadd.f32 %v5679_v56, %v5678_v33  ;;  %v5569_v0 = vpop.f32.mrf.mxu0  ;;  %v452_v8 = vld [vmem:[%s6469_s8 + $0x378] sm:$0xff] }
 0x1cb   : > { %v3346_v51 = vadd.f32 %v5568_v11, %v7009_v12  ;;  %v5681_v22 = vpop.f32.mrf.mxu1 }
 0x1cc   : > { %v5570_v44 = vpop.f32.mrf.mxu0 }
 0x1cd   : > { %v7160_v29 = vadd.f32 %v5680_v62, %v3346_v51  ;;  %v5571_v59 = vadd.f32 %v5570_v44, %v5569_v0  ;;  %v5682_v6 = vpop.f32.mrf.mxu1  ;;  %v4823_v62 = vcombine.high %v443_v41, %v451_v34 }
 0x1ce   : > { %v5683_v52 = vadd.f32 %v5682_v6, %v5681_v22  ;;  %v5572_v60 = vpop.f32.mrf.mxu0  ;;  %3932 = vmatmul.mubr.bf16.gmra.mxu0 %v4790_v53  ;;  %v4825_v53 = vcombine.high %v444_v4, %v452_v8 }
 0x1cf   : > { %v3349_v15 = vadd.f32 %v5571_v59, %v7011_v10  ;;  %v5684_v16 = vpop.f32.mrf.mxu1  ;;  %4093 = vmatmul.mubr.bf16.gmra.mxu1 %v4792_v47  ;;  %3939 = vmatprep.mubr.bf16.mxu0 %v4807_v42  ;;  %v4808_v10 = vcombine.low %v428_v17, %v436_v25  ;;  %v459_v17 = vld [vmem:[%s6469_s8 + $0x3b0] sm:$0xff] }
 0x1d0   : > { %v5573_v12 = vpop.f32.mrf.mxu0  ;;  %4100 = vmatprep.mubr.bf16.mxu1 %v4809_v14  ;;  %v467_v25 = vld [vmem:[%s6469_s8 + $0x3f0] sm:$0xff] }
 0x1d1   : > { %v7165_v39 = vadd.f32 %v5683_v52, %v3349_v15  ;;  %v5574_v35 = vadd.f32 %v5573_v12, %v5572_v60  ;;  %v5685_v31 = vpop.f32.mrf.mxu1  ;;  %v460_v52 = vld [vmem:[%s6469_s8 + $0x3b8] sm:$0xff]  ;;  %v4822_v12 = vcombine.low %v443_v41, %v451_v34 }
 0x1d2   : > { %v5686_v30 = vadd.f32 %v5685_v31, %v5684_v16  ;;  %v5575_v33 = vpop.f32.mrf.mxu0  ;;  %v468_v60 = vld [vmem:[%s6469_s8 + $0x3f8] sm:$0xff] }
 0x1d3   : > { %v3354_v11 = vadd.f32 %v5574_v35, %v7017_v40  ;;  %v5687_v56 = vpop.f32.mrf.mxu1 }
 0x1d4   : > { %v5576_v0 = vpop.f32.mrf.mxu0 }
 0x1d5   : > { %v7170_v51 = vadd.f32 %v5686_v30, %v3354_v11  ;;  %v5577_v22 = vadd.f32 %v5576_v0, %v5575_v33  ;;  %v5688_v47 = vpop.f32.mrf.mxu1  ;;  %v4839_v30 = vcombine.high %v459_v17, %v467_v25 }
 0x1d6   : > { %v5689_v42 = vadd.f32 %v5688_v47, %v5687_v56  ;;  %v5578_v44 = vpop.f32.mrf.mxu0  ;;  %3940 = vmatmul.mubr.bf16.gmra.mxu0 %v4806_v36  ;;  %v4841_v36 = vcombine.high %v460_v52, %v468_v60 }
 0x1d7   : > { %v3357_v55 = vadd.f32 %v5577_v22, %v7019_v49  ;;  %v5690_v57 = vpop.f32.mrf.mxu1  ;;  %4101 = vmatmul.mubr.bf16.gmra.mxu1 %v4808_v10  ;;  %3947 = vmatprep.mubr.bf16.mxu0 %v4823_v62  ;;  %v4824_v49 = vcombine.low %v444_v4, %v452_v8  ;;  %v475_v4 = vld [vmem:[%s6469_s8 + $0x430] sm:$0xff] }
 0x1d8   : > { %v5579_v40 = vpop.f32.mrf.mxu0  ;;  %4108 = vmatprep.mubr.bf16.mxu1 %v4825_v53  ;;  %v483_v8 = vld [vmem:[%s6469_s8 + $0x470] sm:$0xff] }
 0x1d9   : > { %v7175_v14 = vadd.f32 %v5689_v42, %v3357_v55  ;;  %v5580_v59 = vadd.f32 %v5579_v40, %v5578_v44  ;;  %v5691_v6 = vpop.f32.mrf.mxu1  ;;  %v476_v42 = vld [vmem:[%s6469_s8 + $0x438] sm:$0xff]  ;;  %v4838_v40 = vcombine.low %v459_v17, %v467_v25 }
 0x1da   : > { %v5692_v15 = vadd.f32 %v5691_v6, %v5690_v57  ;;  %v5581_v16 = vpop.f32.mrf.mxu0  ;;  %v484_v44 = vld [vmem:[%s6469_s8 + $0x478] sm:$0xff] }
 0x1db   : > { %v3362_v35 = vadd.f32 %v5580_v59, %v7025_v18  ;;  %v5693_v31 = vpop.f32.mrf.mxu1 }
 0x1dc   : > { %v5582_v33 = vpop.f32.mrf.mxu0 }
 0x1dd   : > { %v7180_v11 = vadd.f32 %v5692_v15, %v3362_v35  ;;  %v5583_v56 = vadd.f32 %v5582_v33, %v5581_v16  ;;  %v5694_v10 = vpop.f32.mrf.mxu1  ;;  %v4855_v15 = vcombine.high %v475_v4, %v483_v8 }
 0x1de   : > { %v5695_v62 = vadd.f32 %v5694_v10, %v5693_v31  ;;  %v5584_v0 = vpop.f32.mrf.mxu0  ;;  %3948 = vmatmul.mubr.bf16.gmra.mxu0 %v4822_v12  ;;  %v4857_v12 = vcombine.high %v476_v42, %v484_v44 }
 0x1df   : > { %v3365_v41 = vadd.f32 %v5583_v56, %v7027_v23  ;;  %v5696_v34 = vpop.f32.mrf.mxu1  ;;  %4109 = vmatmul.mubr.bf16.gmra.mxu1 %v4824_v49  ;;  %3955 = vmatprep.mubr.bf16.mxu0 %v4839_v30  ;;  %v4840_v23 = vcombine.low %v460_v52, %v468_v60  ;;  %v491_v52 = vld [vmem:[%s6469_s8 + $0x4b0] sm:$0xff] }
 0x1e0   : > { %v5585_v18 = vpop.f32.mrf.mxu0  ;;  %4116 = vmatprep.mubr.bf16.mxu1 %v4841_v36  ;;  %v499_v60 = vld [vmem:[%s6469_s8 + $0x4f0] sm:$0xff] }
 0x1e1   : > { %v7185_v53 = vadd.f32 %v5695_v62, %v3365_v41  ;;  %v5586_v22 = vadd.f32 %v5585_v18, %v5584_v0  ;;  %v5697_v47 = vpop.f32.mrf.mxu1  ;;  %v492_v62 = vld [vmem:[%s6469_s8 + $0x4b8] sm:$0xff]  ;;  %v4854_v18 = vcombine.low %v475_v4, %v483_v8 }
 0x1e2   : > { %v5698_v55 = vadd.f32 %v5697_v47, %v5696_v34  ;;  %v5587_v57 = vpop.f32.mrf.mxu0  ;;  %v500_v0 = vld [vmem:[%s6469_s8 + $0x4f8] sm:$0xff] }
 0x1e3   : > { %v3370_v59 = vadd.f32 %v5586_v22, %v7033_v48  ;;  %v5699_v6 = vpop.f32.mrf.mxu1 }
 0x1e4   : > { %v5588_v16 = vpop.f32.mrf.mxu0 }
 0x1e5   : > { %v7190_v35 = vadd.f32 %v5698_v55, %v3370_v59  ;;  %v5589_v31 = vadd.f32 %v5588_v16, %v5587_v57  ;;  %v5700_v49 = vpop.f32.mrf.mxu1  ;;  %v4871_v55 = vcombine.high %v491_v52, %v499_v60 }
 0x1e6   : > { %v5701_v30 = vadd.f32 %v5700_v49, %v5699_v6  ;;  %v5590_v33 = vpop.f32.mrf.mxu0  ;;  %3956 = vmatmul.mubr.bf16.gmra.mxu0 %v4838_v40  ;;  %v4873_v40 = vcombine.high %v492_v62, %v500_v0 }
 0x1e7   : > { %v3373_v17 = vadd.f32 %v5589_v31, %v7035_v54  ;;  %v5702_v25 = vpop.f32.mrf.mxu1  ;;  %4117 = vmatmul.mubr.bf16.gmra.mxu1 %v4840_v23  ;;  %3963 = vmatprep.mubr.bf16.mxu0 %v4855_v15  ;;  %v4856_v54 = vcombine.low %v476_v42, %v484_v44  ;;  %v507_v42 = vld [vmem:[%s6469_s8 + $0x530] sm:$0xff] }
 0x1e8   : > { %v5591_v48 = vpop.f32.mrf.mxu0  ;;  %4124 = vmatprep.mubr.bf16.mxu1 %v4857_v12  ;;  %v515_v44 = vld [vmem:[%s6469_s8 + $0x570] sm:$0xff] }
 0x1e9   : > { %v7195_v36 = vadd.f32 %v5701_v30, %v3373_v17  ;;  %v5592_v56 = vadd.f32 %v5591_v48, %v5590_v33  ;;  %v5703_v10 = vpop.f32.mrf.mxu1  ;;  %v508_v30 = vld [vmem:[%s6469_s8 + $0x538] sm:$0xff]  ;;  %v4870_v48 = vcombine.low %v491_v52, %v499_v60 }
 0x1ea   : > { %v5704_v41 = vadd.f32 %v5703_v10, %v5702_v25  ;;  %v5593_v34 = vpop.f32.mrf.mxu0  ;;  %v516_v33 = vld [vmem:[%s6469_s8 + $0x578] sm:$0xff] }
 0x1eb   : > { %v3378_v22 = vadd.f32 %v5592_v56, %v7041_v27  ;;  %v5705_v47 = vpop.f32.mrf.mxu1 }
 0x1ec   : > { %v5594_v57 = vpop.f32.mrf.mxu0 }
 0x1ed   : > { %v7200_v59 = vadd.f32 %v5704_v41, %v3378_v22  ;;  %v5595_v6 = vadd.f32 %v5594_v57, %v5593_v34  ;;  %v5706_v23 = vpop.f32.mrf.mxu1  ;;  %v4887_v41 = vcombine.high %v507_v42, %v515_v44 }
 0x1ee   : > { %v5707_v15 = vadd.f32 %v5706_v23, %v5705_v47  ;;  %v5724_v16 = vpop.f32.mrf.mxu0  ;;  %3964 = vmatmul.mubr.bf16.gmra.mxu0 %v4854_v18  ;;  %v4889_v18 = vcombine.high %v508_v30, %v516_v33 }
 0x1ef   : > { %v3381_v4 = vadd.f32 %v5595_v6, %v7043_v28  ;;  %v5836_v8 = vpop.f32.mrf.mxu1  ;;  %4125 = vmatmul.mubr.bf16.gmra.mxu1 %v4856_v54  ;;  %3971 = vmatprep.mubr.bf16.mxu0 %v4871_v55  ;;  %v4872_v28 = vcombine.low %v492_v62, %v500_v0  ;;  %v523_v62 = vld [vmem:[%s6469_s8 + $0x5b0] sm:$0xff] }
 0x1f0   : > { %v5725_v27 = vpop.f32.mrf.mxu0  ;;  %4132 = vmatprep.mubr.bf16.mxu1 %v4873_v40  ;;  %v531_v0 = vld [vmem:[%s6469_s8 + $0x5f0] sm:$0xff] }
 0x1f1   : > { %v7205_v12 = vadd.f32 %v5707_v15, %v3381_v4  ;;  %v5726_v31 = vadd.f32 %v5725_v27, %v5724_v16  ;;  %v5837_v49 = vpop.f32.mrf.mxu1  ;;  %v524_v15 = vld [vmem:[%s6469_s8 + $0x5b8] sm:$0xff]  ;;  %v4886_v27 = vcombine.low %v507_v42, %v515_v44 }
 0x1f2   : > { %v5838_v17 = vadd.f32 %v5837_v49, %v5836_v8  ;;  %v5727_v25 = vpop.f32.mrf.mxu0  ;;  %v532_v16 = vld [vmem:[%s6469_s8 + $0x5f8] sm:$0xff] }
 0x1f3   : > { %v3580_v56 = vadd.f32 %v5726_v31, %v7050_v20  ;;  %v5839_v10 = vpop.f32.mrf.mxu1 }
 0x1f4   : > { %v5728_v34 = vpop.f32.mrf.mxu0 }
 0x1f5   : > { %v7210_v22 = vadd.f32 %v5838_v17, %v3580_v56  ;;  %v5729_v47 = vadd.f32 %v5728_v34, %v5727_v25  ;;  %v5840_v54 = vpop.f32.mrf.mxu1  ;;  %v4903_v17 = vcombine.high %v523_v62, %v531_v0 }
 0x1f6   : > { %v5841_v55 = vadd.f32 %v5840_v54, %v5839_v10  ;;  %v5730_v57 = vpop.f32.mrf.mxu0  ;;  %3972 = vmatmul.mubr.bf16.gmra.mxu0 %v4870_v48  ;;  %v4905_v48 = vcombine.high %v524_v15, %v532_v16 }
 0x1f7   : > { %v3583_v52 = vadd.f32 %v5729_v47, %v7055_v24  ;;  %v5842_v60 = vpop.f32.mrf.mxu1  ;;  %4133 = vmatmul.mubr.bf16.gmra.mxu1 %v4872_v28  ;;  %3979 = vmatprep.mubr.bf16.mxu0 %v4887_v41  ;;  %v4888_v24 = vcombine.low %v508_v30, %v516_v33  ;;  %v539_v30 = vld [vmem:[%s6469_s8 + $0x630] sm:$0xff] }
 0x1f8   : > { %v5731_v20 = vpop.f32.mrf.mxu0  ;;  %4140 = vmatprep.mubr.bf16.mxu1 %v4889_v18  ;;  %v547_v33 = vld [vmem:[%s6469_s8 + $0x670] sm:$0xff] }
 0x1f9   : > { %v7215_v40 = vadd.f32 %v5841_v55, %v3583_v52  ;;  %v5732_v6 = vadd.f32 %v5731_v20, %v5730_v57  ;;  %v5843_v23 = vpop.f32.mrf.mxu1  ;;  %v540_v55 = vld [vmem:[%s6469_s8 + $0x638] sm:$0xff]  ;;  %v4902_v20 = vcombine.low %v523_v62, %v531_v0 }
 0x1fa   : > { %v5844_v4 = vadd.f32 %v5843_v23, %v5842_v60  ;;  %v5733_v8 = vpop.f32.mrf.mxu0  ;;  %v548_v57 = vld [vmem:[%s6469_s8 + $0x678] sm:$0xff] }
 0x1fb   : > { %v3588_v31 = vadd.f32 %v5732_v6, %v7060_v1  ;;  %v5845_v49 = vpop.f32.mrf.mxu1 }
 0x1fc   : > { %v5734_v25 = vpop.f32.mrf.mxu0 }
 0x1fd   : > { %v7220_v56 = vadd.f32 %v5844_v4, %v3588_v31  ;;  %v5735_v10 = vadd.f32 %v5734_v25, %v5733_v8  ;;  %v5846_v28 = vpop.f32.mrf.mxu1  ;;  %v4919_v4 = vcombine.high %v539_v30, %v547_v33 }
 0x1fe   : > { %v5847_v41 = vadd.f32 %v5846_v28, %v5845_v49  ;;  %v5736_v34 = vpop.f32.mrf.mxu0  ;;  %3980 = vmatmul.mubr.bf16.gmra.mxu0 %v4886_v27  ;;  %v4921_v27 = vcombine.high %v540_v55, %v548_v57 }
 0x1ff   : > { %v3591_v42 = vadd.f32 %v5735_v10, %v7065_v19  ;;  %v5848_v44 = vpop.f32.mrf.mxu1  ;;  %4141 = vmatmul.mubr.bf16.gmra.mxu1 %v4888_v24  ;;  %3987 = vmatprep.mubr.bf16.mxu0 %v4903_v17  ;;  %v4904_v19 = vcombine.low %v524_v15, %v532_v16  ;;  %v555_v15 = vld [vmem:[%s6469_s8 + $0x6b0] sm:$0xff] }
 0x200   : > { %v5737_v1 = vpop.f32.mrf.mxu0  ;;  %4148 = vmatprep.mubr.bf16.mxu1 %v4905_v48  ;;  %v563_v16 = vld [vmem:[%s6469_s8 + $0x6f0] sm:$0xff] }
 0x201   : > { %v7225_v18 = vadd.f32 %v5847_v41, %v3591_v42  ;;  %v5738_v47 = vadd.f32 %v5737_v1, %v5736_v34  ;;  %v5849_v54 = vpop.f32.mrf.mxu1  ;;  %v556_v41 = vld [vmem:[%s6469_s8 + $0x6b8] sm:$0xff]  ;;  %v4918_v1 = vcombine.low %v539_v30, %v547_v33 }
 0x202   : > { %v5850_v52 = vadd.f32 %v5849_v54, %v5848_v44  ;;  %v5739_v60 = vpop.f32.mrf.mxu0  ;;  %v564_v34 = vld [vmem:[%s6469_s8 + $0x6f8] sm:$0xff] }
 0x203   : > { %v3596_v6 = vadd.f32 %v5738_v47, %v7070_v45  ;;  %v5851_v23 = vpop.f32.mrf.mxu1 }
 0x204   : > { %v5740_v8 = vpop.f32.mrf.mxu0 }
 0x205   : > { %v7230_v31 = vadd.f32 %v5850_v52, %v3596_v6  ;;  %v5741_v49 = vadd.f32 %v5740_v8, %v5739_v60  ;;  %v5852_v24 = vpop.f32.mrf.mxu1  ;;  %v4935_v52 = vcombine.high %v555_v15, %v563_v16 }
 0x206   : > { %v5853_v17 = vadd.f32 %v5852_v24, %v5851_v23  ;;  %v5742_v25 = vpop.f32.mrf.mxu0  ;;  %3988 = vmatmul.mubr.bf16.gmra.mxu0 %v4902_v20  ;;  %v4937_v20 = vcombine.high %v556_v41, %v564_v34 }
 0x207   : > { %v3599_v62 = vadd.f32 %v5741_v49, %v7075_v61  ;;  %v5854_v0 = vpop.f32.mrf.mxu1  ;;  %4149 = vmatmul.mubr.bf16.gmra.mxu1 %v4904_v19  ;;  %3995 = vmatprep.mubr.bf16.mxu0 %v4919_v4  ;;  %v4920_v61 = vcombine.low %v540_v55, %v548_v57  ;;  %v571_v55 = vld [vmem:[%s6469_s8 + $0x730] sm:$0xff] }
 0x208   : > { %v5743_v45 = vpop.f32.mrf.mxu0  ;;  %4156 = vmatprep.mubr.bf16.mxu1 %v4921_v27  ;;  %v579_v57 = vld [vmem:[%s6469_s8 + $0x770] sm:$0xff] }
 0x209   : > { %v7235_v48 = vadd.f32 %v5853_v17, %v3599_v62  ;;  %v5744_v10 = vadd.f32 %v5743_v45, %v5742_v25  ;;  %v5855_v28 = vpop.f32.mrf.mxu1  ;;  %v572_v17 = vld [vmem:[%s6469_s8 + $0x738] sm:$0xff]  ;;  %v4934_v45 = vcombine.low %v555_v15, %v563_v16 }
 0x20a   : > { %v5856_v42 = vadd.f32 %v5855_v28, %v5854_v0  ;;  %v5745_v44 = vpop.f32.mrf.mxu0  ;;  %v580_v25 = vld [vmem:[%s6469_s8 + $0x778] sm:$0xff] }
 0x20b   : > { %v3604_v47 = vadd.f32 %v5744_v10, %v7080_v37  ;;  %v5857_v54 = vpop.f32.mrf.mxu1 }
 0x20c   : > { %v5746_v60 = vpop.f32.mrf.mxu0 }
 0x20d   : > { %v7240_v6 = vadd.f32 %v5856_v42, %v3604_v47  ;;  %v5747_v23 = vadd.f32 %v5746_v60, %v5745_v44  ;;  %v5858_v19 = vpop.f32.mrf.mxu1  ;;  %v4951_v42 = vcombine.high %v571_v55, %v579_v57 }
 0x20e   : > { %v5859_v4 = vadd.f32 %v5858_v19, %v5857_v54  ;;  %v5748_v8 = vpop.f32.mrf.mxu0  ;;  %3996 = vmatmul.mubr.bf16.gmra.mxu0 %v4918_v1  ;;  %v4953_v1 = vcombine.high %v572_v17, %v580_v25 }
 0x20f   : > { %v3607_v30 = vadd.f32 %v5747_v23, %v7085_v32  ;;  %v5860_v33 = vpop.f32.mrf.mxu1  ;;  %4157 = vmatmul.mubr.bf16.gmra.mxu1 %v4920_v61  ;;  %4003 = vmatprep.mubr.bf16.mxu0 %v4935_v52  ;;  %v4936_v32 = vcombine.low %v556_v41, %v564_v34  ;;  %v587_v41 = vld [vmem:[%s6469_s8 + $0x7b0] sm:$0xff] }
 0x210   : > { %v5749_v37 = vpop.f32.mrf.mxu0  ;;  %4164 = vmatprep.mubr.bf16.mxu1 %v4937_v20  ;;  %v595_v34 = vld [vmem:[%s6469_s8 + $0x7f0] sm:$0xff] }
 0x211   : > { %v7245_v27 = vadd.f32 %v5859_v4, %v3607_v30  ;;  %v5750_v49 = vadd.f32 %v5749_v37, %v5748_v8  ;;  %v5861_v24 = vpop.f32.mrf.mxu1  ;;  %v588_v4 = vld [vmem:[%s6469_s8 + $0x7b8] sm:$0xff]  ;;  %v4950_v37 = vcombine.low %v571_v55, %v579_v57 }
 0x212   : > { %v5862_v62 = vadd.f32 %v5861_v24, %v5860_v33  ;;  %v5751_v0 = vpop.f32.mrf.mxu0  ;;  %v596_v8 = vld [vmem:[%s6469_s8 + $0x7f8] sm:$0xff]  ;;  %s4712_s8 = sshll.u32 %s7402_s25, 2  ;;  %s4713_s25 = sshll.u32 %s7404_s12, 3 }
 0x213   : > { %v3612_v10 = vadd.f32 %v5750_v49, %v7090_v5  ;;  %v5863_v28 = vpop.f32.mrf.mxu1  ;;  %s7331_s22 = scalar_lea.vmem %s7395_s2, %s4712_s8  ;;  %s271_s26 = scalar_lea.vmem %s7396_s3, %s4713_s25 }
 0x214   : > { %v5752_v44 = vpop.f32.mrf.mxu0 }
 0x215   : > { %v7250_v47 = vadd.f32 %v5862_v62, %v3612_v10  ;;  %v5753_v54 = vadd.f32 %v5752_v44, %v5751_v0  ;;  %v5864_v61 = vpop.f32.mrf.mxu1  ;;  %v4967_v62 = vcombine.high %v587_v41, %v595_v34 }
 0x216   : > { %v5865_v52 = vadd.f32 %v5864_v61, %v5863_v28  ;;  %v5754_v60 = vpop.f32.mrf.mxu0  ;;  %4004 = vmatmul.mubr.bf16.gmra.mxu0 %v4934_v45  ;;  %v4969_v45 = vcombine.high %v588_v4, %v596_v8 }
 0x217   : > { %v3615_v15 = vadd.f32 %v5753_v54, %v7095_v63  ;;  %v5866_v16 = vpop.f32.mrf.mxu1  ;;  %4165 = vmatmul.mubr.bf16.gmra.mxu1 %v4936_v32  ;;  %4011 = vmatprep.mubr.bf16.mxu0 %v4951_v42  ;;  %v4952_v63 = vcombine.low %v572_v17, %v580_v25 }
 0x218   : > { %v5755_v5 = vpop.f32.mrf.mxu0  ;;  %4172 = vmatprep.mubr.bf16.mxu1 %v4953_v1 }
 0x219   : > { %v7255_v20 = vadd.f32 %v5865_v52, %v3615_v15  ;;  %v5756_v23 = vadd.f32 %v5755_v5, %v5754_v60  ;;  %v5867_v19 = vpop.f32.mrf.mxu1  ;;  %v4966_v52 = vcombine.low %v587_v41, %v595_v34 }
 0x21a   : > { %v5868_v30 = vadd.f32 %v5867_v19, %v5866_v16  ;;  %v5757_v33 = vpop.f32.mrf.mxu0  ;;  %v4968_v16 = vcombine.low %v588_v4, %v596_v8 }
 0x21b   : > { %v3620_v49 = vadd.f32 %v5756_v23, %v7100_v3  ;;  %v5869_v24 = vpop.f32.mrf.mxu1 }
 0x21c   : > { %v5758_v0 = vpop.f32.mrf.mxu0 }
 0x21d   : > { %v7260_v10 = vadd.f32 %v5868_v30, %v3620_v49  ;;  %v5759_v28 = vadd.f32 %v5758_v0, %v5757_v33  ;;  %v5870_v32 = vpop.f32.mrf.mxu1 }
 0x21e   : > { %v5871_v42 = vadd.f32 %v5870_v32, %v5869_v24  ;;  %v5760_v44 = vpop.f32.mrf.mxu0  ;;  %4012 = vmatmul.mubr.bf16.gmra.mxu0 %v4950_v37 }
 0x21f   : > { %v3623_v1 = vadd.f32 %v5759_v28, %v7105_v21  ;;  %v5872_v54 = vpop.f32.mrf.mxu1  ;;  %4173 = vmatmul.mubr.bf16.gmra.mxu1 %v4952_v63  ;;  %4019 = vmatprep.mubr.bf16.mxu0 %v4967_v62 }
 0x220   : > { %v5761_v55 = vpop.f32.mrf.mxu0  ;;  %4180 = vmatprep.mubr.bf16.mxu1 %v4969_v45 }
 0x221   : > { %v7263_v3 = vadd.f32 %v5871_v42, %v3623_v1  ;;  %v5762_v57 = vadd.f32 %v5761_v55, %v5760_v44  ;;  %v5873_v17 = vpop.f32.mrf.mxu1 }
 0x222   : > { %v5874_v25 = vadd.f32 %v5873_v17, %v5872_v54  ;;  %v5763_v61 = vpop.f32.mrf.mxu0 }
 0x223   : > { %v3628_v60 = vadd.f32 %v5762_v57, %v7110_v46  ;;  %v5875_v15 = vpop.f32.mrf.mxu1 }
 0x224   : > { %v5764_v5 = vpop.f32.mrf.mxu0 }
 0x225   : > { %v7266_v23 = vadd.f32 %v5874_v25, %v3628_v60  ;;  %v5765_v21 = vadd.f32 %v5764_v5, %v5763_v61  ;;  %v5876_v19 = vpop.f32.mrf.mxu1 }
 0x226   : > { %v5877_v30 = vadd.f32 %v5876_v19, %v5875_v15  ;;  %v5766_v33 = vpop.f32.mrf.mxu0  ;;  %4020 = vmatmul.mubr.bf16.gmra.mxu0 %v4966_v52 }
 0x227   : > { %v3631_v37 = vadd.f32 %v5765_v21, %v7115_v43  ;;  %v5878_v49 = vpop.f32.mrf.mxu1  ;;  %4181 = vmatmul.mubr.bf16.gmra.mxu1 %v4968_v16 }
 0x228   : > { %v5767_v24 = vpop.f32.mrf.mxu0 }
 0x229   : > { %v7269_v63 = vadd.f32 %v5877_v30, %v3631_v37  ;;  %v5768_v41 = vadd.f32 %v5767_v24, %v5766_v33  ;;  %v5879_v34 = vpop.f32.mrf.mxu1 }
 0x22a   : > { %v5880_v46 = vadd.f32 %v5879_v34, %v5878_v49  ;;  %v5769_v62 = vpop.f32.mrf.mxu0 }
 0x22b   : > { %v3636_v4 = vadd.f32 %v5768_v41, %v7120_v38  ;;  %v5881_v8 = vpop.f32.mrf.mxu1 }
 0x22c   : > { %v5770_v0 = vpop.f32.mrf.mxu0 }
 0x22d   : > { %v7272_v45 = vadd.f32 %v5880_v46, %v3636_v4  ;;  %v5771_v28 = vadd.f32 %v5770_v0, %v5769_v62  ;;  %v5882_v32 = vpop.f32.mrf.mxu1 }
 0x22e   : > { %v5883_v42 = vadd.f32 %v5882_v32, %v5881_v8  ;;  %v5772_v44 = vpop.f32.mrf.mxu0 }
 0x22f   : > { %v3639_v43 = vadd.f32 %v5771_v28, %v7125_v2  ;;  %v5884_v1 = vpop.f32.mrf.mxu1 }
 0x230   : > { %v5773_v54 = vpop.f32.mrf.mxu0 }
 0x231   : > { %v7275_v55 = vadd.f32 %v5883_v42, %v3639_v43  ;;  %v5774_v57 = vadd.f32 %v5773_v54, %v5772_v44  ;;  %v5885_v17 = vpop.f32.mrf.mxu1 }
 0x232   : > { %v5886_v25 = vadd.f32 %v5885_v17, %v5884_v1  ;;  %v5775_v61 = vpop.f32.mrf.mxu0 }
 0x233   : > { %v3644_v38 = vadd.f32 %v5774_v57, %v7130_v9  ;;  %v5887_v52 = vpop.f32.mrf.mxu1 }
 0x234   : > { %v5776_v60 = vpop.f32.mrf.mxu0 }
 0x235   : > { %v7278_v15 = vadd.f32 %v5886_v25, %v3644_v38  ;;  %v5777_v16 = vadd.f32 %v5776_v60, %v5775_v61  ;;  %v5888_v5 = vpop.f32.mrf.mxu1 }
 0x236   : > { %v5889_v21 = vadd.f32 %v5888_v5, %v5887_v52  ;;  %v5778_v19 = vpop.f32.mrf.mxu0 }
 0x237   : > { %v3647_v2 = vadd.f32 %v5777_v16, %v7135_v26  ;;  %v5890_v30 = vpop.f32.mrf.mxu1 }
 0x238   : > { %v5779_v33 = vpop.f32.mrf.mxu0 }
 0x239   : > { %v7281_v37 = vadd.f32 %v5889_v21, %v3647_v2  ;;  %v5780_v49 = vadd.f32 %v5779_v33, %v5778_v19  ;;  %v5891_v24 = vpop.f32.mrf.mxu1 }
 0x23a   : > { %v5892_v41 = vadd.f32 %v5891_v24, %v5890_v30  ;;  %v5781_v34 = vpop.f32.mrf.mxu0 }
 0x23b   : > { %v3652_v9 = vadd.f32 %v5780_v49, %v7140_v58  ;;  %v5893_v46 = vpop.f32.mrf.mxu1 }
 0x23c   : > { %v5782_v62 = vpop.f32.mrf.mxu0 }
 0x23d   : > { %v7284_v4 = vadd.f32 %v5892_v41, %v3652_v9  ;;  %v5783_v8 = vadd.f32 %v5782_v62, %v5781_v34  ;;  %v5894_v0 = vpop.f32.mrf.mxu1 }
 0x23e   : > { %v5895_v28 = vadd.f32 %v5894_v0, %v5893_v46  ;;  %v5784_v32 = vpop.f32.mrf.mxu0 }
 0x23f   : > { %v3655_v26 = vadd.f32 %v5783_v8, %v7145_v50  ;;  %v5896_v42 = vpop.f32.mrf.mxu1 }
 0x240   : > { %v5785_v44 = vpop.f32.mrf.mxu0 }
 0x241   : > { %v7287_v43 = vadd.f32 %v5895_v28, %v3655_v26  ;;  %v5786_v1 = vadd.f32 %v5785_v44, %v5784_v32  ;;  %v5897_v54 = vpop.f32.mrf.mxu1 }
 0x242   : > { %v5898_v57 = vadd.f32 %v5897_v54, %v5896_v42  ;;  %v5787_v17 = vpop.f32.mrf.mxu0 }
 0x243   : > { %v3660_v58 = vadd.f32 %v5786_v1, %v7150_v7  ;;  %v5899_v25 = vpop.f32.mrf.mxu1 }
 0x244   : > { %v5788_v61 = vpop.f32.mrf.mxu0 }
 0x245   : > { %v7290_v38 = vadd.f32 %v5898_v57, %v3660_v58  ;;  %v5789_v52 = vadd.f32 %v5788_v61, %v5787_v17  ;;  %v5900_v60 = vpop.f32.mrf.mxu1 }
 0x246   : > { %v5901_v16 = vadd.f32 %v5900_v60, %v5899_v25  ;;  %v5790_v5 = vpop.f32.mrf.mxu0 }
 0x247   : > { %v3663_v50 = vadd.f32 %v5789_v52, %v7155_v13  ;;  %v5902_v21 = vpop.f32.mrf.mxu1 }
 0x248   : > { %v5791_v19 = vpop.f32.mrf.mxu0 }
 0x249   : > { %v7293_v2 = vadd.f32 %v5901_v16, %v3663_v50  ;;  %v5792_v30 = vadd.f32 %v5791_v19, %v5790_v5  ;;  %v5903_v33 = vpop.f32.mrf.mxu1 }
 0x24a   : > { %v5904_v49 = vadd.f32 %v5903_v33, %v5902_v21  ;;  %v5793_v24 = vpop.f32.mrf.mxu0 }
 0x24b   : > { %v3668_v7 = vadd.f32 %v5792_v30, %v7160_v29  ;;  %v5905_v41 = vpop.f32.mrf.mxu1 }
 0x24c   : > { %v5794_v34 = vpop.f32.mrf.mxu0 }
 0x24d   : > { %v7296_v9 = vadd.f32 %v5904_v49, %v3668_v7  ;;  %v5795_v46 = vadd.f32 %v5794_v34, %v5793_v24  ;;  %v5906_v62 = vpop.f32.mrf.mxu1 }
 0x24e   : > { %v5907_v8 = vadd.f32 %v5906_v62, %v5905_v41  ;;  %v5796_v0 = vpop.f32.mrf.mxu0 }
 0x24f   : > { %v3671_v13 = vadd.f32 %v5795_v46, %v7165_v39  ;;  %v5908_v28 = vpop.f32.mrf.mxu1 }
 0x250   : > { %v5797_v32 = vpop.f32.mrf.mxu0 }
 0x251   : > { %v7299_v26 = vadd.f32 %v5907_v8, %v3671_v13  ;;  %v5798_v42 = vadd.f32 %v5797_v32, %v5796_v0  ;;  %v5909_v44 = vpop.f32.mrf.mxu1 }
 0x252   : > { %v5910_v1 = vadd.f32 %v5909_v44, %v5908_v28  ;;  %v5799_v54 = vpop.f32.mrf.mxu0 }
 0x253   : > { %v3676_v29 = vadd.f32 %v5798_v42, %v7170_v51  ;;  %v5911_v57 = vpop.f32.mrf.mxu1 }
 0x254   : > { %v5800_v17 = vpop.f32.mrf.mxu0 }
 0x255   : > { %v7302_v58 = vadd.f32 %v5910_v1, %v3676_v29  ;;  %v5801_v25 = vadd.f32 %v5800_v17, %v5799_v54  ;;  %v5912_v61 = vpop.f32.mrf.mxu1 }
 0x256   : > { %v5913_v52 = vadd.f32 %v5912_v61, %v5911_v57  ;;  %v5802_v60 = vpop.f32.mrf.mxu0 }
 0x257   : > { %v3679_v39 = vadd.f32 %v5801_v25, %v7175_v14  ;;  %v5914_v16 = vpop.f32.mrf.mxu1 }
 0x258   : > { %v5803_v5 = vpop.f32.mrf.mxu0 }
 0x259   : > { %v7305_v50 = vadd.f32 %v5913_v52, %v3679_v39  ;;  %v5804_v21 = vadd.f32 %v5803_v5, %v5802_v60  ;;  %v5915_v19 = vpop.f32.mrf.mxu1 }
 0x25a   : > { %v5916_v30 = vadd.f32 %v5915_v19, %v5914_v16  ;;  %v5805_v33 = vpop.f32.mrf.mxu0 }
 0x25b   : > { %v3684_v51 = vadd.f32 %v5804_v21, %v7180_v11  ;;  %v5917_v49 = vpop.f32.mrf.mxu1 }
 0x25c   : > { %v5806_v24 = vpop.f32.mrf.mxu0 }
 0x25d   : > { %v7308_v7 = vadd.f32 %v5916_v30, %v3684_v51  ;;  %v5807_v41 = vadd.f32 %v5806_v24, %v5805_v33  ;;  %v5918_v34 = vpop.f32.mrf.mxu1 }
 0x25e   : > { %v5919_v46 = vadd.f32 %v5918_v34, %v5917_v49  ;;  %v5808_v62 = vpop.f32.mrf.mxu0 }
 0x25f   : > { %v3687_v14 = vadd.f32 %v5807_v41, %v7185_v53  ;;  %v5920_v8 = vpop.f32.mrf.mxu1 }
 0x260   : > { %v5809_v0 = vpop.f32.mrf.mxu0 }
 0x261   : > { %v7311_v13 = vadd.f32 %v5919_v46, %v3687_v14  ;;  %v5810_v28 = vadd.f32 %v5809_v0, %v5808_v62  ;;  %v5921_v32 = vpop.f32.mrf.mxu1 }
 0x262   : > { %v5922_v42 = vadd.f32 %v5921_v32, %v5920_v8  ;;  %v5811_v44 = vpop.f32.mrf.mxu0 }
 0x263   : > { %v3692_v11 = vadd.f32 %v5810_v28, %v7190_v35  ;;  %v5923_v1 = vpop.f32.mrf.mxu1 }
 0x264   : > { %v5812_v54 = vpop.f32.mrf.mxu0 }
 0x265   : > { %v7314_v29 = vadd.f32 %v5922_v42, %v3692_v11  ;;  %v5813_v57 = vadd.f32 %v5812_v54, %v5811_v44  ;;  %v5924_v17 = vpop.f32.mrf.mxu1 }
 0x266   : > { %v5925_v25 = vadd.f32 %v5924_v17, %v5923_v1  ;;  %v5814_v61 = vpop.f32.mrf.mxu0 }
 0x267   : > { %v3695_v53 = vadd.f32 %v5813_v57, %v7195_v36  ;;  %v5926_v52 = vpop.f32.mrf.mxu1 }
 0x268   : > { %v5815_v60 = vpop.f32.mrf.mxu0 }
 0x269   : > { %v7317_v39 = vadd.f32 %v5925_v25, %v3695_v53  ;;  %v5816_v16 = vadd.f32 %v5815_v60, %v5814_v61  ;;  %v5927_v5 = vpop.f32.mrf.mxu1 }
 0x26a   : > { %v5928_v21 = vadd.f32 %v5927_v5, %v5926_v52  ;;  %v5817_v19 = vpop.f32.mrf.mxu0 }
 0x26b   : > { %v3700_v35 = vadd.f32 %v5816_v16, %v7200_v59  ;;  %v5929_v30 = vpop.f32.mrf.mxu1 }
 0x26c   : > { %v5818_v33 = vpop.f32.mrf.mxu0 }
 0x26d   : > { %v7320_v51 = vadd.f32 %v5928_v21, %v3700_v35  ;;  %v5819_v49 = vadd.f32 %v5818_v33, %v5817_v19  ;;  %v5930_v24 = vpop.f32.mrf.mxu1 }
 0x26e   : > { %v5931_v41 = vadd.f32 %v5930_v24, %v5929_v30  ;;  %v5948_v34 = vpop.f32.mrf.mxu0 }
 0x26f   : > { %v3703_v36 = vadd.f32 %v5819_v49, %v7205_v12  ;;  %v6060_v46 = vpop.f32.mrf.mxu1 }
 0x270   : > { %v5949_v62 = vpop.f32.mrf.mxu0 }
 0x271   : > { %v7323_v14 = vadd.f32 %v5931_v41, %v3703_v36  ;;  %v5950_v8 = vadd.f32 %v5949_v62, %v5948_v34  ;;  %v6061_v0 = vpop.f32.mrf.mxu1 }
 0x272   : > { %v5951_v28 = vpop.f32.mrf.mxu0  ;;  %v6062_v42 = vadd.f32 %v6061_v0, %v6060_v46 }
 0x273   : > { %v3902_v59 = vadd.f32 %v5950_v8, %v7210_v22  ;;  %v6063_v32 = vpop.f32.mrf.mxu1 }
 0x274   : > { %v5952_v44 = vpop.f32.mrf.mxu0 }
 0x275   : > { %v5953_v11 = vadd.f32 %v5952_v44, %v5951_v28  ;;  %v6064_v1 = vpop.f32.mrf.mxu1  ;;  %v4063_v54 = vadd.f32 %v6062_v42, %v3902_v59 }
 0x276   : > { %v5954_v57 = vpop.f32.mrf.mxu0  ;;  %v6065_v12 = vadd.f32 %v6064_v1, %v6063_v32 }
 0x277   : > { %v3905_v17 = vadd.f32 %v5953_v11, %v7215_v40  ;;  %v6066_v25 = vpop.f32.mrf.mxu1  ;;  %v4485_v16 = vmul.f32 %v4063_v54, %v4063_v54 }
 0x278   : > { %v5955_v61 = vpop.f32.mrf.mxu0 }
 0x279   : > { %v4066_v53 = vadd.f32 %v6065_v12, %v3905_v17  ;;  %v5956_v52 = vadd.f32 %v5955_v61, %v5954_v57  ;;  %v6067_v60 = vpop.f32.mrf.mxu1 }
 0x27a   : > { %v6068_v22 = vadd.f32 %v6067_v60, %v6066_v25  ;;  %v5957_v5 = vpop.f32.mrf.mxu0 }
 0x27b   : > { %v5168_v21 = vpack.c.bf16 %v4066_v53, %v4063_v54  ;;  %v4448_v19 = vadd.f32 %v4066_v53, %v4063_v54  ;;  %v4486_v35 = vmul.f32 %v4066_v53, %v4066_v53  ;;  %v3910_v40 = vadd.f32 %v5956_v52, %v7220_v56  ;;  %v6069_v30 = vpop.f32.mrf.mxu1 }
 0x27c   : > { %v5958_v33 = vpop.f32.mrf.mxu0 }
 0x27d   : > { %5169 = vst [vmem:[%s7331_s22] sm:$0xff] %v5168_v21   ;;  %v4517_v49 = vadd.f32 %v4486_v35, %v4485_v16  ;;  %v4071_v24 = vadd.f32 %v6068_v22, %v3910_v40  ;;  %v5959_v41 = vadd.f32 %v5958_v33, %v5957_v5  ;;  %v6070_v34 = vpop.f32.mrf.mxu1 }
 0x27e   : > { %v5960_v36 = vpop.f32.mrf.mxu0  ;;  %v6071_v0 = vadd.f32 %v6070_v34, %v6069_v30 }
 0x27f   : > { %v4449_v46 = vadd.f32 %v4448_v19, %v4071_v24  ;;  %v4487_v62 = vmul.f32 %v4071_v24, %v4071_v24  ;;  %v3913_v8 = vadd.f32 %v5959_v41, %v7225_v18  ;;  %v6072_v28 = vpop.f32.mrf.mxu1 }
 0x280   : > { %v5961_v59 = vpop.f32.mrf.mxu0 }
 0x281   : > { %v4518_v32 = vadd.f32 %v4517_v49, %v4487_v62  ;;  %v4074_v42 = vadd.f32 %v6071_v0, %v3913_v8  ;;  %v5962_v44 = vadd.f32 %v5961_v59, %v5960_v36  ;;  %v6073_v56 = vpop.f32.mrf.mxu1 }
 0x282   : > { %v6074_v11 = vadd.f32 %v6073_v56, %v6072_v28  ;;  %v5963_v1 = vpop.f32.mrf.mxu0 }
 0x283   : > { %v5173_v54 = vpack.c.bf16 %v4074_v42, %v4071_v24  ;;  %v4450_v57 = vadd.f32 %v4449_v46, %v4074_v42  ;;  %v4488_v17 = vmul.f32 %v4074_v42, %v4074_v42  ;;  %v3918_v12 = vadd.f32 %v5962_v44, %v7230_v31  ;;  %v6075_v25 = vpop.f32.mrf.mxu1 }
 0x284   : > { %v5964_v61 = vpop.f32.mrf.mxu0 }
 0x285   : > { %5245 = vst [vmem:[%s7331_s22 + $0x8] sm:$0xff] %v5173_v54   ;;  %v4519_v53 = vadd.f32 %v4518_v32, %v4488_v17  ;;  %v4079_v18 = vadd.f32 %v6074_v11, %v3918_v12  ;;  %v5965_v52 = vadd.f32 %v5964_v61, %v5963_v1  ;;  %v6076_v60 = vpop.f32.mrf.mxu1 }
 0x286   : > { %v5966_v16 = vpop.f32.mrf.mxu0  ;;  %v6077_v19 = vadd.f32 %v6076_v60, %v6075_v25 }
 0x287   : > { %v4451_v22 = vadd.f32 %v4450_v57, %v4079_v18  ;;  %v4489_v5 = vmul.f32 %v4079_v18, %v4079_v18  ;;  %v3921_v21 = vadd.f32 %v5965_v52, %v7235_v48  ;;  %v6078_v35 = vpop.f32.mrf.mxu1 }
 0x288   : > { %v5967_v40 = vpop.f32.mrf.mxu0 }
 0x289   : > { %v4520_v30 = vadd.f32 %v4519_v53, %v4489_v5  ;;  %v4082_v33 = vadd.f32 %v6077_v19, %v3921_v21  ;;  %v5968_v49 = vadd.f32 %v5967_v40, %v5966_v16  ;;  %v6079_v31 = vpop.f32.mrf.mxu1 }
 0x28a   : > { %v6080_v24 = vadd.f32 %v6079_v31, %v6078_v35  ;;  %v5969_v41 = vpop.f32.mrf.mxu0 }
 0x28b   : > { %v5178_v34 = vpack.c.bf16 %v4082_v33, %v4079_v18  ;;  %v4452_v36 = vadd.f32 %v4451_v22, %v4082_v33  ;;  %v4490_v46 = vmul.f32 %v4082_v33, %v4082_v33  ;;  %v3926_v62 = vadd.f32 %v5968_v49, %v7240_v6  ;;  %v6081_v8 = vpop.f32.mrf.mxu1 }
 0x28c   : > { %v5970_v0 = vpop.f32.mrf.mxu0 }
 0x28d   : > { %5246 = vst [vmem:[%s7331_s22 + $0x10] sm:$0xff] %v5178_v34   ;;  %v4521_v28 = vadd.f32 %v4520_v30, %v4490_v46  ;;  %v4087_v48 = vadd.f32 %v6080_v24, %v3926_v62  ;;  %v5971_v59 = vadd.f32 %v5970_v0, %v5969_v41  ;;  %v6082_v32 = vpop.f32.mrf.mxu1 }
 0x28e   : > { %v5972_v42 = vpop.f32.mrf.mxu0  ;;  %v6083_v1 = vadd.f32 %v6082_v32, %v6081_v8 }
 0x28f   : > { %v4453_v44 = vadd.f32 %v4452_v36, %v4087_v48  ;;  %v4491_v56 = vmul.f32 %v4087_v48, %v4087_v48  ;;  %v3929_v11 = vadd.f32 %v5971_v59, %v7245_v27  ;;  %v6084_v54 = vpop.f32.mrf.mxu1 }
 0x290   : > { %v5973_v57 = vpop.f32.mrf.mxu0 }
 0x291   : > { %v4522_v17 = vadd.f32 %v4521_v28, %v4491_v56  ;;  %v4090_v12 = vadd.f32 %v6083_v1, %v3929_v11  ;;  %v5974_v25 = vadd.f32 %v5973_v57, %v5972_v42  ;;  %v6085_v6 = vpop.f32.mrf.mxu1 }
 0x292   : > { %v6086_v61 = vadd.f32 %v6085_v6, %v6084_v54  ;;  %v5975_v53 = vpop.f32.mrf.mxu0 }
 0x293   : > { %v5183_v18 = vpack.c.bf16 %v4090_v12, %v4087_v48  ;;  %v4454_v52 = vadd.f32 %v4453_v44, %v4090_v12  ;;  %v4492_v60 = vmul.f32 %v4090_v12, %v4090_v12  ;;  %v3934_v16 = vadd.f32 %v5974_v25, %v7250_v47  ;;  %v6087_v22 = vpop.f32.mrf.mxu1 }
 0x294   : > { %v5976_v5 = vpop.f32.mrf.mxu0 }
 0x295   : > { %5247 = vst [vmem:[%s7331_s22 + $0x18] sm:$0xff] %v5183_v18   ;;  %v4523_v21 = vadd.f32 %v4522_v17, %v4492_v60  ;;  %v4095_v27 = vadd.f32 %v6086_v61, %v3934_v16  ;;  %v5977_v19 = vadd.f32 %v5976_v5, %v5975_v53  ;;  %v6088_v35 = vpop.f32.mrf.mxu1 }
 0x296   : > { %v5978_v40 = vpop.f32.mrf.mxu0  ;;  %v6089_v31 = vadd.f32 %v6088_v35, %v6087_v22 }
 0x297   : > { %v4455_v30 = vadd.f32 %v4454_v52, %v4095_v27  ;;  %v4493_v33 = vmul.f32 %v4095_v27, %v4095_v27  ;;  %v3937_v49 = vadd.f32 %v5977_v19, %v7255_v20  ;;  %v6090_v24 = vpop.f32.mrf.mxu1 }
 0x298   : > { %v5979_v41 = vpop.f32.mrf.mxu0 }
 0x299   : > { %v4524_v34 = vadd.f32 %v4523_v21, %v4493_v33  ;;  %v4098_v36 = vadd.f32 %v6089_v31, %v3937_v49  ;;  %v5980_v46 = vadd.f32 %v5979_v41, %v5978_v40  ;;  %v6091_v47 = vpop.f32.mrf.mxu1 }
 0x29a   : > { %v6092_v62 = vadd.f32 %v6091_v47, %v6090_v24  ;;  %v5981_v8 = vpop.f32.mrf.mxu0 }
 0x29b   : > { %v5188_v0 = vpack.c.bf16 %v4098_v36, %v4095_v27  ;;  %v4456_v28 = vadd.f32 %v4455_v30, %v4098_v36  ;;  %v4494_v48 = vmul.f32 %v4098_v36, %v4098_v36  ;;  %v3942_v59 = vadd.f32 %v5980_v46, %v7260_v10  ;;  %v6093_v32 = vpop.f32.mrf.mxu1 }
 0x29c   : > { %v5982_v42 = vpop.f32.mrf.mxu0 }
 0x29d   : > { %5248 = vst [vmem:[%s7331_s22 + $0x20] sm:$0xff] %v5188_v0   ;;  %v4525_v44 = vadd.f32 %v4524_v34, %v4494_v48  ;;  %v4103_v20 = vadd.f32 %v6092_v62, %v3942_v59  ;;  %v5983_v56 = vadd.f32 %v5982_v42, %v5981_v8  ;;  %v6094_v11 = vpop.f32.mrf.mxu1 }
 0x29e   : > { %v5984_v1 = vpop.f32.mrf.mxu0  ;;  %v6095_v12 = vadd.f32 %v6094_v11, %v6093_v32 }
 0x29f   : > { %v4457_v54 = vadd.f32 %v4456_v28, %v4103_v20  ;;  %v4495_v57 = vmul.f32 %v4103_v20, %v4103_v20  ;;  %v3945_v17 = vadd.f32 %v5983_v56, %v7263_v3  ;;  %v6096_v25 = vpop.f32.mrf.mxu1 }
 0x2a0   : > { %v5985_v6 = vpop.f32.mrf.mxu0 }
 0x2a1   : > { %v4526_v61 = vadd.f32 %v4525_v44, %v4495_v57  ;;  %v4106_v53 = vadd.f32 %v6095_v12, %v3945_v17  ;;  %v5986_v18 = vadd.f32 %v5985_v6, %v5984_v1  ;;  %v6097_v10 = vpop.f32.mrf.mxu1 }
 0x2a2   : > { %v6098_v52 = vadd.f32 %v6097_v10, %v6096_v25  ;;  %v5987_v60 = vpop.f32.mrf.mxu0 }
 0x2a3   : > { %v5193_v16 = vpack.c.bf16 %v4106_v53, %v4103_v20  ;;  %v4458_v22 = vadd.f32 %v4457_v54, %v4106_v53  ;;  %v4496_v5 = vmul.f32 %v4106_v53, %v4106_v53  ;;  %v3950_v21 = vadd.f32 %v5986_v18, %v7266_v23  ;;  %v6099_v27 = vpop.f32.mrf.mxu1 }
 0x2a4   : > { %v5988_v19 = vpop.f32.mrf.mxu0 }
 0x2a5   : > { %5249 = vst [vmem:[%s7331_s22 + $0x28] sm:$0xff] %v5193_v16   ;;  %v4527_v35 = vadd.f32 %v4526_v61, %v4496_v5  ;;  %v4111_v3 = vadd.f32 %v6098_v52, %v3950_v21  ;;  %v5989_v40 = vadd.f32 %v5988_v19, %v5987_v60  ;;  %v6100_v30 = vpop.f32.mrf.mxu1 }
 0x2a6   : > { %v5990_v33 = vpop.f32.mrf.mxu0  ;;  %v6101_v41 = vadd.f32 %v6100_v30, %v6099_v27 }
 0x2a7   : > { %v4459_v49 = vadd.f32 %v4458_v22, %v4111_v3  ;;  %v4497_v31 = vmul.f32 %v4111_v3, %v4111_v3  ;;  %v3953_v24 = vadd.f32 %v5989_v40, %v7269_v63  ;;  %v6102_v34 = vpop.f32.mrf.mxu1 }
 0x2a8   : > { %v5991_v36 = vpop.f32.mrf.mxu0 }
 0x2a9   : > { %v4528_v46 = vadd.f32 %v4527_v35, %v4497_v31  ;;  %v4114_v47 = vadd.f32 %v6101_v41, %v3953_v24  ;;  %v5992_v62 = vadd.f32 %v5991_v36, %v5990_v33  ;;  %v6103_v23 = vpop.f32.mrf.mxu1 }
 0x2aa   : > { %v6104_v8 = vadd.f32 %v6103_v23, %v6102_v34  ;;  %v5993_v0 = vpop.f32.mrf.mxu0 }
 0x2ab   : > { %v5198_v28 = vpack.c.bf16 %v4114_v47, %v4111_v3  ;;  %v4460_v48 = vadd.f32 %v4459_v49, %v4114_v47  ;;  %v4498_v59 = vmul.f32 %v4114_v47, %v4114_v47  ;;  %v3958_v32 = vadd.f32 %v5992_v62, %v7272_v45  ;;  %v6105_v42 = vpop.f32.mrf.mxu1 }
 0x2ac   : > { %v5994_v44 = vpop.f32.mrf.mxu0 }
 0x2ad   : > { %5250 = vst [vmem:[%s7331_s22 + $0x30] sm:$0xff] %v5198_v28   ;;  %v4529_v20 = vadd.f32 %v4528_v46, %v4498_v59  ;;  %v4119_v63 = vadd.f32 %v6104_v8, %v3958_v32  ;;  %v5995_v56 = vadd.f32 %v5994_v44, %v5993_v0  ;;  %v6106_v11 = vpop.f32.mrf.mxu1 }
 0x2ae   : > { %v5996_v1 = vpop.f32.mrf.mxu0  ;;  %v6107_v12 = vadd.f32 %v6106_v11, %v6105_v42 }
 0x2af   : > { %v4461_v54 = vadd.f32 %v4460_v48, %v4119_v63  ;;  %v4499_v57 = vmul.f32 %v4119_v63, %v4119_v63  ;;  %v3961_v17 = vadd.f32 %v5995_v56, %v7275_v55  ;;  %v6108_v25 = vpop.f32.mrf.mxu1 }
 0x2b0   : > { %v5997_v6 = vpop.f32.mrf.mxu0 }
 0x2b1   : > { %v4530_v61 = vadd.f32 %v4529_v20, %v4499_v57  ;;  %v4122_v53 = vadd.f32 %v6107_v12, %v3961_v17  ;;  %v5998_v18 = vadd.f32 %v5997_v6, %v5996_v1  ;;  %v6109_v45 = vpop.f32.mrf.mxu1 }
 0x2b2   : > { %v6110_v10 = vadd.f32 %v6109_v45, %v6108_v25  ;;  %v5999_v52 = vpop.f32.mrf.mxu0 }
 0x2b3   : > { %v5203_v60 = vpack.c.bf16 %v4122_v53, %v4119_v63  ;;  %v4462_v16 = vadd.f32 %v4461_v54, %v4122_v53  ;;  %v4500_v22 = vmul.f32 %v4122_v53, %v4122_v53  ;;  %v3966_v5 = vadd.f32 %v5998_v18, %v7278_v15  ;;  %v6111_v21 = vpop.f32.mrf.mxu1 }
 0x2b4   : > { %v6000_v27 = vpop.f32.mrf.mxu0 }
 0x2b5   : > { %5251 = vst [vmem:[%s7331_s22 + $0x38] sm:$0xff] %v5203_v60   ;;  %v4531_v19 = vadd.f32 %v4530_v61, %v4500_v22  ;;  %v4127_v55 = vadd.f32 %v6110_v10, %v3966_v5  ;;  %v6001_v35 = vadd.f32 %v6000_v27, %v5999_v52  ;;  %v6112_v3 = vpop.f32.mrf.mxu1 }
 0x2b6   : > { %v6002_v40 = vpop.f32.mrf.mxu0  ;;  %v6113_v31 = vadd.f32 %v6112_v3, %v6111_v21 }
 0x2b7   : > { %v4463_v30 = vadd.f32 %v4462_v16, %v4127_v55  ;;  %v4501_v33 = vmul.f32 %v4127_v55, %v4127_v55  ;;  %v3969_v49 = vadd.f32 %v6001_v35, %v7281_v37  ;;  %v6114_v24 = vpop.f32.mrf.mxu1 }
 0x2b8   : > { %v6003_v41 = vpop.f32.mrf.mxu0 }
 0x2b9   : > { %v4532_v34 = vadd.f32 %v4531_v19, %v4501_v33  ;;  %v4130_v36 = vadd.f32 %v6113_v31, %v3969_v49  ;;  %v6004_v46 = vadd.f32 %v6003_v41, %v6002_v40  ;;  %v6115_v15 = vpop.f32.mrf.mxu1 }
 0x2ba   : > { %v6116_v47 = vadd.f32 %v6115_v15, %v6114_v24  ;;  %v6005_v62 = vpop.f32.mrf.mxu0 }
 0x2bb   : > { %v5208_v23 = vpack.c.bf16 %v4130_v36, %v4127_v55  ;;  %v4464_v8 = vadd.f32 %v4463_v30, %v4130_v36  ;;  %v4502_v0 = vmul.f32 %v4130_v36, %v4130_v36  ;;  %v3974_v28 = vadd.f32 %v6004_v46, %v7284_v4  ;;  %v6117_v48 = vpop.f32.mrf.mxu1 }
 0x2bc   : > { %v6006_v59 = vpop.f32.mrf.mxu0 }
 0x2bd   : > { %5252 = vst [vmem:[%s7331_s22 + $0x40] sm:$0xff] %v5208_v23   ;;  %v4533_v32 = vadd.f32 %v4532_v34, %v4502_v0  ;;  %v4135_v37 = vadd.f32 %v6116_v47, %v3974_v28  ;;  %v6007_v42 = vadd.f32 %v6006_v59, %v6005_v62  ;;  %v6118_v44 = vpop.f32.mrf.mxu1 }
 0x2be   : > { %v6008_v20 = vpop.f32.mrf.mxu0  ;;  %v6119_v1 = vadd.f32 %v6118_v44, %v6117_v48 }
 0x2bf   : > { %v4465_v63 = vadd.f32 %v4464_v8, %v4135_v37  ;;  %v4503_v56 = vmul.f32 %v4135_v37, %v4135_v37  ;;  %v3977_v11 = vadd.f32 %v6007_v42, %v7287_v43  ;;  %v6120_v54 = vpop.f32.mrf.mxu1 }
 0x2c0   : > { %v6009_v57 = vpop.f32.mrf.mxu0 }
 0x2c1   : > { %v4534_v17 = vadd.f32 %v4533_v32, %v4503_v56  ;;  %v4138_v12 = vadd.f32 %v6119_v1, %v3977_v11  ;;  %v6010_v25 = vadd.f32 %v6009_v57, %v6008_v20  ;;  %v6121_v4 = vpop.f32.mrf.mxu1 }
 0x2c2   : > { %v6122_v6 = vadd.f32 %v6121_v4, %v6120_v54  ;;  %v6011_v61 = vpop.f32.mrf.mxu0 }
 0x2c3   : > { %v5213_v53 = vpack.c.bf16 %v4138_v12, %v4135_v37  ;;  %v4466_v18 = vadd.f32 %v4465_v63, %v4138_v12  ;;  %v4504_v45 = vmul.f32 %v4138_v12, %v4138_v12  ;;  %v3982_v10 = vadd.f32 %v6010_v25, %v7290_v38  ;;  %v6123_v52 = vpop.f32.mrf.mxu1 }
 0x2c4   : > { %v6012_v60 = vpop.f32.mrf.mxu0 }
 0x2c5   : > { %5253 = vst [vmem:[%s7331_s22 + $0x48] sm:$0xff] %v5213_v53   ;;  %v4535_v16 = vadd.f32 %v4534_v17, %v4504_v45  ;;  %v4143_v43 = vadd.f32 %v6122_v6, %v3982_v10  ;;  %v6013_v22 = vadd.f32 %v6012_v60, %v6011_v61  ;;  %v6124_v5 = vpop.f32.mrf.mxu1 }
 0x2c6   : > { %v6014_v21 = vpop.f32.mrf.mxu0  ;;  %v6125_v35 = vadd.f32 %v6124_v5, %v6123_v52 }
 0x2c7   : > { %v4467_v27 = vadd.f32 %v4466_v18, %v4143_v43  ;;  %v4505_v19 = vmul.f32 %v4143_v43, %v4143_v43  ;;  %v3985_v55 = vadd.f32 %v6013_v22, %v7293_v2  ;;  %v6126_v3 = vpop.f32.mrf.mxu1 }
 0x2c8   : > { %v6015_v40 = vpop.f32.mrf.mxu0 }
 0x2c9   : > { %v4536_v30 = vadd.f32 %v4535_v16, %v4505_v19  ;;  %v4146_v33 = vadd.f32 %v6125_v35, %v3985_v55  ;;  %v6016_v49 = vadd.f32 %v6015_v40, %v6014_v21  ;;  %v6127_v38 = vpop.f32.mrf.mxu1 }
 0x2ca   : > { %v6128_v31 = vadd.f32 %v6127_v38, %v6126_v3  ;;  %v6017_v24 = vpop.f32.mrf.mxu0 }
 0x2cb   : > { %v5218_v41 = vpack.c.bf16 %v4146_v33, %v4143_v43  ;;  %v4468_v34 = vadd.f32 %v4467_v27, %v4146_v33  ;;  %v4506_v36 = vmul.f32 %v4146_v33, %v4146_v33  ;;  %v3990_v46 = vadd.f32 %v6016_v49, %v7296_v9  ;;  %v6129_v15 = vpop.f32.mrf.mxu1 }
 0x2cc   : > { %v6018_v47 = vpop.f32.mrf.mxu0 }
 0x2cd   : > { %5254 = vst [vmem:[%s7331_s22 + $0x50] sm:$0xff] %v5218_v41   ;;  %v4537_v62 = vadd.f32 %v4536_v30, %v4506_v36  ;;  %v4151_v2 = vadd.f32 %v6128_v31, %v3990_v46  ;;  %v6019_v23 = vadd.f32 %v6018_v47, %v6017_v24  ;;  %v6130_v8 = vpop.f32.mrf.mxu1 }
 0x2ce   : > { %v6020_v0 = vpop.f32.mrf.mxu0  ;;  %v6131_v32 = vadd.f32 %v6130_v8, %v6129_v15 }
 0x2cf   : > { %v4469_v28 = vadd.f32 %v4468_v34, %v4151_v2  ;;  %v4507_v48 = vmul.f32 %v4151_v2, %v4151_v2  ;;  %v3993_v59 = vadd.f32 %v6019_v23, %v7299_v26  ;;  %v6132_v37 = vpop.f32.mrf.mxu1 }
 0x2d0   : > { %v6021_v42 = vpop.f32.mrf.mxu0 }
 0x2d1   : > { %v4538_v44 = vadd.f32 %v4537_v62, %v4507_v48  ;;  %v4154_v20 = vadd.f32 %v6131_v32, %v3993_v59  ;;  %v6022_v63 = vadd.f32 %v6021_v42, %v6020_v0  ;;  %v6133_v9 = vpop.f32.mrf.mxu1 }
 0x2d2   : > { %v6134_v56 = vadd.f32 %v6133_v9, %v6132_v37  ;;  %v6023_v11 = vpop.f32.mrf.mxu0 }
 0x2d3   : > { %v5223_v1 = vpack.c.bf16 %v4154_v20, %v4151_v2  ;;  %v4470_v54 = vadd.f32 %v4469_v28, %v4154_v20  ;;  %v4508_v57 = vmul.f32 %v4154_v20, %v4154_v20  ;;  %v3998_v17 = vadd.f32 %v6022_v63, %v7302_v58  ;;  %v6135_v12 = vpop.f32.mrf.mxu1 }
 0x2d4   : > { %v6024_v25 = vpop.f32.mrf.mxu0 }
 0x2d5   : > { %5255 = vst [vmem:[%s7331_s22 + $0x58] sm:$0xff] %v5223_v1   ;;  %v4539_v4 = vadd.f32 %v4538_v44, %v4508_v57  ;;  %v4159_v26 = vadd.f32 %v6134_v56, %v3998_v17  ;;  %v6025_v6 = vadd.f32 %v6024_v25, %v6023_v11  ;;  %v6136_v61 = vpop.f32.mrf.mxu1 }
 0x2d6   : > { %v6026_v53 = vpop.f32.mrf.mxu0  ;;  %v6137_v52 = vadd.f32 %v6136_v61, %v6135_v12 }
 0x2d7   : > { %v4471_v18 = vadd.f32 %v4470_v54, %v4159_v26  ;;  %v4509_v45 = vmul.f32 %v4159_v26, %v4159_v26  ;;  %v4001_v10 = vadd.f32 %v6025_v6, %v7305_v50  ;;  %v6138_v60 = vpop.f32.mrf.mxu1 }
 0x2d8   : > { %v6027_v16 = vpop.f32.mrf.mxu0 }
 0x2d9   : > { %v4540_v43 = vadd.f32 %v4539_v4, %v4509_v45  ;;  %v4162_v22 = vadd.f32 %v6137_v52, %v4001_v10  ;;  %v6028_v5 = vadd.f32 %v6027_v16, %v6026_v53  ;;  %v6139_v58 = vpop.f32.mrf.mxu1 }
 0x2da   : > { %v6140_v21 = vadd.f32 %v6139_v58, %v6138_v60  ;;  %v6029_v27 = vpop.f32.mrf.mxu0 }
 0x2db   : > { %v5228_v19 = vpack.c.bf16 %v4162_v22, %v4159_v26  ;;  %v4472_v55 = vadd.f32 %v4471_v18, %v4162_v22  ;;  %v4510_v35 = vmul.f32 %v4162_v22, %v4162_v22  ;;  %v4006_v3 = vadd.f32 %v6028_v5, %v7308_v7  ;;  %v6141_v40 = vpop.f32.mrf.mxu1 }
 0x2dc   : > { %v6030_v30 = vpop.f32.mrf.mxu0 }
 0x2dd   : > { %5256 = vst [vmem:[%s7331_s22 + $0x60] sm:$0xff] %v5228_v19   ;;  %v4541_v33 = vadd.f32 %v4540_v43, %v4510_v35  ;;  %v4167_v50 = vadd.f32 %v6140_v21, %v4006_v3  ;;  %v6031_v49 = vadd.f32 %v6030_v30, %v6029_v27  ;;  %v6142_v38 = vpop.f32.mrf.mxu1 }
 0x2de   : > { %v6032_v31 = vpop.f32.mrf.mxu0  ;;  %v6143_v36 = vadd.f32 %v6142_v38, %v6141_v40 }
 0x2df   : > { %v4473_v24 = vadd.f32 %v4472_v55, %v4167_v50  ;;  %v4511_v41 = vmul.f32 %v4167_v50, %v4167_v50  ;;  %v4009_v34 = vadd.f32 %v6031_v49, %v7311_v13  ;;  %v6144_v46 = vpop.f32.mrf.mxu1 }
 0x2e0   : > { %v6033_v15 = vpop.f32.mrf.mxu0 }
 0x2e1   : > { %v4542_v47 = vadd.f32 %v4541_v33, %v4511_v41  ;;  %v4170_v62 = vadd.f32 %v6143_v36, %v4009_v34  ;;  %v6034_v2 = vadd.f32 %v6033_v15, %v6032_v31  ;;  %v6145_v7 = vpop.f32.mrf.mxu1 }
 0x2e2   : > { %v6146_v23 = vadd.f32 %v6145_v7, %v6144_v46  ;;  %v6035_v8 = vpop.f32.mrf.mxu0 }
 0x2e3   : > { %v5233_v0 = vpack.c.bf16 %v4170_v62, %v4167_v50  ;;  %v4474_v28 = vadd.f32 %v4473_v24, %v4170_v62  ;;  %v4512_v48 = vmul.f32 %v4170_v62, %v4170_v62  ;;  %v4014_v59 = vadd.f32 %v6034_v2, %v7314_v29  ;;  %v6147_v32 = vpop.f32.mrf.mxu1 }
 0x2e4   : > { %v6036_v37 = vpop.f32.mrf.mxu0 }
 0x2e5   : > { %5257 = vst [vmem:[%s7331_s22 + $0x68] sm:$0xff] %v5233_v0   ;;  %v4543_v42 = vadd.f32 %v4542_v47, %v4512_v48  ;;  %v4175_v13 = vadd.f32 %v6146_v23, %v4014_v59  ;;  %v6037_v44 = vadd.f32 %v6036_v37, %v6035_v8  ;;  %v6148_v20 = vpop.f32.mrf.mxu1 }
 0x2e6   : > { %v6038_v63 = vpop.f32.mrf.mxu0  ;;  %v6149_v1 = vadd.f32 %v6148_v20, %v6147_v32 }
 0x2e7   : > { %v4475_v9 = vadd.f32 %v4474_v28, %v4175_v13  ;;  %v4513_v56 = vmul.f32 %v4175_v13, %v4175_v13  ;;  %v4017_v11 = vadd.f32 %v6037_v44, %v7317_v39  ;;  %v6150_v54 = vpop.f32.mrf.mxu1 }
 0x2e8   : > { %v6039_v57 = vpop.f32.mrf.mxu0 }
 0x2e9   : > { %v4544_v17 = vadd.f32 %v4543_v42, %v4513_v56  ;;  %v4178_v12 = vadd.f32 %v6149_v1, %v4017_v11  ;;  %v6040_v25 = vadd.f32 %v6039_v57, %v6038_v63  ;;  %v6151_v29 = vpop.f32.mrf.mxu1 }
 0x2ea   : > { %v6152_v4 = vadd.f32 %v6151_v29, %v6150_v54  ;;  %v6041_v26 = vpop.f32.mrf.mxu0 }
 0x2eb   : > { %v5238_v6 = vpack.c.bf16 %v4178_v12, %v4175_v13  ;;  %v4476_v61 = vadd.f32 %v4475_v9, %v4178_v12  ;;  %v4514_v53 = vmul.f32 %v4178_v12, %v4178_v12  ;;  %v4022_v18 = vadd.f32 %v6040_v25, %v7320_v51  ;;  %v6153_v45 = vpop.f32.mrf.mxu1 }
 0x2ec   : > { %v6042_v10 = vpop.f32.mrf.mxu0 }
 0x2ed   : > { %5258 = vst [vmem:[%s7331_s22 + $0x70] sm:$0xff] %v5238_v6   ;;  %v4545_v39 = vadd.f32 %v4544_v17, %v4514_v53  ;;  %v4183_v52 = vadd.f32 %v6152_v4, %v4022_v18  ;;  %v6043_v60 = vadd.f32 %v6042_v10, %v6041_v26  ;;  %v6154_v16 = vpop.f32.mrf.mxu1 }
 0x2ee   : > { %v6155_v58 = vadd.f32 %v6154_v16, %v6153_v45 }
 0x2ef   : > { %v4477_v43 = vadd.f32 %v4476_v61, %v4183_v52  ;;  %v4515_v22 = vmul.f32 %v4183_v52, %v4183_v52  ;;  %v4025_v5 = vadd.f32 %v6043_v60, %v7323_v14 }
 0x2f1   : > { %v4546_v21 = vadd.f32 %v4545_v39, %v4515_v22  ;;  %v4186_v27 = vadd.f32 %v6155_v58, %v4025_v5 }
 0x2f3   : > { %v5243_v19 = vpack.c.bf16 %v4186_v27, %v4183_v52  ;;  %v4478_v55 = vadd.f32 %v4477_v43, %v4186_v27  ;;  %v4516_v51 = vmul.f32 %v4186_v27, %v4186_v27 }
 0x2f5   : > { %5259 = vst [vmem:[%s7331_s22 + $0x78] sm:$0xff] %v5243_v19   ;;  %v4479_v35 = vrot.slane %v4478_v55, 4  ;;  %v4547_v3 = vadd.f32 %v4546_v21, %v4516_v51 }
 0x2f7   : > { %v4480_v40 = vadd.f32 %v4479_v35, %v4478_v55  ;;  %v4548_v30 = vrot.slane %v4547_v3, 4 }
 0x2f9   : > { %v4481_v33 = vrot.slane %v4480_v40, 2  ;;  %v4549_v50 = vadd.f32 %v4548_v30, %v4547_v3 }
 0x2fb   : > { %v4482_v49 = vadd.f32 %v4481_v33, %v4480_v40  ;;  %v4550_v38 = vrot.slane %v4549_v50, 2 }
 0x2fd   : > { %v4483_v31 = vrot.slane %v4482_v49, 1  ;;  %v4551_v24 = vadd.f32 %v4550_v38, %v4549_v50 }
 0x2ff   : > { %v4552_v14 = vrot.slane %v4551_v24, 1  ;;  %v4484_v41 = vadd.f32 %v4483_v31, %v4482_v49 }
 0x301   : > { %v4553_v34 = vadd.f32 %v4552_v14, %v4551_v24 }
 0x303   : > { %v4555_v36 = vsel %vm4554_vm0, %v4484_v41, %v4553_v34 }
 0x304   : > { %v4557_v46 = vsel %vm4556_vm1, %v4555_v36, 0.0 }
 0x305   : > { %4558 = vst [vmem:[%s271_s26] sm:$0xff] %v4557_v46 }
 0x306 PF: > { %s14_s14 = sadd.s32 1, %s6330_s14   ;;  %s7397_s12 = smov %s6326_s13 }
 0x307   : > { %p11_p6 = scmp.ge.s32.totalorder %s14_s14, 4   ;;  %s7398_s13 = smov %s7400_s15 }
 0x309   :  { %13 = sbr.rel (!%p11_p6) target bundleno = 2 (0x2), region = 81 }

// kernel: discriminator_forward.9
= control target key start
LH: loop header
LB: loop body
LE: loop exit
PB: predicated region body
PF: predicated region fallthrough
CT: control target
= control target key end

     0   :  { %s1054_s12 = smov 0   ;;  %s1056_s13 = smov 0   ;;  %s1205_s0 = inlined_call_operand.vmem [shape: bf16[512,128], index: 0, kind: input, shape index: {}]   ;;  %s1206_s1 = inlined_call_operand.vmem [shape: f32[1,128], index: 1, kind: input, shape index: {}]   ;;  %s1207_s2 = inlined_call_operand.vmem [shape: f32[1,128], index: 2, kind: input, shape index: {}]   ;;  %s1208_s3 = inlined_call_operand.vmem [shape: bf16[512,128], index: 3, kind: output, shape index: {}]  }
   0x1   :  { %s1058_s14 = smov 0  }
   0x2 LB: > { %s25_s15 = sadd.s32 1, %s1028_s13  ;;  %p739_p0 = scmp.ge.s32.totalorder %s1032_s14, 1  ;;  %s1032_s14 = sphi %s1058_s14, %s13_s14   ;;  %s1028_s13 = sphi %s1056_s13, %s1210_s13   ;;  %s1024_s12 = sphi %s1054_s12, %s1209_s12  }
   0x3   : > { %p27_p1 = scmp.ge.s32.totalorder %s25_s15, 2  ;;  %p173_p2 = scmp.lt.s32.totalorder %s1032_s14, 3 }
   0x5   : > { %s1212_s15 = smov (%p27_p1, %s25_s15), 0  ;;  %p174_p3 = pnand %p739_p0, %p173_p2 }
   0x6   : > { %s740_s16 = sshll.u32 (!%p174_p3), %s1024_s12, 5 }
   0x7   : > { %177 = sbr.rel (%p174_p3) target bundleno = 75 (0x4b), region = 32  ;;  %p210_p4 = scmp.lt.s32.totalorder (!%p174_p3), %s740_s16, 63 }
   0xc   : > { %s1214_s16 = smov (!%p210_p4, %s740_s16), 63  ;;  %v1085_v0 = vld [vmem:[%s1206_s1] ss:$0 sm:$0xff] }
   0xd   : > { %s741_s17 = sshll.u32 %s1214_s16, 2  ;;  %v1094_v9 = vld [vmem:[%s1207_s2] ss:$0 sm:$0xff] }
   0xe   : > { %s1080_s20 = scalar_lea.vmem %s1205_s0, %s741_s17  ;;  %s1117_s27 = scalar_lea.vmem %s1208_s3, %s741_s17 }
   0xf   : > { %v813_v1 = vld [vmem:[%s1080_s20] sm:$0xff]   ;;  %v956_v2 = vld [vmem:[%s1080_s20 + $0x8] sm:$0xff]   ;;  %v957_v3 = vld [vmem:[%s1080_s20 + $0x10] sm:$0xff]  }
  0x10   : > { %v814_v4 = vunpack.c.l.bf16 %v813_v1  ;;  %v815_v5 = vunpack.c.h.bf16 %v813_v1  ;;  %v818_v6 = vunpack.c.l.bf16 %v956_v2  ;;  %v819_v7 = vunpack.c.h.bf16 %v956_v2  ;;  %v958_v8 = vld [vmem:[%s1080_s20 + $0x18] sm:$0xff]   ;;  %v959_v36 = vld [vmem:[%s1080_s20 + $0x20] sm:$0xff]   ;;  %v960_v41 = vld [vmem:[%s1080_s20 + $0x28] sm:$0xff]  }
  0x11   : > { %v822_v10 = vunpack.c.l.bf16 %v957_v3  ;;  %v823_v11 = vunpack.c.h.bf16 %v957_v3  ;;  %v826_v12 = vunpack.c.l.bf16 %v958_v8  ;;  %v827_v13 = vunpack.c.h.bf16 %v958_v8  ;;  %v961_v52 = vld [vmem:[%s1080_s20 + $0x30] sm:$0xff]   ;;  %v962_v53 = vld [vmem:[%s1080_s20 + $0x38] sm:$0xff]  }
  0x12   : > { %v304_v14 = vmul.f32 %v814_v4, %v1085_v0  ;;  %v305_v15 = vmul.f32 %v815_v5, %v1085_v0  ;;  %v306_v16 = vmul.f32 %v818_v6, %v1085_v0  ;;  %v307_v17 = vmul.f32 %v819_v7, %v1085_v0 }
  0x13   : > { %v308_v18 = vmul.f32 %v822_v10, %v1085_v0  ;;  %v309_v19 = vmul.f32 %v823_v11, %v1085_v0  ;;  %v310_v20 = vmul.f32 %v826_v12, %v1085_v0  ;;  %v311_v21 = vmul.f32 %v827_v13, %v1085_v0 }
  0x14   : > { %v343_v22 = vadd.f32 %v1094_v9, %v304_v14  ;;  %v344_v23 = vadd.f32 %v1094_v9, %v305_v15  ;;  %v345_v24 = vadd.f32 %v1094_v9, %v306_v16  ;;  %v346_v25 = vadd.f32 %v1094_v9, %v307_v17 }
  0x15   : > { %v347_v26 = vadd.f32 %v1094_v9, %v308_v18  ;;  %v348_v27 = vadd.f32 %v1094_v9, %v309_v19  ;;  %v349_v28 = vadd.f32 %v1094_v9, %v310_v20  ;;  %v350_v29 = vadd.f32 %v1094_v9, %v311_v21  ;;  %v963_v20 = vld [vmem:[%s1080_s20 + $0x40] sm:$0xff]  }
  0x16   : > { %vm375_vm0 = vcmp.gt.f32.partialorder %v343_v22, 0.0  ;;  %vm376_vm1 = vcmp.gt.f32.partialorder %v344_v23, 0.0  ;;  %v407_v30 = vmul.f32 0.2, %v343_v22  ;;  %v408_v31 = vmul.f32 0.2, %v344_v23 }
  0x17   : > { %vm377_vm2 = vcmp.gt.f32.partialorder %v345_v24, 0.0  ;;  %vm378_vm3 = vcmp.gt.f32.partialorder %v346_v25, 0.0  ;;  %v409_v32 = vmul.f32 0.2, %v345_v24  ;;  %v410_v33 = vmul.f32 0.2, %v346_v25 }
  0x18   : > { %v439_v34 = vsel %vm375_vm0, %v343_v22, %v407_v30  ;;  %v440_v35 = vsel %vm376_vm1, %v344_v23, %v408_v31  ;;  %vm379_vm4 = vcmp.gt.f32.partialorder %v347_v26, 0.0  ;;  %vm380_vm5 = vcmp.gt.f32.partialorder %v348_v27, 0.0 }
  0x19   : > { %v879_v37 = vpack.c.bf16 %v440_v35, %v439_v34  ;;  %v441_v38 = vsel %vm377_vm2, %v345_v24, %v409_v32  ;;  %v442_v39 = vsel %vm378_vm3, %v346_v25, %v410_v33  ;;  %v411_v40 = vmul.f32 0.2, %v347_v26  ;;  %v964_v24 = vld [vmem:[%s1080_s20 + $0x48] sm:$0xff]  }
  0x1a   : > { %v884_v42 = vpack.c.bf16 %v442_v39, %v441_v38  ;;  %v412_v43 = vmul.f32 0.2, %v348_v27  ;;  %vm381_vm6 = vcmp.gt.f32.partialorder %v349_v28, 0.0  ;;  %vm382_vm7 = vcmp.gt.f32.partialorder %v350_v29, 0.0 }
  0x1b   : > { %880 = vst [vmem:[%s1117_s27] sm:$0xff] %v879_v37   ;;  %v443_v44 = vsel %vm379_vm4, %v347_v26, %v411_v40  ;;  %v413_v45 = vmul.f32 0.2, %v349_v28  ;;  %v414_v46 = vmul.f32 0.2, %v350_v29  ;;  %v830_v47 = vunpack.c.l.bf16 %v959_v36 }
  0x1c   : > { %971 = vst [vmem:[%s1117_s27 + $0x8] sm:$0xff] %v884_v42   ;;  %v444_v48 = vsel %vm380_vm5, %v348_v27, %v412_v43  ;;  %v831_v49 = vunpack.c.h.bf16 %v959_v36  ;;  %v834_v50 = vunpack.c.l.bf16 %v960_v41  ;;  %v835_v51 = vunpack.c.h.bf16 %v960_v41  ;;  %v965_v36 = vld [vmem:[%s1080_s20 + $0x50] sm:$0xff]  }
  0x1d   : > { %v889_v54 = vpack.c.bf16 %v444_v48, %v443_v44  ;;  %v445_v55 = vsel %vm381_vm6, %v349_v28, %v413_v45  ;;  %v446_v56 = vsel %vm382_vm7, %v350_v29, %v414_v46  ;;  %v312_v57 = vmul.f32 %v830_v47, %v1085_v0 }
  0x1e   : > { %v894_v58 = vpack.c.bf16 %v446_v56, %v445_v55  ;;  %v313_v59 = vmul.f32 %v831_v49, %v1085_v0  ;;  %v314_v60 = vmul.f32 %v834_v50, %v1085_v0  ;;  %v315_v61 = vmul.f32 %v835_v51, %v1085_v0  ;;  %v966_v55 = vld [vmem:[%s1080_s20 + $0x58] sm:$0xff]  }
  0x1f   : > { %972 = vst [vmem:[%s1117_s27 + $0x10] sm:$0xff] %v889_v54   ;;  %v351_v62 = vadd.f32 %v1094_v9, %v312_v57  ;;  %v838_v63 = vunpack.c.l.bf16 %v961_v52  ;;  %v839_v1 = vunpack.c.h.bf16 %v961_v52  ;;  %v842_v2 = vunpack.c.l.bf16 %v962_v53 }
  0x20   : > { %973 = vst [vmem:[%s1117_s27 + $0x18] sm:$0xff] %v894_v58   ;;  %v352_v3 = vadd.f32 %v1094_v9, %v313_v59  ;;  %v353_v4 = vadd.f32 %v1094_v9, %v314_v60  ;;  %v354_v5 = vadd.f32 %v1094_v9, %v315_v61  ;;  %v843_v6 = vunpack.c.h.bf16 %v962_v53 }
  0x21   : > { %vm383_vm8 = vcmp.gt.f32.partialorder %v351_v62, 0.0  ;;  %v415_v7 = vmul.f32 0.2, %v351_v62  ;;  %v316_v8 = vmul.f32 %v838_v63, %v1085_v0  ;;  %v317_v10 = vmul.f32 %v839_v1, %v1085_v0  ;;  %v967_v1 = vld [vmem:[%s1080_s20 + $0x60] sm:$0xff]  }
  0x22   : > { %vm384_vm9 = vcmp.gt.f32.partialorder %v352_v3, 0.0  ;;  %v416_v11 = vmul.f32 0.2, %v352_v3  ;;  %vm385_vm10 = vcmp.gt.f32.partialorder %v353_v4, 0.0  ;;  %vm386_vm11 = vcmp.gt.f32.partialorder %v354_v5, 0.0 }
  0x23   : > { %v447_v12 = vsel %vm383_vm8, %v351_v62, %v415_v7  ;;  %v417_v13 = vmul.f32 0.2, %v353_v4  ;;  %v418_v14 = vmul.f32 0.2, %v354_v5  ;;  %v355_v15 = vadd.f32 %v1094_v9, %v316_v8 }
  0x24   : > { %v448_v16 = vsel %vm384_vm9, %v352_v3, %v416_v11  ;;  %v356_v17 = vadd.f32 %v1094_v9, %v317_v10  ;;  %v318_v18 = vmul.f32 %v842_v2, %v1085_v0  ;;  %v319_v19 = vmul.f32 %v843_v6, %v1085_v0  ;;  %v968_v6 = vld [vmem:[%s1080_s20 + $0x68] sm:$0xff]  }
  0x25   : > { %v899_v21 = vpack.c.bf16 %v448_v16, %v447_v12  ;;  %v449_v22 = vsel %vm385_vm10, %v353_v4, %v417_v13  ;;  %v450_v23 = vsel %vm386_vm11, %v354_v5, %v418_v14  ;;  %vm387_vm12 = vcmp.gt.f32.partialorder %v355_v15, 0.0 }
  0x26   : > { %v904_v25 = vpack.c.bf16 %v450_v23, %v449_v22  ;;  %vm388_vm13 = vcmp.gt.f32.partialorder %v356_v17, 0.0  ;;  %v419_v26 = vmul.f32 0.2, %v355_v15  ;;  %v420_v27 = vmul.f32 0.2, %v356_v17  ;;  %v969_v22 = vld [vmem:[%s1080_s20 + $0x70] sm:$0xff]  }
  0x27   : > { %974 = vst [vmem:[%s1117_s27 + $0x20] sm:$0xff] %v899_v21   ;;  %v357_v28 = vadd.f32 %v1094_v9, %v318_v18  ;;  %v358_v29 = vadd.f32 %v1094_v9, %v319_v19  ;;  %v846_v30 = vunpack.c.l.bf16 %v963_v20  ;;  %v847_v31 = vunpack.c.h.bf16 %v963_v20 }
  0x28   : > { %975 = vst [vmem:[%s1117_s27 + $0x28] sm:$0xff] %v904_v25   ;;  %v451_v32 = vsel %vm387_vm12, %v355_v15, %v419_v26  ;;  %v452_v33 = vsel %vm388_vm13, %v356_v17, %v420_v27  ;;  %v850_v34 = vunpack.c.l.bf16 %v964_v24  ;;  %v851_v35 = vunpack.c.h.bf16 %v964_v24 }
  0x29   : > { %v909_v37 = vpack.c.bf16 %v452_v33, %v451_v32  ;;  %vm389_vm14 = vcmp.gt.f32.partialorder %v357_v28, 0.0  ;;  %vm390_vm15 = vcmp.gt.f32.partialorder %v358_v29, 0.0  ;;  %v421_v38 = vmul.f32 0.2, %v357_v28 }
  0x2a   : > { %v422_v39 = vmul.f32 0.2, %v358_v29  ;;  %v320_v40 = vmul.f32 %v846_v30, %v1085_v0  ;;  %v321_v41 = vmul.f32 %v847_v31, %v1085_v0  ;;  %v322_v42 = vmul.f32 %v850_v34, %v1085_v0 }
  0x2b   : > { %976 = vst [vmem:[%s1117_s27 + $0x30] sm:$0xff] %v909_v37   ;;  %v453_v43 = vsel %vm389_vm14, %v357_v28, %v421_v38  ;;  %v323_v44 = vmul.f32 %v851_v35, %v1085_v0  ;;  %v854_v45 = vunpack.c.l.bf16 %v965_v36  ;;  %v855_v46 = vunpack.c.h.bf16 %v965_v36 }
  0x2c   : > { %v454_v47 = vsel %vm390_vm15, %v358_v29, %v422_v39  ;;  %v359_v48 = vadd.f32 %v1094_v9, %v320_v40  ;;  %v360_v49 = vadd.f32 %v1094_v9, %v321_v41  ;;  %v361_v50 = vadd.f32 %v1094_v9, %v322_v42  ;;  %v970_v41 = vld [vmem:[%s1080_s20 + $0x78] sm:$0xff]  }
  0x2d   : > { %v914_v51 = vpack.c.bf16 %v454_v47, %v453_v43  ;;  %v362_v52 = vadd.f32 %v1094_v9, %v323_v44  ;;  %v324_v53 = vmul.f32 %v854_v45, %v1085_v0  ;;  %v325_v54 = vmul.f32 %v855_v46, %v1085_v0 }
  0x2e   : > { %vm391_vm0 = vcmp.gt.f32.partialorder %v359_v48, 0.0  ;;  %vm392_vm1 = vcmp.gt.f32.partialorder %v360_v49, 0.0  ;;  %v423_v56 = vmul.f32 0.2, %v359_v48  ;;  %v424_v57 = vmul.f32 0.2, %v360_v49 }
  0x2f   : > { %977 = vst [vmem:[%s1117_s27 + $0x38] sm:$0xff] %v914_v51   ;;  %vm393_vm2 = vcmp.gt.f32.partialorder %v361_v50, 0.0  ;;  %vm394_vm3 = vcmp.gt.f32.partialorder %v362_v52, 0.0  ;;  %v425_v58 = vmul.f32 0.2, %v361_v50  ;;  %v363_v62 = vadd.f32 %v1094_v9, %v324_v53 }
  0x30   : > { %v426_v59 = vmul.f32 0.2, %v362_v52  ;;  %v455_v60 = vsel %vm391_vm0, %v359_v48, %v423_v56  ;;  %v456_v61 = vsel %vm392_vm1, %v360_v49, %v424_v57  ;;  %v364_v63 = vadd.f32 %v1094_v9, %v325_v54 }
  0x31   : > { %v919_v2 = vpack.c.bf16 %v456_v61, %v455_v60  ;;  %v457_v3 = vsel %vm393_vm2, %v361_v50, %v425_v58  ;;  %v858_v5 = vunpack.c.l.bf16 %v966_v55  ;;  %vm395_vm4 = vcmp.gt.f32.partialorder %v363_v62, 0.0 }
  0x32   : > { %v458_v4 = vsel %vm394_vm3, %v362_v52, %v426_v59  ;;  %vm396_vm5 = vcmp.gt.f32.partialorder %v364_v63, 0.0  ;;  %v427_v8 = vmul.f32 0.2, %v363_v62  ;;  %v428_v10 = vmul.f32 0.2, %v364_v63 }
  0x33   : > { %v924_v7 = vpack.c.bf16 %v458_v4, %v457_v3  ;;  %978 = vst [vmem:[%s1117_s27 + $0x40] sm:$0xff] %v919_v2   ;;  %v859_v11 = vunpack.c.h.bf16 %v966_v55  ;;  %v326_v12 = vmul.f32 %v858_v5, %v1085_v0  ;;  %v862_v13 = vunpack.c.l.bf16 %v967_v1 }
  0x34   : > { %v459_v14 = vsel %vm395_vm4, %v363_v62, %v427_v8  ;;  %v863_v15 = vunpack.c.h.bf16 %v967_v1  ;;  %v866_v16 = vunpack.c.l.bf16 %v968_v6  ;;  %v867_v17 = vunpack.c.h.bf16 %v968_v6 }
  0x35   : > { %979 = vst [vmem:[%s1117_s27 + $0x48] sm:$0xff] %v924_v7   ;;  %v460_v18 = vsel %vm396_vm5, %v364_v63, %v428_v10  ;;  %v327_v19 = vmul.f32 %v859_v11, %v1085_v0  ;;  %v365_v20 = vadd.f32 %v1094_v9, %v326_v12  ;;  %v328_v21 = vmul.f32 %v862_v13, %v1085_v0 }
  0x36   : > { %v929_v23 = vpack.c.bf16 %v460_v18, %v459_v14  ;;  %v329_v24 = vmul.f32 %v863_v15, %v1085_v0  ;;  %v330_v25 = vmul.f32 %v866_v16, %v1085_v0  ;;  %v331_v26 = vmul.f32 %v867_v17, %v1085_v0 }
  0x37   : > { %v366_v27 = vadd.f32 %v1094_v9, %v327_v19  ;;  %vm397_vm6 = vcmp.gt.f32.partialorder %v365_v20, 0.0  ;;  %v429_v28 = vmul.f32 0.2, %v365_v20  ;;  %v367_v29 = vadd.f32 %v1094_v9, %v328_v21 }
  0x38   : > { %980 = vst [vmem:[%s1117_s27 + $0x50] sm:$0xff] %v929_v23   ;;  %v368_v30 = vadd.f32 %v1094_v9, %v329_v24  ;;  %v369_v31 = vadd.f32 %v1094_v9, %v330_v25  ;;  %v370_v32 = vadd.f32 %v1094_v9, %v331_v26  ;;  %v870_v33 = vunpack.c.l.bf16 %v969_v22 }
  0x39   : > { %vm398_vm7 = vcmp.gt.f32.partialorder %v366_v27, 0.0  ;;  %v430_v34 = vmul.f32 0.2, %v366_v27  ;;  %v461_v35 = vsel %vm397_vm6, %v365_v20, %v429_v28  ;;  %vm399_vm8 = vcmp.gt.f32.partialorder %v367_v29, 0.0 }
  0x3a   : > { %vm400_vm9 = vcmp.gt.f32.partialorder %v368_v30, 0.0  ;;  %v431_v36 = vmul.f32 0.2, %v367_v29  ;;  %v432_v37 = vmul.f32 0.2, %v368_v30  ;;  %vm401_vm10 = vcmp.gt.f32.partialorder %v369_v31, 0.0 }
  0x3b   : > { %v462_v38 = vsel %vm398_vm7, %v366_v27, %v430_v34  ;;  %vm402_vm11 = vcmp.gt.f32.partialorder %v370_v32, 0.0  ;;  %v433_v39 = vmul.f32 0.2, %v369_v31  ;;  %v434_v40 = vmul.f32 0.2, %v370_v32 }
  0x3c   : > { %v934_v42 = vpack.c.bf16 %v462_v38, %v461_v35  ;;  %v463_v43 = vsel %vm399_vm8, %v367_v29, %v431_v36  ;;  %v464_v44 = vsel %vm400_vm9, %v368_v30, %v432_v37  ;;  %v871_v45 = vunpack.c.h.bf16 %v969_v22 }
  0x3d   : > { %v939_v46 = vpack.c.bf16 %v464_v44, %v463_v43  ;;  %v465_v47 = vsel %vm401_vm10, %v369_v31, %v433_v39  ;;  %v466_v48 = vsel %vm402_vm11, %v370_v32, %v434_v40  ;;  %v332_v49 = vmul.f32 %v870_v33, %v1085_v0 }
  0x3e   : > { %981 = vst [vmem:[%s1117_s27 + $0x58] sm:$0xff] %v934_v42   ;;  %v944_v50 = vpack.c.bf16 %v466_v48, %v465_v47  ;;  %v333_v51 = vmul.f32 %v871_v45, %v1085_v0  ;;  %v874_v52 = vunpack.c.l.bf16 %v970_v41  ;;  %v875_v53 = vunpack.c.h.bf16 %v970_v41 }
  0x3f   : > { %982 = vst [vmem:[%s1117_s27 + $0x60] sm:$0xff] %v939_v46   ;;  %v371_v54 = vadd.f32 %v1094_v9, %v332_v49 }
  0x40   : > { %983 = vst [vmem:[%s1117_s27 + $0x68] sm:$0xff] %v944_v50   ;;  %v372_v55 = vadd.f32 %v1094_v9, %v333_v51  ;;  %v334_v56 = vmul.f32 %v874_v52, %v1085_v0  ;;  %v335_v57 = vmul.f32 %v875_v53, %v1085_v0 }
  0x41   : > { %vm403_vm12 = vcmp.gt.f32.partialorder %v371_v54, 0.0  ;;  %v435_v58 = vmul.f32 0.2, %v371_v54 }
  0x42   : > { %vm404_vm13 = vcmp.gt.f32.partialorder %v372_v55, 0.0  ;;  %v436_v59 = vmul.f32 0.2, %v372_v55  ;;  %v373_v60 = vadd.f32 %v1094_v9, %v334_v56  ;;  %v374_v61 = vadd.f32 %v1094_v9, %v335_v57 }
  0x43   : > { %v467_v62 = vsel %vm403_vm12, %v371_v54, %v435_v58 }
  0x44   : > { %v468_v63 = vsel %vm404_vm13, %v372_v55, %v436_v59  ;;  %vm405_vm14 = vcmp.gt.f32.partialorder %v373_v60, 0.0  ;;  %vm406_vm15 = vcmp.gt.f32.partialorder %v374_v61, 0.0  ;;  %v437_v1 = vmul.f32 0.2, %v373_v60 }
  0x45   : > { %v949_v2 = vpack.c.bf16 %v468_v63, %v467_v62  ;;  %v438_v3 = vmul.f32 0.2, %v374_v61 }
  0x46   : > { %v469_v4 = vsel %vm405_vm14, %v373_v60, %v437_v1 }
  0x47   : > { %984 = vst [vmem:[%s1117_s27 + $0x70] sm:$0xff] %v949_v2   ;;  %v470_v5 = vsel %vm406_vm15, %v374_v61, %v438_v3 }
  0x48   : > { %v954_v0 = vpack.c.bf16 %v470_v5, %v469_v4 }
  0x4a   : > { %985 = vst [vmem:[%s1117_s27 + $0x78] sm:$0xff] %v954_v0  }
  0x4b PF: > { %s13_s14 = sadd.s32 1, %s1032_s14   ;;  %s1209_s12 = smov %s1028_s13 }
  0x4c   : > { %p10_p5 = scmp.ge.s32.totalorder %s13_s14, 4   ;;  %s1210_s13 = smov %s1212_s15 }
  0x4e   :  { %12 = sbr.rel (!%p10_p5) target bundleno = 2 (0x2), region = 68 }

// kernel: discriminator_forward.10
= control target key start
LH: loop header
LB: loop body
LE: loop exit
PB: predicated region body
PF: predicated region fallthrough
CT: control target
= control target key end

     0   :  { %s4973_s1 = inlined_call_operand.vmem [shape: bf16[2048,128], index: 1, kind: input, shape index: {}]   ;;  %s4974_s0 = inlined_call_operand.vmem [shape: bf16[128,2048], index: 0, kind: input, shape index: {}]   ;;  %s4975_s2 = inlined_call_operand.vmem [shape: f32[1,128], index: 2, kind: input, shape index: {}]   ;;  %s4976_s3 = inlined_call_operand.vmem [shape: f32[1,128], index: 3, kind: input, shape index: {}]   ;;  %s4977_s4 = inlined_call_operand.vmem [shape: bf16[128,128], index: 4, kind: output, shape index: {}]  }
   0x1   :  { %v3767_v0 = vld [vmem:[%s4973_s1 + $0x78] sm:$0xff]   ;;  %v3771_v4 = vld [vmem:[%s4973_s1 + $0x70] sm:$0xff]   ;;  %v3775_v8 = vld [vmem:[%s4973_s1 + $0x68] sm:$0xff]  }
   0x2   :  { %v3768_v1 = vld [vmem:[%s4973_s1 + $0xf8] sm:$0xff]   ;;  %3255 = vmatprep.subr.bf16.mxu0 %v3767_v0  ;;  %v3772_v5 = vld [vmem:[%s4973_s1 + $0xf0] sm:$0xff]   ;;  %v3776_v9 = vld [vmem:[%s4973_s1 + $0xe8] sm:$0xff]  }
   0x3   :  { %v3769_v2 = vld [vmem:[%s4973_s1 + $0x38] sm:$0xff]   ;;  %3319 = vmatprep.subr.bf16.mxu1 %v3768_v1  ;;  %v3773_v6 = vld [vmem:[%s4973_s1 + $0x30] sm:$0xff]   ;;  %v3777_v10 = vld [vmem:[%s4973_s1 + $0x28] sm:$0xff]  }
   0x4   :  { %v3770_v3 = vld [vmem:[%s4973_s1 + $0xb8] sm:$0xff]   ;;  %3256 = vmatpush3.bf16.msra.mxu0 %v3769_v2  ;;  %v3774_v7 = vld [vmem:[%s4973_s1 + $0xb0] sm:$0xff]   ;;  %v3778_v11 = vld [vmem:[%s4973_s1 + $0xa8] sm:$0xff]  }
   0x5   :  { %3320 = vmatpush3.bf16.msra.mxu1 %v3770_v3  ;;  %3257 = vmatprep.subr.bf16.mxu0 %v3771_v4  ;;  %v3779_v12 = vld [vmem:[%s4973_s1 + $0x60] sm:$0xff]   ;;  %v3783_v16 = vld [vmem:[%s4973_s1 + $0x58] sm:$0xff]   ;;  %v3787_v20 = vld [vmem:[%s4973_s1 + $0x50] sm:$0xff]  }
   0x6   :  { %3321 = vmatprep.subr.bf16.mxu1 %v3772_v5  ;;  %v3780_v13 = vld [vmem:[%s4973_s1 + $0xe0] sm:$0xff]   ;;  %v3784_v17 = vld [vmem:[%s4973_s1 + $0xd8] sm:$0xff]   ;;  %v3788_v21 = vld [vmem:[%s4973_s1 + $0xd0] sm:$0xff]  }
   0x7   :  { %v3781_v14 = vld [vmem:[%s4973_s1 + $0x20] sm:$0xff]   ;;  %v3785_v18 = vld [vmem:[%s4973_s1 + $0x18] sm:$0xff]   ;;  %v3789_v22 = vld [vmem:[%s4973_s1 + $0x10] sm:$0xff]  }
   0x8   :  { %3258 = vmatpush3.bf16.msra.mxu0 %v3773_v6  ;;  %v3782_v15 = vld [vmem:[%s4973_s1 + $0xa0] sm:$0xff]   ;;  %v3786_v19 = vld [vmem:[%s4973_s1 + $0x98] sm:$0xff]   ;;  %v3790_v23 = vld [vmem:[%s4973_s1 + $0x90] sm:$0xff]  }
   0x9   :  { %3322 = vmatpush3.bf16.msra.mxu1 %v3774_v7  ;;  %3259 = vmatprep.subr.bf16.mxu0 %v3775_v8  ;;  %v3791_v24 = vld [vmem:[%s4973_s1 + $0x48] sm:$0xff]   ;;  %v3795_v28 = vld [vmem:[%s4973_s1 + $0x40] sm:$0xff]   ;;  %v3799_v40 = vld [vmem:[%s4973_s1 + $0x178] sm:$0xff]  }
   0xa   :  { %3323 = vmatprep.subr.bf16.mxu1 %v3776_v9  ;;  %v3792_v25 = vld [vmem:[%s4973_s1 + $0xc8] sm:$0xff]   ;;  %v3796_v29 = vld [vmem:[%s4973_s1 + $0xc0] sm:$0xff]   ;;  %v3800_v41 = vld [vmem:[%s4973_s1 + $0x138] sm:$0xff]  }
   0xb   :  { %v3793_v26 = vld [vmem:[%s4973_s1 + $0x8] sm:$0xff]   ;;  %v3797_v30 = vld [vmem:[%s4973_s1] sm:$0xff]   ;;  %v3801_v42 = vld [vmem:[%s4973_s1 + $0x1f8] sm:$0xff]  }
   0xc   :  { %3260 = vmatpush3.bf16.msra.mxu0 %v3777_v10  ;;  %v3794_v27 = vld [vmem:[%s4973_s1 + $0x88] sm:$0xff]   ;;  %v3798_v31 = vld [vmem:[%s4973_s1 + $0x80] sm:$0xff]   ;;  %v3802_v43 = vld [vmem:[%s4973_s1 + $0x1b8] sm:$0xff]  }
   0xd   :  { %3324 = vmatpush3.bf16.msra.mxu1 %v3778_v11  ;;  %3261 = vmatprep.subr.bf16.mxu0 %v3779_v12  ;;  %v54_v32 = vld [vmem:[%s4974_s0] sm:$0xff]  ;;  %v55_v34 = vld [vmem:[%s4974_s0 + $0x8] sm:$0xff]  ;;  %v3803_v50 = vld [vmem:[%s4973_s1 + $0x170] sm:$0xff]  }
   0xe   :  { %3325 = vmatprep.subr.bf16.mxu1 %v3780_v13  ;;  %v62_v33 = vld [vmem:[%s4974_s0 + $0x40] sm:$0xff]  ;;  %v63_v37 = vld [vmem:[%s4974_s0 + $0x48] sm:$0xff]  ;;  %v3804_v52 = vld [vmem:[%s4973_s1 + $0x130] sm:$0xff]  }
   0xf   :  { %v2920_v35 = vcombine.low %v54_v32, %v62_v33  ;;  %v2921_v36 = vcombine.high %v54_v32, %v62_v33  ;;  %v2922_v38 = vcombine.low %v55_v34, %v63_v37  ;;  %v2923_v39 = vcombine.high %v55_v34, %v63_v37  ;;  %v70_v44 = vld [vmem:[%s4974_s0 + $0x80] sm:$0xff]  ;;  %v71_v47 = vld [vmem:[%s4974_s0 + $0x88] sm:$0xff]  ;;  %v3805_v54 = vld [vmem:[%s4973_s1 + $0x1f0] sm:$0xff]  }
  0x10   :  { %3262 = vmatpush3.bf16.msra.mxu0 %v3781_v14  ;;  %v78_v45 = vld [vmem:[%s4974_s0 + $0xc0] sm:$0xff]  ;;  %v79_v48 = vld [vmem:[%s4974_s0 + $0xc8] sm:$0xff]  ;;  %v3806_v55 = vld [vmem:[%s4973_s1 + $0x1b0] sm:$0xff]  }
  0x11   :  { %3326 = vmatpush3.bf16.msra.mxu1 %v3782_v15  ;;  %3263 = vmatprep.subr.bf16.mxu0 %v3783_v16  ;;  %v2937_v46 = vcombine.high %v70_v44, %v78_v45  ;;  %v2939_v49 = vcombine.high %v71_v47, %v79_v48  ;;  %v2936_v51 = vcombine.low %v70_v44, %v78_v45  ;;  %v86_v56 = vld [vmem:[%s4974_s0 + $0x100] sm:$0xff]  ;;  %v87_v58 = vld [vmem:[%s4974_s0 + $0x108] sm:$0xff]  ;;  %v3821_v32 = vld [vmem:[%s4973_s1 + $0x1d0] sm:$0xff]  }
  0x12   :  { %3327 = vmatprep.subr.bf16.mxu1 %v3784_v17  ;;  %1878 = vmatprep.mubr.bf16.mxu0 %v2921_v36  ;;  %v2938_v53 = vcombine.low %v71_v47, %v79_v48  ;;  %v94_v57 = vld [vmem:[%s4974_s0 + $0x140] sm:$0xff]  ;;  %v95_v59 = vld [vmem:[%s4974_s0 + $0x148] sm:$0xff]  ;;  %v3822_v33 = vld [vmem:[%s4973_s1 + $0x190] sm:$0xff]  }
  0x13   :  { %1975 = vmatprep.mubr.bf16.mxu1 %v2923_v39  ;;  %v2953_v60 = vcombine.high %v86_v56, %v94_v57  ;;  %v2955_v61 = vcombine.high %v87_v58, %v95_v59  ;;  %v3807_v62 = vld [vmem:[%s4973_s1 + $0x168] sm:$0xff]   ;;  %v2952_v2 = vcombine.low %v86_v56, %v94_v57  ;;  %v102_v3 = vld [vmem:[%s4974_s0 + $0x180] sm:$0xff]  ;;  %v2954_v6 = vcombine.low %v87_v58, %v95_v59  ;;  %v3831_v56 = vld [vmem:[%s4973_s1 + $0x278] sm:$0xff]  }
  0x14   :  { %3264 = vmatpush3.bf16.msra.mxu0 %v3785_v18  ;;  %v3808_v63 = vld [vmem:[%s4973_s1 + $0x128] sm:$0xff]   ;;  %v110_v4 = vld [vmem:[%s4974_s0 + $0x1c0] sm:$0xff]  ;;  %v3815_v18 = vld [vmem:[%s4973_s1 + $0x158] sm:$0xff]  }
  0x15   :  { %3328 = vmatpush3.bf16.msra.mxu1 %v3786_v19  ;;  %3265 = vmatprep.subr.bf16.mxu0 %v3787_v20  ;;  %v3809_v0 = vld [vmem:[%s4973_s1 + $0x1e8] sm:$0xff]   ;;  %v2969_v7 = vcombine.high %v102_v3, %v110_v4  ;;  %v3811_v10 = vld [vmem:[%s4973_s1 + $0x160] sm:$0xff]   ;;  %v2968_v19 = vcombine.low %v102_v3, %v110_v4  ;;  %v3816_v20 = vld [vmem:[%s4973_s1 + $0x118] sm:$0xff]  }
  0x16   :  { %3329 = vmatprep.subr.bf16.mxu1 %v3788_v21  ;;  %v3810_v1 = vld [vmem:[%s4973_s1 + $0x1a8] sm:$0xff]   ;;  %v3812_v11 = vld [vmem:[%s4973_s1 + $0x120] sm:$0xff]   ;;  %v3833_v58 = vld [vmem:[%s4973_s1 + $0x2f8] sm:$0xff]  }
  0x17   :  { %v103_v5 = vld [vmem:[%s4974_s0 + $0x188] sm:$0xff]  ;;  %v3813_v12 = vld [vmem:[%s4973_s1 + $0x1e0] sm:$0xff]   ;;  %v65_v3 = vld [vmem:[%s4974_s0 + $0x58] sm:$0xff] }
  0x18   :  { %3266 = vmatpush3.bf16.msra.mxu0 %v3789_v22  ;;  %v111_v8 = vld [vmem:[%s4974_s0 + $0x1c8] sm:$0xff]  ;;  %v3814_v13 = vld [vmem:[%s4973_s1 + $0x1a0] sm:$0xff]  }
  0x19   :  { %3330 = vmatpush3.bf16.msra.mxu1 %v3790_v23  ;;  %3267 = vmatprep.subr.bf16.mxu0 %v3791_v24  ;;  %v2971_v9 = vcombine.high %v103_v5, %v111_v8  ;;  %v118_v14 = vld [vmem:[%s4974_s0 + $0x200] sm:$0xff]  ;;  %v119_v16 = vld [vmem:[%s4974_s0 + $0x208] sm:$0xff]  ;;  %v2970_v21 = vcombine.low %v103_v5, %v111_v8  ;;  %v3817_v23 = vld [vmem:[%s4973_s1 + $0x1d8] sm:$0xff]  }
  0x1a   :  { %3331 = vmatprep.subr.bf16.mxu1 %v3792_v25  ;;  %v126_v15 = vld [vmem:[%s4974_s0 + $0x240] sm:$0xff]  ;;  %v127_v17 = vld [vmem:[%s4974_s0 + $0x248] sm:$0xff]  ;;  %v3818_v25 = vld [vmem:[%s4973_s1 + $0x198] sm:$0xff]  }
  0x1b   :  { %v2985_v22 = vcombine.high %v118_v14, %v126_v15  ;;  %v2987_v24 = vcombine.high %v119_v16, %v127_v17  ;;  %v2984_v34 = vcombine.low %v118_v14, %v126_v15  ;;  %v3824_v39 = vld [vmem:[%s4973_s1 + $0x108] sm:$0xff]   ;;  %v3828_v48 = vld [vmem:[%s4973_s1 + $0x100] sm:$0xff]   ;;  %v72_v8 = vld [vmem:[%s4974_s0 + $0x90] sm:$0xff] }
  0x1c   :  { %3268 = vmatpush3.bf16.msra.mxu0 %v3793_v26  ;;  %v134_v26 = vld [vmem:[%s4974_s0 + $0x280] sm:$0xff]  ;;  %v151_v44 = vld [vmem:[%s4974_s0 + $0x308] sm:$0xff]  ;;  %v3834_v15 = vld [vmem:[%s4973_s1 + $0x2b8] sm:$0xff]  }
  0x1d   :  { %3332 = vmatpush3.bf16.msra.mxu1 %v3794_v27  ;;  %3269 = vmatprep.subr.bf16.mxu0 %v3795_v28  ;;  %v142_v27 = vld [vmem:[%s4974_s0 + $0x2c0] sm:$0xff]  ;;  %v3819_v28 = vld [vmem:[%s4973_s1 + $0x150] sm:$0xff]   ;;  %v159_v45 = vld [vmem:[%s4974_s0 + $0x348] sm:$0xff] }
  0x1e   :  { %3333 = vmatprep.subr.bf16.mxu1 %v3796_v29  ;;  %v135_v29 = vld [vmem:[%s4974_s0 + $0x288] sm:$0xff]  ;;  %v3001_v36 = vcombine.high %v134_v26, %v142_v27  ;;  %v3000_v47 = vcombine.low %v134_v26, %v142_v27 }
  0x1f   :  { %v167_v57 = vld [vmem:[%s4974_s0 + $0x388] sm:$0xff] }
  0x20   :  { %3270 = vmatpush3.bf16.msra.mxu0 %v3797_v30  ;;  %v143_v30 = vld [vmem:[%s4974_s0 + $0x2c8] sm:$0xff] }
  0x21   :  { %3334 = vmatpush3.bf16.msra.mxu1 %v3798_v31  ;;  %3383 = vmatprep.subr.bf16.mxu0 %v3799_v40  ;;  %v3820_v31 = vld [vmem:[%s4973_s1 + $0x110] sm:$0xff]   ;;  %v3003_v37 = vcombine.high %v135_v29, %v143_v30  ;;  %v3825_v40 = vld [vmem:[%s4973_s1 + $0x1c8] sm:$0xff]  }
  0x22   :  { %3447 = vmatprep.subr.bf16.mxu1 %v3801_v42  ;;  %v158_v42 = vld [vmem:[%s4974_s0 + $0x340] sm:$0xff]  ;;  %v175_v59 = vld [vmem:[%s4974_s0 + $0x3c8] sm:$0xff] }
  0x23   :  { %1879 = vmatmul.mubr.bf16.vlgmr.msra.gmra.mxu0 %v2920_v35  ;;  %v2986_v35 = vcombine.low %v119_v16, %v127_v17  ;;  %v3034_v5 = vcombine.low %v167_v57, %v175_v59  ;;  %v3835_v17 = vld [vmem:[%s4973_s1 + $0x270] sm:$0xff]   ;;  %v3839_v26 = vld [vmem:[%s4973_s1 + $0x268] sm:$0xff]  }
  0x24   :  { %1976 = vmatmul.mubr.bf16.vlgmr.msra.gmra.mxu1 %v2922_v38  ;;  %3384 = vmatpush3.bf16.msra.mxu0 %v3800_v41  ;;  %v3823_v38 = vld [vmem:[%s4973_s1 + $0x148] sm:$0xff]   ;;  %v150_v41 = vld [vmem:[%s4974_s0 + $0x300] sm:$0xff] }
  0x25   :  { %3448 = vmatpush3.bf16.msra.mxu1 %v3802_v43  ;;  %1886 = vmatprep.mubr.bf16.mxu0 %v2937_v46  ;;  %v3826_v43 = vld [vmem:[%s4973_s1 + $0x188] sm:$0xff]   ;;  %v3827_v46 = vld [vmem:[%s4973_s1 + $0x140] sm:$0xff]  }
  0x26   :  { %1983 = vmatprep.mubr.bf16.mxu1 %v2939_v49  ;;  %3385 = vmatprep.subr.bf16.mxu0 %v3803_v50  ;;  %v3002_v49 = vcombine.low %v135_v29, %v143_v30  ;;  %v3017_v50 = vcombine.high %v150_v41, %v158_v42  ;;  %v3841_v27 = vld [vmem:[%s4973_s1 + $0x2e8] sm:$0xff]  }
  0x27   :  { %3449 = vmatprep.subr.bf16.mxu1 %v3805_v54  ;;  %v166_v54 = vld [vmem:[%s4974_s0 + $0x380] sm:$0xff] }
  0x28   :  { %3386 = vmatpush3.bf16.msra.mxu0 %v3804_v52  ;;  %v3019_v52 = vcombine.high %v151_v44, %v159_v45 }
  0x29   :  { %3450 = vmatpush3.bf16.msra.mxu1 %v3806_v55  ;;  %3387 = vmatprep.subr.bf16.mxu0 %v3807_v62  ;;  %v174_v55 = vld [vmem:[%s4974_s0 + $0x3c0] sm:$0xff] }
  0x2a   :  { %3451 = vmatprep.subr.bf16.mxu1 %v3809_v0  ;;  %v3033_v62 = vcombine.high %v166_v54, %v174_v55  ;;  %v56_v0 = vld [vmem:[%s4974_s0 + $0x10] sm:$0xff]  ;;  %v3032_v4 = vcombine.low %v166_v54, %v174_v55  ;;  %v121_v54 = vld [vmem:[%s4974_s0 + $0x218] sm:$0xff] }
  0x2b   :  { %1887 = vmatmul.mubr.bf16.gmra.mxu0 %v2936_v51  ;;  %v3829_v51 = vld [vmem:[%s4973_s1 + $0x1c0] sm:$0xff]   ;;  %v129_v55 = vld [vmem:[%s4974_s0 + $0x258] sm:$0xff] }
  0x2c   :  { %1984 = vmatmul.mubr.bf16.gmra.mxu1 %v2938_v53  ;;  %1894 = vmatprep.mubr.bf16.mxu0 %v2953_v60  ;;  %v3830_v53 = vld [vmem:[%s4973_s1 + $0x180] sm:$0xff]   ;;  %v3016_v60 = vcombine.low %v150_v41, %v158_v42  ;;  %v3847_v42 = vld [vmem:[%s4973_s1 + $0x258] sm:$0xff]  }
  0x2d   :  { %1991 = vmatprep.mubr.bf16.mxu1 %v2955_v61  ;;  %3388 = vmatpush3.bf16.msra.mxu0 %v3808_v63  ;;  %v3018_v61 = vcombine.low %v151_v44, %v159_v45  ;;  %v3035_v63 = vcombine.high %v167_v57, %v175_v59  ;;  %v3846_v41 = vld [vmem:[%s4973_s1 + $0x2a0] sm:$0xff]   ;;  %v3849_v44 = vld [vmem:[%s4973_s1 + $0x2d8] sm:$0xff]   ;;  %v3854_v57 = vld [vmem:[%s4973_s1 + $0x290] sm:$0xff]  }
  0x2e   :  { %3452 = vmatpush3.bf16.msra.mxu1 %v3810_v1  ;;  %3389 = vmatprep.subr.bf16.mxu0 %v3811_v10  ;;  %v64_v1 = vld [vmem:[%s4974_s0 + $0x50] sm:$0xff] }
  0x2f   :  { %3453 = vmatprep.subr.bf16.mxu1 %v3813_v12  ;;  %v2924_v10 = vcombine.low %v56_v0, %v64_v1  ;;  %v73_v12 = vld [vmem:[%s4974_s0 + $0x98] sm:$0xff] }
  0x31   :  { %3390 = vmatpush3.bf16.msra.mxu0 %v3812_v11  ;;  %v3832_v11 = vld [vmem:[%s4973_s1 + $0x238] sm:$0xff]  }
  0x32   :  { %3454 = vmatpush3.bf16.msra.mxu1 %v3814_v13  ;;  %3391 = vmatprep.subr.bf16.mxu0 %v3815_v18  ;;  %v81_v13 = vld [vmem:[%s4974_s0 + $0xd8] sm:$0xff] }
  0x33   :  { %1895 = vmatmul.mubr.bf16.gmra.mxu0 %v2952_v2  ;;  %3455 = vmatprep.subr.bf16.mxu1 %v3817_v23  ;;  %v57_v2 = vld [vmem:[%s4974_s0 + $0x18] sm:$0xff]  ;;  %v2943_v18 = vcombine.high %v73_v12, %v81_v13  ;;  %v96_v23 = vld [vmem:[%s4974_s0 + $0x150] sm:$0xff]  ;;  %v2942_v29 = vcombine.low %v73_v12, %v81_v13  ;;  %v2990_v13 = vcombine.low %v121_v54, %v129_v55 }
  0x34   :  { %1992 = vmatmul.mubr.bf16.gmra.mxu1 %v2954_v6  ;;  %1902 = vmatprep.mubr.bf16.mxu0 %v2969_v7  ;;  %v2925_v6 = vcombine.high %v56_v0, %v64_v1  ;;  %v2927_v7 = vcombine.high %v57_v2, %v65_v3  ;;  %v2926_v14 = vcombine.low %v57_v2, %v65_v3  ;;  %v3856_v0 = vld [vmem:[%s4973_s1 + $0x208] sm:$0xff]   ;;  %v3859_v2 = vld [vmem:[%s4973_s1 + $0x240] sm:$0xff]   ;;  %v136_v3 = vld [vmem:[%s4974_s0 + $0x290] sm:$0xff] }
  0x35   :  { %1999 = vmatprep.mubr.bf16.mxu1 %v2971_v9  ;;  %3392 = vmatpush3.bf16.msra.mxu0 %v3816_v20  ;;  %v80_v9 = vld [vmem:[%s4974_s0 + $0xd0] sm:$0xff]  ;;  %v3858_v1 = vld [vmem:[%s4973_s1 + $0x288] sm:$0xff]   ;;  %v3865_v12 = vld [vmem:[%s4973_s1 + $0x3f8] sm:$0xff]  }
  0x36   :  { %3456 = vmatpush3.bf16.msra.mxu1 %v3818_v25  ;;  %3393 = vmatprep.subr.bf16.mxu0 %v3819_v28  ;;  %v2941_v16 = vcombine.high %v72_v8, %v80_v9  ;;  %v3837_v20 = vld [vmem:[%s4973_s1 + $0x2f0] sm:$0xff]   ;;  %v97_v25 = vld [vmem:[%s4974_s0 + $0x158] sm:$0xff]  ;;  %v2940_v28 = vcombine.low %v72_v8, %v80_v9  ;;  %v3860_v8 = vld [vmem:[%s4973_s1 + $0x200] sm:$0xff]  }
  0x37   :  { %3457 = vmatprep.subr.bf16.mxu1 %v3821_v32  ;;  %v3840_v32 = vld [vmem:[%s4973_s1 + $0x228] sm:$0xff]   ;;  %v3862_v9 = vld [vmem:[%s4973_s1 + $0x280] sm:$0xff]  }
  0x39   :  { %3394 = vmatpush3.bf16.msra.mxu0 %v3820_v31 }
  0x3a   :  { %3458 = vmatpush3.bf16.msra.mxu1 %v3822_v33  ;;  %3395 = vmatprep.subr.bf16.mxu0 %v3823_v38  ;;  %v3842_v33 = vld [vmem:[%s4973_s1 + $0x2a8] sm:$0xff]   ;;  %v105_v38 = vld [vmem:[%s4974_s0 + $0x198] sm:$0xff] }
  0x3b   :  { %1903 = vmatmul.mubr.bf16.gmra.mxu0 %v2968_v19  ;;  %3459 = vmatprep.subr.bf16.mxu1 %v3825_v40  ;;  %v3836_v19 = vld [vmem:[%s4973_s1 + $0x230] sm:$0xff]   ;;  %v3844_v40 = vld [vmem:[%s4973_s1 + $0x220] sm:$0xff]  }
  0x3c   :  { %2000 = vmatmul.mubr.bf16.gmra.mxu1 %v2970_v21  ;;  %1910 = vmatprep.mubr.bf16.mxu0 %v2985_v22  ;;  %v3838_v21 = vld [vmem:[%s4973_s1 + $0x2b0] sm:$0xff]  }
  0x3d   :  { %2007 = vmatprep.mubr.bf16.mxu1 %v2987_v24  ;;  %3396 = vmatpush3.bf16.msra.mxu0 %v3824_v39  ;;  %v88_v22 = vld [vmem:[%s4974_s0 + $0x110] sm:$0xff]  ;;  %v89_v24 = vld [vmem:[%s4974_s0 + $0x118] sm:$0xff] }
  0x3e   :  { %3460 = vmatpush3.bf16.msra.mxu1 %v3826_v43  ;;  %3397 = vmatprep.subr.bf16.mxu0 %v3827_v46  ;;  %v2957_v30 = vcombine.high %v88_v22, %v96_v23  ;;  %v2959_v31 = vcombine.high %v89_v24, %v97_v25  ;;  %v113_v39 = vld [vmem:[%s4974_s0 + $0x1d8] sm:$0xff]  ;;  %v2956_v43 = vcombine.low %v88_v22, %v96_v23 }
  0x3f   :  { %3461 = vmatprep.subr.bf16.mxu1 %v3829_v51  ;;  %v2958_v45 = vcombine.low %v89_v24, %v97_v25  ;;  %v120_v51 = vld [vmem:[%s4974_s0 + $0x210] sm:$0xff] }
  0x40   :  { %v168_v24 = vld [vmem:[%s4974_s0 + $0x390] sm:$0xff] }
  0x41   :  { %3398 = vmatpush3.bf16.msra.mxu0 %v3828_v48  ;;  %v2975_v48 = vcombine.high %v105_v38, %v113_v39  ;;  %v176_v25 = vld [vmem:[%s4974_s0 + $0x3d0] sm:$0xff] }
  0x42   :  { %3462 = vmatpush3.bf16.msra.mxu1 %v3830_v53  ;;  %3511 = vmatprep.subr.bf16.mxu0 %v3831_v56  ;;  %v128_v53 = vld [vmem:[%s4974_s0 + $0x250] sm:$0xff] }
  0x43   :  { %1911 = vmatmul.mubr.bf16.gmra.mxu0 %v2984_v34  ;;  %3575 = vmatprep.subr.bf16.mxu1 %v3833_v58  ;;  %v3843_v34 = vld [vmem:[%s4973_s1 + $0x260] sm:$0xff]   ;;  %v3852_v56 = vld [vmem:[%s4973_s1 + $0x210] sm:$0xff]   ;;  %v3855_v58 = vld [vmem:[%s4973_s1 + $0x248] sm:$0xff]  }
  0x44   :  { %2008 = vmatmul.mubr.bf16.gmra.mxu1 %v2986_v35  ;;  %1918 = vmatprep.mubr.bf16.mxu0 %v3001_v36  ;;  %v104_v35 = vld [vmem:[%s4974_s0 + $0x190] sm:$0xff] }
  0x45   :  { %2015 = vmatprep.mubr.bf16.mxu1 %v3003_v37  ;;  %v112_v36 = vld [vmem:[%s4974_s0 + $0x1d0] sm:$0xff]  ;;  %v3845_v37 = vld [vmem:[%s4973_s1 + $0x2e0] sm:$0xff]  }
  0x46   :  { %v2973_v46 = vcombine.high %v104_v35, %v112_v36  ;;  %v2972_v59 = vcombine.low %v104_v35, %v112_v36  ;;  %v67_v35 = vld [vmem:[%s4974_s0 + $0x68] sm:$0xff]  ;;  %v3036_v36 = vcombine.low %v168_v24, %v176_v25 }
  0x4b   :  { %1919 = vmatmul.mubr.bf16.gmra.mxu0 %v3000_v47  ;;  %v3848_v47 = vld [vmem:[%s4973_s1 + $0x218] sm:$0xff]  }
  0x4c   :  { %2016 = vmatmul.mubr.bf16.gmra.mxu1 %v3002_v49  ;;  %1926 = vmatprep.mubr.bf16.mxu0 %v3017_v50  ;;  %v3850_v49 = vld [vmem:[%s4973_s1 + $0x298] sm:$0xff]   ;;  %v3851_v50 = vld [vmem:[%s4973_s1 + $0x250] sm:$0xff]  }
  0x4d   :  { %2023 = vmatprep.mubr.bf16.mxu1 %v3019_v52  ;;  %v3853_v52 = vld [vmem:[%s4973_s1 + $0x2d0] sm:$0xff]  }
  0x53   :  { %1927 = vmatmul.mubr.bf16.gmra.mxu0 %v3016_v60  ;;  %v3857_v60 = vld [vmem:[%s4973_s1 + $0x2c8] sm:$0xff]  }
  0x54   :  { %2024 = vmatmul.mubr.bf16.gmra.mxu1 %v3018_v61  ;;  %1934 = vmatprep.mubr.bf16.mxu0 %v3033_v62  ;;  %v2974_v61 = vcombine.low %v105_v38, %v113_v39  ;;  %v2989_v62 = vcombine.high %v120_v51, %v128_v53 }
  0x55   :  { %2031 = vmatprep.mubr.bf16.mxu1 %v3035_v63  ;;  %v2991_v63 = vcombine.high %v121_v54, %v129_v55  ;;  %v90_v54 = vld [vmem:[%s4974_s0 + $0x120] sm:$0xff] }
  0x56   :  { %v98_v55 = vld [vmem:[%s4974_s0 + $0x160] sm:$0xff] }
  0x5b   :  { %1935 = vmatmul.mubr.bf16.gmra.mxu0 %v3032_v4  ;;  %v144_v4 = vld [vmem:[%s4974_s0 + $0x2d0] sm:$0xff] }
  0x5c   :  { %2032 = vmatmul.mubr.bf16.gmra.mxu1 %v3034_v5  ;;  %2072 = vmatprep.mubr.bf16.mxu0 %v2925_v6  ;;  %v3861_v5 = vld [vmem:[%s4973_s1 + $0x2c0] sm:$0xff]   ;;  %v137_v6 = vld [vmem:[%s4974_s0 + $0x298] sm:$0xff] }
  0x5d   :  { %2169 = vmatprep.mubr.bf16.mxu1 %v2927_v7  ;;  %v145_v7 = vld [vmem:[%s4974_s0 + $0x2d8] sm:$0xff] }
  0x63   :  { %2073 = vmatmul.mubr.bf16.vlgmr.msra.gmra.mxu0 %v2924_v10  ;;  %v3863_v10 = vld [vmem:[%s4973_s1 + $0x378] sm:$0xff]  }
  0x64   :  { %2170 = vmatmul.mubr.bf16.vlgmr.msra.gmra.mxu1 %v2926_v14  ;;  %3512 = vmatpush3.bf16.msra.mxu0 %v3832_v11  ;;  %v2988_v11 = vcombine.low %v120_v51, %v128_v53  ;;  %v3005_v14 = vcombine.high %v136_v3, %v144_v4  ;;  %v3869_v51 = vld [vmem:[%s4973_s1 + $0x3f0] sm:$0xff]  }
  0x65   :  { %3576 = vmatpush3.bf16.msra.mxu1 %v3834_v15  ;;  %2080 = vmatprep.mubr.bf16.mxu0 %v2941_v16  ;;  %v3007_v15 = vcombine.high %v137_v6, %v145_v7  ;;  %v152_v16 = vld [vmem:[%s4974_s0 + $0x310] sm:$0xff] }
  0x66   :  { %2177 = vmatprep.mubr.bf16.mxu1 %v2943_v18  ;;  %3513 = vmatprep.subr.bf16.mxu0 %v3835_v17  ;;  %v160_v17 = vld [vmem:[%s4974_s0 + $0x350] sm:$0xff]  ;;  %v153_v18 = vld [vmem:[%s4974_s0 + $0x318] sm:$0xff] }
  0x67   :  { %3577 = vmatprep.subr.bf16.mxu1 %v3837_v20  ;;  %v3004_v20 = vcombine.low %v136_v3, %v144_v4  ;;  %v3021_v22 = vcombine.high %v152_v16, %v160_v17  ;;  %v3870_v53 = vld [vmem:[%s4973_s1 + $0x3b0] sm:$0xff]   ;;  %v3877_v3 = vld [vmem:[%s4973_s1 + $0x3e0] sm:$0xff]  }
  0x68   :  { %3514 = vmatpush3.bf16.msra.mxu0 %v3836_v19  ;;  %v161_v19 = vld [vmem:[%s4974_s0 + $0x358] sm:$0xff]  ;;  %v106_v4 = vld [vmem:[%s4974_s0 + $0x1a0] sm:$0xff] }
  0x69   :  { %3578 = vmatpush3.bf16.msra.mxu1 %v3838_v21  ;;  %3515 = vmatprep.subr.bf16.mxu0 %v3839_v26  ;;  %v3006_v21 = vcombine.low %v137_v6, %v145_v7  ;;  %v3023_v23 = vcombine.high %v153_v18, %v161_v19  ;;  %v169_v26 = vld [vmem:[%s4974_s0 + $0x398] sm:$0xff]  ;;  %v107_v6 = vld [vmem:[%s4974_s0 + $0x1a8] sm:$0xff]  ;;  %v3876_v7 = vld [vmem:[%s4973_s1 + $0x320] sm:$0xff]  }
  0x6a   :  { %3579 = vmatprep.subr.bf16.mxu1 %v3841_v27  ;;  %v177_v27 = vld [vmem:[%s4974_s0 + $0x3d8] sm:$0xff] }
  0x6b   :  { %2081 = vmatmul.mubr.bf16.gmra.mxu0 %v2940_v28  ;;  %v3020_v28 = vcombine.low %v152_v16, %v160_v17  ;;  %v3880_v16 = vld [vmem:[%s4973_s1 + $0x318] sm:$0xff]  }
  0x6c   :  { %2178 = vmatmul.mubr.bf16.gmra.mxu1 %v2942_v29  ;;  %2088 = vmatprep.mubr.bf16.mxu0 %v2957_v30  ;;  %v3022_v29 = vcombine.low %v153_v18, %v161_v19  ;;  %v3037_v30 = vcombine.high %v168_v24, %v176_v25  ;;  %v3882_v17 = vld [vmem:[%s4973_s1 + $0x398] sm:$0xff]   ;;  %v3883_v18 = vld [vmem:[%s4973_s1 + $0x350] sm:$0xff]   ;;  %v131_v24 = vld [vmem:[%s4974_s0 + $0x268] sm:$0xff] }
  0x6d   :  { %2185 = vmatprep.mubr.bf16.mxu1 %v2959_v31  ;;  %3516 = vmatpush3.bf16.msra.mxu0 %v3840_v32  ;;  %v3039_v31 = vcombine.high %v169_v26, %v177_v27  ;;  %v58_v32 = vld [vmem:[%s4974_s0 + $0x20] sm:$0xff]  ;;  %v3885_v19 = vld [vmem:[%s4973_s1 + $0x3d0] sm:$0xff]  }
  0x6e   :  { %3580 = vmatpush3.bf16.msra.mxu1 %v3842_v33  ;;  %3517 = vmatprep.subr.bf16.mxu0 %v3843_v34  ;;  %v66_v33 = vld [vmem:[%s4974_s0 + $0x60] sm:$0xff]  ;;  %v59_v34 = vld [vmem:[%s4974_s0 + $0x28] sm:$0xff]  ;;  %v3886_v25 = vld [vmem:[%s4973_s1 + $0x390] sm:$0xff]  }
  0x6f   :  { %3581 = vmatprep.subr.bf16.mxu1 %v3845_v37  ;;  %v3038_v37 = vcombine.low %v169_v26, %v177_v27  ;;  %v2929_v38 = vcombine.high %v58_v32, %v66_v33  ;;  %v2931_v39 = vcombine.high %v59_v34, %v67_v35  ;;  %v3887_v26 = vld [vmem:[%s4973_s1 + $0x348] sm:$0xff]  }
  0x71   :  { %3518 = vmatpush3.bf16.msra.mxu0 %v3844_v40  ;;  %v74_v40 = vld [vmem:[%s4974_s0 + $0xa0] sm:$0xff] }
  0x72   :  { %3582 = vmatpush3.bf16.msra.mxu1 %v3846_v41  ;;  %3519 = vmatprep.subr.bf16.mxu0 %v3847_v42  ;;  %v82_v41 = vld [vmem:[%s4974_s0 + $0xe0] sm:$0xff]  ;;  %v2928_v42 = vcombine.low %v58_v32, %v66_v33  ;;  %v3888_v32 = vld [vmem:[%s4973_s1 + $0x308] sm:$0xff]  }
  0x73   :  { %2089 = vmatmul.mubr.bf16.gmra.mxu0 %v2956_v43  ;;  %3583 = vmatprep.subr.bf16.mxu1 %v3849_v44  ;;  %v75_v43 = vld [vmem:[%s4974_s0 + $0xa8] sm:$0xff] }
  0x74   :  { %2186 = vmatmul.mubr.bf16.gmra.mxu1 %v2958_v45  ;;  %2096 = vmatprep.mubr.bf16.mxu0 %v2973_v46  ;;  %v83_v44 = vld [vmem:[%s4974_s0 + $0xe8] sm:$0xff]  ;;  %v2930_v45 = vcombine.low %v59_v34, %v67_v35  ;;  %v3864_v46 = vld [vmem:[%s4973_s1 + $0x338] sm:$0xff]   ;;  %v3891_v34 = vld [vmem:[%s4973_s1 + $0x340] sm:$0xff]  }
  0x75   :  { %2193 = vmatprep.mubr.bf16.mxu1 %v2975_v48  ;;  %3520 = vmatpush3.bf16.msra.mxu0 %v3848_v47  ;;  %v3866_v47 = vld [vmem:[%s4973_s1 + $0x3b8] sm:$0xff]   ;;  %v2945_v48 = vcombine.high %v74_v40, %v82_v41  ;;  %v3890_v33 = vld [vmem:[%s4973_s1 + $0x388] sm:$0xff]   ;;  %v3893_v35 = vld [vmem:[%s4973_s1 + $0x3c0] sm:$0xff]  }
  0x76   :  { %3584 = vmatpush3.bf16.msra.mxu1 %v3850_v49  ;;  %3521 = vmatprep.subr.bf16.mxu0 %v3851_v50  ;;  %v2947_v49 = vcombine.high %v75_v43, %v83_v44  ;;  %v3867_v50 = vld [vmem:[%s4973_s1 + $0x370] sm:$0xff]  }
  0x77   :  { %3585 = vmatprep.subr.bf16.mxu1 %v3853_v52  ;;  %v3868_v52 = vld [vmem:[%s4973_s1 + $0x330] sm:$0xff]  }
  0x79   :  { %3522 = vmatpush3.bf16.msra.mxu0 %v3852_v56  ;;  %v3871_v56 = vld [vmem:[%s4973_s1 + $0x368] sm:$0xff]  }
  0x7a   :  { %3586 = vmatpush3.bf16.msra.mxu1 %v3854_v57  ;;  %3523 = vmatprep.subr.bf16.mxu0 %v3855_v58  ;;  %v91_v57 = vld [vmem:[%s4974_s0 + $0x128] sm:$0xff] }
  0x7b   :  { %2097 = vmatmul.mubr.bf16.gmra.mxu0 %v2972_v59  ;;  %3587 = vmatprep.subr.bf16.mxu1 %v3857_v60  ;;  %v99_v58 = vld [vmem:[%s4974_s0 + $0x168] sm:$0xff]  ;;  %v2944_v60 = vcombine.low %v74_v40, %v82_v41  ;;  %v3894_v41 = vld [vmem:[%s4973_s1 + $0x380] sm:$0xff]  }
  0x7c   :  { %2194 = vmatmul.mubr.bf16.gmra.mxu1 %v2974_v61  ;;  %2104 = vmatprep.mubr.bf16.mxu0 %v2989_v62  ;;  %v3873_v59 = vld [vmem:[%s4973_s1 + $0x3e8] sm:$0xff]   ;;  %v2946_v61 = vcombine.low %v75_v43, %v83_v44  ;;  %v2961_v62 = vcombine.high %v90_v54, %v98_v55 }
  0x7d   :  { %2201 = vmatprep.mubr.bf16.mxu1 %v2991_v63  ;;  %3524 = vmatpush3.bf16.msra.mxu0 %v3856_v0  ;;  %v2963_v63 = vcombine.high %v91_v57, %v99_v58  ;;  %v3872_v0 = vld [vmem:[%s4973_s1 + $0x328] sm:$0xff]  }
  0x7e   :  { %3588 = vmatpush3.bf16.msra.mxu1 %v3858_v1  ;;  %3525 = vmatprep.subr.bf16.mxu0 %v3859_v2  ;;  %v3874_v1 = vld [vmem:[%s4973_s1 + $0x3a8] sm:$0xff]   ;;  %v3875_v2 = vld [vmem:[%s4973_s1 + $0x360] sm:$0xff]  }
  0x7f   :  { %3589 = vmatprep.subr.bf16.mxu1 %v3861_v5  ;;  %v114_v5 = vld [vmem:[%s4974_s0 + $0x1e0] sm:$0xff]  ;;  %v147_v40 = vld [vmem:[%s4974_s0 + $0x2e8] sm:$0xff] }
  0x80   :  { %v2976_v27 = vcombine.low %v106_v4, %v114_v5 }
  0x81   :  { %3526 = vmatpush3.bf16.msra.mxu0 %v3860_v8  ;;  %v115_v8 = vld [vmem:[%s4974_s0 + $0x1e8] sm:$0xff] }
  0x82   :  { %3590 = vmatpush3.bf16.msra.mxu1 %v3862_v9  ;;  %3639 = vmatprep.subr.bf16.mxu0 %v3863_v10  ;;  %v3878_v9 = vld [vmem:[%s4973_s1 + $0x3a0] sm:$0xff]   ;;  %v3879_v10 = vld [vmem:[%s4973_s1 + $0x358] sm:$0xff]  }
  0x83   :  { %2105 = vmatmul.mubr.bf16.gmra.mxu0 %v2988_v11  ;;  %3703 = vmatprep.subr.bf16.mxu1 %v3865_v12  ;;  %v2960_v11 = vcombine.low %v90_v54, %v98_v55  ;;  %v3881_v12 = vld [vmem:[%s4973_s1 + $0x3d8] sm:$0xff]   ;;  %v170_v54 = vld [vmem:[%s4974_s0 + $0x3a0] sm:$0xff] }
  0x84   :  { %2202 = vmatmul.mubr.bf16.gmra.mxu1 %v2990_v13  ;;  %2112 = vmatprep.mubr.bf16.mxu0 %v3005_v14  ;;  %v2962_v13 = vcombine.low %v91_v57, %v99_v58  ;;  %v2977_v14 = vcombine.high %v106_v4, %v114_v5  ;;  %v178_v55 = vld [vmem:[%s4974_s0 + $0x3e0] sm:$0xff]  ;;  %v179_v57 = vld [vmem:[%s4974_s0 + $0x3e8] sm:$0xff] }
  0x85   :  { %2209 = vmatprep.mubr.bf16.mxu1 %v3007_v15  ;;  %v2979_v15 = vcombine.high %v107_v6, %v115_v8 }
  0x8b   :  { %2113 = vmatmul.mubr.bf16.gmra.mxu0 %v3004_v20  ;;  %v122_v20 = vld [vmem:[%s4974_s0 + $0x220] sm:$0xff] }
  0x8c   :  { %2210 = vmatmul.mubr.bf16.gmra.mxu1 %v3006_v21  ;;  %2120 = vmatprep.mubr.bf16.mxu0 %v3021_v22  ;;  %v130_v21 = vld [vmem:[%s4974_s0 + $0x260] sm:$0xff]  ;;  %v123_v22 = vld [vmem:[%s4974_s0 + $0x228] sm:$0xff] }
  0x8d   :  { %2217 = vmatprep.mubr.bf16.mxu1 %v3023_v23  ;;  %v3884_v23 = vld [vmem:[%s4973_s1 + $0x310] sm:$0xff]   ;;  %v2994_v43 = vcombine.low %v123_v22, %v131_v24 }
  0x93   :  { %2121 = vmatmul.mubr.bf16.gmra.mxu0 %v3020_v28  ;;  %v3889_v28 = vld [vmem:[%s4973_s1 + $0x3c8] sm:$0xff]  }
  0x94   :  { %2218 = vmatmul.mubr.bf16.gmra.mxu1 %v3022_v29  ;;  %2128 = vmatprep.mubr.bf16.mxu0 %v3037_v30  ;;  %v2978_v29 = vcombine.low %v107_v6, %v115_v8  ;;  %v2993_v30 = vcombine.high %v122_v20, %v130_v21  ;;  %v76_v6 = vld [vmem:[%s4974_s0 + $0xb0] sm:$0xff]  ;;  %v77_v8 = vld [vmem:[%s4974_s0 + $0xb8] sm:$0xff] }
  0x95   :  { %2225 = vmatprep.mubr.bf16.mxu1 %v3039_v31  ;;  %v2995_v31 = vcombine.high %v123_v22, %v131_v24  ;;  %v101_v22 = vld [vmem:[%s4974_s0 + $0x178] sm:$0xff] }
  0x9b   :  { %2129 = vmatmul.mubr.bf16.gmra.mxu0 %v3036_v36  ;;  %v138_v36 = vld [vmem:[%s4974_s0 + $0x2a0] sm:$0xff] }
  0x9c   :  { %2226 = vmatmul.mubr.bf16.gmra.mxu1 %v3038_v37  ;;  %2266 = vmatprep.mubr.bf16.mxu0 %v2929_v38  ;;  %v146_v37 = vld [vmem:[%s4974_s0 + $0x2e0] sm:$0xff] }
  0x9d   :  { %2363 = vmatprep.mubr.bf16.mxu1 %v2931_v39  ;;  %v3892_v38 = vld [vmem:[%s4973_s1 + $0x300] sm:$0xff]   ;;  %v139_v39 = vld [vmem:[%s4974_s0 + $0x2a8] sm:$0xff]  ;;  %v3009_v44 = vcombine.high %v138_v36, %v146_v37 }
  0xa3   :  { %2267 = vmatmul.mubr.bf16.vlgmr.msra.gmra.mxu0 %v2928_v42  ;;  %v2992_v42 = vcombine.low %v122_v20, %v130_v21  ;;  %v93_v21 = vld [vmem:[%s4974_s0 + $0x138] sm:$0xff] }
  0xa4   :  { %2364 = vmatmul.mubr.bf16.vlgmr.msra.gmra.mxu1 %v2930_v45  ;;  %3640 = vmatpush3.bf16.msra.mxu0 %v3864_v46  ;;  %v3011_v45 = vcombine.high %v139_v39, %v147_v40  ;;  %v154_v46 = vld [vmem:[%s4974_s0 + $0x320] sm:$0xff] }
  0xa5   :  { %3704 = vmatpush3.bf16.msra.mxu1 %v3866_v47  ;;  %2274 = vmatprep.mubr.bf16.mxu0 %v2945_v48  ;;  %v162_v47 = vld [vmem:[%s4974_s0 + $0x360] sm:$0xff]  ;;  %v155_v48 = vld [vmem:[%s4974_s0 + $0x328] sm:$0xff] }
  0xa6   :  { %2371 = vmatprep.mubr.bf16.mxu1 %v2947_v49  ;;  %3641 = vmatprep.subr.bf16.mxu0 %v3867_v50  ;;  %v163_v49 = vld [vmem:[%s4974_s0 + $0x368] sm:$0xff]  ;;  %v3008_v50 = vcombine.low %v138_v36, %v146_v37  ;;  %v3024_v58 = vcombine.low %v154_v46, %v162_v47 }
  0xa7   :  { %3705 = vmatprep.subr.bf16.mxu1 %v3869_v51  ;;  %v3010_v51 = vcombine.low %v139_v39, %v147_v40  ;;  %v108_v39 = vld [vmem:[%s4974_s0 + $0x1b0] sm:$0xff] }
  0xa8   :  { %3642 = vmatpush3.bf16.msra.mxu0 %v3868_v52  ;;  %v3025_v52 = vcombine.high %v154_v46, %v162_v47  ;;  %v116_v40 = vld [vmem:[%s4974_s0 + $0x1f0] sm:$0xff] }
  0xa9   :  { %3706 = vmatpush3.bf16.msra.mxu1 %v3870_v53  ;;  %3643 = vmatprep.subr.bf16.mxu0 %v3871_v56  ;;  %v3027_v53 = vcombine.high %v155_v48, %v163_v49  ;;  %v171_v56 = vld [vmem:[%s4974_s0 + $0x3a8] sm:$0xff] }
  0xaa   :  { %3707 = vmatprep.subr.bf16.mxu1 %v3873_v59  ;;  %v3026_v59 = vcombine.low %v155_v48, %v163_v49  ;;  %v2966_v49 = vcombine.low %v93_v21, %v101_v22 }
  0xab   :  { %2275 = vmatmul.mubr.bf16.gmra.mxu0 %v2944_v60  ;;  %v3041_v60 = vcombine.high %v170_v54, %v178_v55 }
  0xac   :  { %2372 = vmatmul.mubr.bf16.gmra.mxu1 %v2946_v61  ;;  %2282 = vmatprep.mubr.bf16.mxu0 %v2961_v62  ;;  %v3043_v61 = vcombine.high %v171_v56, %v179_v57  ;;  %v60_v62 = vld [vmem:[%s4974_s0 + $0x30] sm:$0xff] }
  0xad   :  { %2379 = vmatprep.mubr.bf16.mxu1 %v2963_v63  ;;  %3644 = vmatpush3.bf16.msra.mxu0 %v3872_v0  ;;  %v68_v63 = vld [vmem:[%s4974_s0 + $0x70] sm:$0xff]  ;;  %v61_v0 = vld [vmem:[%s4974_s0 + $0x38] sm:$0xff] }
  0xae   :  { %3708 = vmatpush3.bf16.msra.mxu1 %v3874_v1  ;;  %3645 = vmatprep.subr.bf16.mxu0 %v3875_v2  ;;  %v69_v1 = vld [vmem:[%s4974_s0 + $0x78] sm:$0xff]  ;;  %v3040_v2 = vcombine.low %v170_v54, %v178_v55  ;;  %v2933_v4 = vcombine.high %v60_v62, %v68_v63 }
  0xaf   :  { %3709 = vmatprep.subr.bf16.mxu1 %v3877_v3  ;;  %v3042_v3 = vcombine.low %v171_v56, %v179_v57  ;;  %v2935_v5 = vcombine.high %v61_v0, %v69_v1 }
  0xb1   :  { %3646 = vmatpush3.bf16.msra.mxu0 %v3876_v7  ;;  %v84_v7 = vld [vmem:[%s4974_s0 + $0xf0] sm:$0xff] }
  0xb2   :  { %3710 = vmatpush3.bf16.msra.mxu1 %v3878_v9  ;;  %3647 = vmatprep.subr.bf16.mxu0 %v3879_v10  ;;  %v85_v9 = vld [vmem:[%s4974_s0 + $0xf8] sm:$0xff]  ;;  %v2932_v10 = vcombine.low %v60_v62, %v68_v63  ;;  %v132_v62 = vld [vmem:[%s4974_s0 + $0x270] sm:$0xff] }
  0xb3   :  { %2283 = vmatmul.mubr.bf16.gmra.mxu0 %v2960_v11  ;;  %3711 = vmatprep.subr.bf16.mxu1 %v3881_v12  ;;  %v2934_v11 = vcombine.low %v61_v0, %v69_v1  ;;  %v2949_v12 = vcombine.high %v76_v6, %v84_v7  ;;  %v125_v1 = vld [vmem:[%s4974_s0 + $0x238] sm:$0xff] }
  0xb4   :  { %2380 = vmatmul.mubr.bf16.gmra.mxu1 %v2962_v13  ;;  %2290 = vmatprep.mubr.bf16.mxu0 %v2977_v14  ;;  %v2951_v13 = vcombine.high %v77_v8, %v85_v9 }
  0xb5   :  { %2387 = vmatprep.mubr.bf16.mxu1 %v2979_v15  ;;  %3648 = vmatpush3.bf16.msra.mxu0 %v3880_v16 }
  0xb6   :  { %3712 = vmatpush3.bf16.msra.mxu1 %v3882_v17  ;;  %3649 = vmatprep.subr.bf16.mxu0 %v3883_v18  ;;  %v92_v17 = vld [vmem:[%s4974_s0 + $0x130] sm:$0xff] }
  0xb7   :  { %3713 = vmatprep.subr.bf16.mxu1 %v3885_v19  ;;  %v100_v18 = vld [vmem:[%s4974_s0 + $0x170] sm:$0xff] }
  0xb8   :  { %v2964_v47 = vcombine.low %v92_v17, %v100_v18 }
  0xb9   :  { %3650 = vmatpush3.bf16.msra.mxu0 %v3884_v23 }
  0xba   :  { %3714 = vmatpush3.bf16.msra.mxu1 %v3886_v25  ;;  %3651 = vmatprep.subr.bf16.mxu0 %v3887_v26  ;;  %v2948_v25 = vcombine.low %v76_v6, %v84_v7 }
  0xbb   :  { %2291 = vmatmul.mubr.bf16.gmra.mxu0 %v2976_v27  ;;  %3715 = vmatprep.subr.bf16.mxu1 %v3889_v28  ;;  %v2950_v27 = vcombine.low %v77_v8, %v85_v9  ;;  %v2965_v28 = vcombine.high %v92_v17, %v100_v18 }
  0xbc   :  { %2388 = vmatmul.mubr.bf16.gmra.mxu1 %v2978_v29  ;;  %2298 = vmatprep.mubr.bf16.mxu0 %v2993_v30 }
  0xbd   :  { %2395 = vmatprep.mubr.bf16.mxu1 %v2995_v31  ;;  %3652 = vmatpush3.bf16.msra.mxu0 %v3888_v32  ;;  %v2967_v31 = vcombine.high %v93_v21, %v101_v22 }
  0xbe   :  { %3716 = vmatpush3.bf16.msra.mxu1 %v3890_v33  ;;  %3653 = vmatprep.subr.bf16.mxu0 %v3891_v34 }
  0xbf   :  { %3717 = vmatprep.subr.bf16.mxu1 %v3893_v35 }
  0xc1   :  { %3654 = vmatpush3.bf16.msra.mxu0 %v3892_v38 }
  0xc2   :  { %3718 = vmatpush3.bf16.msra.mxu1 %v3894_v41 }
  0xc3   :  { %2299 = vmatmul.mubr.bf16.gmra.mxu0 %v2992_v42 }
  0xc4   :  { %2396 = vmatmul.mubr.bf16.gmra.mxu1 %v2994_v43  ;;  %2306 = vmatprep.mubr.bf16.mxu0 %v3009_v44  ;;  %v109_v43 = vld [vmem:[%s4974_s0 + $0x1b8] sm:$0xff] }
  0xc5   :  { %2403 = vmatprep.mubr.bf16.mxu1 %v3011_v45  ;;  %v117_v44 = vld [vmem:[%s4974_s0 + $0x1f8] sm:$0xff] }
  0xc6   :  { %v2982_v7 = vcombine.low %v109_v43, %v117_v44 }
  0xcb   :  { %2307 = vmatmul.mubr.bf16.gmra.mxu0 %v3008_v50  ;;  %v2981_v50 = vcombine.high %v108_v39, %v116_v40 }
  0xcc   :  { %2404 = vmatmul.mubr.bf16.gmra.mxu1 %v3010_v51  ;;  %2314 = vmatprep.mubr.bf16.mxu0 %v3025_v52 }
  0xcd   :  { %2411 = vmatprep.mubr.bf16.mxu1 %v3027_v53  ;;  %v2983_v53 = vcombine.high %v109_v43, %v117_v44  ;;  %v156_v43 = vld [vmem:[%s4974_s0 + $0x330] sm:$0xff] }
  0xce   :  { %v164_v44 = vld [vmem:[%s4974_s0 + $0x370] sm:$0xff] }
  0xd3   :  { %2315 = vmatmul.mubr.bf16.gmra.mxu0 %v3024_v58 }
  0xd4   :  { %2412 = vmatmul.mubr.bf16.gmra.mxu1 %v3026_v59  ;;  %2322 = vmatprep.mubr.bf16.mxu0 %v3041_v60 }
  0xd5   :  { %2419 = vmatprep.mubr.bf16.mxu1 %v3043_v61  ;;  %v124_v61 = vld [vmem:[%s4974_s0 + $0x230] sm:$0xff] }
  0xd6   :  { %v2997_v8 = vcombine.high %v124_v61, %v132_v62 }
  0xdb   :  { %2323 = vmatmul.mubr.bf16.gmra.mxu0 %v3040_v2  ;;  %v133_v2 = vld [vmem:[%s4974_s0 + $0x278] sm:$0xff] }
  0xdc   :  { %2420 = vmatmul.mubr.bf16.gmra.mxu1 %v3042_v3  ;;  %2460 = vmatprep.mubr.bf16.mxu0 %v2933_v4 }
  0xdd   :  { %2557 = vmatprep.mubr.bf16.mxu1 %v2935_v5  ;;  %v2980_v5 = vcombine.low %v108_v39, %v116_v40 }
  0xe3   :  { %v3271_v14 = vpop.f32.mrf.mxu0  ;;  %2461 = vmatmul.mubr.bf16.vlgmr.msra.gmra.mxu0 %v2932_v10 }
  0xe4   :  { %v3335_v15 = vpop.f32.mrf.mxu1  ;;  %2558 = vmatmul.mubr.bf16.vlgmr.msra.gmra.mxu1 %v2934_v11  ;;  %2468 = vmatprep.mubr.bf16.mxu0 %v2949_v12  ;;  %v2999_v11 = vcombine.high %v125_v1, %v133_v2 }
  0xe5   :  { %v3272_v16 = vpop.f32.mrf.mxu0  ;;  %2565 = vmatprep.mubr.bf16.mxu1 %v2951_v13 }
  0xe6   :  { %v3273_v19 = vadd.f32 %v3272_v16, %v3271_v14  ;;  %v3336_v20 = vpop.f32.mrf.mxu1 }
  0xe7   :  { %v3337_v23 = vadd.f32 %v3336_v20, %v3335_v15  ;;  %v3274_v24 = vpop.f32.mrf.mxu0  ;;  %v148_v20 = vld [vmem:[%s4974_s0 + $0x2f0] sm:$0xff] }
  0xe8   :  { %v3338_v26 = vpop.f32.mrf.mxu1 }
  0xe9   :  { %v4630_v29 = vadd.f32 %v3337_v23, %v3273_v19  ;;  %v3275_v30 = vpop.f32.mrf.mxu0  ;;  %v140_v19 = vld [vmem:[%s4974_s0 + $0x2b0] sm:$0xff]  ;;  %v141_v23 = vld [vmem:[%s4974_s0 + $0x2b8] sm:$0xff] }
  0xea   :  { %v3276_v32 = vadd.f32 %v3275_v30, %v3274_v24  ;;  %v3339_v33 = vpop.f32.mrf.mxu1  ;;  %v149_v24 = vld [vmem:[%s4974_s0 + $0x2f8] sm:$0xff]  ;;  %v2998_v30 = vcombine.low %v125_v1, %v133_v2 }
  0xeb   :  { %v3340_v34 = vadd.f32 %v3339_v33, %v3338_v26  ;;  %v3277_v35 = vpop.f32.mrf.mxu0  ;;  %2469 = vmatmul.mubr.bf16.gmra.mxu0 %v2948_v25 }
  0xec   :  { %v3341_v36 = vpop.f32.mrf.mxu1  ;;  %2566 = vmatmul.mubr.bf16.gmra.mxu1 %v2950_v27  ;;  %2476 = vmatprep.mubr.bf16.mxu0 %v2965_v28  ;;  %v2996_v27 = vcombine.low %v124_v61, %v132_v62 }
  0xed   :  { %v4632_v37 = vadd.f32 %v3340_v34, %v3276_v32  ;;  %v3278_v38 = vpop.f32.mrf.mxu0  ;;  %2573 = vmatprep.mubr.bf16.mxu1 %v2967_v31  ;;  %v3013_v31 = vcombine.high %v140_v19, %v148_v20  ;;  %v3015_v34 = vcombine.high %v141_v23, %v149_v24 }
  0xee   :  { %v3279_v41 = vadd.f32 %v3278_v38, %v3277_v35  ;;  %v3342_v42 = vpop.f32.mrf.mxu1 }
  0xef   :  { %v3343_v45 = vadd.f32 %v3342_v42, %v3341_v36  ;;  %v3280_v46 = vpop.f32.mrf.mxu0 }
  0xf0   :  { %v3344_v48 = vpop.f32.mrf.mxu1 }
  0xf1   :  { %v4646_v51 = vadd.f32 %v3343_v45, %v3279_v41  ;;  %v3281_v52 = vpop.f32.mrf.mxu0 }
  0xf2   :  { %v3282_v54 = vadd.f32 %v3281_v52, %v3280_v46  ;;  %v3345_v55 = vpop.f32.mrf.mxu1  ;;  %v3012_v52 = vcombine.low %v140_v19, %v148_v20 }
  0xf3   :  { %v3346_v56 = vadd.f32 %v3345_v55, %v3344_v48  ;;  %v3283_v57 = vpop.f32.mrf.mxu0  ;;  %2477 = vmatmul.mubr.bf16.gmra.mxu0 %v2964_v47  ;;  %v157_v47 = vld [vmem:[%s4974_s0 + $0x338] sm:$0xff]  ;;  %v3029_v55 = vcombine.high %v156_v43, %v164_v44 }
  0xf4   :  { %v3347_v58 = vpop.f32.mrf.mxu1  ;;  %2574 = vmatmul.mubr.bf16.gmra.mxu1 %v2966_v49  ;;  %2484 = vmatprep.mubr.bf16.mxu0 %v2981_v50  ;;  %v165_v48 = vld [vmem:[%s4974_s0 + $0x378] sm:$0xff] }
  0xf5   :  { %v4648_v59 = vadd.f32 %v3346_v56, %v3282_v54  ;;  %v3284_v60 = vpop.f32.mrf.mxu0  ;;  %2581 = vmatprep.mubr.bf16.mxu1 %v2983_v53  ;;  %v3014_v54 = vcombine.low %v141_v23, %v149_v24 }
  0xf6   :  { %v3285_v63 = vadd.f32 %v3284_v60, %v3283_v57  ;;  %v3348_v0 = vpop.f32.mrf.mxu1 }
  0xf7   :  { %v3349_v3 = vadd.f32 %v3348_v0, %v3347_v58  ;;  %v3286_v4 = vpop.f32.mrf.mxu0  ;;  %v3031_v58 = vcombine.high %v157_v47, %v165_v48 }
  0xf8   :  { %v3350_v6 = vpop.f32.mrf.mxu1 }
  0xf9   :  { %v4662_v9 = vadd.f32 %v3349_v3, %v3285_v63  ;;  %v3287_v10 = vpop.f32.mrf.mxu0  ;;  %v172_v3 = vld [vmem:[%s4974_s0 + $0x3b0] sm:$0xff] }
  0xfa   :  { %v3288_v12 = vadd.f32 %v3287_v10, %v3286_v4  ;;  %v3351_v13 = vpop.f32.mrf.mxu1  ;;  %v180_v4 = vld [vmem:[%s4974_s0 + $0x3f0] sm:$0xff] }
  0xfb   :  { %v3352_v14 = vadd.f32 %v3351_v13, %v3350_v6  ;;  %v3289_v15 = vpop.f32.mrf.mxu0  ;;  %2485 = vmatmul.mubr.bf16.gmra.mxu0 %v2980_v5 }
  0xfc   :  { %v3353_v16 = vpop.f32.mrf.mxu1  ;;  %2582 = vmatmul.mubr.bf16.gmra.mxu1 %v2982_v7  ;;  %2492 = vmatprep.mubr.bf16.mxu0 %v2997_v8  ;;  %v173_v7 = vld [vmem:[%s4974_s0 + $0x3b8] sm:$0xff] }
  0xfd   :  { %v4664_v17 = vadd.f32 %v3352_v14, %v3288_v12  ;;  %v3290_v18 = vpop.f32.mrf.mxu0  ;;  %2589 = vmatprep.mubr.bf16.mxu1 %v2999_v11  ;;  %v181_v8 = vld [vmem:[%s4974_s0 + $0x3f8] sm:$0xff]  ;;  %v3028_v12 = vcombine.low %v156_v43, %v164_v44  ;;  %v3030_v14 = vcombine.low %v157_v47, %v165_v48 }
  0xfe   :  { %v3291_v21 = vadd.f32 %v3290_v18, %v3289_v15  ;;  %v3354_v22 = vpop.f32.mrf.mxu1  ;;  %v3045_v15 = vcombine.high %v172_v3, %v180_v4  ;;  %v3047_v19 = vcombine.high %v173_v7, %v181_v8 }
  0xff   :  { %v3355_v25 = vadd.f32 %v3354_v22, %v3353_v16  ;;  %v3292_v26 = vpop.f32.mrf.mxu0 }
 0x100   :  { %v3356_v28 = vpop.f32.mrf.mxu1 }
 0x101   :  { %v4678_v32 = vadd.f32 %v3355_v25, %v3291_v21  ;;  %v3293_v33 = vpop.f32.mrf.mxu0 }
 0x102   :  { %v3294_v35 = vadd.f32 %v3293_v33, %v3292_v26  ;;  %v3357_v36 = vpop.f32.mrf.mxu1  ;;  %v3044_v33 = vcombine.low %v172_v3, %v180_v4 }
 0x103   :  { %v3358_v38 = vadd.f32 %v3357_v36, %v3356_v28  ;;  %v3295_v39 = vpop.f32.mrf.mxu0  ;;  %2493 = vmatmul.mubr.bf16.gmra.mxu0 %v2996_v27 }
 0x104   :  { %v3359_v40 = vpop.f32.mrf.mxu1  ;;  %2590 = vmatmul.mubr.bf16.gmra.mxu1 %v2998_v30  ;;  %2500 = vmatprep.mubr.bf16.mxu0 %v3013_v31 }
 0x105   :  { %v4680_v41 = vadd.f32 %v3358_v38, %v3294_v35  ;;  %v3296_v42 = vpop.f32.mrf.mxu0  ;;  %2597 = vmatprep.mubr.bf16.mxu1 %v3015_v34  ;;  %v3046_v35 = vcombine.low %v173_v7, %v181_v8 }
 0x106   :  { %v3297_v45 = vadd.f32 %v3296_v42, %v3295_v39  ;;  %v3360_v46 = vpop.f32.mrf.mxu1 }
 0x107   :  { %v3361_v49 = vadd.f32 %v3360_v46, %v3359_v40  ;;  %v3298_v50 = vpop.f32.mrf.mxu0 }
 0x108   :  { %v3362_v53 = vpop.f32.mrf.mxu1 }
 0x109   :  { %v4694_v56 = vadd.f32 %v3361_v49, %v3297_v45  ;;  %v3299_v57 = vpop.f32.mrf.mxu0 }
 0x10a   :  { %v3300_v60 = vadd.f32 %v3299_v57, %v3298_v50  ;;  %v3363_v61 = vpop.f32.mrf.mxu1 }
 0x10b   :  { %v3364_v62 = vadd.f32 %v3363_v61, %v3362_v53  ;;  %v3301_v63 = vpop.f32.mrf.mxu0  ;;  %2501 = vmatmul.mubr.bf16.gmra.mxu0 %v3012_v52 }
 0x10c   :  { %v3365_v0 = vpop.f32.mrf.mxu1  ;;  %2598 = vmatmul.mubr.bf16.gmra.mxu1 %v3014_v54  ;;  %2508 = vmatprep.mubr.bf16.mxu0 %v3029_v55 }
 0x10d   :  { %v4696_v1 = vadd.f32 %v3364_v62, %v3300_v60  ;;  %v3302_v2 = vpop.f32.mrf.mxu0  ;;  %2605 = vmatprep.mubr.bf16.mxu1 %v3031_v58 }
 0x10e   :  { %v3303_v5 = vadd.f32 %v3302_v2, %v3301_v63  ;;  %v3366_v6 = vpop.f32.mrf.mxu1 }
 0x10f   :  { %v3367_v10 = vadd.f32 %v3366_v6, %v3365_v0  ;;  %v3304_v11 = vpop.f32.mrf.mxu0 }
 0x110   :  { %v3368_v13 = vpop.f32.mrf.mxu1 }
 0x111   :  { %v4710_v16 = vadd.f32 %v3367_v10, %v3303_v5  ;;  %v3305_v18 = vpop.f32.mrf.mxu0 }
 0x112   :  { %v3306_v20 = vadd.f32 %v3305_v18, %v3304_v11  ;;  %v3369_v21 = vpop.f32.mrf.mxu1 }
 0x113   :  { %v3370_v22 = vadd.f32 %v3369_v21, %v3368_v13  ;;  %v3307_v23 = vpop.f32.mrf.mxu0  ;;  %2509 = vmatmul.mubr.bf16.gmra.mxu0 %v3028_v12 }
 0x114   :  { %v3371_v24 = vpop.f32.mrf.mxu1  ;;  %2606 = vmatmul.mubr.bf16.gmra.mxu1 %v3030_v14  ;;  %2516 = vmatprep.mubr.bf16.mxu0 %v3045_v15 }
 0x115   :  { %v4712_v25 = vadd.f32 %v3370_v22, %v3306_v20  ;;  %v3308_v26 = vpop.f32.mrf.mxu0  ;;  %2613 = vmatprep.mubr.bf16.mxu1 %v3047_v19 }
 0x116   :  { %v3309_v27 = vadd.f32 %v3308_v26, %v3307_v23  ;;  %v3372_v28 = vpop.f32.mrf.mxu1 }
 0x117   :  { %v3373_v30 = vadd.f32 %v3372_v28, %v3371_v24  ;;  %v3310_v31 = vpop.f32.mrf.mxu0 }
 0x118   :  { %v3374_v34 = vpop.f32.mrf.mxu1 }
 0x119   :  { %v4714_v36 = vadd.f32 %v3373_v30, %v3309_v27  ;;  %v3311_v38 = vpop.f32.mrf.mxu0 }
 0x11a   :  { %v3312_v39 = vadd.f32 %v3311_v38, %v3310_v31  ;;  %v3375_v40 = vpop.f32.mrf.mxu1 }
 0x11b   :  { %v3376_v42 = vadd.f32 %v3375_v40, %v3374_v34  ;;  %v3313_v43 = vpop.f32.mrf.mxu0  ;;  %2517 = vmatmul.mubr.bf16.gmra.mxu0 %v3044_v33 }
 0x11c   :  { %v3377_v44 = vpop.f32.mrf.mxu1  ;;  %2614 = vmatmul.mubr.bf16.gmra.mxu1 %v3046_v35 }
 0x11d   :  { %v4716_v45 = vadd.f32 %v3376_v42, %v3312_v39  ;;  %v3314_v46 = vpop.f32.mrf.mxu0 }
 0x11e   :  { %v3315_v47 = vadd.f32 %v3314_v46, %v3313_v43  ;;  %v3378_v48 = vpop.f32.mrf.mxu1 }
 0x11f   :  { %v3379_v49 = vadd.f32 %v3378_v48, %v3377_v44  ;;  %v3316_v50 = vpop.f32.mrf.mxu0 }
 0x120   :  { %v3380_v52 = vpop.f32.mrf.mxu1 }
 0x121   :  { %v4718_v53 = vadd.f32 %v3379_v49, %v3315_v47  ;;  %v3317_v54 = vpop.f32.mrf.mxu0 }
 0x122   :  { %v3318_v55 = vadd.f32 %v3317_v54, %v3316_v50  ;;  %v3381_v57 = vpop.f32.mrf.mxu1 }
 0x123   :  { %v3382_v58 = vadd.f32 %v3381_v57, %v3380_v52  ;;  %v3399_v60 = vpop.f32.mrf.mxu0 }
 0x124   :  { %v3463_v61 = vpop.f32.mrf.mxu1 }
 0x125   :  { %v4720_v62 = vadd.f32 %v3382_v58, %v3318_v55  ;;  %v3400_v63 = vpop.f32.mrf.mxu0 }
 0x126   :  { %v3401_v0 = vadd.f32 %v3400_v63, %v3399_v60  ;;  %v3464_v2 = vpop.f32.mrf.mxu1 }
 0x127   :  { %v3465_v3 = vadd.f32 %v3464_v2, %v3463_v61  ;;  %v3402_v4 = vpop.f32.mrf.mxu0 }
 0x128   :  { %v2075_v5 = vadd.f32 %v3401_v0, %v4630_v29  ;;  %v3466_v6 = vpop.f32.mrf.mxu1 }
 0x129   :  { %v3403_v7 = vpop.f32.mrf.mxu0 }
 0x12a   :  { %v4723_v8 = vadd.f32 %v3465_v3, %v2075_v5  ;;  %v3404_v10 = vadd.f32 %v3403_v7, %v3402_v4  ;;  %v3467_v11 = vpop.f32.mrf.mxu1 }
 0x12b   :  { %v3468_v12 = vadd.f32 %v3467_v11, %v3466_v6  ;;  %v3405_v13 = vpop.f32.mrf.mxu0 }
 0x12c   :  { %v2078_v14 = vadd.f32 %v3404_v10, %v4632_v37  ;;  %v3469_v15 = vpop.f32.mrf.mxu1 }
 0x12d   :  { %v3406_v18 = vpop.f32.mrf.mxu0 }
 0x12e   :  { %v4726_v19 = vadd.f32 %v3468_v12, %v2078_v14  ;;  %v3407_v20 = vadd.f32 %v3406_v18, %v3405_v13  ;;  %v3470_v21 = vpop.f32.mrf.mxu1 }
 0x12f   :  { %v3471_v22 = vadd.f32 %v3470_v21, %v3469_v15  ;;  %v3408_v23 = vpop.f32.mrf.mxu0 }
 0x130   :  { %v2083_v29 = vadd.f32 %v3407_v20, %v4646_v51  ;;  %v3472_v24 = vpop.f32.mrf.mxu1 }
 0x131   :  { %v3409_v26 = vpop.f32.mrf.mxu0 }
 0x132   :  { %v4729_v27 = vadd.f32 %v3471_v22, %v2083_v29  ;;  %v3410_v28 = vadd.f32 %v3409_v26, %v3408_v23  ;;  %v3473_v30 = vpop.f32.mrf.mxu1 }
 0x133   :  { %v3474_v31 = vadd.f32 %v3473_v30, %v3472_v24  ;;  %v3411_v33 = vpop.f32.mrf.mxu0 }
 0x134   :  { %v2086_v37 = vadd.f32 %v3410_v28, %v4648_v59  ;;  %v3475_v34 = vpop.f32.mrf.mxu1 }
 0x135   :  { %v3412_v35 = vpop.f32.mrf.mxu0 }
 0x136   :  { %v4732_v38 = vadd.f32 %v3474_v31, %v2086_v37  ;;  %v3413_v39 = vadd.f32 %v3412_v35, %v3411_v33  ;;  %v3476_v40 = vpop.f32.mrf.mxu1 }
 0x137   :  { %v3477_v42 = vadd.f32 %v3476_v40, %v3475_v34  ;;  %v3414_v43 = vpop.f32.mrf.mxu0 }
 0x138   :  { %v2091_v51 = vadd.f32 %v3413_v39, %v4662_v9  ;;  %v3478_v44 = vpop.f32.mrf.mxu1 }
 0x139   :  { %v3415_v46 = vpop.f32.mrf.mxu0 }
 0x13a   :  { %v4735_v47 = vadd.f32 %v3477_v42, %v2091_v51  ;;  %v3416_v48 = vadd.f32 %v3415_v46, %v3414_v43  ;;  %v3479_v49 = vpop.f32.mrf.mxu1 }
 0x13b   :  { %v3480_v50 = vadd.f32 %v3479_v49, %v3478_v44  ;;  %v3417_v52 = vpop.f32.mrf.mxu0 }
 0x13c   :  { %v2094_v59 = vadd.f32 %v3416_v48, %v4664_v17  ;;  %v3481_v54 = vpop.f32.mrf.mxu1 }
 0x13d   :  { %v3418_v55 = vpop.f32.mrf.mxu0 }
 0x13e   :  { %v4738_v57 = vadd.f32 %v3480_v50, %v2094_v59  ;;  %v3419_v58 = vadd.f32 %v3418_v55, %v3417_v52  ;;  %v3482_v60 = vpop.f32.mrf.mxu1 }
 0x13f   :  { %v3483_v61 = vadd.f32 %v3482_v60, %v3481_v54  ;;  %v3420_v63 = vpop.f32.mrf.mxu0 }
 0x140   :  { %v2099_v9 = vadd.f32 %v3419_v58, %v4678_v32  ;;  %v3484_v0 = vpop.f32.mrf.mxu1 }
 0x141   :  { %v3421_v2 = vpop.f32.mrf.mxu0 }
 0x142   :  { %v4741_v3 = vadd.f32 %v3483_v61, %v2099_v9  ;;  %v3422_v4 = vadd.f32 %v3421_v2, %v3420_v63  ;;  %v3485_v5 = vpop.f32.mrf.mxu1 }
 0x143   :  { %v3486_v6 = vadd.f32 %v3485_v5, %v3484_v0  ;;  %v3423_v7 = vpop.f32.mrf.mxu0 }
 0x144   :  { %v2102_v17 = vadd.f32 %v3422_v4, %v4680_v41  ;;  %v3487_v10 = vpop.f32.mrf.mxu1 }
 0x145   :  { %v3424_v11 = vpop.f32.mrf.mxu0 }
 0x146   :  { %v4744_v12 = vadd.f32 %v3486_v6, %v2102_v17  ;;  %v3425_v13 = vadd.f32 %v3424_v11, %v3423_v7  ;;  %v3488_v14 = vpop.f32.mrf.mxu1 }
 0x147   :  { %v3489_v15 = vadd.f32 %v3488_v14, %v3487_v10  ;;  %v3426_v18 = vpop.f32.mrf.mxu0 }
 0x148   :  { %v2107_v32 = vadd.f32 %v3425_v13, %v4694_v56  ;;  %v3490_v20 = vpop.f32.mrf.mxu1 }
 0x149   :  { %v3427_v21 = vpop.f32.mrf.mxu0 }
 0x14a   :  { %v4747_v22 = vadd.f32 %v3489_v15, %v2107_v32  ;;  %v3428_v23 = vadd.f32 %v3427_v21, %v3426_v18  ;;  %v3491_v29 = vpop.f32.mrf.mxu1 }
 0x14b   :  { %v3492_v24 = vadd.f32 %v3491_v29, %v3490_v20  ;;  %v3429_v26 = vpop.f32.mrf.mxu0 }
 0x14c   :  { %v2110_v41 = vadd.f32 %v3428_v23, %v4696_v1  ;;  %v3493_v28 = vpop.f32.mrf.mxu1 }
 0x14d   :  { %v3430_v30 = vpop.f32.mrf.mxu0 }
 0x14e   :  { %v4750_v31 = vadd.f32 %v3492_v24, %v2110_v41  ;;  %v3431_v33 = vadd.f32 %v3430_v30, %v3429_v26  ;;  %v3494_v37 = vpop.f32.mrf.mxu1 }
 0x14f   :  { %v3495_v34 = vadd.f32 %v3494_v37, %v3493_v28  ;;  %v3432_v35 = vpop.f32.mrf.mxu0 }
 0x150   :  { %v2115_v56 = vadd.f32 %v3431_v33, %v4710_v16  ;;  %v3496_v39 = vpop.f32.mrf.mxu1 }
 0x151   :  { %v3433_v40 = vpop.f32.mrf.mxu0 }
 0x152   :  { %v4753_v42 = vadd.f32 %v3495_v34, %v2115_v56  ;;  %v3434_v43 = vadd.f32 %v3433_v40, %v3432_v35  ;;  %v3497_v51 = vpop.f32.mrf.mxu1 }
 0x153   :  { %v3498_v44 = vadd.f32 %v3497_v51, %v3496_v39  ;;  %v3435_v46 = vpop.f32.mrf.mxu0 }
 0x154   :  { %v2118_v1 = vadd.f32 %v3434_v43, %v4712_v25  ;;  %v3499_v48 = vpop.f32.mrf.mxu1 }
 0x155   :  { %v3436_v49 = vpop.f32.mrf.mxu0 }
 0x156   :  { %v4756_v50 = vadd.f32 %v3498_v44, %v2118_v1  ;;  %v3437_v52 = vadd.f32 %v3436_v49, %v3435_v46  ;;  %v3500_v59 = vpop.f32.mrf.mxu1 }
 0x157   :  { %v3501_v54 = vadd.f32 %v3500_v59, %v3499_v48  ;;  %v3438_v55 = vpop.f32.mrf.mxu0 }
 0x158   :  { %v2123_v16 = vadd.f32 %v3437_v52, %v4714_v36  ;;  %v3502_v58 = vpop.f32.mrf.mxu1 }
 0x159   :  { %v3439_v60 = vpop.f32.mrf.mxu0 }
 0x15a   :  { %v4759_v61 = vadd.f32 %v3501_v54, %v2123_v16  ;;  %v3440_v63 = vadd.f32 %v3439_v60, %v3438_v55  ;;  %v3503_v9 = vpop.f32.mrf.mxu1 }
 0x15b   :  { %v3504_v0 = vadd.f32 %v3503_v9, %v3502_v58  ;;  %v3441_v2 = vpop.f32.mrf.mxu0 }
 0x15c   :  { %v2126_v25 = vadd.f32 %v3440_v63, %v4716_v45  ;;  %v3505_v4 = vpop.f32.mrf.mxu1 }
 0x15d   :  { %v3442_v5 = vpop.f32.mrf.mxu0 }
 0x15e   :  { %v4762_v6 = vadd.f32 %v3504_v0, %v2126_v25  ;;  %v3443_v7 = vadd.f32 %v3442_v5, %v3441_v2  ;;  %v3506_v17 = vpop.f32.mrf.mxu1 }
 0x15f   :  { %v3507_v10 = vadd.f32 %v3506_v17, %v3505_v4  ;;  %v3444_v11 = vpop.f32.mrf.mxu0 }
 0x160   :  { %v2131_v36 = vadd.f32 %v3443_v7, %v4718_v53  ;;  %v3508_v13 = vpop.f32.mrf.mxu1 }
 0x161   :  { %v3445_v14 = vpop.f32.mrf.mxu0 }
 0x162   :  { %v4765_v15 = vadd.f32 %v3507_v10, %v2131_v36  ;;  %v3446_v18 = vadd.f32 %v3445_v14, %v3444_v11  ;;  %v3509_v32 = vpop.f32.mrf.mxu1 }
 0x163   :  { %v3510_v20 = vadd.f32 %v3509_v32, %v3508_v13  ;;  %v3527_v21 = vpop.f32.mrf.mxu0 }
 0x164   :  { %v2134_v45 = vadd.f32 %v3446_v18, %v4720_v62  ;;  %v3591_v23 = vpop.f32.mrf.mxu1 }
 0x165   :  { %v3528_v29 = vpop.f32.mrf.mxu0 }
 0x166   :  { %v4768_v24 = vadd.f32 %v3510_v20, %v2134_v45  ;;  %v3529_v26 = vadd.f32 %v3528_v29, %v3527_v21  ;;  %v3592_v41 = vpop.f32.mrf.mxu1 }
 0x167   :  { %v3593_v28 = vadd.f32 %v3592_v41, %v3591_v23  ;;  %v3530_v30 = vpop.f32.mrf.mxu0 }
 0x168   :  { %v2269_v53 = vadd.f32 %v3529_v26, %v4723_v8  ;;  %v3594_v33 = vpop.f32.mrf.mxu1 }
 0x169   :  { %v3531_v37 = vpop.f32.mrf.mxu0 }
 0x16a   :  { %v4771_v34 = vadd.f32 %v3593_v28, %v2269_v53  ;;  %v3532_v35 = vadd.f32 %v3531_v37, %v3530_v30  ;;  %v3595_v56 = vpop.f32.mrf.mxu1 }
 0x16b   :  { %v3596_v39 = vadd.f32 %v3595_v56, %v3594_v33  ;;  %v3533_v40 = vpop.f32.mrf.mxu0 }
 0x16c   :  { %v2272_v62 = vadd.f32 %v3532_v35, %v4726_v19  ;;  %v3597_v43 = vpop.f32.mrf.mxu1 }
 0x16d   :  { %v3534_v51 = vpop.f32.mrf.mxu0 }
 0x16e   :  { %v4774_v44 = vadd.f32 %v3596_v39, %v2272_v62  ;;  %v3535_v46 = vadd.f32 %v3534_v51, %v3533_v40  ;;  %v3598_v1 = vpop.f32.mrf.mxu1 }
 0x16f   :  { %v3599_v48 = vadd.f32 %v3598_v1, %v3597_v43  ;;  %v3536_v49 = vpop.f32.mrf.mxu0 }
 0x170   :  { %v2277_v8 = vadd.f32 %v3535_v46, %v4729_v27  ;;  %v3600_v52 = vpop.f32.mrf.mxu1 }
 0x171   :  { %v3537_v59 = vpop.f32.mrf.mxu0 }
 0x172   :  { %v4777_v54 = vadd.f32 %v3599_v48, %v2277_v8  ;;  %v3538_v55 = vadd.f32 %v3537_v59, %v3536_v49  ;;  %v3601_v16 = vpop.f32.mrf.mxu1 }
 0x173   :  { %v3602_v58 = vadd.f32 %v3601_v16, %v3600_v52  ;;  %v3539_v60 = vpop.f32.mrf.mxu0 }
 0x174   :  { %v2280_v19 = vadd.f32 %v3538_v55, %v4732_v38  ;;  %v3603_v63 = vpop.f32.mrf.mxu1 }
 0x175   :  { %v3540_v9 = vpop.f32.mrf.mxu0 }
 0x176   :  { %v4780_v0 = vadd.f32 %v3602_v58, %v2280_v19  ;;  %v3541_v2 = vadd.f32 %v3540_v9, %v3539_v60  ;;  %v3604_v25 = vpop.f32.mrf.mxu1 }
 0x177   :  { %v3605_v4 = vadd.f32 %v3604_v25, %v3603_v63  ;;  %v3542_v5 = vpop.f32.mrf.mxu0 }
 0x178   :  { %v2285_v27 = vadd.f32 %v3541_v2, %v4735_v47  ;;  %v3606_v7 = vpop.f32.mrf.mxu1 }
 0x179   :  { %v3543_v17 = vpop.f32.mrf.mxu0 }
 0x17a   :  { %v4783_v10 = vadd.f32 %v3605_v4, %v2285_v27  ;;  %v3544_v11 = vadd.f32 %v3543_v17, %v3542_v5  ;;  %v3607_v36 = vpop.f32.mrf.mxu1 }
 0x17b   :  { %v3608_v13 = vadd.f32 %v3607_v36, %v3606_v7  ;;  %v3545_v14 = vpop.f32.mrf.mxu0 }
 0x17c   :  { %v2288_v38 = vadd.f32 %v3544_v11, %v4738_v57  ;;  %v3609_v18 = vpop.f32.mrf.mxu1 }
 0x17d   :  { %v3546_v32 = vpop.f32.mrf.mxu0 }
 0x17e   :  { %v4786_v20 = vadd.f32 %v3608_v13, %v2288_v38  ;;  %v3547_v21 = vadd.f32 %v3546_v32, %v3545_v14  ;;  %v3610_v45 = vpop.f32.mrf.mxu1 }
 0x17f   :  { %v3611_v23 = vadd.f32 %v3610_v45, %v3609_v18  ;;  %v3548_v29 = vpop.f32.mrf.mxu0 }
 0x180   :  { %v2293_v47 = vadd.f32 %v3547_v21, %v4741_v3  ;;  %v3612_v26 = vpop.f32.mrf.mxu1 }
 0x181   :  { %v3549_v41 = vpop.f32.mrf.mxu0 }
 0x182   :  { %v4789_v28 = vadd.f32 %v3611_v23, %v2293_v47  ;;  %v3550_v30 = vadd.f32 %v3549_v41, %v3548_v29  ;;  %v3613_v53 = vpop.f32.mrf.mxu1 }
 0x183   :  { %v3614_v33 = vadd.f32 %v3613_v53, %v3612_v26  ;;  %v3551_v37 = vpop.f32.mrf.mxu0 }
 0x184   :  { %v2296_v57 = vadd.f32 %v3550_v30, %v4744_v12  ;;  %v3615_v35 = vpop.f32.mrf.mxu1 }
 0x185   :  { %v3552_v56 = vpop.f32.mrf.mxu0 }
 0x186   :  { %v4792_v39 = vadd.f32 %v3614_v33, %v2296_v57  ;;  %v3553_v40 = vadd.f32 %v3552_v56, %v3551_v37  ;;  %v3616_v62 = vpop.f32.mrf.mxu1 }
 0x187   :  { %v3617_v43 = vadd.f32 %v3616_v62, %v3615_v35  ;;  %v3554_v51 = vpop.f32.mrf.mxu0 }
 0x188   :  { %v2301_v3 = vadd.f32 %v3553_v40, %v4747_v22  ;;  %v3618_v46 = vpop.f32.mrf.mxu1 }
 0x189   :  { %v3555_v1 = vpop.f32.mrf.mxu0 }
 0x18a   :  { %v4795_v48 = vadd.f32 %v3617_v43, %v2301_v3  ;;  %v3556_v49 = vadd.f32 %v3555_v1, %v3554_v51  ;;  %v3619_v8 = vpop.f32.mrf.mxu1 }
 0x18b   :  { %v3620_v52 = vadd.f32 %v3619_v8, %v3618_v46  ;;  %v3557_v59 = vpop.f32.mrf.mxu0 }
 0x18c   :  { %v2304_v12 = vadd.f32 %v3556_v49, %v4750_v31  ;;  %v3621_v55 = vpop.f32.mrf.mxu1 }
 0x18d   :  { %v3558_v16 = vpop.f32.mrf.mxu0 }
 0x18e   :  { %v4798_v58 = vadd.f32 %v3620_v52, %v2304_v12  ;;  %v3559_v60 = vadd.f32 %v3558_v16, %v3557_v59  ;;  %v3622_v19 = vpop.f32.mrf.mxu1 }
 0x18f   :  { %v3623_v63 = vadd.f32 %v3622_v19, %v3621_v55  ;;  %v3560_v9 = vpop.f32.mrf.mxu0 }
 0x190   :  { %v2309_v22 = vadd.f32 %v3559_v60, %v4753_v42  ;;  %v3624_v2 = vpop.f32.mrf.mxu1 }
 0x191   :  { %v3561_v25 = vpop.f32.mrf.mxu0 }
 0x192   :  { %v4801_v4 = vadd.f32 %v3623_v63, %v2309_v22  ;;  %v3562_v5 = vadd.f32 %v3561_v25, %v3560_v9  ;;  %v3625_v27 = vpop.f32.mrf.mxu1 }
 0x193   :  { %v3626_v7 = vadd.f32 %v3625_v27, %v3624_v2  ;;  %v3563_v17 = vpop.f32.mrf.mxu0 }
 0x194   :  { %v2312_v31 = vadd.f32 %v3562_v5, %v4756_v50  ;;  %v3627_v11 = vpop.f32.mrf.mxu1 }
 0x195   :  { %v3564_v36 = vpop.f32.mrf.mxu0 }
 0x196   :  { %v4804_v13 = vadd.f32 %v3626_v7, %v2312_v31  ;;  %v3565_v14 = vadd.f32 %v3564_v36, %v3563_v17  ;;  %v3628_v38 = vpop.f32.mrf.mxu1 }
 0x197   :  { %v3629_v18 = vadd.f32 %v3628_v38, %v3627_v11  ;;  %v3566_v32 = vpop.f32.mrf.mxu0 }
 0x198   :  { %v2317_v42 = vadd.f32 %v3565_v14, %v4759_v61  ;;  %v3630_v21 = vpop.f32.mrf.mxu1 }
 0x199   :  { %v3567_v45 = vpop.f32.mrf.mxu0 }
 0x19a   :  { %v4807_v23 = vadd.f32 %v3629_v18, %v2317_v42  ;;  %v3568_v29 = vadd.f32 %v3567_v45, %v3566_v32  ;;  %v3631_v47 = vpop.f32.mrf.mxu1 }
 0x19b   :  { %v3632_v26 = vadd.f32 %v3631_v47, %v3630_v21  ;;  %v3569_v41 = vpop.f32.mrf.mxu0 }
 0x19c   :  { %v2320_v50 = vadd.f32 %v3568_v29, %v4762_v6  ;;  %v3633_v30 = vpop.f32.mrf.mxu1 }
 0x19d   :  { %v3570_v53 = vpop.f32.mrf.mxu0 }
 0x19e   :  { %v4810_v33 = vadd.f32 %v3632_v26, %v2320_v50  ;;  %v3571_v37 = vadd.f32 %v3570_v53, %v3569_v41  ;;  %v3634_v57 = vpop.f32.mrf.mxu1 }
 0x19f   :  { %v4812_v35 = vpop.f32.mrf.mxu0  ;;  %v3635_v56 = vadd.f32 %v3634_v57, %v3633_v30 }
 0x1a0   :  { %v2325_v61 = vadd.f32 %v3571_v37, %v4765_v15  ;;  %v4815_v40 = vpop.f32.mrf.mxu1 }
 0x1a1   :  { %v4817_v62 = vpop.f32.mrf.mxu0 }
 0x1a2   :  { %v4819_v43 = vadd.f32 %v3635_v56, %v2325_v61  ;;  %v4821_v51 = vpop.f32.mrf.mxu1 }
 0x1a3   :  { %v3655_v6 = vpop.f32.mrf.mxu0 }
 0x1a4   :  { %v3719_v3 = vpop.f32.mrf.mxu1 }
 0x1a5   :  { %v3656_v46 = vpop.f32.mrf.mxu0 }
 0x1a6   :  { %v3720_v1 = vpop.f32.mrf.mxu1  ;;  %v3657_v19 = vadd.f32 %v3656_v46, %v3655_v6 }
 0x1a7   :  { %v3658_v49 = vpop.f32.mrf.mxu0  ;;  %v3721_v14 = vadd.f32 %v3720_v1, %v3719_v3 }
 0x1a8   :  { %v3722_v8 = vpop.f32.mrf.mxu1  ;;  %v2463_v7 = vadd.f32 %v3657_v19, %v4771_v34 }
 0x1a9   :  { %v3659_v52 = vpop.f32.mrf.mxu0 }
 0x1aa   :  { %v3723_v59 = vpop.f32.mrf.mxu1  ;;  %v3660_v15 = vadd.f32 %v3659_v52, %v3658_v49 }
 0x1ab   :  { %v3661_v12 = vpop.f32.mrf.mxu0  ;;  %v3724_v17 = vadd.f32 %v3723_v59, %v3722_v8 }
 0x1ac   :  { %v3725_v55 = vpop.f32.mrf.mxu1  ;;  %v2466_v2 = vadd.f32 %v3660_v15, %v4774_v44  ;;  %v4829_v44 = vadd.f32 %v3721_v14, %v2463_v7 }
 0x1ad   :  { %v3662_v16 = vpop.f32.mrf.mxu0 }
 0x1ae   :  { %v3726_v60 = vpop.f32.mrf.mxu1  ;;  %v3663_v63 = vadd.f32 %v3662_v16, %v3661_v12  ;;  %v4826_v38 = vadd.f32 %v3724_v17, %v2466_v2  ;;  %v2696_v57 = vmul.f32 %v4829_v44, %v4829_v44 }
 0x1af   :  { %v3664_v9 = vpop.f32.mrf.mxu0  ;;  %v3727_v18 = vadd.f32 %v3726_v60, %v3725_v55 }
 0x1b0   :  { %v3728_v22 = vpop.f32.mrf.mxu1  ;;  %v2471_v31 = vadd.f32 %v3663_v63, %v4777_v54  ;;  %v2697_v41 = vmul.f32 %v4826_v38, %v4826_v38 }
 0x1b1   :  { %v3665_v25 = vpop.f32.mrf.mxu0 }
 0x1b2   :  { %v3666_v5 = vadd.f32 %v3665_v25, %v3664_v9  ;;  %v3729_v27 = vpop.f32.mrf.mxu1  ;;  %v4831_v29 = vadd.f32 %v3727_v18, %v2471_v31  ;;  %v2712_v49 = vadd.f32 %v2697_v41, %v2696_v57 }
 0x1b3   :  { %v3667_v11 = vpop.f32.mrf.mxu0  ;;  %v3730_v47 = vadd.f32 %v3729_v27, %v3728_v22 }
 0x1b4   :  { %v3731_v36 = vpop.f32.mrf.mxu1  ;;  %v2474_v32 = vadd.f32 %v3666_v5, %v4780_v0  ;;  %v2698_v61 = vmul.f32 %v4831_v29, %v4831_v29 }
 0x1b5   :  { %v3668_v42 = vpop.f32.mrf.mxu0 }
 0x1b6   :  { %v3669_v21 = vadd.f32 %v3668_v42, %v3667_v11  ;;  %v3732_v45 = vpop.f32.mrf.mxu1  ;;  %v4836_v50 = vadd.f32 %v3730_v47, %v2474_v32  ;;  %v2713_v16 = vadd.f32 %v2712_v49, %v2698_v61 }
 0x1b7   :  { %v3670_v34 = vpop.f32.mrf.mxu0  ;;  %v3733_v30 = vadd.f32 %v3732_v45, %v3731_v36 }
 0x1b8   :  { %v2479_v26 = vadd.f32 %v3669_v21, %v4783_v10  ;;  %v3734_v54 = vpop.f32.mrf.mxu1  ;;  %v2673_v10 = vadd.f32 %v4826_v38, %v4829_v44  ;;  %v2699_v8 = vmul.f32 %v4836_v50, %v4836_v50 }
 0x1b9   :  { %v3671_v53 = vpop.f32.mrf.mxu0 }
 0x1ba   :  { %v3672_v0 = vadd.f32 %v3671_v53, %v3670_v34  ;;  %v3735_v37 = vpop.f32.mrf.mxu1  ;;  %v4842_v56 = vadd.f32 %v3733_v30, %v2479_v26  ;;  %v2674_v59 = vadd.f32 %v2673_v10, %v4831_v29  ;;  %v2714_v2 = vadd.f32 %v2713_v16, %v2699_v8 }
 0x1bb   :  { %v3673_v6 = vpop.f32.mrf.mxu0  ;;  %v3736_v46 = vadd.f32 %v3735_v37, %v3734_v54 }
 0x1bc   :  { %v2482_v3 = vadd.f32 %v3672_v0, %v4786_v20  ;;  %v3737_v1 = vpop.f32.mrf.mxu1  ;;  %v2700_v60 = vmul.f32 %v4842_v56, %v4842_v56  ;;  %v2675_v20 = vadd.f32 %v2674_v59, %v4836_v50 }
 0x1bd   :  { %v3674_v52 = vpop.f32.mrf.mxu0 }
 0x1be   :  { %v4850_v12 = vadd.f32 %v3736_v46, %v2482_v3  ;;  %v3675_v55 = vadd.f32 %v3674_v52, %v3673_v6  ;;  %v3738_v15 = vpop.f32.mrf.mxu1  ;;  %v2676_v27 = vadd.f32 %v2675_v20, %v4842_v56  ;;  %v2715_v11 = vadd.f32 %v2714_v2, %v2700_v60 }
 0x1bf   :  { %v3676_v19 = vpop.f32.mrf.mxu0  ;;  %v3739_v9 = vadd.f32 %v3738_v15, %v3737_v1 }
 0x1c0   :  { %v2487_v63 = vadd.f32 %v3675_v55, %v4789_v28  ;;  %v3740_v22 = vpop.f32.mrf.mxu1  ;;  %v2701_v25 = vmul.f32 %v4850_v12, %v4850_v12  ;;  %v2677_v14 = vadd.f32 %v2676_v27, %v4850_v12 }
 0x1c1   :  { %v3677_v5 = vpop.f32.mrf.mxu0 }
 0x1c2   :  { %v4859_v7 = vadd.f32 %v3739_v9, %v2487_v63  ;;  %v3678_v17 = vadd.f32 %v3677_v5, %v3676_v19  ;;  %v3741_v31 = vpop.f32.mrf.mxu1  ;;  %v2716_v21 = vadd.f32 %v2715_v11, %v2701_v25 }
 0x1c3   :  { %v3679_v36 = vpop.f32.mrf.mxu0  ;;  %v3742_v32 = vadd.f32 %v3741_v31, %v3740_v22 }
 0x1c4   :  { %v2702_v28 = vmul.f32 %v4859_v7, %v4859_v7  ;;  %v2490_v18 = vadd.f32 %v3678_v17, %v4792_v39  ;;  %v3743_v42 = vpop.f32.mrf.mxu1  ;;  %v2678_v47 = vadd.f32 %v2677_v14, %v4859_v7 }
 0x1c5   :  { %v3680_v45 = vpop.f32.mrf.mxu0 }
 0x1c6   :  { %v4866_v34 = vadd.f32 %v3742_v32, %v2490_v18  ;;  %v3681_v26 = vadd.f32 %v3680_v45, %v3679_v36  ;;  %v3744_v54 = vpop.f32.mrf.mxu1  ;;  %v2717_v41 = vadd.f32 %v2716_v21, %v2702_v28 }
 0x1c7   :  { %v3682_v30 = vpop.f32.mrf.mxu0  ;;  %v3745_v39 = vadd.f32 %v3744_v54, %v3743_v42 }
 0x1c8   :  { %v2679_v53 = vadd.f32 %v2678_v47, %v4866_v34  ;;  %v2703_v0 = vmul.f32 %v4866_v34, %v4866_v34  ;;  %v2495_v37 = vadd.f32 %v3681_v26, %v4795_v48  ;;  %v3746_v57 = vpop.f32.mrf.mxu1 }
 0x1c9   :  { %v3683_v61 = vpop.f32.mrf.mxu0 }
 0x1ca   :  { %v2718_v6 = vadd.f32 %v2717_v41, %v2703_v0  ;;  %v4872_v10 = vadd.f32 %v3745_v39, %v2495_v37  ;;  %v3684_v3 = vadd.f32 %v3683_v61, %v3682_v30  ;;  %v3747_v46 = vpop.f32.mrf.mxu1 }
 0x1cb   :  { %v3685_v1 = vpop.f32.mrf.mxu0  ;;  %v3748_v59 = vadd.f32 %v3747_v46, %v3746_v57 }
 0x1cc   :  { %v2680_v49 = vadd.f32 %v2679_v53, %v4872_v10  ;;  %v2704_v8 = vmul.f32 %v4872_v10, %v4872_v10  ;;  %v2498_v52 = vadd.f32 %v3684_v3, %v4798_v58  ;;  %v3749_v55 = vpop.f32.mrf.mxu1 }
 0x1cd   :  { %v3686_v15 = vpop.f32.mrf.mxu0 }
 0x1ce   :  { %v2719_v48 = vadd.f32 %v2718_v6, %v2704_v8  ;;  %v4878_v16 = vadd.f32 %v3748_v59, %v2498_v52  ;;  %v3687_v60 = vadd.f32 %v3686_v15, %v3685_v1  ;;  %v3750_v19 = vpop.f32.mrf.mxu1 }
 0x1cf   :  { %v3688_v20 = vpop.f32.mrf.mxu0  ;;  %v3751_v2 = vadd.f32 %v3750_v19, %v3749_v55 }
 0x1d0   :  { %v2681_v63 = vadd.f32 %v2680_v49, %v4878_v16  ;;  %v2705_v9 = vmul.f32 %v4878_v16, %v4878_v16  ;;  %v2503_v22 = vadd.f32 %v3687_v60, %v4801_v4  ;;  %v3752_v25 = vpop.f32.mrf.mxu1 }
 0x1d1   :  { %v3689_v5 = vpop.f32.mrf.mxu0 }
 0x1d2   :  { %v2720_v58 = vadd.f32 %v2719_v48, %v2705_v9  ;;  %v4884_v27 = vadd.f32 %v3751_v2, %v2503_v22  ;;  %v3690_v17 = vadd.f32 %v3689_v5, %v3688_v20  ;;  %v3753_v31 = vpop.f32.mrf.mxu1  ;;  %v3638_v48 = vadd.f32 %v4821_v51, %v4815_v40 }
 0x1d3   :  { %v3691_v11 = vpop.f32.mrf.mxu0  ;;  %v3754_v18 = vadd.f32 %v3753_v31, %v3752_v25 }
 0x1d4   :  { %v2682_v36 = vadd.f32 %v2681_v63, %v4884_v27  ;;  %v2706_v14 = vmul.f32 %v4884_v27, %v4884_v27  ;;  %v2506_v28 = vadd.f32 %v3690_v17, %v4804_v13  ;;  %v3755_v32 = vpop.f32.mrf.mxu1  ;;  %v3574_v13 = vadd.f32 %v4817_v62, %v4812_v35 }
 0x1d5   :  { %v3692_v42 = vpop.f32.mrf.mxu0 }
 0x1d6   :  { %v2721_v4 = vadd.f32 %v2720_v58, %v2706_v14  ;;  %v4890_v21 = vadd.f32 %v3754_v18, %v2506_v28  ;;  %v3693_v45 = vadd.f32 %v3692_v42, %v3691_v11  ;;  %v3756_v47 = vpop.f32.mrf.mxu1  ;;  %v2328_v59 = vadd.f32 %v3574_v13, %v4768_v24 }
 0x1d7   :  { %v3694_v26 = vpop.f32.mrf.mxu0  ;;  %v3757_v53 = vadd.f32 %v3756_v47, %v3755_v32 }
 0x1d8   :  { %v2683_v54 = vadd.f32 %v2682_v36, %v4890_v21  ;;  %v2707_v41 = vmul.f32 %v4890_v21, %v4890_v21  ;;  %v2511_v30 = vadd.f32 %v3693_v45, %v4807_v23  ;;  %v3758_v0 = vpop.f32.mrf.mxu1  ;;  %v2425_v24 = vadd.f32 %v3638_v48, %v2328_v59  ;;  %v2741_v59 = vld [vmem:[%s4976_s3] sm:$0x1] }
 0x1d9   :  { %v3695_v37 = vpop.f32.mrf.mxu0 }
 0x1da   :  { %v2722_v39 = vadd.f32 %v2721_v4, %v2707_v41  ;;  %v4898_v57 = vadd.f32 %v3757_v53, %v2511_v30  ;;  %v3696_v61 = vadd.f32 %v3695_v37, %v3694_v26  ;;  %v3759_v6 = vpop.f32.mrf.mxu1 }
 0x1db   :  { %v3697_v3 = vpop.f32.mrf.mxu0  ;;  %v3760_v23 = vadd.f32 %v3759_v6, %v3758_v0 }
 0x1dc   :  { %v2684_v46 = vadd.f32 %v2683_v54, %v4898_v57  ;;  %v2708_v1 = vmul.f32 %v4898_v57, %v4898_v57  ;;  %v2514_v49 = vadd.f32 %v3696_v61, %v4810_v33  ;;  %v3761_v8 = vpop.f32.mrf.mxu1 }
 0x1dd   :  { %v3698_v52 = vpop.f32.mrf.mxu0 }
 0x1de   :  { %v2723_v55 = vadd.f32 %v2722_v39, %v2708_v1  ;;  %v4905_v35 = vadd.f32 %v3760_v23, %v2514_v49  ;;  %v3699_v62 = vadd.f32 %v3698_v52, %v3697_v3  ;;  %v3762_v15 = vpop.f32.mrf.mxu1  ;;  %v2737_v49 = vld [vmem:[%s4975_s2] sm:$0x1] }
 0x1df   :  { %v3700_v60 = vpop.f32.mrf.mxu0  ;;  %v3763_v63 = vadd.f32 %v3762_v15, %v3761_v8 }
 0x1e0   :  { %v2685_v19 = vadd.f32 %v2684_v46, %v4905_v35  ;;  %v2709_v20 = vmul.f32 %v4905_v35, %v4905_v35  ;;  %v2519_v33 = vadd.f32 %v3699_v62, %v4819_v43  ;;  %v3764_v9 = vpop.f32.mrf.mxu1  ;;  %v2745_v46 = vlaneseq }
 0x1e1   :  { %v3701_v22 = vpop.f32.mrf.mxu0 }
 0x1e2   :  { %v2724_v2 = vadd.f32 %v2723_v55, %v2709_v20  ;;  %v2616_v25 = vadd.f32 %v3763_v63, %v2519_v33  ;;  %v3702_v5 = vadd.f32 %v3701_v22, %v3700_v60  ;;  %v3765_v58 = vpop.f32.mrf.mxu1  ;;  %v2746_v1 = vshrl.u32 %v2745_v46, 7 }
 0x1e3   :  { %v3766_v40 = vadd.f32 %v3765_v58, %v3764_v9 }
 0x1e4   :  { %v2686_v17 = vadd.f32 %v2685_v19, %v2616_v25  ;;  %v2710_v31 = vmul.f32 %v2616_v25, %v2616_v25  ;;  %v2522_v11 = vadd.f32 %v3702_v5, %v2425_v24  ;;  %v2747_v23 = vsub.s32 0, %v2746_v1 }
 0x1e6   :  { %v2725_v51 = vadd.f32 %v2724_v2, %v2710_v31  ;;  %v2619_v36 = vadd.f32 %v3766_v40, %v2522_v11 }
 0x1e8   :  { %v2687_v14 = vadd.f32 %v2686_v17, %v2619_v36  ;;  %v2711_v28 = vmul.f32 %v2619_v36, %v2619_v36 }
 0x1ea   :  { %v2688_v18 = vrot.slane %v2687_v14, 4  ;;  %v2726_v32 = vadd.f32 %v2725_v51, %v2711_v28 }
 0x1ec   :  { %v2689_v42 = vadd.f32 %v2688_v18, %v2687_v14  ;;  %v2727_v43 = vrot.slane %v2726_v32, 4 }
 0x1ee   :  { %v2690_v4 = vrot.slane %v2689_v42, 2  ;;  %v2728_v45 = vadd.f32 %v2727_v43, %v2726_v32 }
 0x1f0   :  { %v2691_v47 = vadd.f32 %v2690_v4, %v2689_v42  ;;  %v2729_v26 = vrot.slane %v2728_v45, 2 }
 0x1f2   :  { %v2692_v54 = vrot.slane %v2691_v47, 1  ;;  %v2730_v41 = vadd.f32 %v2729_v26, %v2728_v45 }
 0x1f4   :  { %v2693_v30 = vadd.f32 %v2692_v54, %v2691_v47  ;;  %v2731_v53 = vrot.slane %v2730_v41, 1 }
 0x1f6   :  { %v2695_v0 = vmul.f32 0.0078125, %v2693_v30  ;;  %v2732_v37 = vadd.f32 %v2731_v53, %v2730_v41 }
 0x1f8   :  { %v2733_v13 = vmul.f32 0.0078125, %v2732_v37  ;;  %v2734_v39 = vmul.f32 %v2695_v0, %v2695_v0 }
 0x1fa   :  { %v2735_v61 = vsub.f32 %v2733_v13, %v2734_v39 }
 0x1fc   :  { %v2736_v6 = vmax.f32 %v2735_v61, 0.0 }
 0x1fe   :  { %v2738_v3 = vadd.f32 1e-05, %v2736_v6 }
 0x200   :  { %3895 = vrsqrt.f32 %v2738_v3 }
 0x20d   :  { %v3896_v8 = vpop.eup %3895 }
 0x20e   :  { %v2740_v52 = vmul.f32 %v3896_v8, %v2737_v49 }
 0x210   :  { %v2742_v55 = vmul.f32 %v2740_v52, %v2695_v0  ;;  %v2748_v62 = vrot.slane %v2740_v52, %v2747_v23 }
 0x212   :  { %v2743_v15 = vsub.f32 %v2741_v59, %v2742_v55  ;;  %v2750_v48 = vmul.f32 %v2748_v62, %v4829_v44  ;;  %v2751_v60 = vmul.f32 %v2748_v62, %v4826_v38  ;;  %v2756_v19 = vmul.f32 %v2748_v62, %v4859_v7 }
 0x213   :  { %v2757_v20 = vmul.f32 %v2748_v62, %v4866_v34  ;;  %v2758_v33 = vmul.f32 %v2748_v62, %v4872_v10  ;;  %v2759_v63 = vmul.f32 %v2748_v62, %v4878_v16  ;;  %v2760_v9 = vmul.f32 %v2748_v62, %v4884_v27 }
 0x214   :  { %v2761_v22 = vmul.f32 %v2748_v62, %v4890_v21  ;;  %v2762_v24 = vmul.f32 %v2748_v62, %v4898_v57  ;;  %v2763_v2 = vmul.f32 %v2748_v62, %v4905_v35  ;;  %v2764_v5 = vmul.f32 %v2748_v62, %v2616_v25 }
 0x215   :  { %v2752_v44 = vmul.f32 %v2748_v62, %v4831_v29  ;;  %v2753_v38 = vmul.f32 %v2748_v62, %v4836_v50  ;;  %v2765_v7 = vmul.f32 %v2748_v62, %v2619_v36  ;;  %v2770_v58 = vrot.slane %v2743_v15, %v2747_v23 }
 0x216   :  { %v2754_v34 = vmul.f32 %v2748_v62, %v4842_v56  ;;  %v2755_v10 = vmul.f32 %v2748_v62, %v4850_v12 }
 0x217   :  { %v2772_v16 = vadd.f32 %v2770_v58, %v2750_v48  ;;  %v2773_v17 = vadd.f32 %v2770_v58, %v2751_v60  ;;  %v2774_v27 = vadd.f32 %v2770_v58, %v2752_v44  ;;  %v2775_v31 = vadd.f32 %v2770_v58, %v2753_v38 }
 0x218   :  { %v2776_v21 = vadd.f32 %v2770_v58, %v2754_v34  ;;  %v2777_v11 = vadd.f32 %v2770_v58, %v2755_v10  ;;  %v2778_v57 = vadd.f32 %v2770_v58, %v2756_v19  ;;  %v2779_v40 = vadd.f32 %v2770_v58, %v2757_v20 }
 0x219   :  { %v2780_v35 = vadd.f32 %v2770_v58, %v2758_v33  ;;  %v2781_v25 = vadd.f32 %v2770_v58, %v2759_v63  ;;  %v2782_v51 = vadd.f32 %v2770_v58, %v2760_v9  ;;  %v2783_v29 = vadd.f32 %v2770_v58, %v2761_v22 }
 0x21a   :  { %v2784_v14 = vadd.f32 %v2770_v58, %v2762_v24  ;;  %v2785_v50 = vadd.f32 %v2770_v58, %v2763_v2  ;;  %v2786_v36 = vadd.f32 %v2770_v58, %v2764_v5  ;;  %v2787_v28 = vadd.f32 %v2770_v58, %v2765_v7 }
 0x21b   :  { %vm2788_vm0 = vcmp.gt.f32.partialorder %v2772_v16, 0.0  ;;  %vm2789_vm1 = vcmp.gt.f32.partialorder %v2773_v17, 0.0  ;;  %vm2790_vm2 = vcmp.gt.f32.partialorder %v2774_v27, 0.0  ;;  %vm2791_vm3 = vcmp.gt.f32.partialorder %v2775_v31, 0.0 }
 0x21c   :  { %vm2792_vm4 = vcmp.gt.f32.partialorder %v2776_v21, 0.0  ;;  %vm2793_vm5 = vcmp.gt.f32.partialorder %v2777_v11, 0.0  ;;  %vm2794_vm6 = vcmp.gt.f32.partialorder %v2778_v57, 0.0  ;;  %vm2795_vm7 = vcmp.gt.f32.partialorder %v2779_v40, 0.0 }
 0x21d   :  { %vm2796_vm8 = vcmp.gt.f32.partialorder %v2780_v35, 0.0  ;;  %vm2797_vm9 = vcmp.gt.f32.partialorder %v2781_v25, 0.0  ;;  %vm2798_vm10 = vcmp.gt.f32.partialorder %v2782_v51, 0.0  ;;  %vm2799_vm11 = vcmp.gt.f32.partialorder %v2783_v29, 0.0 }
 0x21e   :  { %vm2800_vm12 = vcmp.gt.f32.partialorder %v2784_v14, 0.0  ;;  %vm2801_vm13 = vcmp.gt.f32.partialorder %v2785_v50, 0.0  ;;  %vm2802_vm14 = vcmp.gt.f32.partialorder %v2786_v36, 0.0  ;;  %vm2803_vm15 = vcmp.gt.f32.partialorder %v2787_v28, 0.0 }
 0x21f   :  { %v2804_v56 = vmul.f32 0.2, %v2772_v16  ;;  %v2805_v12 = vmul.f32 0.2, %v2773_v17  ;;  %v2806_v18 = vmul.f32 0.2, %v2774_v27 }
 0x220   :  { %v2807_v32 = vmul.f32 0.2, %v2775_v31  ;;  %v2808_v42 = vmul.f32 0.2, %v2776_v21  ;;  %v2809_v43 = vmul.f32 0.2, %v2777_v11 }
 0x221   :  { %v2810_v4 = vmul.f32 0.2, %v2778_v57  ;;  %v2811_v45 = vmul.f32 0.2, %v2779_v40  ;;  %v2812_v47 = vmul.f32 0.2, %v2780_v35  ;;  %v2820_v26 = vsel %vm2788_vm0, %v2772_v16, %v2804_v56 }
 0x222   :  { %v2813_v54 = vmul.f32 0.2, %v2781_v25  ;;  %v2814_v41 = vmul.f32 0.2, %v2782_v51  ;;  %v2815_v30 = vmul.f32 0.2, %v2783_v29  ;;  %v2821_v53 = vsel %vm2789_vm1, %v2773_v17, %v2805_v12 }
 0x223   :  { %v2816_v0 = vmul.f32 0.2, %v2784_v14  ;;  %v2817_v37 = vmul.f32 0.2, %v2785_v50  ;;  %v2818_v13 = vmul.f32 0.2, %v2786_v36  ;;  %v2822_v39 = vsel %vm2790_vm2, %v2774_v27, %v2806_v18 }
 0x224   :  { %v2819_v61 = vmul.f32 0.2, %v2787_v28  ;;  %v2823_v6 = vsel %vm2791_vm3, %v2775_v31, %v2807_v32  ;;  %v2824_v3 = vsel %vm2792_vm4, %v2776_v21, %v2808_v42  ;;  %v2825_v46 = vsel %vm2793_vm5, %v2777_v11, %v2809_v43 }
 0x225   :  { %v2826_v1 = vsel %vm2794_vm6, %v2778_v57, %v2810_v4  ;;  %v2827_v49 = vsel %vm2795_vm7, %v2779_v40, %v2811_v45  ;;  %v2828_v23 = vsel %vm2796_vm8, %v2780_v35, %v2812_v47  ;;  %v2829_v8 = vsel %vm2797_vm9, %v2781_v25, %v2813_v54 }
 0x226   :  { %v2830_v52 = vsel %vm2798_vm10, %v2782_v51, %v2814_v41  ;;  %v2831_v59 = vsel %vm2799_vm11, %v2783_v29, %v2815_v30  ;;  %v2832_v55 = vsel %vm2800_vm12, %v2784_v14, %v2816_v0  ;;  %v2833_v62 = vsel %vm2801_vm13, %v2785_v50, %v2817_v37 }
 0x227   :  { %v2834_v15 = vsel %vm2802_vm14, %v2786_v36, %v2818_v13  ;;  %v2835_v48 = vsel %vm2803_vm15, %v2787_v28, %v2819_v61  ;;  %v3211_v60 = vpack.c.bf16 %v2821_v53, %v2820_v26  ;;  %v3216_v19 = vpack.c.bf16 %v2823_v6, %v2822_v39 }
 0x228   :  { %v3221_v20 = vpack.c.bf16 %v2825_v46, %v2824_v3  ;;  %v3226_v33 = vpack.c.bf16 %v2827_v49, %v2826_v1  ;;  %v3231_v63 = vpack.c.bf16 %v2829_v8, %v2828_v23  ;;  %v3236_v9 = vpack.c.bf16 %v2831_v59, %v2830_v52 }
 0x229   :  { %3212 = vst [vmem:[%s4977_s4] sm:$0xff] %v3211_v60   ;;  %3248 = vst [vmem:[%s4977_s4 + $0x8] sm:$0xff] %v3216_v19   ;;  %v3241_v22 = vpack.c.bf16 %v2833_v62, %v2832_v55  ;;  %v3246_v24 = vpack.c.bf16 %v2835_v48, %v2834_v15 }
 0x22a   :  { %3249 = vst [vmem:[%s4977_s4 + $0x10] sm:$0xff] %v3221_v20   ;;  %3250 = vst [vmem:[%s4977_s4 + $0x18] sm:$0xff] %v3226_v33  }
 0x22b   :  { %3251 = vst [vmem:[%s4977_s4 + $0x20] sm:$0xff] %v3231_v63   ;;  %3252 = vst [vmem:[%s4977_s4 + $0x28] sm:$0xff] %v3236_v9  }
 0x22c   :  { %3253 = vst [vmem:[%s4977_s4 + $0x30] sm:$0xff] %v3241_v22   ;;  %3254 = vst [vmem:[%s4977_s4 + $0x38] sm:$0xff] %v3246_v24  }

// kernel: discriminator_forward.11
= control target key start
LH: loop header
LB: loop body
LE: loop exit
PB: predicated region body
PF: predicated region fallthrough
CT: control target
= control target key end

     0   :  { %s2794_s1 = inlined_call_operand.vmem [shape: bf16[2048,128], index: 1, kind: input, shape index: {}]   ;;  %s2795_s0 = inlined_call_operand.vmem [shape: bf16[32,2048], index: 0, kind: input, shape index: {}]   ;;  %s2796_s2 = inlined_call_operand.vmem [shape: f32[1,128], index: 2, kind: input, shape index: {}]   ;;  %s2797_s3 = inlined_call_operand.vmem [shape: f32[1,128], index: 3, kind: input, shape index: {}]   ;;  %s2798_s4 = inlined_call_operand.vmem [shape: bf16[32,128], index: 4, kind: output, shape index: {}]  }
   0x1   :  { %v2147_v0 = vld [vmem:[%s2794_s1 + $0x78] sm:$0xff]   ;;  %v2151_v4 = vld [vmem:[%s2794_s1 + $0x70] sm:$0xff]   ;;  %v2155_v8 = vld [vmem:[%s2794_s1 + $0x68] sm:$0xff]  }
   0x2   :  { %v2148_v1 = vld [vmem:[%s2794_s1 + $0xf8] sm:$0xff]   ;;  %1923 = vmatprep.subr.bf16.mxu0 %v2147_v0  ;;  %v2152_v5 = vld [vmem:[%s2794_s1 + $0xf0] sm:$0xff]   ;;  %v2156_v9 = vld [vmem:[%s2794_s1 + $0xe8] sm:$0xff]  }
   0x3   :  { %v2149_v2 = vld [vmem:[%s2794_s1 + $0x38] sm:$0xff]   ;;  %1951 = vmatprep.subr.bf16.mxu1 %v2148_v1  ;;  %v2153_v6 = vld [vmem:[%s2794_s1 + $0x30] sm:$0xff]   ;;  %v2157_v10 = vld [vmem:[%s2794_s1 + $0x28] sm:$0xff]  }
   0x4   :  { %v2150_v3 = vld [vmem:[%s2794_s1 + $0xb8] sm:$0xff]   ;;  %1924 = vmatpush3.bf16.msra.mxu0 %v2149_v2  ;;  %v2154_v7 = vld [vmem:[%s2794_s1 + $0xb0] sm:$0xff]   ;;  %v2158_v11 = vld [vmem:[%s2794_s1 + $0xa8] sm:$0xff]  }
   0x5   :  { %1952 = vmatpush3.bf16.msra.mxu1 %v2150_v3  ;;  %1925 = vmatprep.subr.bf16.mxu0 %v2151_v4  ;;  %v2159_v12 = vld [vmem:[%s2794_s1 + $0x60] sm:$0xff]   ;;  %v2163_v16 = vld [vmem:[%s2794_s1 + $0x58] sm:$0xff]   ;;  %v2167_v20 = vld [vmem:[%s2794_s1 + $0x50] sm:$0xff]  }
   0x6   :  { %1953 = vmatprep.subr.bf16.mxu1 %v2152_v5  ;;  %v2160_v13 = vld [vmem:[%s2794_s1 + $0xe0] sm:$0xff]   ;;  %v2164_v17 = vld [vmem:[%s2794_s1 + $0xd8] sm:$0xff]   ;;  %v2168_v21 = vld [vmem:[%s2794_s1 + $0xd0] sm:$0xff]  }
   0x7   :  { %v2161_v14 = vld [vmem:[%s2794_s1 + $0x20] sm:$0xff]   ;;  %v2165_v18 = vld [vmem:[%s2794_s1 + $0x18] sm:$0xff]   ;;  %v2169_v22 = vld [vmem:[%s2794_s1 + $0x10] sm:$0xff]  }
   0x8   :  { %1926 = vmatpush3.bf16.msra.mxu0 %v2153_v6  ;;  %v2162_v15 = vld [vmem:[%s2794_s1 + $0xa0] sm:$0xff]   ;;  %v2166_v19 = vld [vmem:[%s2794_s1 + $0x98] sm:$0xff]   ;;  %v2170_v23 = vld [vmem:[%s2794_s1 + $0x90] sm:$0xff]  }
   0x9   :  { %1954 = vmatpush3.bf16.msra.mxu1 %v2154_v7  ;;  %1927 = vmatprep.subr.bf16.mxu0 %v2155_v8  ;;  %v2171_v24 = vld [vmem:[%s2794_s1 + $0x48] sm:$0xff]   ;;  %v2175_v28 = vld [vmem:[%s2794_s1 + $0x40] sm:$0xff]   ;;  %v2179_v40 = vld [vmem:[%s2794_s1 + $0x178] sm:$0xff]  }
   0xa   :  { %1955 = vmatprep.subr.bf16.mxu1 %v2156_v9  ;;  %v2172_v25 = vld [vmem:[%s2794_s1 + $0xc8] sm:$0xff]   ;;  %v2176_v29 = vld [vmem:[%s2794_s1 + $0xc0] sm:$0xff]   ;;  %v2180_v41 = vld [vmem:[%s2794_s1 + $0x1f8] sm:$0xff]  }
   0xb   :  { %v2173_v26 = vld [vmem:[%s2794_s1 + $0x8] sm:$0xff]   ;;  %v2177_v30 = vld [vmem:[%s2794_s1] sm:$0xff]   ;;  %v2181_v42 = vld [vmem:[%s2794_s1 + $0x138] sm:$0xff]  }
   0xc   :  { %1928 = vmatpush3.bf16.msra.mxu0 %v2157_v10  ;;  %v2174_v27 = vld [vmem:[%s2794_s1 + $0x88] sm:$0xff]   ;;  %v2178_v31 = vld [vmem:[%s2794_s1 + $0x80] sm:$0xff]   ;;  %v2182_v43 = vld [vmem:[%s2794_s1 + $0x1b8] sm:$0xff]  }
   0xd   :  { %1956 = vmatpush3.bf16.msra.mxu1 %v2158_v11  ;;  %1929 = vmatprep.subr.bf16.mxu0 %v2159_v12  ;;  %v30_v32 = vld [vmem:[%s2795_s0] sm:$0xff]  ;;  %v31_v34 = vld [vmem:[%s2795_s0 + $0x8] sm:$0xff]  ;;  %v2183_v44 = vld [vmem:[%s2794_s1 + $0x170] sm:$0xff]  }
   0xe   :  { %1957 = vmatprep.subr.bf16.mxu1 %v2160_v13  ;;  %v38_v33 = vld [vmem:[%s2795_s0 + $0x40] sm:$0xff]  ;;  %v39_v37 = vld [vmem:[%s2795_s0 + $0x48] sm:$0xff]  ;;  %v2184_v45 = vld [vmem:[%s2794_s1 + $0x1f0] sm:$0xff]  }
   0xf   :  { %v1744_v35 = vcombine.low %v30_v32, %v38_v33  ;;  %v1745_v36 = vcombine.high %v30_v32, %v38_v33  ;;  %v1746_v38 = vcombine.low %v31_v34, %v39_v37  ;;  %v1747_v39 = vcombine.high %v31_v34, %v39_v37  ;;  %v2185_v46 = vld [vmem:[%s2794_s1 + $0x130] sm:$0xff]   ;;  %v2187_v48 = vld [vmem:[%s2794_s1 + $0x168] sm:$0xff]   ;;  %v2191_v52 = vld [vmem:[%s2794_s1 + $0x160] sm:$0xff]  }
  0x10   :  { %1930 = vmatpush3.bf16.msra.mxu0 %v2161_v14  ;;  %v2186_v47 = vld [vmem:[%s2794_s1 + $0x1b0] sm:$0xff]   ;;  %v2188_v49 = vld [vmem:[%s2794_s1 + $0x1e8] sm:$0xff]   ;;  %v2192_v53 = vld [vmem:[%s2794_s1 + $0x1e0] sm:$0xff]  }
  0x11   :  { %1958 = vmatpush3.bf16.msra.mxu1 %v2162_v15  ;;  %1931 = vmatprep.subr.bf16.mxu0 %v2163_v16  ;;  %v2189_v50 = vld [vmem:[%s2794_s1 + $0x128] sm:$0xff]   ;;  %v2193_v54 = vld [vmem:[%s2794_s1 + $0x120] sm:$0xff]   ;;  %v2195_v56 = vld [vmem:[%s2794_s1 + $0x158] sm:$0xff]  }
  0x12   :  { %1959 = vmatprep.subr.bf16.mxu1 %v2164_v17  ;;  %1278 = vmatprep.mubr.bf16.mxu0 %v1745_v36  ;;  %v2190_v51 = vld [vmem:[%s2794_s1 + $0x1a8] sm:$0xff]   ;;  %v2194_v55 = vld [vmem:[%s2794_s1 + $0x1a0] sm:$0xff]   ;;  %v2196_v57 = vld [vmem:[%s2794_s1 + $0x1d8] sm:$0xff]  }
  0x13   :  { %1327 = vmatprep.mubr.bf16.mxu1 %v1747_v39  ;;  %v2197_v58 = vld [vmem:[%s2794_s1 + $0x118] sm:$0xff]   ;;  %v46_v60 = vld [vmem:[%s2795_s0 + $0x80] sm:$0xff]  ;;  %v47_v63 = vld [vmem:[%s2795_s0 + $0x88] sm:$0xff] }
  0x14   :  { %1932 = vmatpush3.bf16.msra.mxu0 %v2165_v18  ;;  %v2198_v59 = vld [vmem:[%s2794_s1 + $0x198] sm:$0xff]   ;;  %v54_v61 = vld [vmem:[%s2795_s0 + $0xc0] sm:$0xff]  ;;  %v55_v0 = vld [vmem:[%s2795_s0 + $0xc8] sm:$0xff] }
  0x15   :  { %1960 = vmatpush3.bf16.msra.mxu1 %v2166_v19  ;;  %1933 = vmatprep.subr.bf16.mxu0 %v2167_v20  ;;  %v1761_v62 = vcombine.high %v46_v60, %v54_v61  ;;  %v1760_v1 = vcombine.low %v46_v60, %v54_v61  ;;  %v1763_v2 = vcombine.high %v47_v63, %v55_v0  ;;  %v2199_v4 = vld [vmem:[%s2794_s1 + $0x150] sm:$0xff]   ;;  %v2203_v8 = vld [vmem:[%s2794_s1 + $0x148] sm:$0xff]   ;;  %v2207_v12 = vld [vmem:[%s2794_s1 + $0x140] sm:$0xff]  }
  0x16   :  { %1961 = vmatprep.subr.bf16.mxu1 %v2168_v21  ;;  %v1762_v3 = vcombine.low %v47_v63, %v55_v0  ;;  %v2200_v5 = vld [vmem:[%s2794_s1 + $0x1d0] sm:$0xff]   ;;  %v2204_v9 = vld [vmem:[%s2794_s1 + $0x1c8] sm:$0xff]   ;;  %v2208_v13 = vld [vmem:[%s2794_s1 + $0x1c0] sm:$0xff]  }
  0x17   :  { %v2201_v6 = vld [vmem:[%s2794_s1 + $0x110] sm:$0xff]   ;;  %v2205_v10 = vld [vmem:[%s2794_s1 + $0x108] sm:$0xff]   ;;  %v2209_v14 = vld [vmem:[%s2794_s1 + $0x100] sm:$0xff]  }
  0x18   :  { %1934 = vmatpush3.bf16.msra.mxu0 %v2169_v22  ;;  %v2202_v7 = vld [vmem:[%s2794_s1 + $0x190] sm:$0xff]   ;;  %v2206_v11 = vld [vmem:[%s2794_s1 + $0x188] sm:$0xff]   ;;  %v2210_v15 = vld [vmem:[%s2794_s1 + $0x180] sm:$0xff]  }
  0x19   :  { %1962 = vmatpush3.bf16.msra.mxu1 %v2170_v23  ;;  %1935 = vmatprep.subr.bf16.mxu0 %v2171_v24  ;;  %v32_v16 = vld [vmem:[%s2795_s0 + $0x10] sm:$0xff]  ;;  %v33_v18 = vld [vmem:[%s2795_s0 + $0x18] sm:$0xff]  ;;  %v2219_v36 = vld [vmem:[%s2794_s1 + $0x268] sm:$0xff]  }
  0x1a   :  { %1963 = vmatprep.subr.bf16.mxu1 %v2172_v25  ;;  %v40_v17 = vld [vmem:[%s2795_s0 + $0x50] sm:$0xff]  ;;  %v41_v19 = vld [vmem:[%s2795_s0 + $0x58] sm:$0xff]  ;;  %v2220_v37 = vld [vmem:[%s2794_s1 + $0x2e8] sm:$0xff]  }
  0x1b   :  { %v1748_v20 = vcombine.low %v32_v16, %v40_v17  ;;  %v1749_v21 = vcombine.high %v32_v16, %v40_v17  ;;  %v1750_v22 = vcombine.low %v33_v18, %v41_v19  ;;  %v1751_v23 = vcombine.high %v33_v18, %v41_v19  ;;  %v2211_v24 = vld [vmem:[%s2794_s1 + $0x278] sm:$0xff]   ;;  %v48_v32 = vld [vmem:[%s2795_s0 + $0x90] sm:$0xff]  ;;  %v2239_v60 = vld [vmem:[%s2794_s1 + $0x240] sm:$0xff]  }
  0x1c   :  { %1936 = vmatpush3.bf16.msra.mxu0 %v2173_v26  ;;  %v2212_v25 = vld [vmem:[%s2794_s1 + $0x2f8] sm:$0xff]   ;;  %v56_v33 = vld [vmem:[%s2795_s0 + $0xd0] sm:$0xff]  ;;  %v2240_v61 = vld [vmem:[%s2794_s1 + $0x2c0] sm:$0xff]  }
  0x1d   :  { %1964 = vmatpush3.bf16.msra.mxu1 %v2174_v27  ;;  %1937 = vmatprep.subr.bf16.mxu0 %v2175_v28  ;;  %v2213_v26 = vld [vmem:[%s2794_s1 + $0x238] sm:$0xff]   ;;  %v2215_v28 = vld [vmem:[%s2794_s1 + $0x270] sm:$0xff]   ;;  %v1765_v34 = vcombine.high %v48_v32, %v56_v33  ;;  %v2242_v63 = vld [vmem:[%s2794_s1 + $0x280] sm:$0xff]  }
  0x1e   :  { %1965 = vmatprep.subr.bf16.mxu1 %v2176_v29  ;;  %v2214_v27 = vld [vmem:[%s2794_s1 + $0x2b8] sm:$0xff]   ;;  %v2216_v29 = vld [vmem:[%s2794_s1 + $0x2f0] sm:$0xff]   ;;  %v34_v0 = vld [vmem:[%s2795_s0 + $0x20] sm:$0xff] }
  0x1f   :  { %v57_v39 = vld [vmem:[%s2795_s0 + $0xd8] sm:$0xff]  ;;  %v50_v16 = vld [vmem:[%s2795_s0 + $0xa0] sm:$0xff] }
  0x20   :  { %1938 = vmatpush3.bf16.msra.mxu0 %v2177_v30  ;;  %v2217_v30 = vld [vmem:[%s2794_s1 + $0x230] sm:$0xff]   ;;  %v58_v17 = vld [vmem:[%s2795_s0 + $0xe0] sm:$0xff] }
  0x21   :  { %1966 = vmatpush3.bf16.msra.mxu1 %v2178_v31  ;;  %1979 = vmatprep.subr.bf16.mxu0 %v2179_v40  ;;  %v2218_v31 = vld [vmem:[%s2794_s1 + $0x2b0] sm:$0xff]   ;;  %v1769_v18 = vcombine.high %v50_v16, %v58_v17  ;;  %v1768_v19 = vcombine.low %v50_v16, %v58_v17 }
  0x22   :  { %2007 = vmatprep.subr.bf16.mxu1 %v2180_v41  ;;  %v2221_v41 = vld [vmem:[%s2794_s1 + $0x228] sm:$0xff]  }
  0x23   :  { %1279 = vmatmul.mubr.bf16.vlgmr.msra.gmra.mxu0 %v1744_v35  ;;  %v1764_v35 = vcombine.low %v48_v32, %v56_v33  ;;  %v2259_v32 = vld [vmem:[%s2794_s1 + $0x358] sm:$0xff]  }
  0x24   :  { %1328 = vmatmul.mubr.bf16.vlgmr.msra.gmra.mxu1 %v1746_v38  ;;  %1980 = vmatpush3.bf16.msra.mxu0 %v2181_v42  ;;  %v49_v38 = vld [vmem:[%s2795_s0 + $0x98] sm:$0xff] }
  0x25   :  { %2008 = vmatpush3.bf16.msra.mxu1 %v2182_v43  ;;  %1981 = vmatprep.subr.bf16.mxu0 %v2183_v44  ;;  %v1767_v40 = vcombine.high %v49_v38, %v57_v39  ;;  %v1766_v42 = vcombine.low %v49_v38, %v57_v39  ;;  %v2222_v43 = vld [vmem:[%s2794_s1 + $0x2a8] sm:$0xff]   ;;  %v2223_v44 = vld [vmem:[%s2794_s1 + $0x260] sm:$0xff]   ;;  %v2260_v33 = vld [vmem:[%s2794_s1 + $0x3d8] sm:$0xff]  }
  0x26   :  { %2009 = vmatprep.subr.bf16.mxu1 %v2184_v45  ;;  %1286 = vmatprep.mubr.bf16.mxu0 %v1761_v62  ;;  %v2224_v45 = vld [vmem:[%s2794_s1 + $0x2e0] sm:$0xff]   ;;  %v2265_v38 = vld [vmem:[%s2794_s1 + $0x310] sm:$0xff]  }
  0x27   :  { %1335 = vmatprep.mubr.bf16.mxu1 %v1763_v2  ;;  %v2241_v62 = vld [vmem:[%s2794_s1 + $0x200] sm:$0xff]   ;;  %v2266_v39 = vld [vmem:[%s2794_s1 + $0x390] sm:$0xff]  }
  0x28   :  { %1982 = vmatpush3.bf16.msra.mxu0 %v2185_v46  ;;  %v2225_v46 = vld [vmem:[%s2794_s1 + $0x220] sm:$0xff]  }
  0x29   :  { %2010 = vmatpush3.bf16.msra.mxu1 %v2186_v47  ;;  %1983 = vmatprep.subr.bf16.mxu0 %v2187_v48  ;;  %v2226_v47 = vld [vmem:[%s2794_s1 + $0x2a0] sm:$0xff]   ;;  %v2227_v48 = vld [vmem:[%s2794_s1 + $0x258] sm:$0xff]  }
  0x2a   :  { %2011 = vmatprep.subr.bf16.mxu1 %v2188_v49  ;;  %v2228_v49 = vld [vmem:[%s2794_s1 + $0x2d8] sm:$0xff]  }
  0x2b   :  { %1287 = vmatmul.mubr.bf16.gmra.mxu0 %v1760_v1  ;;  %v42_v1 = vld [vmem:[%s2795_s0 + $0x60] sm:$0xff] }
  0x2c   :  { %1984 = vmatpush3.bf16.msra.mxu0 %v2189_v50  ;;  %1336 = vmatmul.mubr.bf16.gmra.mxu1 %v1762_v3  ;;  %v2229_v50 = vld [vmem:[%s2794_s1 + $0x218] sm:$0xff]   ;;  %v1752_v2 = vcombine.low %v34_v0, %v42_v1  ;;  %v1753_v3 = vcombine.high %v34_v0, %v42_v1 }
  0x2d   :  { %2012 = vmatpush3.bf16.msra.mxu1 %v2190_v51  ;;  %1985 = vmatprep.subr.bf16.mxu0 %v2191_v52  ;;  %v2230_v51 = vld [vmem:[%s2794_s1 + $0x298] sm:$0xff]   ;;  %v2231_v52 = vld [vmem:[%s2794_s1 + $0x250] sm:$0xff]  }
  0x2e   :  { %2013 = vmatprep.subr.bf16.mxu1 %v2192_v53  ;;  %1376 = vmatprep.mubr.bf16.mxu0 %v1749_v21  ;;  %v2232_v53 = vld [vmem:[%s2794_s1 + $0x2d0] sm:$0xff]   ;;  %v2252_v21 = vld [vmem:[%s2794_s1 + $0x3e8] sm:$0xff]  }
  0x2f   :  { %1425 = vmatprep.mubr.bf16.mxu1 %v1751_v23  ;;  %v59_v23 = vld [vmem:[%s2795_s0 + $0xe8] sm:$0xff] }
  0x30   :  { %1986 = vmatpush3.bf16.msra.mxu0 %v2193_v54  ;;  %v2233_v54 = vld [vmem:[%s2794_s1 + $0x210] sm:$0xff]  }
  0x31   :  { %2014 = vmatpush3.bf16.msra.mxu1 %v2194_v55  ;;  %1987 = vmatprep.subr.bf16.mxu0 %v2195_v56  ;;  %v2234_v55 = vld [vmem:[%s2794_s1 + $0x290] sm:$0xff]   ;;  %v2235_v56 = vld [vmem:[%s2794_s1 + $0x248] sm:$0xff]  }
  0x32   :  { %2015 = vmatprep.subr.bf16.mxu1 %v2196_v57  ;;  %v2236_v57 = vld [vmem:[%s2794_s1 + $0x2c8] sm:$0xff]  }
  0x34   :  { %1988 = vmatpush3.bf16.msra.mxu0 %v2197_v58  ;;  %v2237_v58 = vld [vmem:[%s2794_s1 + $0x208] sm:$0xff]  }
  0x35   :  { %2016 = vmatpush3.bf16.msra.mxu1 %v2198_v59  ;;  %1989 = vmatprep.subr.bf16.mxu0 %v2199_v4  ;;  %v2238_v59 = vld [vmem:[%s2794_s1 + $0x288] sm:$0xff]  }
  0x36   :  { %2017 = vmatprep.subr.bf16.mxu1 %v2200_v5  ;;  %v35_v4 = vld [vmem:[%s2795_s0 + $0x28] sm:$0xff] }
  0x37   :  { %v43_v5 = vld [vmem:[%s2795_s0 + $0x68] sm:$0xff] }
  0x38   :  { %1990 = vmatpush3.bf16.msra.mxu0 %v2201_v6  ;;  %v1754_v6 = vcombine.low %v35_v4, %v43_v5 }
  0x39   :  { %2018 = vmatpush3.bf16.msra.mxu1 %v2202_v7  ;;  %1991 = vmatprep.subr.bf16.mxu0 %v2203_v8  ;;  %v1755_v7 = vcombine.high %v35_v4, %v43_v5  ;;  %v2243_v8 = vld [vmem:[%s2794_s1 + $0x378] sm:$0xff]  }
  0x3a   :  { %2019 = vmatprep.subr.bf16.mxu1 %v2204_v9  ;;  %v2244_v9 = vld [vmem:[%s2794_s1 + $0x3f8] sm:$0xff]  }
  0x3c   :  { %1992 = vmatpush3.bf16.msra.mxu0 %v2205_v10  ;;  %v2245_v10 = vld [vmem:[%s2794_s1 + $0x338] sm:$0xff]  }
  0x3d   :  { %2020 = vmatpush3.bf16.msra.mxu1 %v2206_v11  ;;  %1993 = vmatprep.subr.bf16.mxu0 %v2207_v12  ;;  %v2246_v11 = vld [vmem:[%s2794_s1 + $0x3b8] sm:$0xff]   ;;  %v2247_v12 = vld [vmem:[%s2794_s1 + $0x370] sm:$0xff]  }
  0x3e   :  { %2021 = vmatprep.subr.bf16.mxu1 %v2208_v13  ;;  %v2248_v13 = vld [vmem:[%s2794_s1 + $0x3f0] sm:$0xff]  }
  0x40   :  { %1994 = vmatpush3.bf16.msra.mxu0 %v2209_v14  ;;  %v2249_v14 = vld [vmem:[%s2794_s1 + $0x330] sm:$0xff]  }
  0x41   :  { %2022 = vmatpush3.bf16.msra.mxu1 %v2210_v15  ;;  %2035 = vmatprep.subr.bf16.mxu0 %v2211_v24  ;;  %v2250_v15 = vld [vmem:[%s2794_s1 + $0x3b0] sm:$0xff]  }
  0x42   :  { %2063 = vmatprep.subr.bf16.mxu1 %v2212_v25  ;;  %v2253_v25 = vld [vmem:[%s2794_s1 + $0x328] sm:$0xff]  }
  0x43   :  { %1377 = vmatmul.mubr.bf16.vlgmr.msra.gmra.mxu0 %v1748_v20  ;;  %v2251_v20 = vld [vmem:[%s2794_s1 + $0x368] sm:$0xff]  }
  0x44   :  { %1426 = vmatmul.mubr.bf16.vlgmr.msra.gmra.mxu1 %v1750_v22  ;;  %2036 = vmatpush3.bf16.msra.mxu0 %v2213_v26  ;;  %v51_v22 = vld [vmem:[%s2795_s0 + $0xa8] sm:$0xff] }
  0x45   :  { %2064 = vmatpush3.bf16.msra.mxu1 %v2214_v27  ;;  %2037 = vmatprep.subr.bf16.mxu0 %v2215_v28  ;;  %v1771_v24 = vcombine.high %v51_v22, %v59_v23  ;;  %v1770_v26 = vcombine.low %v51_v22, %v59_v23  ;;  %v2254_v27 = vld [vmem:[%s2794_s1 + $0x3a8] sm:$0xff]   ;;  %v2255_v28 = vld [vmem:[%s2794_s1 + $0x360] sm:$0xff]  }
  0x46   :  { %2065 = vmatprep.subr.bf16.mxu1 %v2216_v29  ;;  %1384 = vmatprep.mubr.bf16.mxu0 %v1765_v34  ;;  %v2256_v29 = vld [vmem:[%s2794_s1 + $0x3e0] sm:$0xff]   ;;  %v2261_v34 = vld [vmem:[%s2794_s1 + $0x318] sm:$0xff]  }
  0x47   :  { %1433 = vmatprep.mubr.bf16.mxu1 %v1767_v40  ;;  %v2267_v40 = vld [vmem:[%s2794_s1 + $0x348] sm:$0xff]  }
  0x48   :  { %2038 = vmatpush3.bf16.msra.mxu0 %v2217_v30  ;;  %v2257_v30 = vld [vmem:[%s2794_s1 + $0x320] sm:$0xff]  }
  0x49   :  { %2066 = vmatpush3.bf16.msra.mxu1 %v2218_v31  ;;  %2039 = vmatprep.subr.bf16.mxu0 %v2219_v36  ;;  %v2258_v31 = vld [vmem:[%s2794_s1 + $0x3a0] sm:$0xff]   ;;  %v2263_v36 = vld [vmem:[%s2794_s1 + $0x350] sm:$0xff]  }
  0x4a   :  { %2067 = vmatprep.subr.bf16.mxu1 %v2220_v37  ;;  %v2264_v37 = vld [vmem:[%s2794_s1 + $0x3d0] sm:$0xff]  }
  0x4b   :  { %1385 = vmatmul.mubr.bf16.gmra.mxu0 %v1764_v35  ;;  %v2262_v35 = vld [vmem:[%s2794_s1 + $0x398] sm:$0xff]  }
  0x4c   :  { %2040 = vmatpush3.bf16.msra.mxu0 %v2221_v41  ;;  %1434 = vmatmul.mubr.bf16.gmra.mxu1 %v1766_v42  ;;  %v2268_v41 = vld [vmem:[%s2794_s1 + $0x3c8] sm:$0xff]  }
  0x4d   :  { %2068 = vmatpush3.bf16.msra.mxu1 %v2222_v43  ;;  %2041 = vmatprep.subr.bf16.mxu0 %v2223_v44  ;;  %v2269_v42 = vld [vmem:[%s2794_s1 + $0x308] sm:$0xff]   ;;  %v2271_v44 = vld [vmem:[%s2794_s1 + $0x340] sm:$0xff]  }
  0x4e   :  { %2069 = vmatprep.subr.bf16.mxu1 %v2224_v45  ;;  %1474 = vmatprep.mubr.bf16.mxu0 %v1753_v3  ;;  %v2270_v43 = vld [vmem:[%s2794_s1 + $0x388] sm:$0xff]   ;;  %v2272_v45 = vld [vmem:[%s2794_s1 + $0x3c0] sm:$0xff]  }
  0x4f   :  { %1523 = vmatprep.mubr.bf16.mxu1 %v1755_v7 }
  0x50   :  { %2042 = vmatpush3.bf16.msra.mxu0 %v2225_v46  ;;  %v2273_v46 = vld [vmem:[%s2794_s1 + $0x300] sm:$0xff]  }
  0x51   :  { %2070 = vmatpush3.bf16.msra.mxu1 %v2226_v47  ;;  %2043 = vmatprep.subr.bf16.mxu0 %v2227_v48  ;;  %v2274_v47 = vld [vmem:[%s2794_s1 + $0x380] sm:$0xff]   ;;  %v36_v48 = vld [vmem:[%s2795_s0 + $0x30] sm:$0xff] }
  0x52   :  { %2071 = vmatprep.subr.bf16.mxu1 %v2228_v49  ;;  %v44_v49 = vld [vmem:[%s2795_s0 + $0x70] sm:$0xff] }
  0x54   :  { %2044 = vmatpush3.bf16.msra.mxu0 %v2229_v50  ;;  %v37_v50 = vld [vmem:[%s2795_s0 + $0x38] sm:$0xff] }
  0x55   :  { %2072 = vmatpush3.bf16.msra.mxu1 %v2230_v51  ;;  %2045 = vmatprep.subr.bf16.mxu0 %v2231_v52  ;;  %v1756_v51 = vcombine.low %v36_v48, %v44_v49  ;;  %v1757_v52 = vcombine.high %v36_v48, %v44_v49 }
  0x56   :  { %2073 = vmatprep.subr.bf16.mxu1 %v2232_v53  ;;  %v45_v53 = vld [vmem:[%s2795_s0 + $0x78] sm:$0xff] }
  0x58   :  { %2046 = vmatpush3.bf16.msra.mxu0 %v2233_v54  ;;  %v52_v54 = vld [vmem:[%s2795_s0 + $0xb0] sm:$0xff] }
  0x59   :  { %2074 = vmatpush3.bf16.msra.mxu1 %v2234_v55  ;;  %2047 = vmatprep.subr.bf16.mxu0 %v2235_v56  ;;  %v60_v55 = vld [vmem:[%s2795_s0 + $0xf0] sm:$0xff]  ;;  %v1758_v56 = vcombine.low %v37_v50, %v45_v53 }
  0x5a   :  { %2075 = vmatprep.subr.bf16.mxu1 %v2236_v57  ;;  %v1759_v57 = vcombine.high %v37_v50, %v45_v53 }
  0x5c   :  { %2048 = vmatpush3.bf16.msra.mxu0 %v2237_v58  ;;  %v1773_v58 = vcombine.high %v52_v54, %v60_v55 }
  0x5d   :  { %2076 = vmatpush3.bf16.msra.mxu1 %v2238_v59  ;;  %2049 = vmatprep.subr.bf16.mxu0 %v2239_v60  ;;  %v53_v59 = vld [vmem:[%s2795_s0 + $0xb8] sm:$0xff] }
  0x5e   :  { %2077 = vmatprep.subr.bf16.mxu1 %v2240_v61  ;;  %v61_v60 = vld [vmem:[%s2795_s0 + $0xf8] sm:$0xff] }
  0x5f   :  { %v1775_v61 = vcombine.high %v53_v59, %v61_v60 }
  0x60   :  { %2050 = vmatpush3.bf16.msra.mxu0 %v2241_v62  ;;  %v1772_v62 = vcombine.low %v52_v54, %v60_v55 }
  0x61   :  { %2078 = vmatpush3.bf16.msra.mxu1 %v2242_v63  ;;  %2091 = vmatprep.subr.bf16.mxu0 %v2243_v8  ;;  %v1774_v63 = vcombine.low %v53_v59, %v61_v60 }
  0x62   :  { %2119 = vmatprep.subr.bf16.mxu1 %v2244_v9 }
  0x63   :  { %1475 = vmatmul.mubr.bf16.vlgmr.msra.gmra.mxu0 %v1752_v2 }
  0x64   :  { %1524 = vmatmul.mubr.bf16.vlgmr.msra.gmra.mxu1 %v1754_v6  ;;  %2092 = vmatpush3.bf16.msra.mxu0 %v2245_v10 }
  0x65   :  { %2120 = vmatpush3.bf16.msra.mxu1 %v2246_v11  ;;  %2093 = vmatprep.subr.bf16.mxu0 %v2247_v12 }
  0x66   :  { %2121 = vmatprep.subr.bf16.mxu1 %v2248_v13  ;;  %1482 = vmatprep.mubr.bf16.mxu0 %v1769_v18 }
  0x67   :  { %1531 = vmatprep.mubr.bf16.mxu1 %v1771_v24 }
  0x68   :  { %2094 = vmatpush3.bf16.msra.mxu0 %v2249_v14 }
  0x69   :  { %2122 = vmatpush3.bf16.msra.mxu1 %v2250_v15  ;;  %2095 = vmatprep.subr.bf16.mxu0 %v2251_v20 }
  0x6a   :  { %2123 = vmatprep.subr.bf16.mxu1 %v2252_v21 }
  0x6b   :  { %1483 = vmatmul.mubr.bf16.gmra.mxu0 %v1768_v19 }
  0x6c   :  { %2096 = vmatpush3.bf16.msra.mxu0 %v2253_v25  ;;  %1532 = vmatmul.mubr.bf16.gmra.mxu1 %v1770_v26 }
  0x6d   :  { %2124 = vmatpush3.bf16.msra.mxu1 %v2254_v27  ;;  %2097 = vmatprep.subr.bf16.mxu0 %v2255_v28 }
  0x6e   :  { %2125 = vmatprep.subr.bf16.mxu1 %v2256_v29  ;;  %1572 = vmatprep.mubr.bf16.mxu0 %v1757_v52 }
  0x6f   :  { %1621 = vmatprep.mubr.bf16.mxu1 %v1759_v57 }
  0x70   :  { %2098 = vmatpush3.bf16.msra.mxu0 %v2257_v30 }
  0x71   :  { %2126 = vmatpush3.bf16.msra.mxu1 %v2258_v31  ;;  %2099 = vmatprep.subr.bf16.mxu0 %v2259_v32 }
  0x72   :  { %2127 = vmatprep.subr.bf16.mxu1 %v2260_v33 }
  0x74   :  { %2100 = vmatpush3.bf16.msra.mxu0 %v2261_v34 }
  0x75   :  { %2128 = vmatpush3.bf16.msra.mxu1 %v2262_v35  ;;  %2101 = vmatprep.subr.bf16.mxu0 %v2263_v36 }
  0x76   :  { %2129 = vmatprep.subr.bf16.mxu1 %v2264_v37 }
  0x78   :  { %2102 = vmatpush3.bf16.msra.mxu0 %v2265_v38 }
  0x79   :  { %2130 = vmatpush3.bf16.msra.mxu1 %v2266_v39  ;;  %2103 = vmatprep.subr.bf16.mxu0 %v2267_v40 }
  0x7a   :  { %2131 = vmatprep.subr.bf16.mxu1 %v2268_v41 }
  0x7c   :  { %2104 = vmatpush3.bf16.msra.mxu0 %v2269_v42 }
  0x7d   :  { %2132 = vmatpush3.bf16.msra.mxu1 %v2270_v43  ;;  %2105 = vmatprep.subr.bf16.mxu0 %v2271_v44 }
  0x7e   :  { %2133 = vmatprep.subr.bf16.mxu1 %v2272_v45 }
  0x80   :  { %2106 = vmatpush3.bf16.msra.mxu0 %v2273_v46 }
  0x81   :  { %2134 = vmatpush3.bf16.msra.mxu1 %v2274_v47 }
  0x83   :  { %1573 = vmatmul.mubr.bf16.vlgmr.msra.gmra.mxu0 %v1756_v51 }
  0x84   :  { %1622 = vmatmul.mubr.bf16.vlgmr.msra.gmra.mxu1 %v1758_v56  ;;  %1580 = vmatprep.mubr.bf16.mxu0 %v1773_v58 }
  0x85   :  { %1629 = vmatprep.mubr.bf16.mxu1 %v1775_v61 }
  0x8b   :  { %1581 = vmatmul.mubr.bf16.gmra.mxu0 %v1772_v62 }
  0x8c   :  { %1630 = vmatmul.mubr.bf16.gmra.mxu1 %v1774_v63 }
  0xe3   :  { %v1939_v0 = vpop.f32.mrf.mxu0 }
  0xe4   :  { %v1967_v2 = vpop.f32.mrf.mxu1 }
  0xe5   :  { %v1940_v1 = vpop.f32.mrf.mxu0 }
  0xe6   :  { %v1968_v4 = vpop.f32.mrf.mxu1  ;;  %v1941_v42 = vadd.f32 %v1940_v1, %v1939_v0 }
  0xe7   :  { %v1942_v3 = vpop.f32.mrf.mxu0  ;;  %v1969_v43 = vadd.f32 %v1968_v4, %v1967_v2 }
  0xe8   :  { %v1970_v6 = vpop.f32.mrf.mxu1 }
  0xe9   :  { %v1943_v5 = vpop.f32.mrf.mxu0  ;;  %v1330_v50 = vadd.f32 %v1969_v43, %v1941_v42 }
  0xea   :  { %v1971_v8 = vpop.f32.mrf.mxu1  ;;  %v1944_v45 = vadd.f32 %v1943_v5, %v1942_v3 }
  0xeb   :  { %v1945_v7 = vpop.f32.mrf.mxu0  ;;  %v1972_v46 = vadd.f32 %v1971_v8, %v1970_v6 }
  0xec   :  { %v1973_v10 = vpop.f32.mrf.mxu1 }
  0xed   :  { %v1946_v9 = vpop.f32.mrf.mxu0  ;;  %v1333_v54 = vadd.f32 %v1972_v46, %v1944_v45 }
  0xee   :  { %v1974_v12 = vpop.f32.mrf.mxu1  ;;  %v1947_v51 = vadd.f32 %v1946_v9, %v1945_v7 }
  0xef   :  { %v1948_v11 = vpop.f32.mrf.mxu0  ;;  %v1975_v52 = vadd.f32 %v1974_v12, %v1973_v10 }
  0xf0   :  { %v1976_v14 = vpop.f32.mrf.mxu1 }
  0xf1   :  { %v1949_v13 = vpop.f32.mrf.mxu0  ;;  %v1338_v60 = vadd.f32 %v1975_v52, %v1947_v51 }
  0xf2   :  { %v1977_v16 = vpop.f32.mrf.mxu1  ;;  %v1950_v63 = vadd.f32 %v1949_v13, %v1948_v11 }
  0xf3   :  { %v1978_v0 = vadd.f32 %v1977_v16, %v1976_v14 }
 0x103   :  { %v1995_v15 = vpop.f32.mrf.mxu0 }
 0x104   :  { %v2023_v18 = vpop.f32.mrf.mxu1 }
 0x105   :  { %v1996_v17 = vpop.f32.mrf.mxu0 }
 0x106   :  { %v2024_v20 = vpop.f32.mrf.mxu1  ;;  %v1997_v48 = vadd.f32 %v1996_v17, %v1995_v15 }
 0x107   :  { %v1998_v19 = vpop.f32.mrf.mxu0  ;;  %v2025_v57 = vadd.f32 %v2024_v20, %v2023_v18 }
 0x108   :  { %v2026_v22 = vpop.f32.mrf.mxu1  ;;  %v1379_v56 = vadd.f32 %v1997_v48, %v1330_v50 }
 0x109   :  { %v1999_v21 = vpop.f32.mrf.mxu0 }
 0x10a   :  { %v2027_v24 = vpop.f32.mrf.mxu1  ;;  %v2000_v49 = vadd.f32 %v1999_v21, %v1998_v19  ;;  %v1428_v4 = vadd.f32 %v2025_v57, %v1379_v56  ;;  %v1341_v19 = vadd.f32 %v1978_v0, %v1950_v63 }
 0x10b   :  { %v2001_v23 = vpop.f32.mrf.mxu0  ;;  %v2028_v1 = vadd.f32 %v2027_v24, %v2026_v22 }
 0x10c   :  { %v2029_v25 = vpop.f32.mrf.mxu1  ;;  %v1382_v59 = vadd.f32 %v2000_v49, %v1333_v54 }
 0x10d   :  { %v2002_v26 = vpop.f32.mrf.mxu0 }
 0x10e   :  { %v2030_v27 = vpop.f32.mrf.mxu1  ;;  %v2003_v58 = vadd.f32 %v2002_v26, %v2001_v23  ;;  %v1431_v8 = vadd.f32 %v2028_v1, %v1382_v59 }
 0x10f   :  { %v2004_v28 = vpop.f32.mrf.mxu0  ;;  %v2031_v6 = vadd.f32 %v2030_v27, %v2029_v25 }
 0x110   :  { %v2032_v29 = vpop.f32.mrf.mxu1  ;;  %v1387_v5 = vadd.f32 %v2003_v58, %v1338_v60 }
 0x111   :  { %v2005_v30 = vpop.f32.mrf.mxu0 }
 0x112   :  { %v2033_v32 = vpop.f32.mrf.mxu1  ;;  %v2006_v9 = vadd.f32 %v2005_v30, %v2004_v28  ;;  %v1436_v23 = vadd.f32 %v2031_v6, %v1387_v5 }
 0x113   :  { %v2034_v16 = vadd.f32 %v2033_v32, %v2032_v29 }
 0x114   :  { %v1390_v14 = vadd.f32 %v2006_v9, %v1341_v19 }
 0x123   :  { %v2051_v31 = vpop.f32.mrf.mxu0 }
 0x124   :  { %v2079_v33 = vpop.f32.mrf.mxu1 }
 0x125   :  { %v2052_v34 = vpop.f32.mrf.mxu0 }
 0x126   :  { %v2080_v35 = vpop.f32.mrf.mxu1  ;;  %v2053_v61 = vadd.f32 %v2052_v34, %v2051_v31 }
 0x127   :  { %v2054_v36 = vpop.f32.mrf.mxu0  ;;  %v2081_v15 = vadd.f32 %v2080_v35, %v2079_v33 }
 0x128   :  { %v2082_v37 = vpop.f32.mrf.mxu1  ;;  %v1477_v12 = vadd.f32 %v2053_v61, %v1428_v4 }
 0x129   :  { %v2055_v38 = vpop.f32.mrf.mxu0 }
 0x12a   :  { %v2083_v39 = vpop.f32.mrf.mxu1  ;;  %v2056_v2 = vadd.f32 %v2055_v38, %v2054_v36  ;;  %v1526_v26 = vadd.f32 %v2081_v15, %v1477_v12  ;;  %v1439_v38 = vadd.f32 %v2034_v16, %v1390_v14 }
 0x12b   :  { %v2057_v40 = vpop.f32.mrf.mxu0  ;;  %v2084_v22 = vadd.f32 %v2083_v39, %v2082_v37 }
 0x12c   :  { %v2085_v41 = vpop.f32.mrf.mxu1  ;;  %v1480_v20 = vadd.f32 %v2056_v2, %v1431_v8 }
 0x12d   :  { %v2058_v44 = vpop.f32.mrf.mxu0 }
 0x12e   :  { %v2086_v47 = vpop.f32.mrf.mxu1  ;;  %v2059_v17 = vadd.f32 %v2058_v44, %v2057_v40  ;;  %v1529_v28 = vadd.f32 %v2084_v22, %v1480_v20 }
 0x12f   :  { %v2060_v53 = vpop.f32.mrf.mxu0  ;;  %v2087_v27 = vadd.f32 %v2086_v47, %v2085_v41 }
 0x130   :  { %v2088_v55 = vpop.f32.mrf.mxu1  ;;  %v1485_v25 = vadd.f32 %v2059_v17, %v1436_v23 }
 0x131   :  { %v2061_v62 = vpop.f32.mrf.mxu0 }
 0x132   :  { %v2089_v3 = vpop.f32.mrf.mxu1  ;;  %v2062_v30 = vadd.f32 %v2061_v62, %v2060_v53  ;;  %v1534_v44 = vadd.f32 %v2087_v27, %v1485_v25  ;;  %v1681_v25 = vld [vmem:[%s2796_s2] sm:$0x1] }
 0x133   :  { %v2090_v32 = vadd.f32 %v2089_v3, %v2088_v55 }
 0x134   :  { %v1488_v29 = vadd.f32 %v2062_v30, %v1439_v38  ;;  %v1685_v30 = vld [vmem:[%s2797_s3] sm:$0x1] }
 0x136   :  { %v1537_v53 = vadd.f32 %v2090_v32, %v1488_v29 }
 0x143   :  { %v2107_v7 = vpop.f32.mrf.mxu0 }
 0x144   :  { %v2135_v10 = vpop.f32.mrf.mxu1 }
 0x145   :  { %v2108_v18 = vpop.f32.mrf.mxu0 }
 0x146   :  { %v2136_v21 = vpop.f32.mrf.mxu1  ;;  %v2109_v11 = vadd.f32 %v2108_v18, %v2107_v7 }
 0x147   :  { %v2110_v13 = vpop.f32.mrf.mxu0  ;;  %v2137_v45 = vadd.f32 %v2136_v21, %v2135_v10 }
 0x148   :  { %v2138_v24 = vpop.f32.mrf.mxu1  ;;  %v1575_v35 = vadd.f32 %v2109_v11, %v1526_v26 }
 0x149   :  { %v2111_v31 = vpop.f32.mrf.mxu0 }
 0x14a   :  { %v2112_v34 = vadd.f32 %v2111_v31, %v2110_v13  ;;  %v2139_v33 = vpop.f32.mrf.mxu1  ;;  %v1624_v41 = vadd.f32 %v2137_v45, %v1575_v35 }
 0x14b   :  { %v2113_v36 = vpop.f32.mrf.mxu0  ;;  %v2140_v42 = vadd.f32 %v2139_v33, %v2138_v24  ;;  %v1689_v24 = vlaneseq }
 0x14c   :  { %v1578_v40 = vadd.f32 %v2112_v34, %v1529_v28  ;;  %v2141_v43 = vpop.f32.mrf.mxu1  ;;  %v1664_v59 = vmul.f32 %v1624_v41, %v1624_v41 }
 0x14d   :  { %v2114_v46 = vpop.f32.mrf.mxu0  ;;  %v1690_v26 = vshrl.u32 %v1689_v24, 7 }
 0x14e   :  { %v1627_v37 = vadd.f32 %v2140_v42, %v1578_v40  ;;  %v2115_v39 = vadd.f32 %v2114_v46, %v2113_v36  ;;  %v2142_v48 = vpop.f32.mrf.mxu1 }
 0x14f   :  { %v2116_v47 = vpop.f32.mrf.mxu0  ;;  %v2143_v50 = vadd.f32 %v2142_v48, %v2141_v43  ;;  %v1691_v27 = vsub.s32 0, %v1690_v26 }
 0x150   :  { %v1583_v49 = vadd.f32 %v2115_v39, %v1534_v44  ;;  %v2144_v51 = vpop.f32.mrf.mxu1  ;;  %v1665_v54 = vmul.f32 %v1627_v37, %v1627_v37  ;;  %v1653_v60 = vadd.f32 %v1627_v37, %v1624_v41 }
 0x151   :  { %v2117_v52 = vpop.f32.mrf.mxu0 }
 0x152   :  { %v1632_v56 = vadd.f32 %v2143_v50, %v1583_v49  ;;  %v2118_v57 = vadd.f32 %v2117_v52, %v2116_v47  ;;  %v2145_v58 = vpop.f32.mrf.mxu1  ;;  %v1668_v55 = vadd.f32 %v1665_v54, %v1664_v59 }
 0x153   :  { %v2146_v63 = vadd.f32 %v2145_v58, %v2144_v51 }
 0x154   :  { %v1666_v61 = vmul.f32 %v1632_v56, %v1632_v56  ;;  %v1586_v62 = vadd.f32 %v2118_v57, %v1537_v53  ;;  %v1654_v0 = vadd.f32 %v1653_v60, %v1632_v56 }
 0x156   :  { %v1635_v1 = vadd.f32 %v2146_v63, %v1586_v62  ;;  %v1669_v2 = vadd.f32 %v1668_v55, %v1666_v61 }
 0x158   :  { %v1655_v3 = vadd.f32 %v1654_v0, %v1635_v1  ;;  %v1667_v4 = vmul.f32 %v1635_v1, %v1635_v1 }
 0x15a   :  { %v1656_v5 = vrot.slane %v1655_v3, 4  ;;  %v1670_v6 = vadd.f32 %v1669_v2, %v1667_v4 }
 0x15c   :  { %v1657_v7 = vadd.f32 %v1656_v5, %v1655_v3  ;;  %v1671_v8 = vrot.slane %v1670_v6, 4 }
 0x15e   :  { %v1658_v9 = vrot.slane %v1657_v7, 2  ;;  %v1672_v10 = vadd.f32 %v1671_v8, %v1670_v6 }
 0x160   :  { %v1659_v12 = vadd.f32 %v1658_v9, %v1657_v7  ;;  %v1673_v15 = vrot.slane %v1672_v10, 2 }
 0x162   :  { %v1660_v17 = vrot.slane %v1659_v12, 1  ;;  %v1674_v18 = vadd.f32 %v1673_v15, %v1672_v10 }
 0x164   :  { %v1661_v19 = vadd.f32 %v1660_v17, %v1659_v12  ;;  %v1675_v20 = vrot.slane %v1674_v18, 1 }
 0x166   :  { %v1663_v21 = vmul.f32 0.03125, %v1661_v19  ;;  %v1676_v23 = vadd.f32 %v1675_v20, %v1674_v18 }
 0x168   :  { %v1677_v11 = vmul.f32 0.03125, %v1676_v23  ;;  %v1678_v13 = vmul.f32 %v1663_v21, %v1663_v21 }
 0x16a   :  { %v1679_v14 = vsub.f32 %v1677_v11, %v1678_v13 }
 0x16c   :  { %v1680_v16 = vmax.f32 %v1679_v14, 0.0 }
 0x16e   :  { %v1682_v22 = vadd.f32 1e-05, %v1680_v16 }
 0x170   :  { %2275 = vrsqrt.f32 %v1682_v22 }
 0x17d   :  { %v2276_v31 = vpop.eup %2275 }
 0x17e   :  { %v1684_v28 = vmul.f32 %v2276_v31, %v1681_v25 }
 0x180   :  { %v1686_v34 = vmul.f32 %v1684_v28, %v1663_v21  ;;  %v1692_v33 = vrot.slane %v1684_v28, %v1691_v27 }
 0x182   :  { %v1687_v35 = vsub.f32 %v1685_v30, %v1686_v34  ;;  %v1694_v36 = vmul.f32 %v1692_v33, %v1624_v41  ;;  %v1695_v38 = vmul.f32 %v1692_v33, %v1627_v37  ;;  %v1696_v40 = vmul.f32 %v1692_v33, %v1632_v56 }
 0x183   :  { %v1697_v42 = vmul.f32 %v1692_v33, %v1635_v1 }
 0x184   :  { %v1702_v43 = vrot.slane %v1687_v35, %v1691_v27 }
 0x186   :  { %v1704_v44 = vadd.f32 %v1702_v43, %v1694_v36  ;;  %v1705_v45 = vadd.f32 %v1702_v43, %v1695_v38  ;;  %v1706_v46 = vadd.f32 %v1702_v43, %v1696_v40  ;;  %v1707_v29 = vadd.f32 %v1702_v43, %v1697_v42 }
 0x188   :  { %vm1708_vm0 = vcmp.gt.f32.partialorder %v1704_v44, 0.0  ;;  %vm1709_vm1 = vcmp.gt.f32.partialorder %v1705_v45, 0.0  ;;  %vm1710_vm2 = vcmp.gt.f32.partialorder %v1706_v46, 0.0  ;;  %vm1711_vm3 = vcmp.gt.f32.partialorder %v1707_v29, 0.0 }
 0x189   :  { %v1712_v32 = vmul.f32 0.2, %v1704_v44  ;;  %v1713_v39 = vmul.f32 0.2, %v1705_v45  ;;  %v1714_v48 = vmul.f32 0.2, %v1706_v46 }
 0x18a   :  { %v1715_v47 = vmul.f32 0.2, %v1707_v29 }
 0x18b   :  { %v1716_v49 = vsel %vm1708_vm0, %v1704_v44, %v1712_v32  ;;  %v1717_v50 = vsel %vm1709_vm1, %v1705_v45, %v1713_v39  ;;  %v1718_v51 = vsel %vm1710_vm2, %v1706_v46, %v1714_v48 }
 0x18c   :  { %v1719_v41 = vsel %vm1711_vm3, %v1707_v29, %v1715_v47  ;;  %v1915_v37 = vpack.c.bf16 %v1717_v50, %v1716_v49 }
 0x18d   :  { %v1920_v52 = vpack.c.bf16 %v1719_v41, %v1718_v51 }
 0x18e   :  { %1916 = vst [vmem:[%s2798_s4] sm:$0xff] %v1915_v37  }
 0x18f   :  { %1922 = vst [vmem:[%s2798_s4 + $0x8] sm:$0xff] %v1920_v52  }

// kernel: discriminator_forward.13
= control target key start
LH: loop header
LB: loop body
LE: loop exit
PB: predicated region body
PF: predicated region fallthrough
CT: control target
= control target key end

     0   :  { %v990_v22 = vmov 1966171168   ;;  %v152_v24 = vlaneseq  ;;  %s1218_s1 = inlined_call_operand.vmem [shape: bf16[1024,128], index: 1, kind: input, shape index: {}]   ;;  %s1219_s0 = inlined_call_operand.vmem [shape: bf16[2,1024], index: 0, kind: input, shape index: {}]   ;;  %s1220_s2 = inlined_call_operand.vmem [shape: f32[2,128], index: 2, kind: output, shape index: {}]  }
   0x1   :  { %v921_v0 = vld [vmem:[%s1218_s1 + $0x78] sm:$0xff]   ;;  %v925_v4 = vld [vmem:[%s1218_s1 + $0x70] sm:$0xff]   ;;  %v929_v8 = vld [vmem:[%s1218_s1 + $0x68] sm:$0xff]   ;;  %v150_v23 = vunpack.c.l.s4 %v990_v22 }
   0x2   :  { %v922_v1 = vld [vmem:[%s1218_s1 + $0xf8] sm:$0xff]   ;;  %831 = vmatprep.subr.bf16.mxu0 %v921_v0  ;;  %v926_v5 = vld [vmem:[%s1218_s1 + $0xf0] sm:$0xff]   ;;  %v930_v9 = vld [vmem:[%s1218_s1 + $0xe8] sm:$0xff]   ;;  %v153_v30 = vshrl.u32 %v152_v24, 7 }
   0x3   :  { %v923_v2 = vld [vmem:[%s1218_s1 + $0x38] sm:$0xff]   ;;  %853 = vmatprep.subr.bf16.mxu1 %v922_v1  ;;  %v927_v6 = vld [vmem:[%s1218_s1 + $0x30] sm:$0xff]   ;;  %v931_v10 = vld [vmem:[%s1218_s1 + $0x28] sm:$0xff]   ;;  %v151_v29 = vunpack.c.0.s8 %v150_v23 }
   0x4   :  { %v924_v3 = vld [vmem:[%s1218_s1 + $0xb8] sm:$0xff]   ;;  %832 = vmatpush3.bf16.msra.mxu0 %v923_v2  ;;  %v928_v7 = vld [vmem:[%s1218_s1 + $0xb0] sm:$0xff]   ;;  %v932_v11 = vld [vmem:[%s1218_s1 + $0xa8] sm:$0xff]  }
   0x5   :  { %854 = vmatpush3.bf16.msra.mxu1 %v924_v3  ;;  %833 = vmatprep.subr.bf16.mxu0 %v925_v4  ;;  %v933_v12 = vld [vmem:[%s1218_s1 + $0x60] sm:$0xff]   ;;  %v937_v16 = vld [vmem:[%s1218_s1 + $0x58] sm:$0xff]   ;;  %v941_v20 = vld [vmem:[%s1218_s1 + $0x50] sm:$0xff]   ;;  %v1097_v35 = vsub.s32 %v151_v29, %v153_v30 }
   0x6   :  { %855 = vmatprep.subr.bf16.mxu1 %v926_v5  ;;  %v934_v13 = vld [vmem:[%s1218_s1 + $0xe0] sm:$0xff]   ;;  %v938_v17 = vld [vmem:[%s1218_s1 + $0xd8] sm:$0xff]   ;;  %v942_v21 = vld [vmem:[%s1218_s1 + $0xd0] sm:$0xff]  }
   0x7   :  { %v935_v14 = vld [vmem:[%s1218_s1 + $0x20] sm:$0xff]   ;;  %v939_v18 = vld [vmem:[%s1218_s1 + $0x18] sm:$0xff]   ;;  %v943_v25 = vld [vmem:[%s1218_s1 + $0x10] sm:$0xff]  }
   0x8   :  { %834 = vmatpush3.bf16.msra.mxu0 %v927_v6  ;;  %v936_v15 = vld [vmem:[%s1218_s1 + $0xa0] sm:$0xff]   ;;  %v940_v19 = vld [vmem:[%s1218_s1 + $0x98] sm:$0xff]   ;;  %v944_v26 = vld [vmem:[%s1218_s1 + $0x90] sm:$0xff]  }
   0x9   :  { %856 = vmatpush3.bf16.msra.mxu1 %v928_v7  ;;  %835 = vmatprep.subr.bf16.mxu0 %v929_v8  ;;  %v945_v27 = vld [vmem:[%s1218_s1 + $0x48] sm:$0xff]   ;;  %v949_v33 = vld [vmem:[%s1218_s1 + $0x40] sm:$0xff]   ;;  %v954_v41 = vld [vmem:[%s1218_s1 + $0x178] sm:$0xff]  }
   0xa   :  { %857 = vmatprep.subr.bf16.mxu1 %v930_v9  ;;  %v946_v28 = vld [vmem:[%s1218_s1 + $0xc8] sm:$0xff]   ;;  %v950_v34 = vld [vmem:[%s1218_s1 + $0xc0] sm:$0xff]   ;;  %v955_v42 = vld [vmem:[%s1218_s1 + $0x1f8] sm:$0xff]  }
   0xb   :  { %v947_v31 = vld [vmem:[%s1218_s1 + $0x8] sm:$0xff]   ;;  %v951_v36 = vld [vmem:[%s1218_s1] sm:$0xff]   ;;  %v956_v47 = vld [vmem:[%s1218_s1 + $0x138] sm:$0xff]  }
   0xc   :  { %836 = vmatpush3.bf16.msra.mxu0 %v931_v10  ;;  %v948_v32 = vld [vmem:[%s1218_s1 + $0x88] sm:$0xff]   ;;  %v952_v37 = vld [vmem:[%s1218_s1 + $0x80] sm:$0xff]   ;;  %v958_v50 = vld [vmem:[%s1218_s1 + $0x170] sm:$0xff]  }
   0xd   :  { %858 = vmatpush3.bf16.msra.mxu1 %v932_v11  ;;  %837 = vmatprep.subr.bf16.mxu0 %v933_v12  ;;  %v18_v38 = vld [vmem:[%s1219_s0] sm:$0xff]  ;;  %v957_v52 = vld [vmem:[%s1218_s1 + $0x1b8] sm:$0xff]   ;;  %v959_v54 = vld [vmem:[%s1218_s1 + $0x1f0] sm:$0xff]  }
   0xe   :  { %859 = vmatprep.subr.bf16.mxu1 %v934_v13  ;;  %v148_v39 = vcombine.high %v18_v38, %v18_v38  ;;  %v155_v40 = vrot.slane %v18_v38, %v1097_v35  ;;  %v960_v55 = vld [vmem:[%s1218_s1 + $0x130] sm:$0xff]   ;;  %v962_v57 = vld [vmem:[%s1218_s1 + $0x168] sm:$0xff]   ;;  %v966_v61 = vld [vmem:[%s1218_s1 + $0x160] sm:$0xff]  }
   0xf   :  { %v961_v58 = vld [vmem:[%s1218_s1 + $0x1b0] sm:$0xff]   ;;  %v963_v59 = vld [vmem:[%s1218_s1 + $0x1e8] sm:$0xff]   ;;  %v967_v63 = vld [vmem:[%s1218_s1 + $0x1e0] sm:$0xff]  }
  0x10   :  { %838 = vmatpush3.bf16.msra.mxu0 %v935_v14  ;;  %v163_v43 = vcombine.high %v155_v40, %v155_v40  ;;  %v171_v44 = vrot.slane %v155_v40, %v1097_v35  ;;  %v1117_v45 = vrot.slane %v148_v39, %v1097_v35  ;;  %v964_v60 = vld [vmem:[%s1218_s1 + $0x128] sm:$0xff]   ;;  %v968_v0 = vld [vmem:[%s1218_s1 + $0x120] sm:$0xff]   ;;  %v970_v1 = vld [vmem:[%s1218_s1 + $0x158] sm:$0xff]  }
  0x11   :  { %860 = vmatpush3.bf16.msra.mxu1 %v936_v15  ;;  %839 = vmatprep.subr.bf16.mxu0 %v937_v16  ;;  %v965_v62 = vld [vmem:[%s1218_s1 + $0x1a8] sm:$0xff]   ;;  %v969_v2 = vld [vmem:[%s1218_s1 + $0x1a0] sm:$0xff]   ;;  %v971_v3 = vld [vmem:[%s1218_s1 + $0x1d8] sm:$0xff]  }
  0x12   :  { %861 = vmatprep.subr.bf16.mxu1 %v938_v17  ;;  %v185_v46 = vrot.slane %v163_v43, %v1097_v35  ;;  %v164_v48 = vcombine.high %v1117_v45, %v1117_v45  ;;  %v193_v49 = vcombine.high %v171_v44, %v171_v44  ;;  %v972_v4 = vld [vmem:[%s1218_s1 + $0x118] sm:$0xff]   ;;  %v974_v5 = vld [vmem:[%s1218_s1 + $0x150] sm:$0xff]   ;;  %v978_v9 = vld [vmem:[%s1218_s1 + $0x148] sm:$0xff]   ;;  %v178_v17 = vrot.slane %v1117_v45, %v1097_v35 }
  0x13   :  { %v973_v6 = vld [vmem:[%s1218_s1 + $0x198] sm:$0xff]   ;;  %v975_v7 = vld [vmem:[%s1218_s1 + $0x1d0] sm:$0xff]   ;;  %v979_v11 = vld [vmem:[%s1218_s1 + $0x1c8] sm:$0xff]  }
  0x14   :  { %840 = vmatpush3.bf16.msra.mxu0 %v939_v18  ;;  %621 = vmatprep.mubr.bf16.mxu0 %v185_v46  ;;  %v195_v51 = vcombine.high %v185_v46, %v185_v46  ;;  %v192_v53 = vrot.slane %v164_v48, %v1097_v35  ;;  %v976_v8 = vld [vmem:[%s1218_s1 + $0x110] sm:$0xff]   ;;  %v980_v12 = vld [vmem:[%s1218_s1 + $0x108] sm:$0xff]   ;;  %v982_v13 = vld [vmem:[%s1218_s1 + $0x140] sm:$0xff]  }
  0x15   :  { %862 = vmatpush3.bf16.msra.mxu1 %v940_v19  ;;  %841 = vmatprep.subr.bf16.mxu0 %v941_v20  ;;  %v977_v10 = vld [vmem:[%s1218_s1 + $0x190] sm:$0xff]   ;;  %v981_v14 = vld [vmem:[%s1218_s1 + $0x188] sm:$0xff]   ;;  %v983_v15 = vld [vmem:[%s1218_s1 + $0x1c0] sm:$0xff]   ;;  %v194_v19 = vcombine.high %v178_v17, %v178_v17  ;;  %v991_v20 = vmov 0.0  }
  0x16   :  { %863 = vmatprep.subr.bf16.mxu1 %v942_v21  ;;  %661 = vmatprep.mubr.bf16.mxu1 %v195_v51  ;;  %v196_v56 = vcombine.high %v192_v53, %v192_v53  ;;  %v984_v16 = vld [vmem:[%s1218_s1 + $0x100] sm:$0xff]   ;;  %16 = vst [vmem:[#allocation2] sm:$0x3] %v991_v20 }
  0x17   :  { %v985_v18 = vld [vmem:[%s1218_s1 + $0x180] sm:$0xff]  }
  0x18   :  { %842 = vmatpush3.bf16.msra.mxu0 %v943_v25 }
  0x19   :  { %864 = vmatpush3.bf16.msra.mxu1 %v944_v26  ;;  %843 = vmatprep.subr.bf16.mxu0 %v945_v27 }
  0x1a   :  { %865 = vmatprep.subr.bf16.mxu1 %v946_v28 }
  0x1c   :  { %844 = vmatpush3.bf16.msra.mxu0 %v947_v31 }
  0x1d   :  { %866 = vmatpush3.bf16.msra.mxu1 %v948_v32  ;;  %845 = vmatprep.subr.bf16.mxu0 %v949_v33  ;;  %v17_v40 = vld [vmem:[#allocation2] sm:$0x3] }
  0x1e   :  { %867 = vmatprep.subr.bf16.mxu1 %v950_v34 }
  0x20   :  { %846 = vmatpush3.bf16.msra.mxu0 %v951_v36 }
  0x21   :  { %868 = vmatpush3.bf16.msra.mxu1 %v952_v37  ;;  %875 = vmatprep.subr.bf16.mxu0 %v954_v41 }
  0x22   :  { %897 = vmatprep.subr.bf16.mxu1 %v955_v42 }
  0x23   :  { %622 = vmatmul.mubr.bf16.vlgmr.msra.gmra.mxu0 %v171_v44 }
  0x24   :  { %876 = vmatpush3.bf16.msra.mxu0 %v956_v47  ;;  %662 = vmatmul.mubr.bf16.vlgmr.msra.gmra.mxu1 %v193_v49 }
  0x25   :  { %877 = vmatprep.subr.bf16.mxu0 %v958_v50  ;;  %898 = vmatpush3.bf16.msra.mxu1 %v957_v52 }
  0x26   :  { %701 = vmatprep.mubr.bf16.mxu0 %v192_v53  ;;  %899 = vmatprep.subr.bf16.mxu1 %v959_v54 }
  0x27   :  { %741 = vmatprep.mubr.bf16.mxu1 %v196_v56 }
  0x28   :  { %878 = vmatpush3.bf16.msra.mxu0 %v960_v55 }
  0x29   :  { %879 = vmatprep.subr.bf16.mxu0 %v962_v57  ;;  %900 = vmatpush3.bf16.msra.mxu1 %v961_v58 }
  0x2a   :  { %901 = vmatprep.subr.bf16.mxu1 %v963_v59 }
  0x2c   :  { %880 = vmatpush3.bf16.msra.mxu0 %v964_v60 }
  0x2d   :  { %881 = vmatprep.subr.bf16.mxu0 %v966_v61  ;;  %902 = vmatpush3.bf16.msra.mxu1 %v965_v62 }
  0x2e   :  { %903 = vmatprep.subr.bf16.mxu1 %v967_v63 }
  0x30   :  { %882 = vmatpush3.bf16.msra.mxu0 %v968_v0 }
  0x31   :  { %883 = vmatprep.subr.bf16.mxu0 %v970_v1  ;;  %904 = vmatpush3.bf16.msra.mxu1 %v969_v2 }
  0x32   :  { %905 = vmatprep.subr.bf16.mxu1 %v971_v3 }
  0x34   :  { %884 = vmatpush3.bf16.msra.mxu0 %v972_v4 }
  0x35   :  { %885 = vmatprep.subr.bf16.mxu0 %v974_v5  ;;  %906 = vmatpush3.bf16.msra.mxu1 %v973_v6 }
  0x36   :  { %907 = vmatprep.subr.bf16.mxu1 %v975_v7 }
  0x38   :  { %886 = vmatpush3.bf16.msra.mxu0 %v976_v8 }
  0x39   :  { %887 = vmatprep.subr.bf16.mxu0 %v978_v9  ;;  %908 = vmatpush3.bf16.msra.mxu1 %v977_v10 }
  0x3a   :  { %909 = vmatprep.subr.bf16.mxu1 %v979_v11 }
  0x3c   :  { %888 = vmatpush3.bf16.msra.mxu0 %v980_v12 }
  0x3d   :  { %889 = vmatprep.subr.bf16.mxu0 %v982_v13  ;;  %910 = vmatpush3.bf16.msra.mxu1 %v981_v14 }
  0x3e   :  { %911 = vmatprep.subr.bf16.mxu1 %v983_v15 }
  0x40   :  { %890 = vmatpush3.bf16.msra.mxu0 %v984_v16 }
  0x41   :  { %912 = vmatpush3.bf16.msra.mxu1 %v985_v18 }
  0x43   :  { %702 = vmatmul.mubr.bf16.vlgmr.msra.gmra.mxu0 %v178_v17 }
  0x44   :  { %742 = vmatmul.mubr.bf16.vlgmr.msra.gmra.mxu1 %v194_v19 }
  0xe3   :  { %v847_v21 = vpop.f32.mrf.mxu0 }
  0xe4   :  { %v869_v22 = vpop.f32.mrf.mxu1 }
  0xe5   :  { %v848_v23 = vpop.f32.mrf.mxu0 }
  0xe6   :  { %v870_v24 = vpop.f32.mrf.mxu1  ;;  %v849_v29 = vadd.f32 %v848_v23, %v847_v21 }
  0xe7   :  { %v850_v25 = vpop.f32.mrf.mxu0  ;;  %v871_v30 = vadd.f32 %v870_v24, %v869_v22 }
  0xe8   :  { %v872_v26 = vpop.f32.mrf.mxu1 }
  0xe9   :  { %v851_v27 = vpop.f32.mrf.mxu0  ;;  %v664_v34 = vadd.f32 %v871_v30, %v849_v29 }
  0xea   :  { %v873_v28 = vpop.f32.mrf.mxu1 }
 0x103   :  { %v891_v31 = vpop.f32.mrf.mxu0 }
 0x104   :  { %v913_v32 = vpop.f32.mrf.mxu1 }
 0x105   :  { %v892_v33 = vpop.f32.mrf.mxu0 }
 0x106   :  { %v893_v35 = vadd.f32 %v892_v33, %v891_v31  ;;  %v914_v36 = vpop.f32.mrf.mxu1 }
 0x107   :  { %v894_v37 = vpop.f32.mrf.mxu0  ;;  %v915_v39 = vadd.f32 %v914_v36, %v913_v32 }
 0x108   :  { %v704_v38 = vadd.f32 %v893_v35, %v664_v34  ;;  %v916_v41 = vpop.f32.mrf.mxu1 }
 0x109   :  { %v895_v42 = vpop.f32.mrf.mxu0 }
 0x10a   :  { %v744_v43 = vadd.f32 %v915_v39, %v704_v38  ;;  %v917_v44 = vpop.f32.mrf.mxu1 }
 0x10c   :  { %v749_v45 = vadd.f32 %v744_v43, %v17_v40 }
 0x10e   :  { %750 = vst [vmem:[#allocation2] sm:$0x3] %v749_v45 }
 0x115   :  { %v754_v46 = vld [vmem:[#allocation2] sm:$0x3] }
 0x116   :  { %v830_v47 = vmul.f32 -1.442695, %v754_v46 }
 0x118   :  { %986 = vpow2.f32 %v830_v47 }
 0x125   :  { %v987_v48 = vpop.eup %986 }
 0x126   :  { %v758_v49 = vadd.f32 1.0, %v987_v48 }
 0x128   :  { %988 = vrcp.f32 %v758_v49 }
 0x135   :  { %v989_v50 = vpop.eup %988 }
 0x136   :  { %761 = vst [vmem:[%s1220_s2] sm:$0x3] %v989_v50 }

// kernel: discriminator_forward.12
= control target key start
LH: loop header
LB: loop body
LE: loop exit
PB: predicated region body
PF: predicated region fallthrough
CT: control target
= control target key end

     0   :  { %s3486_s15 = smov 0   ;;  %s3488_s16 = smov 0   ;;  %s4264_s0 = inlined_call_operand.vmem [shape: bf16[8,2048], index: 0, kind: input, shape index: {}]   ;;  %s4265_s1 = inlined_call_operand.vmem [shape: bf16[2048,256], index: 1, kind: input, shape index: {}]   ;;  %s4266_s2 = inlined_call_operand.vmem [shape: f32[1,256], index: 2, kind: input, shape index: {}]   ;;  %s4267_s3 = inlined_call_operand.vmem [shape: f32[1,256], index: 3, kind: input, shape index: {}]   ;;  %s4268_s4 = inlined_call_operand.vmem [shape: bf16[8,256], index: 4, kind: output, shape index: {}]  }
   0x1   :  { %s3490_s17 = smov 0   ;;  %s3492_s18 = smov 0  }
   0x2   :  { %s3494_s19 = smov 0  }
   0x3 LB: > { %s29_s20 = sadd.s32 1, %s3455_s18  ;;  %p75_p1 = scmp.ne.s32.totalorder %s3447_s16, %s3443_s15  ;;  %s3459_s19 = sphi %s3494_s19, %s14_s19   ;;  %s3455_s18 = sphi %s3492_s18, %s4272_s18   ;;  %s3451_s17 = sphi %s3490_s17, %s4271_s17   ;;  %s3447_s16 = sphi %s3488_s16, %s4270_s16   ;;  %s3443_s15 = sphi %s3486_s15, %s4269_s15  }
   0x4   : > { %p31_p0 = scmp.ge.s32.totalorder %s29_s20, 2  ;;  %p76_p2 = scmp.eq.s32.totalorder %s3459_s19, 0 }
   0x5   : > { %s68_s22 = sadd.s32 1, %s3447_s16  ;;  %p2907_p5 = scmp.ge.s32.totalorder %s3459_s19, 2 }
   0x6   : > { %s4274_s20 = smov (%p31_p0, %s29_s20), 0  ;;  %p77_p3 = por %p76_p2, %p75_p1 }
   0x7   : > { %s64_s21 = ssub.s32 %s3455_s18, %s4274_s20  ;;  %188 = sbr.rel (%p2907_p5) target bundleno = 186 (0xba), region = 20 }
   0x8   : > { %p66_p4 = scmp.eq.s32.totalorder %s64_s21, 0 }
   0xa   : > { %s3521_s23 = scalar_select %p66_p4, %s3447_s16, %s68_s22  }
   0xc   : > { %191 = sbr.rel (!%p77_p3) target bundleno = 186 (0xba), region = 24  ;;  %s193_s24 = sand.u32 (%p77_p3), 1, %s3447_s16  }
   0xd   : > { %s2909_s25 = sshll.u32 (%p77_p3), %s3455_s18, 2  ;;  %s2908_s26 = sshll.u32 (%p77_p3), %s193_s24, 10 }
   0xe   : > { %s3529_s29 = scalar_lea.vmem (%p77_p3), %s4265_s1, %s2909_s25  ;;  %s3533_s30 = scalar_lea.vmem (%p77_p3), [#allocation3], %s2908_s26 }
   0xf   : > { %v217_v0 = vld [vmem:[%s3529_s29] sm:$0xf] (%p77_p3)  ;;  %v219_v1 = vld [vmem:[%s3529_s29 + $0x8] sm:$0xf] (%p77_p3)  ;;  %v221_v2 = vld [vmem:[%s3529_s29 + $0x10] sm:$0xf] (%p77_p3) }
  0x10   : > { %218 = vst [vmem:[%s3533_s30] sm:$0xf] (%p77_p3), %v217_v0  ;;  %220 = vst [vmem:[%s3533_s30 + $0x4] sm:$0xf] (%p77_p3), %v219_v1  ;;  %v223_v3 = vld [vmem:[%s3529_s29 + $0x18] sm:$0xf] (%p77_p3) }
  0x11   : > { %v225_v4 = vld [vmem:[%s3529_s29 + $0x20] sm:$0xf]  ;;  %222 = vst [vmem:[%s3533_s30 + $0x8] sm:$0xf] %v221_v2  ;;  %224 = vst [vmem:[%s3533_s30 + $0xc] sm:$0xf] %v223_v3 }
  0x12   : > { %226 = vst [vmem:[%s3533_s30 + $0x10] sm:$0xf] %v225_v4  ;;  %v227_v5 = vld [vmem:[%s3529_s29 + $0x28] sm:$0xf]  ;;  %v229_v6 = vld [vmem:[%s3529_s29 + $0x30] sm:$0xf] }
  0x13   : > { %v231_v7 = vld [vmem:[%s3529_s29 + $0x38] sm:$0xf]  ;;  %228 = vst [vmem:[%s3533_s30 + $0x14] sm:$0xf] %v227_v5  ;;  %230 = vst [vmem:[%s3533_s30 + $0x18] sm:$0xf] %v229_v6 }
  0x14   : > { %232 = vst [vmem:[%s3533_s30 + $0x1c] sm:$0xf] %v231_v7  ;;  %v233_v8 = vld [vmem:[%s3529_s29 + $0x40] sm:$0xf]  ;;  %v235_v9 = vld [vmem:[%s3529_s29 + $0x48] sm:$0xf] }
  0x15   : > { %v237_v10 = vld [vmem:[%s3529_s29 + $0x50] sm:$0xf]  ;;  %234 = vst [vmem:[%s3533_s30 + $0x20] sm:$0xf] %v233_v8  ;;  %236 = vst [vmem:[%s3533_s30 + $0x24] sm:$0xf] %v235_v9 }
  0x16   : > { %238 = vst [vmem:[%s3533_s30 + $0x28] sm:$0xf] %v237_v10  ;;  %v239_v11 = vld [vmem:[%s3529_s29 + $0x58] sm:$0xf]  ;;  %v241_v12 = vld [vmem:[%s3529_s29 + $0x60] sm:$0xf] }
  0x17   : > { %v243_v13 = vld [vmem:[%s3529_s29 + $0x68] sm:$0xf]  ;;  %240 = vst [vmem:[%s3533_s30 + $0x2c] sm:$0xf] %v239_v11  ;;  %242 = vst [vmem:[%s3533_s30 + $0x30] sm:$0xf] %v241_v12 }
  0x18   : > { %244 = vst [vmem:[%s3533_s30 + $0x34] sm:$0xf] %v243_v13  ;;  %v245_v14 = vld [vmem:[%s3529_s29 + $0x70] sm:$0xf]  ;;  %v247_v15 = vld [vmem:[%s3529_s29 + $0x78] sm:$0xf] }
  0x19   : > { %v249_v16 = vld [vmem:[%s3529_s29 + $0x80] sm:$0xf]  ;;  %246 = vst [vmem:[%s3533_s30 + $0x38] sm:$0xf] %v245_v14  ;;  %248 = vst [vmem:[%s3533_s30 + $0x3c] sm:$0xf] %v247_v15 }
  0x1a   : > { %250 = vst [vmem:[%s3533_s30 + $0x40] sm:$0xf] %v249_v16  ;;  %v251_v17 = vld [vmem:[%s3529_s29 + $0x88] sm:$0xf]  ;;  %v253_v18 = vld [vmem:[%s3529_s29 + $0x90] sm:$0xf] }
  0x1b   : > { %v255_v19 = vld [vmem:[%s3529_s29 + $0x98] sm:$0xf]  ;;  %252 = vst [vmem:[%s3533_s30 + $0x44] sm:$0xf] %v251_v17  ;;  %254 = vst [vmem:[%s3533_s30 + $0x48] sm:$0xf] %v253_v18 }
  0x1c   : > { %256 = vst [vmem:[%s3533_s30 + $0x4c] sm:$0xf] %v255_v19  ;;  %v257_v20 = vld [vmem:[%s3529_s29 + $0xa0] sm:$0xf]  ;;  %v259_v21 = vld [vmem:[%s3529_s29 + $0xa8] sm:$0xf] }
  0x1d   : > { %v261_v22 = vld [vmem:[%s3529_s29 + $0xb0] sm:$0xf]  ;;  %258 = vst [vmem:[%s3533_s30 + $0x50] sm:$0xf] %v257_v20  ;;  %260 = vst [vmem:[%s3533_s30 + $0x54] sm:$0xf] %v259_v21 }
  0x1e   : > { %262 = vst [vmem:[%s3533_s30 + $0x58] sm:$0xf] %v261_v22  ;;  %v263_v23 = vld [vmem:[%s3529_s29 + $0xb8] sm:$0xf]  ;;  %v265_v24 = vld [vmem:[%s3529_s29 + $0xc0] sm:$0xf] }
  0x1f   : > { %v267_v25 = vld [vmem:[%s3529_s29 + $0xc8] sm:$0xf]  ;;  %264 = vst [vmem:[%s3533_s30 + $0x5c] sm:$0xf] %v263_v23  ;;  %266 = vst [vmem:[%s3533_s30 + $0x60] sm:$0xf] %v265_v24 }
  0x20   : > { %268 = vst [vmem:[%s3533_s30 + $0x64] sm:$0xf] %v267_v25  ;;  %v269_v26 = vld [vmem:[%s3529_s29 + $0xd0] sm:$0xf]  ;;  %v271_v27 = vld [vmem:[%s3529_s29 + $0xd8] sm:$0xf] }
  0x21   : > { %v273_v28 = vld [vmem:[%s3529_s29 + $0xe0] sm:$0xf]  ;;  %270 = vst [vmem:[%s3533_s30 + $0x68] sm:$0xf] %v269_v26  ;;  %272 = vst [vmem:[%s3533_s30 + $0x6c] sm:$0xf] %v271_v27 }
  0x22   : > { %274 = vst [vmem:[%s3533_s30 + $0x70] sm:$0xf] %v273_v28  ;;  %v275_v29 = vld [vmem:[%s3529_s29 + $0xe8] sm:$0xf]  ;;  %v277_v30 = vld [vmem:[%s3529_s29 + $0xf0] sm:$0xf] }
  0x23   : > { %v279_v31 = vld [vmem:[%s3529_s29 + $0xf8] sm:$0xf]  ;;  %276 = vst [vmem:[%s3533_s30 + $0x74] sm:$0xf] %v275_v29  ;;  %278 = vst [vmem:[%s3533_s30 + $0x78] sm:$0xf] %v277_v30 }
  0x24   : > { %280 = vst [vmem:[%s3533_s30 + $0x7c] sm:$0xf] %v279_v31  ;;  %v281_v32 = vld [vmem:[%s3529_s29 + $0x100] sm:$0xf]  ;;  %v283_v33 = vld [vmem:[%s3529_s29 + $0x108] sm:$0xf] }
  0x25   : > { %v285_v34 = vld [vmem:[%s3529_s29 + $0x110] sm:$0xf]  ;;  %282 = vst [vmem:[%s3533_s30 + $0x80] sm:$0xf] %v281_v32  ;;  %284 = vst [vmem:[%s3533_s30 + $0x84] sm:$0xf] %v283_v33 }
  0x26   : > { %286 = vst [vmem:[%s3533_s30 + $0x88] sm:$0xf] %v285_v34  ;;  %v287_v35 = vld [vmem:[%s3529_s29 + $0x118] sm:$0xf]  ;;  %v289_v36 = vld [vmem:[%s3529_s29 + $0x120] sm:$0xf] }
  0x27   : > { %v291_v37 = vld [vmem:[%s3529_s29 + $0x128] sm:$0xf]  ;;  %288 = vst [vmem:[%s3533_s30 + $0x8c] sm:$0xf] %v287_v35  ;;  %290 = vst [vmem:[%s3533_s30 + $0x90] sm:$0xf] %v289_v36 }
  0x28   : > { %292 = vst [vmem:[%s3533_s30 + $0x94] sm:$0xf] %v291_v37  ;;  %v293_v38 = vld [vmem:[%s3529_s29 + $0x130] sm:$0xf]  ;;  %v295_v39 = vld [vmem:[%s3529_s29 + $0x138] sm:$0xf] }
  0x29   : > { %v297_v40 = vld [vmem:[%s3529_s29 + $0x140] sm:$0xf]  ;;  %294 = vst [vmem:[%s3533_s30 + $0x98] sm:$0xf] %v293_v38  ;;  %296 = vst [vmem:[%s3533_s30 + $0x9c] sm:$0xf] %v295_v39 }
  0x2a   : > { %298 = vst [vmem:[%s3533_s30 + $0xa0] sm:$0xf] %v297_v40  ;;  %v299_v41 = vld [vmem:[%s3529_s29 + $0x148] sm:$0xf]  ;;  %v301_v42 = vld [vmem:[%s3529_s29 + $0x150] sm:$0xf] }
  0x2b   : > { %v303_v43 = vld [vmem:[%s3529_s29 + $0x158] sm:$0xf]  ;;  %300 = vst [vmem:[%s3533_s30 + $0xa4] sm:$0xf] %v299_v41  ;;  %302 = vst [vmem:[%s3533_s30 + $0xa8] sm:$0xf] %v301_v42 }
  0x2c   : > { %304 = vst [vmem:[%s3533_s30 + $0xac] sm:$0xf] %v303_v43  ;;  %v305_v44 = vld [vmem:[%s3529_s29 + $0x160] sm:$0xf]  ;;  %v307_v45 = vld [vmem:[%s3529_s29 + $0x168] sm:$0xf] }
  0x2d   : > { %v309_v46 = vld [vmem:[%s3529_s29 + $0x170] sm:$0xf]  ;;  %306 = vst [vmem:[%s3533_s30 + $0xb0] sm:$0xf] %v305_v44  ;;  %308 = vst [vmem:[%s3533_s30 + $0xb4] sm:$0xf] %v307_v45 }
  0x2e   : > { %310 = vst [vmem:[%s3533_s30 + $0xb8] sm:$0xf] %v309_v46  ;;  %v311_v47 = vld [vmem:[%s3529_s29 + $0x178] sm:$0xf]  ;;  %v313_v48 = vld [vmem:[%s3529_s29 + $0x180] sm:$0xf] }
  0x2f   : > { %v315_v49 = vld [vmem:[%s3529_s29 + $0x188] sm:$0xf]  ;;  %312 = vst [vmem:[%s3533_s30 + $0xbc] sm:$0xf] %v311_v47  ;;  %314 = vst [vmem:[%s3533_s30 + $0xc0] sm:$0xf] %v313_v48 }
  0x30   : > { %316 = vst [vmem:[%s3533_s30 + $0xc4] sm:$0xf] %v315_v49  ;;  %v317_v50 = vld [vmem:[%s3529_s29 + $0x190] sm:$0xf]  ;;  %v319_v51 = vld [vmem:[%s3529_s29 + $0x198] sm:$0xf] }
  0x31   : > { %v321_v52 = vld [vmem:[%s3529_s29 + $0x1a0] sm:$0xf]  ;;  %318 = vst [vmem:[%s3533_s30 + $0xc8] sm:$0xf] %v317_v50  ;;  %320 = vst [vmem:[%s3533_s30 + $0xcc] sm:$0xf] %v319_v51 }
  0x32   : > { %322 = vst [vmem:[%s3533_s30 + $0xd0] sm:$0xf] %v321_v52  ;;  %v323_v53 = vld [vmem:[%s3529_s29 + $0x1a8] sm:$0xf]  ;;  %v325_v54 = vld [vmem:[%s3529_s29 + $0x1b0] sm:$0xf] }
  0x33   : > { %v327_v55 = vld [vmem:[%s3529_s29 + $0x1b8] sm:$0xf]  ;;  %324 = vst [vmem:[%s3533_s30 + $0xd4] sm:$0xf] %v323_v53  ;;  %326 = vst [vmem:[%s3533_s30 + $0xd8] sm:$0xf] %v325_v54 }
  0x34   : > { %328 = vst [vmem:[%s3533_s30 + $0xdc] sm:$0xf] %v327_v55  ;;  %v329_v56 = vld [vmem:[%s3529_s29 + $0x1c0] sm:$0xf]  ;;  %v331_v57 = vld [vmem:[%s3529_s29 + $0x1c8] sm:$0xf] }
  0x35   : > { %v333_v58 = vld [vmem:[%s3529_s29 + $0x1d0] sm:$0xf]  ;;  %330 = vst [vmem:[%s3533_s30 + $0xe0] sm:$0xf] %v329_v56  ;;  %332 = vst [vmem:[%s3533_s30 + $0xe4] sm:$0xf] %v331_v57 }
  0x36   : > { %334 = vst [vmem:[%s3533_s30 + $0xe8] sm:$0xf] %v333_v58  ;;  %v335_v59 = vld [vmem:[%s3529_s29 + $0x1d8] sm:$0xf]  ;;  %v337_v60 = vld [vmem:[%s3529_s29 + $0x1e0] sm:$0xf] }
  0x37   : > { %v339_v61 = vld [vmem:[%s3529_s29 + $0x1e8] sm:$0xf]  ;;  %336 = vst [vmem:[%s3533_s30 + $0xec] sm:$0xf] %v335_v59  ;;  %338 = vst [vmem:[%s3533_s30 + $0xf0] sm:$0xf] %v337_v60 }
  0x38   : > { %340 = vst [vmem:[%s3533_s30 + $0xf4] sm:$0xf] %v339_v61  ;;  %v341_v62 = vld [vmem:[%s3529_s29 + $0x1f0] sm:$0xf]  ;;  %v343_v63 = vld [vmem:[%s3529_s29 + $0x1f8] sm:$0xf] }
  0x39   : > { %v345_v0 = vld [vmem:[%s3529_s29 + $0x200] sm:$0xf]  ;;  %342 = vst [vmem:[%s3533_s30 + $0xf8] sm:$0xf] %v341_v62  ;;  %344 = vst [vmem:[%s3533_s30 + $0xfc] sm:$0xf] %v343_v63 }
  0x3a   : > { %346 = vst [vmem:[%s3533_s30 + $0x100] sm:$0xf] %v345_v0  ;;  %v347_v1 = vld [vmem:[%s3529_s29 + $0x208] sm:$0xf]  ;;  %v349_v2 = vld [vmem:[%s3529_s29 + $0x210] sm:$0xf] }
  0x3b   : > { %v351_v3 = vld [vmem:[%s3529_s29 + $0x218] sm:$0xf]  ;;  %348 = vst [vmem:[%s3533_s30 + $0x104] sm:$0xf] %v347_v1  ;;  %350 = vst [vmem:[%s3533_s30 + $0x108] sm:$0xf] %v349_v2 }
  0x3c   : > { %352 = vst [vmem:[%s3533_s30 + $0x10c] sm:$0xf] %v351_v3  ;;  %v353_v4 = vld [vmem:[%s3529_s29 + $0x220] sm:$0xf]  ;;  %v355_v5 = vld [vmem:[%s3529_s29 + $0x228] sm:$0xf] }
  0x3d   : > { %v357_v6 = vld [vmem:[%s3529_s29 + $0x230] sm:$0xf]  ;;  %354 = vst [vmem:[%s3533_s30 + $0x110] sm:$0xf] %v353_v4  ;;  %356 = vst [vmem:[%s3533_s30 + $0x114] sm:$0xf] %v355_v5 }
  0x3e   : > { %358 = vst [vmem:[%s3533_s30 + $0x118] sm:$0xf] %v357_v6  ;;  %v359_v7 = vld [vmem:[%s3529_s29 + $0x238] sm:$0xf]  ;;  %v361_v8 = vld [vmem:[%s3529_s29 + $0x240] sm:$0xf] }
  0x3f   : > { %v363_v9 = vld [vmem:[%s3529_s29 + $0x248] sm:$0xf]  ;;  %360 = vst [vmem:[%s3533_s30 + $0x11c] sm:$0xf] %v359_v7  ;;  %362 = vst [vmem:[%s3533_s30 + $0x120] sm:$0xf] %v361_v8 }
  0x40   : > { %364 = vst [vmem:[%s3533_s30 + $0x124] sm:$0xf] %v363_v9  ;;  %v365_v10 = vld [vmem:[%s3529_s29 + $0x250] sm:$0xf]  ;;  %v367_v11 = vld [vmem:[%s3529_s29 + $0x258] sm:$0xf] }
  0x41   : > { %v369_v12 = vld [vmem:[%s3529_s29 + $0x260] sm:$0xf]  ;;  %366 = vst [vmem:[%s3533_s30 + $0x128] sm:$0xf] %v365_v10  ;;  %368 = vst [vmem:[%s3533_s30 + $0x12c] sm:$0xf] %v367_v11 }
  0x42   : > { %370 = vst [vmem:[%s3533_s30 + $0x130] sm:$0xf] %v369_v12  ;;  %v371_v13 = vld [vmem:[%s3529_s29 + $0x268] sm:$0xf]  ;;  %v373_v14 = vld [vmem:[%s3529_s29 + $0x270] sm:$0xf] }
  0x43   : > { %v375_v15 = vld [vmem:[%s3529_s29 + $0x278] sm:$0xf]  ;;  %372 = vst [vmem:[%s3533_s30 + $0x134] sm:$0xf] %v371_v13  ;;  %374 = vst [vmem:[%s3533_s30 + $0x138] sm:$0xf] %v373_v14 }
  0x44   : > { %376 = vst [vmem:[%s3533_s30 + $0x13c] sm:$0xf] %v375_v15  ;;  %v377_v16 = vld [vmem:[%s3529_s29 + $0x280] sm:$0xf]  ;;  %v379_v17 = vld [vmem:[%s3529_s29 + $0x288] sm:$0xf] }
  0x45   : > { %v381_v18 = vld [vmem:[%s3529_s29 + $0x290] sm:$0xf]  ;;  %378 = vst [vmem:[%s3533_s30 + $0x140] sm:$0xf] %v377_v16  ;;  %380 = vst [vmem:[%s3533_s30 + $0x144] sm:$0xf] %v379_v17 }
  0x46   : > { %382 = vst [vmem:[%s3533_s30 + $0x148] sm:$0xf] %v381_v18  ;;  %v383_v19 = vld [vmem:[%s3529_s29 + $0x298] sm:$0xf]  ;;  %v385_v20 = vld [vmem:[%s3529_s29 + $0x2a0] sm:$0xf] }
  0x47   : > { %v387_v21 = vld [vmem:[%s3529_s29 + $0x2a8] sm:$0xf]  ;;  %384 = vst [vmem:[%s3533_s30 + $0x14c] sm:$0xf] %v383_v19  ;;  %386 = vst [vmem:[%s3533_s30 + $0x150] sm:$0xf] %v385_v20 }
  0x48   : > { %388 = vst [vmem:[%s3533_s30 + $0x154] sm:$0xf] %v387_v21  ;;  %v389_v22 = vld [vmem:[%s3529_s29 + $0x2b0] sm:$0xf]  ;;  %v391_v23 = vld [vmem:[%s3529_s29 + $0x2b8] sm:$0xf] }
  0x49   : > { %v393_v24 = vld [vmem:[%s3529_s29 + $0x2c0] sm:$0xf]  ;;  %390 = vst [vmem:[%s3533_s30 + $0x158] sm:$0xf] %v389_v22  ;;  %392 = vst [vmem:[%s3533_s30 + $0x15c] sm:$0xf] %v391_v23 }
  0x4a   : > { %394 = vst [vmem:[%s3533_s30 + $0x160] sm:$0xf] %v393_v24  ;;  %v395_v25 = vld [vmem:[%s3529_s29 + $0x2c8] sm:$0xf]  ;;  %v397_v26 = vld [vmem:[%s3529_s29 + $0x2d0] sm:$0xf] }
  0x4b   : > { %v399_v27 = vld [vmem:[%s3529_s29 + $0x2d8] sm:$0xf]  ;;  %396 = vst [vmem:[%s3533_s30 + $0x164] sm:$0xf] %v395_v25  ;;  %398 = vst [vmem:[%s3533_s30 + $0x168] sm:$0xf] %v397_v26 }
  0x4c   : > { %400 = vst [vmem:[%s3533_s30 + $0x16c] sm:$0xf] %v399_v27  ;;  %v401_v28 = vld [vmem:[%s3529_s29 + $0x2e0] sm:$0xf]  ;;  %v403_v29 = vld [vmem:[%s3529_s29 + $0x2e8] sm:$0xf] }
  0x4d   : > { %v405_v30 = vld [vmem:[%s3529_s29 + $0x2f0] sm:$0xf]  ;;  %402 = vst [vmem:[%s3533_s30 + $0x170] sm:$0xf] %v401_v28  ;;  %404 = vst [vmem:[%s3533_s30 + $0x174] sm:$0xf] %v403_v29 }
  0x4e   : > { %406 = vst [vmem:[%s3533_s30 + $0x178] sm:$0xf] %v405_v30  ;;  %v407_v31 = vld [vmem:[%s3529_s29 + $0x2f8] sm:$0xf]  ;;  %v409_v32 = vld [vmem:[%s3529_s29 + $0x300] sm:$0xf] }
  0x4f   : > { %v411_v33 = vld [vmem:[%s3529_s29 + $0x308] sm:$0xf]  ;;  %408 = vst [vmem:[%s3533_s30 + $0x17c] sm:$0xf] %v407_v31  ;;  %410 = vst [vmem:[%s3533_s30 + $0x180] sm:$0xf] %v409_v32 }
  0x50   : > { %412 = vst [vmem:[%s3533_s30 + $0x184] sm:$0xf] %v411_v33  ;;  %v413_v34 = vld [vmem:[%s3529_s29 + $0x310] sm:$0xf]  ;;  %v415_v35 = vld [vmem:[%s3529_s29 + $0x318] sm:$0xf] }
  0x51   : > { %v417_v36 = vld [vmem:[%s3529_s29 + $0x320] sm:$0xf]  ;;  %414 = vst [vmem:[%s3533_s30 + $0x188] sm:$0xf] %v413_v34  ;;  %416 = vst [vmem:[%s3533_s30 + $0x18c] sm:$0xf] %v415_v35 }
  0x52   : > { %418 = vst [vmem:[%s3533_s30 + $0x190] sm:$0xf] %v417_v36  ;;  %v419_v37 = vld [vmem:[%s3529_s29 + $0x328] sm:$0xf]  ;;  %v421_v38 = vld [vmem:[%s3529_s29 + $0x330] sm:$0xf] }
  0x53   : > { %v423_v39 = vld [vmem:[%s3529_s29 + $0x338] sm:$0xf]  ;;  %420 = vst [vmem:[%s3533_s30 + $0x194] sm:$0xf] %v419_v37  ;;  %422 = vst [vmem:[%s3533_s30 + $0x198] sm:$0xf] %v421_v38 }
  0x54   : > { %424 = vst [vmem:[%s3533_s30 + $0x19c] sm:$0xf] %v423_v39  ;;  %v425_v40 = vld [vmem:[%s3529_s29 + $0x340] sm:$0xf]  ;;  %v427_v41 = vld [vmem:[%s3529_s29 + $0x348] sm:$0xf] }
  0x55   : > { %v429_v42 = vld [vmem:[%s3529_s29 + $0x350] sm:$0xf]  ;;  %426 = vst [vmem:[%s3533_s30 + $0x1a0] sm:$0xf] %v425_v40  ;;  %428 = vst [vmem:[%s3533_s30 + $0x1a4] sm:$0xf] %v427_v41 }
  0x56   : > { %430 = vst [vmem:[%s3533_s30 + $0x1a8] sm:$0xf] %v429_v42  ;;  %v431_v43 = vld [vmem:[%s3529_s29 + $0x358] sm:$0xf]  ;;  %v433_v44 = vld [vmem:[%s3529_s29 + $0x360] sm:$0xf] }
  0x57   : > { %v435_v45 = vld [vmem:[%s3529_s29 + $0x368] sm:$0xf]  ;;  %432 = vst [vmem:[%s3533_s30 + $0x1ac] sm:$0xf] %v431_v43  ;;  %434 = vst [vmem:[%s3533_s30 + $0x1b0] sm:$0xf] %v433_v44 }
  0x58   : > { %436 = vst [vmem:[%s3533_s30 + $0x1b4] sm:$0xf] %v435_v45  ;;  %v437_v46 = vld [vmem:[%s3529_s29 + $0x370] sm:$0xf]  ;;  %v439_v47 = vld [vmem:[%s3529_s29 + $0x378] sm:$0xf] }
  0x59   : > { %v441_v48 = vld [vmem:[%s3529_s29 + $0x380] sm:$0xf]  ;;  %438 = vst [vmem:[%s3533_s30 + $0x1b8] sm:$0xf] %v437_v46  ;;  %440 = vst [vmem:[%s3533_s30 + $0x1bc] sm:$0xf] %v439_v47 }
  0x5a   : > { %442 = vst [vmem:[%s3533_s30 + $0x1c0] sm:$0xf] %v441_v48  ;;  %v443_v49 = vld [vmem:[%s3529_s29 + $0x388] sm:$0xf]  ;;  %v445_v50 = vld [vmem:[%s3529_s29 + $0x390] sm:$0xf] }
  0x5b   : > { %v447_v51 = vld [vmem:[%s3529_s29 + $0x398] sm:$0xf]  ;;  %444 = vst [vmem:[%s3533_s30 + $0x1c4] sm:$0xf] %v443_v49  ;;  %446 = vst [vmem:[%s3533_s30 + $0x1c8] sm:$0xf] %v445_v50 }
  0x5c   : > { %448 = vst [vmem:[%s3533_s30 + $0x1cc] sm:$0xf] %v447_v51  ;;  %v449_v52 = vld [vmem:[%s3529_s29 + $0x3a0] sm:$0xf]  ;;  %v451_v53 = vld [vmem:[%s3529_s29 + $0x3a8] sm:$0xf] }
  0x5d   : > { %v453_v54 = vld [vmem:[%s3529_s29 + $0x3b0] sm:$0xf]  ;;  %450 = vst [vmem:[%s3533_s30 + $0x1d0] sm:$0xf] %v449_v52  ;;  %452 = vst [vmem:[%s3533_s30 + $0x1d4] sm:$0xf] %v451_v53 }
  0x5e   : > { %454 = vst [vmem:[%s3533_s30 + $0x1d8] sm:$0xf] %v453_v54  ;;  %v455_v55 = vld [vmem:[%s3529_s29 + $0x3b8] sm:$0xf]  ;;  %v457_v56 = vld [vmem:[%s3529_s29 + $0x3c0] sm:$0xf] }
  0x5f   : > { %v459_v57 = vld [vmem:[%s3529_s29 + $0x3c8] sm:$0xf]  ;;  %456 = vst [vmem:[%s3533_s30 + $0x1dc] sm:$0xf] %v455_v55  ;;  %458 = vst [vmem:[%s3533_s30 + $0x1e0] sm:$0xf] %v457_v56 }
  0x60   : > { %460 = vst [vmem:[%s3533_s30 + $0x1e4] sm:$0xf] %v459_v57  ;;  %v461_v58 = vld [vmem:[%s3529_s29 + $0x3d0] sm:$0xf]  ;;  %v463_v59 = vld [vmem:[%s3529_s29 + $0x3d8] sm:$0xf] }
  0x61   : > { %v465_v60 = vld [vmem:[%s3529_s29 + $0x3e0] sm:$0xf]  ;;  %462 = vst [vmem:[%s3533_s30 + $0x1e8] sm:$0xf] %v461_v58  ;;  %464 = vst [vmem:[%s3533_s30 + $0x1ec] sm:$0xf] %v463_v59 }
  0x62   : > { %466 = vst [vmem:[%s3533_s30 + $0x1f0] sm:$0xf] %v465_v60  ;;  %v467_v61 = vld [vmem:[%s3529_s29 + $0x3e8] sm:$0xf]  ;;  %v469_v62 = vld [vmem:[%s3529_s29 + $0x3f0] sm:$0xf] }
  0x63   : > { %v471_v63 = vld [vmem:[%s3529_s29 + $0x3f8] sm:$0xf]  ;;  %468 = vst [vmem:[%s3533_s30 + $0x1f4] sm:$0xf] %v467_v61  ;;  %470 = vst [vmem:[%s3533_s30 + $0x1f8] sm:$0xf] %v469_v62 }
  0x64   : > { %472 = vst [vmem:[%s3533_s30 + $0x1fc] sm:$0xf] %v471_v63  ;;  %v473_v0 = vld [vmem:[%s3529_s29 + $0x400] sm:$0xf]  ;;  %v475_v1 = vld [vmem:[%s3529_s29 + $0x408] sm:$0xf] }
  0x65   : > { %v477_v2 = vld [vmem:[%s3529_s29 + $0x410] sm:$0xf]  ;;  %474 = vst [vmem:[%s3533_s30 + $0x200] sm:$0xf] %v473_v0  ;;  %476 = vst [vmem:[%s3533_s30 + $0x204] sm:$0xf] %v475_v1 }
  0x66   : > { %478 = vst [vmem:[%s3533_s30 + $0x208] sm:$0xf] %v477_v2  ;;  %v479_v3 = vld [vmem:[%s3529_s29 + $0x418] sm:$0xf]  ;;  %v481_v4 = vld [vmem:[%s3529_s29 + $0x420] sm:$0xf] }
  0x67   : > { %v483_v5 = vld [vmem:[%s3529_s29 + $0x428] sm:$0xf]  ;;  %480 = vst [vmem:[%s3533_s30 + $0x20c] sm:$0xf] %v479_v3  ;;  %482 = vst [vmem:[%s3533_s30 + $0x210] sm:$0xf] %v481_v4 }
  0x68   : > { %484 = vst [vmem:[%s3533_s30 + $0x214] sm:$0xf] %v483_v5  ;;  %v485_v6 = vld [vmem:[%s3529_s29 + $0x430] sm:$0xf]  ;;  %v487_v7 = vld [vmem:[%s3529_s29 + $0x438] sm:$0xf] }
  0x69   : > { %v489_v8 = vld [vmem:[%s3529_s29 + $0x440] sm:$0xf]  ;;  %486 = vst [vmem:[%s3533_s30 + $0x218] sm:$0xf] %v485_v6  ;;  %488 = vst [vmem:[%s3533_s30 + $0x21c] sm:$0xf] %v487_v7 }
  0x6a   : > { %490 = vst [vmem:[%s3533_s30 + $0x220] sm:$0xf] %v489_v8  ;;  %v491_v9 = vld [vmem:[%s3529_s29 + $0x448] sm:$0xf]  ;;  %v493_v10 = vld [vmem:[%s3529_s29 + $0x450] sm:$0xf] }
  0x6b   : > { %v495_v11 = vld [vmem:[%s3529_s29 + $0x458] sm:$0xf]  ;;  %492 = vst [vmem:[%s3533_s30 + $0x224] sm:$0xf] %v491_v9  ;;  %494 = vst [vmem:[%s3533_s30 + $0x228] sm:$0xf] %v493_v10 }
  0x6c   : > { %496 = vst [vmem:[%s3533_s30 + $0x22c] sm:$0xf] %v495_v11  ;;  %v497_v12 = vld [vmem:[%s3529_s29 + $0x460] sm:$0xf]  ;;  %v499_v13 = vld [vmem:[%s3529_s29 + $0x468] sm:$0xf] }
  0x6d   : > { %v501_v14 = vld [vmem:[%s3529_s29 + $0x470] sm:$0xf]  ;;  %498 = vst [vmem:[%s3533_s30 + $0x230] sm:$0xf] %v497_v12  ;;  %500 = vst [vmem:[%s3533_s30 + $0x234] sm:$0xf] %v499_v13 }
  0x6e   : > { %502 = vst [vmem:[%s3533_s30 + $0x238] sm:$0xf] %v501_v14  ;;  %v503_v15 = vld [vmem:[%s3529_s29 + $0x478] sm:$0xf]  ;;  %v505_v16 = vld [vmem:[%s3529_s29 + $0x480] sm:$0xf] }
  0x6f   : > { %v507_v17 = vld [vmem:[%s3529_s29 + $0x488] sm:$0xf]  ;;  %504 = vst [vmem:[%s3533_s30 + $0x23c] sm:$0xf] %v503_v15  ;;  %506 = vst [vmem:[%s3533_s30 + $0x240] sm:$0xf] %v505_v16 }
  0x70   : > { %508 = vst [vmem:[%s3533_s30 + $0x244] sm:$0xf] %v507_v17  ;;  %v509_v18 = vld [vmem:[%s3529_s29 + $0x490] sm:$0xf]  ;;  %v511_v19 = vld [vmem:[%s3529_s29 + $0x498] sm:$0xf] }
  0x71   : > { %v513_v20 = vld [vmem:[%s3529_s29 + $0x4a0] sm:$0xf]  ;;  %510 = vst [vmem:[%s3533_s30 + $0x248] sm:$0xf] %v509_v18  ;;  %512 = vst [vmem:[%s3533_s30 + $0x24c] sm:$0xf] %v511_v19 }
  0x72   : > { %514 = vst [vmem:[%s3533_s30 + $0x250] sm:$0xf] %v513_v20  ;;  %v515_v21 = vld [vmem:[%s3529_s29 + $0x4a8] sm:$0xf]  ;;  %v517_v22 = vld [vmem:[%s3529_s29 + $0x4b0] sm:$0xf] }
  0x73   : > { %v519_v23 = vld [vmem:[%s3529_s29 + $0x4b8] sm:$0xf]  ;;  %516 = vst [vmem:[%s3533_s30 + $0x254] sm:$0xf] %v515_v21  ;;  %518 = vst [vmem:[%s3533_s30 + $0x258] sm:$0xf] %v517_v22 }
  0x74   : > { %520 = vst [vmem:[%s3533_s30 + $0x25c] sm:$0xf] %v519_v23  ;;  %v521_v24 = vld [vmem:[%s3529_s29 + $0x4c0] sm:$0xf]  ;;  %v523_v25 = vld [vmem:[%s3529_s29 + $0x4c8] sm:$0xf] }
  0x75   : > { %v525_v26 = vld [vmem:[%s3529_s29 + $0x4d0] sm:$0xf]  ;;  %522 = vst [vmem:[%s3533_s30 + $0x260] sm:$0xf] %v521_v24  ;;  %524 = vst [vmem:[%s3533_s30 + $0x264] sm:$0xf] %v523_v25 }
  0x76   : > { %526 = vst [vmem:[%s3533_s30 + $0x268] sm:$0xf] %v525_v26  ;;  %v527_v27 = vld [vmem:[%s3529_s29 + $0x4d8] sm:$0xf]  ;;  %v529_v28 = vld [vmem:[%s3529_s29 + $0x4e0] sm:$0xf] }
  0x77   : > { %v531_v29 = vld [vmem:[%s3529_s29 + $0x4e8] sm:$0xf]  ;;  %528 = vst [vmem:[%s3533_s30 + $0x26c] sm:$0xf] %v527_v27  ;;  %530 = vst [vmem:[%s3533_s30 + $0x270] sm:$0xf] %v529_v28 }
  0x78   : > { %532 = vst [vmem:[%s3533_s30 + $0x274] sm:$0xf] %v531_v29  ;;  %v533_v30 = vld [vmem:[%s3529_s29 + $0x4f0] sm:$0xf]  ;;  %v535_v31 = vld [vmem:[%s3529_s29 + $0x4f8] sm:$0xf] }
  0x79   : > { %v537_v32 = vld [vmem:[%s3529_s29 + $0x500] sm:$0xf]  ;;  %534 = vst [vmem:[%s3533_s30 + $0x278] sm:$0xf] %v533_v30  ;;  %536 = vst [vmem:[%s3533_s30 + $0x27c] sm:$0xf] %v535_v31 }
  0x7a   : > { %538 = vst [vmem:[%s3533_s30 + $0x280] sm:$0xf] %v537_v32  ;;  %v539_v33 = vld [vmem:[%s3529_s29 + $0x508] sm:$0xf]  ;;  %v541_v34 = vld [vmem:[%s3529_s29 + $0x510] sm:$0xf] }
  0x7b   : > { %v543_v35 = vld [vmem:[%s3529_s29 + $0x518] sm:$0xf]  ;;  %540 = vst [vmem:[%s3533_s30 + $0x284] sm:$0xf] %v539_v33  ;;  %542 = vst [vmem:[%s3533_s30 + $0x288] sm:$0xf] %v541_v34 }
  0x7c   : > { %544 = vst [vmem:[%s3533_s30 + $0x28c] sm:$0xf] %v543_v35  ;;  %v545_v36 = vld [vmem:[%s3529_s29 + $0x520] sm:$0xf]  ;;  %v547_v37 = vld [vmem:[%s3529_s29 + $0x528] sm:$0xf] }
  0x7d   : > { %v549_v38 = vld [vmem:[%s3529_s29 + $0x530] sm:$0xf]  ;;  %546 = vst [vmem:[%s3533_s30 + $0x290] sm:$0xf] %v545_v36  ;;  %548 = vst [vmem:[%s3533_s30 + $0x294] sm:$0xf] %v547_v37 }
  0x7e   : > { %550 = vst [vmem:[%s3533_s30 + $0x298] sm:$0xf] %v549_v38  ;;  %v551_v39 = vld [vmem:[%s3529_s29 + $0x538] sm:$0xf]  ;;  %v553_v40 = vld [vmem:[%s3529_s29 + $0x540] sm:$0xf] }
  0x7f   : > { %v555_v41 = vld [vmem:[%s3529_s29 + $0x548] sm:$0xf]  ;;  %552 = vst [vmem:[%s3533_s30 + $0x29c] sm:$0xf] %v551_v39  ;;  %554 = vst [vmem:[%s3533_s30 + $0x2a0] sm:$0xf] %v553_v40 }
  0x80   : > { %556 = vst [vmem:[%s3533_s30 + $0x2a4] sm:$0xf] %v555_v41  ;;  %v557_v42 = vld [vmem:[%s3529_s29 + $0x550] sm:$0xf]  ;;  %v559_v43 = vld [vmem:[%s3529_s29 + $0x558] sm:$0xf] }
  0x81   : > { %v561_v44 = vld [vmem:[%s3529_s29 + $0x560] sm:$0xf]  ;;  %558 = vst [vmem:[%s3533_s30 + $0x2a8] sm:$0xf] %v557_v42  ;;  %560 = vst [vmem:[%s3533_s30 + $0x2ac] sm:$0xf] %v559_v43 }
  0x82   : > { %562 = vst [vmem:[%s3533_s30 + $0x2b0] sm:$0xf] %v561_v44  ;;  %v563_v45 = vld [vmem:[%s3529_s29 + $0x568] sm:$0xf]  ;;  %v565_v46 = vld [vmem:[%s3529_s29 + $0x570] sm:$0xf] }
  0x83   : > { %v567_v47 = vld [vmem:[%s3529_s29 + $0x578] sm:$0xf]  ;;  %564 = vst [vmem:[%s3533_s30 + $0x2b4] sm:$0xf] %v563_v45  ;;  %566 = vst [vmem:[%s3533_s30 + $0x2b8] sm:$0xf] %v565_v46 }
  0x84   : > { %568 = vst [vmem:[%s3533_s30 + $0x2bc] sm:$0xf] %v567_v47  ;;  %v569_v48 = vld [vmem:[%s3529_s29 + $0x580] sm:$0xf]  ;;  %v571_v49 = vld [vmem:[%s3529_s29 + $0x588] sm:$0xf] }
  0x85   : > { %v573_v50 = vld [vmem:[%s3529_s29 + $0x590] sm:$0xf]  ;;  %570 = vst [vmem:[%s3533_s30 + $0x2c0] sm:$0xf] %v569_v48  ;;  %572 = vst [vmem:[%s3533_s30 + $0x2c4] sm:$0xf] %v571_v49 }
  0x86   : > { %574 = vst [vmem:[%s3533_s30 + $0x2c8] sm:$0xf] %v573_v50  ;;  %v575_v51 = vld [vmem:[%s3529_s29 + $0x598] sm:$0xf]  ;;  %v577_v52 = vld [vmem:[%s3529_s29 + $0x5a0] sm:$0xf] }
  0x87   : > { %v579_v53 = vld [vmem:[%s3529_s29 + $0x5a8] sm:$0xf]  ;;  %576 = vst [vmem:[%s3533_s30 + $0x2cc] sm:$0xf] %v575_v51  ;;  %578 = vst [vmem:[%s3533_s30 + $0x2d0] sm:$0xf] %v577_v52 }
  0x88   : > { %580 = vst [vmem:[%s3533_s30 + $0x2d4] sm:$0xf] %v579_v53  ;;  %v581_v54 = vld [vmem:[%s3529_s29 + $0x5b0] sm:$0xf]  ;;  %v583_v55 = vld [vmem:[%s3529_s29 + $0x5b8] sm:$0xf] }
  0x89   : > { %v585_v56 = vld [vmem:[%s3529_s29 + $0x5c0] sm:$0xf]  ;;  %582 = vst [vmem:[%s3533_s30 + $0x2d8] sm:$0xf] %v581_v54  ;;  %584 = vst [vmem:[%s3533_s30 + $0x2dc] sm:$0xf] %v583_v55 }
  0x8a   : > { %586 = vst [vmem:[%s3533_s30 + $0x2e0] sm:$0xf] %v585_v56  ;;  %v587_v57 = vld [vmem:[%s3529_s29 + $0x5c8] sm:$0xf]  ;;  %v589_v58 = vld [vmem:[%s3529_s29 + $0x5d0] sm:$0xf] }
  0x8b   : > { %v591_v59 = vld [vmem:[%s3529_s29 + $0x5d8] sm:$0xf]  ;;  %588 = vst [vmem:[%s3533_s30 + $0x2e4] sm:$0xf] %v587_v57  ;;  %590 = vst [vmem:[%s3533_s30 + $0x2e8] sm:$0xf] %v589_v58 }
  0x8c   : > { %592 = vst [vmem:[%s3533_s30 + $0x2ec] sm:$0xf] %v591_v59  ;;  %v593_v60 = vld [vmem:[%s3529_s29 + $0x5e0] sm:$0xf]  ;;  %v595_v61 = vld [vmem:[%s3529_s29 + $0x5e8] sm:$0xf] }
  0x8d   : > { %v597_v62 = vld [vmem:[%s3529_s29 + $0x5f0] sm:$0xf]  ;;  %594 = vst [vmem:[%s3533_s30 + $0x2f0] sm:$0xf] %v593_v60  ;;  %596 = vst [vmem:[%s3533_s30 + $0x2f4] sm:$0xf] %v595_v61 }
  0x8e   : > { %598 = vst [vmem:[%s3533_s30 + $0x2f8] sm:$0xf] %v597_v62  ;;  %v599_v63 = vld [vmem:[%s3529_s29 + $0x5f8] sm:$0xf]  ;;  %v601_v0 = vld [vmem:[%s3529_s29 + $0x600] sm:$0xf] }
  0x8f   : > { %v603_v1 = vld [vmem:[%s3529_s29 + $0x608] sm:$0xf]  ;;  %600 = vst [vmem:[%s3533_s30 + $0x2fc] sm:$0xf] %v599_v63  ;;  %602 = vst [vmem:[%s3533_s30 + $0x300] sm:$0xf] %v601_v0 }
  0x90   : > { %604 = vst [vmem:[%s3533_s30 + $0x304] sm:$0xf] %v603_v1  ;;  %v605_v2 = vld [vmem:[%s3529_s29 + $0x610] sm:$0xf]  ;;  %v607_v3 = vld [vmem:[%s3529_s29 + $0x618] sm:$0xf] }
  0x91   : > { %v609_v4 = vld [vmem:[%s3529_s29 + $0x620] sm:$0xf]  ;;  %606 = vst [vmem:[%s3533_s30 + $0x308] sm:$0xf] %v605_v2  ;;  %608 = vst [vmem:[%s3533_s30 + $0x30c] sm:$0xf] %v607_v3 }
  0x92   : > { %610 = vst [vmem:[%s3533_s30 + $0x310] sm:$0xf] %v609_v4  ;;  %v611_v5 = vld [vmem:[%s3529_s29 + $0x628] sm:$0xf]  ;;  %v613_v6 = vld [vmem:[%s3529_s29 + $0x630] sm:$0xf] }
  0x93   : > { %v615_v7 = vld [vmem:[%s3529_s29 + $0x638] sm:$0xf]  ;;  %612 = vst [vmem:[%s3533_s30 + $0x314] sm:$0xf] %v611_v5  ;;  %614 = vst [vmem:[%s3533_s30 + $0x318] sm:$0xf] %v613_v6 }
  0x94   : > { %616 = vst [vmem:[%s3533_s30 + $0x31c] sm:$0xf] %v615_v7  ;;  %v617_v8 = vld [vmem:[%s3529_s29 + $0x640] sm:$0xf]  ;;  %v619_v9 = vld [vmem:[%s3529_s29 + $0x648] sm:$0xf] }
  0x95   : > { %v621_v10 = vld [vmem:[%s3529_s29 + $0x650] sm:$0xf]  ;;  %618 = vst [vmem:[%s3533_s30 + $0x320] sm:$0xf] %v617_v8  ;;  %620 = vst [vmem:[%s3533_s30 + $0x324] sm:$0xf] %v619_v9 }
  0x96   : > { %622 = vst [vmem:[%s3533_s30 + $0x328] sm:$0xf] %v621_v10  ;;  %v623_v11 = vld [vmem:[%s3529_s29 + $0x658] sm:$0xf]  ;;  %v625_v12 = vld [vmem:[%s3529_s29 + $0x660] sm:$0xf] }
  0x97   : > { %v627_v13 = vld [vmem:[%s3529_s29 + $0x668] sm:$0xf]  ;;  %624 = vst [vmem:[%s3533_s30 + $0x32c] sm:$0xf] %v623_v11  ;;  %626 = vst [vmem:[%s3533_s30 + $0x330] sm:$0xf] %v625_v12 }
  0x98   : > { %628 = vst [vmem:[%s3533_s30 + $0x334] sm:$0xf] %v627_v13  ;;  %v629_v14 = vld [vmem:[%s3529_s29 + $0x670] sm:$0xf]  ;;  %v631_v15 = vld [vmem:[%s3529_s29 + $0x678] sm:$0xf] }
  0x99   : > { %v633_v16 = vld [vmem:[%s3529_s29 + $0x680] sm:$0xf]  ;;  %630 = vst [vmem:[%s3533_s30 + $0x338] sm:$0xf] %v629_v14  ;;  %632 = vst [vmem:[%s3533_s30 + $0x33c] sm:$0xf] %v631_v15 }
  0x9a   : > { %634 = vst [vmem:[%s3533_s30 + $0x340] sm:$0xf] %v633_v16  ;;  %v635_v17 = vld [vmem:[%s3529_s29 + $0x688] sm:$0xf]  ;;  %v637_v18 = vld [vmem:[%s3529_s29 + $0x690] sm:$0xf] }
  0x9b   : > { %v639_v19 = vld [vmem:[%s3529_s29 + $0x698] sm:$0xf]  ;;  %636 = vst [vmem:[%s3533_s30 + $0x344] sm:$0xf] %v635_v17  ;;  %638 = vst [vmem:[%s3533_s30 + $0x348] sm:$0xf] %v637_v18 }
  0x9c   : > { %640 = vst [vmem:[%s3533_s30 + $0x34c] sm:$0xf] %v639_v19  ;;  %v641_v20 = vld [vmem:[%s3529_s29 + $0x6a0] sm:$0xf]  ;;  %v643_v21 = vld [vmem:[%s3529_s29 + $0x6a8] sm:$0xf] }
  0x9d   : > { %v645_v22 = vld [vmem:[%s3529_s29 + $0x6b0] sm:$0xf]  ;;  %642 = vst [vmem:[%s3533_s30 + $0x350] sm:$0xf] %v641_v20  ;;  %644 = vst [vmem:[%s3533_s30 + $0x354] sm:$0xf] %v643_v21 }
  0x9e   : > { %646 = vst [vmem:[%s3533_s30 + $0x358] sm:$0xf] %v645_v22  ;;  %v647_v23 = vld [vmem:[%s3529_s29 + $0x6b8] sm:$0xf]  ;;  %v649_v24 = vld [vmem:[%s3529_s29 + $0x6c0] sm:$0xf] }
  0x9f   : > { %v651_v25 = vld [vmem:[%s3529_s29 + $0x6c8] sm:$0xf]  ;;  %648 = vst [vmem:[%s3533_s30 + $0x35c] sm:$0xf] %v647_v23  ;;  %650 = vst [vmem:[%s3533_s30 + $0x360] sm:$0xf] %v649_v24 }
  0xa0   : > { %652 = vst [vmem:[%s3533_s30 + $0x364] sm:$0xf] %v651_v25  ;;  %v653_v26 = vld [vmem:[%s3529_s29 + $0x6d0] sm:$0xf]  ;;  %v655_v27 = vld [vmem:[%s3529_s29 + $0x6d8] sm:$0xf] }
  0xa1   : > { %v657_v28 = vld [vmem:[%s3529_s29 + $0x6e0] sm:$0xf]  ;;  %654 = vst [vmem:[%s3533_s30 + $0x368] sm:$0xf] %v653_v26  ;;  %656 = vst [vmem:[%s3533_s30 + $0x36c] sm:$0xf] %v655_v27 }
  0xa2   : > { %658 = vst [vmem:[%s3533_s30 + $0x370] sm:$0xf] %v657_v28  ;;  %v659_v29 = vld [vmem:[%s3529_s29 + $0x6e8] sm:$0xf]  ;;  %v661_v30 = vld [vmem:[%s3529_s29 + $0x6f0] sm:$0xf] }
  0xa3   : > { %v663_v31 = vld [vmem:[%s3529_s29 + $0x6f8] sm:$0xf]  ;;  %660 = vst [vmem:[%s3533_s30 + $0x374] sm:$0xf] %v659_v29  ;;  %662 = vst [vmem:[%s3533_s30 + $0x378] sm:$0xf] %v661_v30 }
  0xa4   : > { %664 = vst [vmem:[%s3533_s30 + $0x37c] sm:$0xf] %v663_v31  ;;  %v665_v32 = vld [vmem:[%s3529_s29 + $0x700] sm:$0xf]  ;;  %v667_v33 = vld [vmem:[%s3529_s29 + $0x708] sm:$0xf] }
  0xa5   : > { %v669_v34 = vld [vmem:[%s3529_s29 + $0x710] sm:$0xf]  ;;  %666 = vst [vmem:[%s3533_s30 + $0x380] sm:$0xf] %v665_v32  ;;  %668 = vst [vmem:[%s3533_s30 + $0x384] sm:$0xf] %v667_v33 }
  0xa6   : > { %670 = vst [vmem:[%s3533_s30 + $0x388] sm:$0xf] %v669_v34  ;;  %v671_v35 = vld [vmem:[%s3529_s29 + $0x718] sm:$0xf]  ;;  %v673_v36 = vld [vmem:[%s3529_s29 + $0x720] sm:$0xf] }
  0xa7   : > { %v675_v37 = vld [vmem:[%s3529_s29 + $0x728] sm:$0xf]  ;;  %672 = vst [vmem:[%s3533_s30 + $0x38c] sm:$0xf] %v671_v35  ;;  %674 = vst [vmem:[%s3533_s30 + $0x390] sm:$0xf] %v673_v36 }
  0xa8   : > { %676 = vst [vmem:[%s3533_s30 + $0x394] sm:$0xf] %v675_v37  ;;  %v677_v38 = vld [vmem:[%s3529_s29 + $0x730] sm:$0xf]  ;;  %v679_v39 = vld [vmem:[%s3529_s29 + $0x738] sm:$0xf] }
  0xa9   : > { %v681_v40 = vld [vmem:[%s3529_s29 + $0x740] sm:$0xf]  ;;  %678 = vst [vmem:[%s3533_s30 + $0x398] sm:$0xf] %v677_v38  ;;  %680 = vst [vmem:[%s3533_s30 + $0x39c] sm:$0xf] %v679_v39 }
  0xaa   : > { %682 = vst [vmem:[%s3533_s30 + $0x3a0] sm:$0xf] %v681_v40  ;;  %v683_v41 = vld [vmem:[%s3529_s29 + $0x748] sm:$0xf]  ;;  %v685_v42 = vld [vmem:[%s3529_s29 + $0x750] sm:$0xf] }
  0xab   : > { %v687_v43 = vld [vmem:[%s3529_s29 + $0x758] sm:$0xf]  ;;  %684 = vst [vmem:[%s3533_s30 + $0x3a4] sm:$0xf] %v683_v41  ;;  %686 = vst [vmem:[%s3533_s30 + $0x3a8] sm:$0xf] %v685_v42 }
  0xac   : > { %688 = vst [vmem:[%s3533_s30 + $0x3ac] sm:$0xf] %v687_v43  ;;  %v689_v44 = vld [vmem:[%s3529_s29 + $0x760] sm:$0xf]  ;;  %v691_v45 = vld [vmem:[%s3529_s29 + $0x768] sm:$0xf] }
  0xad   : > { %v693_v46 = vld [vmem:[%s3529_s29 + $0x770] sm:$0xf]  ;;  %690 = vst [vmem:[%s3533_s30 + $0x3b0] sm:$0xf] %v689_v44  ;;  %692 = vst [vmem:[%s3533_s30 + $0x3b4] sm:$0xf] %v691_v45 }
  0xae   : > { %694 = vst [vmem:[%s3533_s30 + $0x3b8] sm:$0xf] %v693_v46  ;;  %v695_v47 = vld [vmem:[%s3529_s29 + $0x778] sm:$0xf]  ;;  %v697_v48 = vld [vmem:[%s3529_s29 + $0x780] sm:$0xf] }
  0xaf   : > { %v699_v49 = vld [vmem:[%s3529_s29 + $0x788] sm:$0xf]  ;;  %696 = vst [vmem:[%s3533_s30 + $0x3bc] sm:$0xf] %v695_v47  ;;  %698 = vst [vmem:[%s3533_s30 + $0x3c0] sm:$0xf] %v697_v48 }
  0xb0   : > { %700 = vst [vmem:[%s3533_s30 + $0x3c4] sm:$0xf] %v699_v49  ;;  %v701_v50 = vld [vmem:[%s3529_s29 + $0x790] sm:$0xf]  ;;  %v703_v51 = vld [vmem:[%s3529_s29 + $0x798] sm:$0xf] }
  0xb1   : > { %v705_v52 = vld [vmem:[%s3529_s29 + $0x7a0] sm:$0xf]  ;;  %702 = vst [vmem:[%s3533_s30 + $0x3c8] sm:$0xf] %v701_v50  ;;  %704 = vst [vmem:[%s3533_s30 + $0x3cc] sm:$0xf] %v703_v51 }
  0xb2   : > { %706 = vst [vmem:[%s3533_s30 + $0x3d0] sm:$0xf] %v705_v52  ;;  %v707_v53 = vld [vmem:[%s3529_s29 + $0x7a8] sm:$0xf]  ;;  %v709_v54 = vld [vmem:[%s3529_s29 + $0x7b0] sm:$0xf] }
  0xb3   : > { %v711_v55 = vld [vmem:[%s3529_s29 + $0x7b8] sm:$0xf]  ;;  %708 = vst [vmem:[%s3533_s30 + $0x3d4] sm:$0xf] %v707_v53  ;;  %710 = vst [vmem:[%s3533_s30 + $0x3d8] sm:$0xf] %v709_v54 }
  0xb4   : > { %712 = vst [vmem:[%s3533_s30 + $0x3dc] sm:$0xf] %v711_v55  ;;  %v713_v56 = vld [vmem:[%s3529_s29 + $0x7c0] sm:$0xf]  ;;  %v715_v57 = vld [vmem:[%s3529_s29 + $0x7c8] sm:$0xf] }
  0xb5   : > { %v717_v58 = vld [vmem:[%s3529_s29 + $0x7d0] sm:$0xf]  ;;  %714 = vst [vmem:[%s3533_s30 + $0x3e0] sm:$0xf] %v713_v56  ;;  %716 = vst [vmem:[%s3533_s30 + $0x3e4] sm:$0xf] %v715_v57 }
  0xb6   : > { %718 = vst [vmem:[%s3533_s30 + $0x3e8] sm:$0xf] %v717_v58  ;;  %v719_v59 = vld [vmem:[%s3529_s29 + $0x7d8] sm:$0xf]  ;;  %v721_v60 = vld [vmem:[%s3529_s29 + $0x7e0] sm:$0xf] }
  0xb7   : > { %v723_v61 = vld [vmem:[%s3529_s29 + $0x7e8] sm:$0xf]  ;;  %720 = vst [vmem:[%s3533_s30 + $0x3ec] sm:$0xf] %v719_v59  ;;  %722 = vst [vmem:[%s3533_s30 + $0x3f0] sm:$0xf] %v721_v60 }
  0xb8   : > { %724 = vst [vmem:[%s3533_s30 + $0x3f4] sm:$0xf] %v723_v61  ;;  %v725_v62 = vld [vmem:[%s3529_s29 + $0x7f0] sm:$0xf]  ;;  %v727_v63 = vld [vmem:[%s3529_s29 + $0x7f8] sm:$0xf] }
  0xb9   : > { %726 = vst [vmem:[%s3533_s30 + $0x3f8] sm:$0xf] %v725_v62  ;;  %728 = vst [vmem:[%s3533_s30 + $0x3fc] sm:$0xf] %v727_v63 }
  0xba PF: > { %p2910_p6 = scmp.ge.s32.totalorder %s3459_s19, 1  ;;  %p1275_p7 = scmp.lt.s32.totalorder %s3459_s19, 3 }
  0xbc   : > { %p1276_p8 = pnand %p2910_p6, %p1275_p7 }
  0xbd   : > { %s1282_s5 = sand.u32 (!%p1276_p8), 1, %s3443_s15   ;;  %p1324_p9 = scmp.lt.s32.totalorder (!%p1276_p8), %s3451_s17, 1 }
  0xbe   : > { %1279 = sbr.rel (%p1276_p8) target bundleno = 579 (0x243), region = 73  ;;  %s2911_s10 = sshll.u32 (!%p1276_p8), %s1282_s5, 10 }
  0xbf   : > { %s4062_s11 = scalar_lea.vmem (!%p1276_p8), [#allocation3], %s2911_s10 }
  0xc3   : > { %v4051_v0 = vld [vmem:[%s4264_s0] sm:$0xff]  ;;  %v4056_v1 = vld [vmem:[%s4264_s0 + $0x8] sm:$0xff]  ;;  %v3275_v4 = vld [vmem:[%s4062_s11 + $0x78] sm:$0xff]   ;;  %s4276_s17 = smov (!%p1324_p9, %s3451_s17), 1 }
  0xc4   : > { %v2914_v2 = vcombine.high %v4051_v0, %v4051_v0  ;;  %v2916_v3 = vcombine.high %v4056_v1, %v4056_v1  ;;  %v3276_v5 = vld [vmem:[%s4062_s11 + $0xf8] sm:$0xff]   ;;  %3059 = vmatprep.subr.bf16.mxu0 %v3275_v4  ;;  %v3279_v8 = vld [vmem:[%s4062_s11 + $0x70] sm:$0xff]   ;;  %v3283_v12 = vld [vmem:[%s4062_s11 + $0x68] sm:$0xff]   ;;  %v2913_v38 = vcombine.low %v4051_v0, %v4051_v0  ;;  %v2915_v39 = vcombine.low %v4056_v1, %v4056_v1  ;;  %s1326_s6 = scalar_lea.vmem %s4266_s2, %s4276_s17  ;;  %s1329_s9 = scalar_lea.vmem %s4267_s3, %s4276_s17 }
  0xc5   : > { %v3277_v6 = vld [vmem:[%s4062_s11 + $0x38] sm:$0xff]   ;;  %3081 = vmatprep.subr.bf16.mxu1 %v3276_v5  ;;  %v3280_v9 = vld [vmem:[%s4062_s11 + $0xf0] sm:$0xff]   ;;  %v3284_v13 = vld [vmem:[%s4062_s11 + $0xe8] sm:$0xff]   ;;  %s2912_s10 = sshll.u32 %s4276_s17, 2 }
  0xc6   : > { %2461 = vmatprep.mubr.bf16.mxu0 %v2914_v2  ;;  %2501 = vmatprep.mubr.bf16.mxu1 %v2916_v3  ;;  %v3278_v7 = vld [vmem:[%s4062_s11 + $0xb8] sm:$0xff]   ;;  %v3281_v10 = vld [vmem:[%s4062_s11 + $0x30] sm:$0xff]   ;;  %v3285_v14 = vld [vmem:[%s4062_s11 + $0x28] sm:$0xff]   ;;  %s1333_s13 = scalar_lea.vmem %s4268_s4, %s2912_s10 }
  0xc7   : > { %3060 = vmatpush3.bf16.msra.mxu0 %v3277_v6  ;;  %3082 = vmatpush3.bf16.msra.mxu1 %v3278_v7  ;;  %v3282_v11 = vld [vmem:[%s4062_s11 + $0xb0] sm:$0xff]   ;;  %v3286_v15 = vld [vmem:[%s4062_s11 + $0xa8] sm:$0xff]   ;;  %v3287_v16 = vld [vmem:[%s4062_s11 + $0x60] sm:$0xff]  }
  0xc8   : > { %3061 = vmatprep.subr.bf16.mxu0 %v3279_v8  ;;  %3083 = vmatprep.subr.bf16.mxu1 %v3280_v9  ;;  %v3288_v17 = vld [vmem:[%s4062_s11 + $0xe0] sm:$0xff]   ;;  %v3291_v20 = vld [vmem:[%s4062_s11 + $0x58] sm:$0xff]   ;;  %v3295_v24 = vld [vmem:[%s4062_s11 + $0x50] sm:$0xff]  }
  0xc9   : > { %v3289_v18 = vld [vmem:[%s4062_s11 + $0x20] sm:$0xff]   ;;  %v3292_v21 = vld [vmem:[%s4062_s11 + $0xd8] sm:$0xff]   ;;  %v3296_v25 = vld [vmem:[%s4062_s11 + $0xd0] sm:$0xff]  }
  0xca   : > { %v3290_v19 = vld [vmem:[%s4062_s11 + $0xa0] sm:$0xff]   ;;  %v3293_v22 = vld [vmem:[%s4062_s11 + $0x18] sm:$0xff]   ;;  %v3297_v26 = vld [vmem:[%s4062_s11 + $0x10] sm:$0xff]  }
  0xcb   : > { %3062 = vmatpush3.bf16.msra.mxu0 %v3281_v10  ;;  %3084 = vmatpush3.bf16.msra.mxu1 %v3282_v11  ;;  %v3294_v23 = vld [vmem:[%s4062_s11 + $0x98] sm:$0xff]   ;;  %v3298_v27 = vld [vmem:[%s4062_s11 + $0x90] sm:$0xff]   ;;  %v3299_v28 = vld [vmem:[%s4062_s11 + $0x48] sm:$0xff]  }
  0xcc   : > { %3063 = vmatprep.subr.bf16.mxu0 %v3283_v12  ;;  %3085 = vmatprep.subr.bf16.mxu1 %v3284_v13  ;;  %v3300_v29 = vld [vmem:[%s4062_s11 + $0xc8] sm:$0xff]   ;;  %v3303_v32 = vld [vmem:[%s4062_s11 + $0x40] sm:$0xff]   ;;  %v4096_v33 = vld [vmem:[%s4264_s0 + $0x10] sm:$0xff] }
  0xcd   : > { %v3301_v30 = vld [vmem:[%s4062_s11 + $0x8] sm:$0xff]   ;;  %v3304_v34 = vld [vmem:[%s4062_s11 + $0xc0] sm:$0xff]   ;;  %v4102_v35 = vld [vmem:[%s4264_s0 + $0x18] sm:$0xff]  ;;  %v2918_v42 = vcombine.high %v4096_v33, %v4096_v33  ;;  %v2917_v12 = vcombine.low %v4096_v33, %v4096_v33 }
  0xce   : > { %v3302_v31 = vld [vmem:[%s4062_s11 + $0x88] sm:$0xff]   ;;  %v3305_v36 = vld [vmem:[%s4062_s11] sm:$0xff]   ;;  %v3311_v40 = vld [vmem:[%s4062_s11 + $0x178] sm:$0xff]   ;;  %v2920_v44 = vcombine.high %v4102_v35, %v4102_v35  ;;  %v2919_v13 = vcombine.low %v4102_v35, %v4102_v35 }
  0xcf   : > { %3064 = vmatpush3.bf16.msra.mxu0 %v3285_v14  ;;  %3086 = vmatpush3.bf16.msra.mxu1 %v3286_v15  ;;  %v3306_v37 = vld [vmem:[%s4062_s11 + $0x80] sm:$0xff]   ;;  %v3312_v41 = vld [vmem:[%s4062_s11 + $0x1f8] sm:$0xff]   ;;  %v3315_v46 = vld [vmem:[%s4062_s11 + $0x170] sm:$0xff]  }
  0xd0   : > { %3065 = vmatprep.subr.bf16.mxu0 %v3287_v16  ;;  %3087 = vmatprep.subr.bf16.mxu1 %v3288_v17  ;;  %v3313_v43 = vld [vmem:[%s4062_s11 + $0x138] sm:$0xff]   ;;  %v3316_v47 = vld [vmem:[%s4062_s11 + $0x1f0] sm:$0xff]   ;;  %v3319_v50 = vld [vmem:[%s4062_s11 + $0x168] sm:$0xff]  }
  0xd1   : > { %v3314_v45 = vld [vmem:[%s4062_s11 + $0x1b8] sm:$0xff]   ;;  %v3317_v48 = vld [vmem:[%s4062_s11 + $0x130] sm:$0xff]   ;;  %v3320_v51 = vld [vmem:[%s4062_s11 + $0x1e8] sm:$0xff]  }
  0xd2   : > { %v3318_v49 = vld [vmem:[%s4062_s11 + $0x1b0] sm:$0xff]   ;;  %v3321_v52 = vld [vmem:[%s4062_s11 + $0x128] sm:$0xff]   ;;  %v3323_v54 = vld [vmem:[%s4062_s11 + $0x160] sm:$0xff]  }
  0xd3   : > { %3066 = vmatpush3.bf16.msra.mxu0 %v3289_v18  ;;  %3088 = vmatpush3.bf16.msra.mxu1 %v3290_v19  ;;  %v3322_v53 = vld [vmem:[%s4062_s11 + $0x1a8] sm:$0xff]   ;;  %v3324_v55 = vld [vmem:[%s4062_s11 + $0x1e0] sm:$0xff]   ;;  %v3327_v58 = vld [vmem:[%s4062_s11 + $0x158] sm:$0xff]  }
  0xd4   : > { %3067 = vmatprep.subr.bf16.mxu0 %v3291_v20  ;;  %3089 = vmatprep.subr.bf16.mxu1 %v3292_v21  ;;  %v3325_v56 = vld [vmem:[%s4062_s11 + $0x120] sm:$0xff]   ;;  %v3328_v59 = vld [vmem:[%s4062_s11 + $0x1d8] sm:$0xff]   ;;  %v3331_v62 = vld [vmem:[%s4062_s11 + $0x150] sm:$0xff]  }
  0xd5   : > { %v3326_v57 = vld [vmem:[%s4062_s11 + $0x1a0] sm:$0xff]   ;;  %v3329_v60 = vld [vmem:[%s4062_s11 + $0x118] sm:$0xff]   ;;  %v3332_v63 = vld [vmem:[%s4062_s11 + $0x1d0] sm:$0xff]  }
  0xd6   : > { %v3330_v61 = vld [vmem:[%s4062_s11 + $0x198] sm:$0xff]   ;;  %v3333_v0 = vld [vmem:[%s4062_s11 + $0x110] sm:$0xff]   ;;  %v3335_v2 = vld [vmem:[%s4062_s11 + $0x148] sm:$0xff]  }
  0xd7   : > { %3068 = vmatpush3.bf16.msra.mxu0 %v3293_v22  ;;  %3090 = vmatpush3.bf16.msra.mxu1 %v3294_v23  ;;  %v3334_v1 = vld [vmem:[%s4062_s11 + $0x190] sm:$0xff]   ;;  %v3336_v3 = vld [vmem:[%s4062_s11 + $0x1c8] sm:$0xff]   ;;  %v3339_v6 = vld [vmem:[%s4062_s11 + $0x140] sm:$0xff]  }
  0xd8   : > { %3069 = vmatprep.subr.bf16.mxu0 %v3295_v24  ;;  %3091 = vmatprep.subr.bf16.mxu1 %v3296_v25  ;;  %v3337_v4 = vld [vmem:[%s4062_s11 + $0x108] sm:$0xff]   ;;  %v4146_v7 = vld [vmem:[%s4264_s0 + $0x20] sm:$0xff]  ;;  %v3347_v14 = vld [vmem:[%s4062_s11 + $0x278] sm:$0xff]  }
  0xd9   : > { %v3338_v5 = vld [vmem:[%s4062_s11 + $0x188] sm:$0xff]   ;;  %v3340_v8 = vld [vmem:[%s4062_s11 + $0x1c0] sm:$0xff]   ;;  %v3348_v15 = vld [vmem:[%s4062_s11 + $0x2f8] sm:$0xff]   ;;  %v2922_v16 = vcombine.high %v4146_v7, %v4146_v7 }
  0xda   : > { %v4152_v9 = vld [vmem:[%s4264_s0 + $0x28] sm:$0xff]  ;;  %v3341_v10 = vld [vmem:[%s4062_s11 + $0x100] sm:$0xff]   ;;  %v3349_v17 = vld [vmem:[%s4062_s11 + $0x238] sm:$0xff]  }
  0xdb   : > { %3070 = vmatpush3.bf16.msra.mxu0 %v3297_v26  ;;  %3092 = vmatpush3.bf16.msra.mxu1 %v3298_v27  ;;  %v3342_v11 = vld [vmem:[%s4062_s11 + $0x180] sm:$0xff]   ;;  %v2924_v18 = vcombine.high %v4152_v9, %v4152_v9  ;;  %v3350_v19 = vld [vmem:[%s4062_s11 + $0x2b8] sm:$0xff]   ;;  %v3351_v20 = vld [vmem:[%s4062_s11 + $0x270] sm:$0xff]  }
  0xdc   : > { %3071 = vmatprep.subr.bf16.mxu0 %v3299_v28  ;;  %3093 = vmatprep.subr.bf16.mxu1 %v3300_v29  ;;  %v3352_v21 = vld [vmem:[%s4062_s11 + $0x2f0] sm:$0xff]   ;;  %v3355_v24 = vld [vmem:[%s4062_s11 + $0x268] sm:$0xff]   ;;  %v3359_v28 = vld [vmem:[%s4062_s11 + $0x260] sm:$0xff]  }
  0xdd   : > { %v3353_v22 = vld [vmem:[%s4062_s11 + $0x230] sm:$0xff]   ;;  %v3356_v25 = vld [vmem:[%s4062_s11 + $0x2e8] sm:$0xff]   ;;  %v3360_v29 = vld [vmem:[%s4062_s11 + $0x2e0] sm:$0xff]  }
  0xde   : > { %v3354_v23 = vld [vmem:[%s4062_s11 + $0x2b0] sm:$0xff]   ;;  %v3357_v26 = vld [vmem:[%s4062_s11 + $0x228] sm:$0xff]   ;;  %v3364_v33 = vld [vmem:[%s4062_s11 + $0x2d8] sm:$0xff]  }
  0xdf   : > { %3072 = vmatpush3.bf16.msra.mxu0 %v3301_v30  ;;  %3094 = vmatpush3.bf16.msra.mxu1 %v3302_v31  ;;  %v3358_v27 = vld [vmem:[%s4062_s11 + $0x2a8] sm:$0xff]   ;;  %v3361_v30 = vld [vmem:[%s4062_s11 + $0x220] sm:$0xff]   ;;  %v3366_v35 = vld [vmem:[%s4062_s11 + $0x298] sm:$0xff]  }
  0xe0   : > { %3073 = vmatprep.subr.bf16.mxu0 %v3303_v32  ;;  %3095 = vmatprep.subr.bf16.mxu1 %v3304_v34  ;;  %v3362_v31 = vld [vmem:[%s4062_s11 + $0x2a0] sm:$0xff]   ;;  %v3363_v32 = vld [vmem:[%s4062_s11 + $0x258] sm:$0xff]  }
  0xe1   : > { %v3365_v34 = vld [vmem:[%s4062_s11 + $0x218] sm:$0xff]  }
  0xe3   : > { %3074 = vmatpush3.bf16.msra.mxu0 %v3305_v36  ;;  %3096 = vmatpush3.bf16.msra.mxu1 %v3306_v37  ;;  %v3367_v36 = vld [vmem:[%s4062_s11 + $0x250] sm:$0xff]  }
  0xe4   : > { %3103 = vmatprep.subr.bf16.mxu0 %v3311_v40  ;;  %3125 = vmatprep.subr.bf16.mxu1 %v3312_v41  ;;  %v3368_v37 = vld [vmem:[%s4062_s11 + $0x2d0] sm:$0xff]   ;;  %v3371_v40 = vld [vmem:[%s4062_s11 + $0x248] sm:$0xff]  }
  0xe5   : > { %v3372_v41 = vld [vmem:[%s4062_s11 + $0x2c8] sm:$0xff]  }
  0xe6   : > { %2462 = vmatmul.mubr.bf16.vlgmr.msra.gmra.mxu0 %v2913_v38  ;;  %2502 = vmatmul.mubr.bf16.vlgmr.msra.gmra.mxu1 %v2915_v39  ;;  %v3369_v38 = vld [vmem:[%s4062_s11 + $0x210] sm:$0xff]  }
  0xe7   : > { %3104 = vmatpush3.bf16.msra.mxu0 %v3313_v43  ;;  %3126 = vmatpush3.bf16.msra.mxu1 %v3314_v45  ;;  %v3370_v39 = vld [vmem:[%s4062_s11 + $0x290] sm:$0xff]   ;;  %v3374_v43 = vld [vmem:[%s4062_s11 + $0x288] sm:$0xff]   ;;  %v3376_v45 = vld [vmem:[%s4062_s11 + $0x2c0] sm:$0xff]  }
  0xe8   : > { %2541 = vmatprep.mubr.bf16.mxu0 %v2918_v42  ;;  %3105 = vmatprep.subr.bf16.mxu0 %v3315_v46  ;;  %v3373_v42 = vld [vmem:[%s4062_s11 + $0x208] sm:$0xff]   ;;  %v3377_v46 = vld [vmem:[%s4062_s11 + $0x200] sm:$0xff]  }
  0xe9   : > { %2581 = vmatprep.mubr.bf16.mxu1 %v2920_v44  ;;  %3127 = vmatprep.subr.bf16.mxu1 %v3316_v47  ;;  %v3375_v44 = vld [vmem:[%s4062_s11 + $0x240] sm:$0xff]  }
  0xea   : > { %v3378_v47 = vld [vmem:[%s4062_s11 + $0x280] sm:$0xff]  }
  0xeb   : > { %3106 = vmatpush3.bf16.msra.mxu0 %v3317_v48  ;;  %3128 = vmatpush3.bf16.msra.mxu1 %v3318_v49  ;;  %v2921_v48 = vcombine.low %v4146_v7, %v4146_v7  ;;  %v2923_v49 = vcombine.low %v4152_v9, %v4152_v9  ;;  %v3404_v7 = vld [vmem:[%s4062_s11 + $0x3d0] sm:$0xff]  }
  0xec   : > { %3107 = vmatprep.subr.bf16.mxu0 %v3319_v50  ;;  %3129 = vmatprep.subr.bf16.mxu1 %v3320_v51  ;;  %v3383_v50 = vld [vmem:[%s4062_s11 + $0x378] sm:$0xff]   ;;  %v3406_v9 = vld [vmem:[%s4062_s11 + $0x390] sm:$0xff]  }
  0xed   : > { %v3384_v51 = vld [vmem:[%s4062_s11 + $0x3f8] sm:$0xff]  }
  0xef   : > { %3108 = vmatpush3.bf16.msra.mxu0 %v3321_v52  ;;  %3130 = vmatpush3.bf16.msra.mxu1 %v3322_v53  ;;  %v3385_v52 = vld [vmem:[%s4062_s11 + $0x338] sm:$0xff]  }
  0xf0   : > { %3109 = vmatprep.subr.bf16.mxu0 %v3323_v54  ;;  %3131 = vmatprep.subr.bf16.mxu1 %v3324_v55  ;;  %v3386_v53 = vld [vmem:[%s4062_s11 + $0x3b8] sm:$0xff]   ;;  %v3387_v54 = vld [vmem:[%s4062_s11 + $0x370] sm:$0xff]  }
  0xf1   : > { %v3388_v55 = vld [vmem:[%s4062_s11 + $0x3f0] sm:$0xff]  }
  0xf3   : > { %3110 = vmatpush3.bf16.msra.mxu0 %v3325_v56  ;;  %3132 = vmatpush3.bf16.msra.mxu1 %v3326_v57  ;;  %v3389_v56 = vld [vmem:[%s4062_s11 + $0x330] sm:$0xff]  }
  0xf4   : > { %3111 = vmatprep.subr.bf16.mxu0 %v3327_v58  ;;  %3133 = vmatprep.subr.bf16.mxu1 %v3328_v59  ;;  %v3390_v57 = vld [vmem:[%s4062_s11 + $0x3b0] sm:$0xff]   ;;  %v3391_v58 = vld [vmem:[%s4062_s11 + $0x368] sm:$0xff]  }
  0xf5   : > { %v3392_v59 = vld [vmem:[%s4062_s11 + $0x3e8] sm:$0xff]  }
  0xf7   : > { %3112 = vmatpush3.bf16.msra.mxu0 %v3329_v60  ;;  %3134 = vmatpush3.bf16.msra.mxu1 %v3330_v61  ;;  %v3393_v60 = vld [vmem:[%s4062_s11 + $0x328] sm:$0xff]  }
  0xf8   : > { %3113 = vmatprep.subr.bf16.mxu0 %v3331_v62  ;;  %3135 = vmatprep.subr.bf16.mxu1 %v3332_v63  ;;  %v3394_v61 = vld [vmem:[%s4062_s11 + $0x3a8] sm:$0xff]   ;;  %v3395_v62 = vld [vmem:[%s4062_s11 + $0x360] sm:$0xff]  }
  0xf9   : > { %v3396_v63 = vld [vmem:[%s4062_s11 + $0x3e0] sm:$0xff]  }
  0xfb   : > { %3114 = vmatpush3.bf16.msra.mxu0 %v3333_v0  ;;  %3136 = vmatpush3.bf16.msra.mxu1 %v3334_v1  ;;  %v3397_v0 = vld [vmem:[%s4062_s11 + $0x320] sm:$0xff]  }
  0xfc   : > { %3115 = vmatprep.subr.bf16.mxu0 %v3335_v2  ;;  %3137 = vmatprep.subr.bf16.mxu1 %v3336_v3  ;;  %v3398_v1 = vld [vmem:[%s4062_s11 + $0x3a0] sm:$0xff]   ;;  %v3399_v2 = vld [vmem:[%s4062_s11 + $0x358] sm:$0xff]  }
  0xfd   : > { %v3400_v3 = vld [vmem:[%s4062_s11 + $0x3d8] sm:$0xff]  }
  0xff   : > { %3116 = vmatpush3.bf16.msra.mxu0 %v3337_v4  ;;  %3138 = vmatpush3.bf16.msra.mxu1 %v3338_v5  ;;  %v3401_v4 = vld [vmem:[%s4062_s11 + $0x318] sm:$0xff]  }
 0x100   : > { %3117 = vmatprep.subr.bf16.mxu0 %v3339_v6  ;;  %3139 = vmatprep.subr.bf16.mxu1 %v3340_v8  ;;  %v3402_v5 = vld [vmem:[%s4062_s11 + $0x398] sm:$0xff]   ;;  %v3403_v6 = vld [vmem:[%s4062_s11 + $0x350] sm:$0xff]  }
 0x101   : > { %v3405_v8 = vld [vmem:[%s4062_s11 + $0x310] sm:$0xff]  }
 0x103   : > { %3118 = vmatpush3.bf16.msra.mxu0 %v3341_v10  ;;  %3140 = vmatpush3.bf16.msra.mxu1 %v3342_v11  ;;  %v3407_v10 = vld [vmem:[%s4062_s11 + $0x348] sm:$0xff]  }
 0x104   : > { %3147 = vmatprep.subr.bf16.mxu0 %v3347_v14  ;;  %3169 = vmatprep.subr.bf16.mxu1 %v3348_v15  ;;  %v3408_v11 = vld [vmem:[%s4062_s11 + $0x3c8] sm:$0xff]   ;;  %v3411_v14 = vld [vmem:[%s4062_s11 + $0x340] sm:$0xff]  }
 0x105   : > { %v3412_v15 = vld [vmem:[%s4062_s11 + $0x3c0] sm:$0xff]  }
 0x106   : > { %2542 = vmatmul.mubr.bf16.vlgmr.msra.gmra.mxu0 %v2917_v12  ;;  %2582 = vmatmul.mubr.bf16.vlgmr.msra.gmra.mxu1 %v2919_v13  ;;  %v3409_v12 = vld [vmem:[%s4062_s11 + $0x308] sm:$0xff]  }
 0x107   : > { %3148 = vmatpush3.bf16.msra.mxu0 %v3349_v17  ;;  %3170 = vmatpush3.bf16.msra.mxu1 %v3350_v19  ;;  %v3410_v13 = vld [vmem:[%s4062_s11 + $0x388] sm:$0xff]   ;;  %v3414_v17 = vld [vmem:[%s4062_s11 + $0x380] sm:$0xff]   ;;  %v1348_v19 = vld [vmem:[%s4264_s0 + $0x38] sm:$0xff] }
 0x108   : > { %2621 = vmatprep.mubr.bf16.mxu0 %v2922_v16  ;;  %3149 = vmatprep.subr.bf16.mxu0 %v3351_v20  ;;  %v3413_v16 = vld [vmem:[%s4062_s11 + $0x300] sm:$0xff]  }
 0x109   : > { %2661 = vmatprep.mubr.bf16.mxu1 %v2924_v18  ;;  %3171 = vmatprep.subr.bf16.mxu1 %v3352_v21  ;;  %v1347_v18 = vld [vmem:[%s4264_s0 + $0x30] sm:$0xff] }
 0x10a   : > { %v2925_v20 = vcombine.low %v1347_v18, %v1347_v18  ;;  %v2926_v21 = vcombine.high %v1347_v18, %v1347_v18 }
 0x10b   : > { %3150 = vmatpush3.bf16.msra.mxu0 %v3353_v22  ;;  %3172 = vmatpush3.bf16.msra.mxu1 %v3354_v23  ;;  %v2927_v22 = vcombine.low %v1348_v19, %v1348_v19  ;;  %v2928_v23 = vcombine.high %v1348_v19, %v1348_v19 }
 0x10c   : > { %3151 = vmatprep.subr.bf16.mxu0 %v3355_v24  ;;  %3173 = vmatprep.subr.bf16.mxu1 %v3356_v25 }
 0x10f   : > { %3152 = vmatpush3.bf16.msra.mxu0 %v3357_v26  ;;  %3174 = vmatpush3.bf16.msra.mxu1 %v3358_v27 }
 0x110   : > { %3153 = vmatprep.subr.bf16.mxu0 %v3359_v28  ;;  %3175 = vmatprep.subr.bf16.mxu1 %v3360_v29 }
 0x113   : > { %3154 = vmatpush3.bf16.msra.mxu0 %v3361_v30  ;;  %3176 = vmatpush3.bf16.msra.mxu1 %v3362_v31 }
 0x114   : > { %3155 = vmatprep.subr.bf16.mxu0 %v3363_v32  ;;  %3177 = vmatprep.subr.bf16.mxu1 %v3364_v33 }
 0x117   : > { %3156 = vmatpush3.bf16.msra.mxu0 %v3365_v34  ;;  %3178 = vmatpush3.bf16.msra.mxu1 %v3366_v35 }
 0x118   : > { %3157 = vmatprep.subr.bf16.mxu0 %v3367_v36  ;;  %3179 = vmatprep.subr.bf16.mxu1 %v3368_v37 }
 0x11b   : > { %3158 = vmatpush3.bf16.msra.mxu0 %v3369_v38  ;;  %3180 = vmatpush3.bf16.msra.mxu1 %v3370_v39 }
 0x11c   : > { %3159 = vmatprep.subr.bf16.mxu0 %v3371_v40  ;;  %3181 = vmatprep.subr.bf16.mxu1 %v3372_v41 }
 0x11f   : > { %3160 = vmatpush3.bf16.msra.mxu0 %v3373_v42  ;;  %3182 = vmatpush3.bf16.msra.mxu1 %v3374_v43 }
 0x120   : > { %3161 = vmatprep.subr.bf16.mxu0 %v3375_v44  ;;  %3183 = vmatprep.subr.bf16.mxu1 %v3376_v45 }
 0x123   : > { %3162 = vmatpush3.bf16.msra.mxu0 %v3377_v46  ;;  %3184 = vmatpush3.bf16.msra.mxu1 %v3378_v47 }
 0x124   : > { %3191 = vmatprep.subr.bf16.mxu0 %v3383_v50  ;;  %3213 = vmatprep.subr.bf16.mxu1 %v3384_v51 }
 0x126   : > { %2622 = vmatmul.mubr.bf16.vlgmr.msra.gmra.mxu0 %v2921_v48  ;;  %2662 = vmatmul.mubr.bf16.vlgmr.msra.gmra.mxu1 %v2923_v49 }
 0x127   : > { %3192 = vmatpush3.bf16.msra.mxu0 %v3385_v52  ;;  %3214 = vmatpush3.bf16.msra.mxu1 %v3386_v53 }
 0x128   : > { %3193 = vmatprep.subr.bf16.mxu0 %v3387_v54  ;;  %3215 = vmatprep.subr.bf16.mxu1 %v3388_v55 }
 0x129   : > { %2701 = vmatprep.mubr.bf16.mxu0 %v2926_v21  ;;  %2741 = vmatprep.mubr.bf16.mxu1 %v2928_v23 }
 0x12b   : > { %3194 = vmatpush3.bf16.msra.mxu0 %v3389_v56  ;;  %3216 = vmatpush3.bf16.msra.mxu1 %v3390_v57 }
 0x12c   : > { %3195 = vmatprep.subr.bf16.mxu0 %v3391_v58  ;;  %3217 = vmatprep.subr.bf16.mxu1 %v3392_v59 }
 0x12f   : > { %3196 = vmatpush3.bf16.msra.mxu0 %v3393_v60  ;;  %3218 = vmatpush3.bf16.msra.mxu1 %v3394_v61 }
 0x130   : > { %3197 = vmatprep.subr.bf16.mxu0 %v3395_v62  ;;  %3219 = vmatprep.subr.bf16.mxu1 %v3396_v63 }
 0x133   : > { %3198 = vmatpush3.bf16.msra.mxu0 %v3397_v0  ;;  %3220 = vmatpush3.bf16.msra.mxu1 %v3398_v1 }
 0x134   : > { %3199 = vmatprep.subr.bf16.mxu0 %v3399_v2  ;;  %3221 = vmatprep.subr.bf16.mxu1 %v3400_v3 }
 0x137   : > { %3200 = vmatpush3.bf16.msra.mxu0 %v3401_v4  ;;  %3222 = vmatpush3.bf16.msra.mxu1 %v3402_v5 }
 0x138   : > { %3201 = vmatprep.subr.bf16.mxu0 %v3403_v6  ;;  %3223 = vmatprep.subr.bf16.mxu1 %v3404_v7 }
 0x13b   : > { %3202 = vmatpush3.bf16.msra.mxu0 %v3405_v8  ;;  %3224 = vmatpush3.bf16.msra.mxu1 %v3406_v9 }
 0x13c   : > { %3203 = vmatprep.subr.bf16.mxu0 %v3407_v10  ;;  %3225 = vmatprep.subr.bf16.mxu1 %v3408_v11 }
 0x13f   : > { %3204 = vmatpush3.bf16.msra.mxu0 %v3409_v12  ;;  %3226 = vmatpush3.bf16.msra.mxu1 %v3410_v13 }
 0x140   : > { %3205 = vmatprep.subr.bf16.mxu0 %v3411_v14  ;;  %3227 = vmatprep.subr.bf16.mxu1 %v3412_v15 }
 0x143   : > { %3206 = vmatpush3.bf16.msra.mxu0 %v3413_v16  ;;  %3228 = vmatpush3.bf16.msra.mxu1 %v3414_v17 }
 0x146   : > { %2702 = vmatmul.mubr.bf16.vlgmr.msra.gmra.mxu0 %v2925_v20  ;;  %2742 = vmatmul.mubr.bf16.vlgmr.msra.gmra.mxu1 %v2927_v22 }
 0x1a6   : > { %v3075_v24 = vpop.f32.mrf.mxu0  ;;  %v3097_v25 = vpop.f32.mrf.mxu1 }
 0x1a8   : > { %v3076_v26 = vpop.f32.mrf.mxu0  ;;  %v3098_v28 = vpop.f32.mrf.mxu1 }
 0x1a9   : > { %v3077_v27 = vadd.f32 %v3076_v26, %v3075_v24  ;;  %v3099_v29 = vadd.f32 %v3098_v28, %v3097_v25  ;;  %v2782_v26 = vlaneseq  ;;  %v2774_v28 = vld [vmem:[%s1326_s6] sm:$0x1] }
 0x1aa   : > { %v3078_v30 = vpop.f32.mrf.mxu0  ;;  %v3100_v31 = vpop.f32.mrf.mxu1 }
 0x1ab   : > { %v2504_v32 = vadd.f32 %v3099_v29, %v3077_v27  ;;  %v2783_v27 = vshrl.u32 %v2782_v26, 7 }
 0x1ac   : > { %v3079_v33 = vpop.f32.mrf.mxu0  ;;  %v3101_v34 = vpop.f32.mrf.mxu1 }
 0x1ad   : > { %v2784_v29 = vsub.s32 0, %v2783_v27 }
 0x1c6   : > { %v3119_v35 = vpop.f32.mrf.mxu0  ;;  %v3141_v36 = vpop.f32.mrf.mxu1 }
 0x1c8   : > { %v3120_v37 = vpop.f32.mrf.mxu0  ;;  %v3142_v38 = vpop.f32.mrf.mxu1 }
 0x1c9   : > { %v3121_v51 = vadd.f32 %v3120_v37, %v3119_v35  ;;  %v3143_v53 = vadd.f32 %v3142_v38, %v3141_v36 }
 0x1ca   : > { %v3122_v39 = vpop.f32.mrf.mxu0  ;;  %v3144_v40 = vpop.f32.mrf.mxu1 }
 0x1cb   : > { %v2544_v52 = vadd.f32 %v3121_v51, %v2504_v32  ;;  %v2778_v32 = vld [vmem:[%s1329_s9] sm:$0x1] }
 0x1cc   : > { %v3123_v41 = vpop.f32.mrf.mxu0  ;;  %v3145_v42 = vpop.f32.mrf.mxu1 }
 0x1cd   : > { %v2584_v55 = vadd.f32 %v3143_v53, %v2544_v52 }
 0x1e6   : > { %v3163_v43 = vpop.f32.mrf.mxu0  ;;  %v3185_v44 = vpop.f32.mrf.mxu1 }
 0x1e8   : > { %v3164_v45 = vpop.f32.mrf.mxu0  ;;  %v3186_v46 = vpop.f32.mrf.mxu1 }
 0x1e9   : > { %v3165_v54 = vadd.f32 %v3164_v45, %v3163_v43  ;;  %v3187_v57 = vadd.f32 %v3186_v46, %v3185_v44 }
 0x1ea   : > { %v3166_v47 = vpop.f32.mrf.mxu0  ;;  %v3188_v48 = vpop.f32.mrf.mxu1 }
 0x1eb   : > { %v2624_v56 = vadd.f32 %v3165_v54, %v2584_v55 }
 0x1ec   : > { %v3167_v49 = vpop.f32.mrf.mxu0  ;;  %v3189_v50 = vpop.f32.mrf.mxu1 }
 0x1ed   : > { %v2664_v62 = vadd.f32 %v3187_v57, %v2624_v56 }
 0x206   : > { %v3207_v58 = vpop.f32.mrf.mxu0  ;;  %v3229_v59 = vpop.f32.mrf.mxu1 }
 0x208   : > { %v3208_v60 = vpop.f32.mrf.mxu0  ;;  %v3230_v61 = vpop.f32.mrf.mxu1 }
 0x209   : > { %v3209_v63 = vadd.f32 %v3208_v60, %v3207_v58  ;;  %v3231_v3 = vadd.f32 %v3230_v61, %v3229_v59 }
 0x20a   : > { %v3210_v0 = vpop.f32.mrf.mxu0  ;;  %v3232_v1 = vpop.f32.mrf.mxu1 }
 0x20b   : > { %v2704_v2 = vadd.f32 %v3209_v63, %v2664_v62 }
 0x20c   : > { %v3211_v4 = vpop.f32.mrf.mxu0  ;;  %v3233_v5 = vpop.f32.mrf.mxu1 }
 0x20d   : > { %v2744_v6 = vadd.f32 %v3231_v3, %v2704_v2 }
 0x20f   : > { %v2755_v7 = vrot.slane %v2744_v6, 4  ;;  %v2763_v8 = vmul.f32 %v2744_v6, %v2744_v6 }
 0x211   : > { %v2756_v9 = vadd.f32 %v2755_v7, %v2744_v6  ;;  %v2764_v10 = vrot.slane %v2763_v8, 4 }
 0x213   : > { %v2757_v11 = vrot.slane %v2756_v9, 2  ;;  %v2765_v12 = vadd.f32 %v2764_v10, %v2763_v8 }
 0x215   : > { %v2758_v13 = vadd.f32 %v2757_v11, %v2756_v9  ;;  %v2766_v14 = vrot.slane %v2765_v12, 2 }
 0x217   : > { %v2759_v15 = vrot.slane %v2758_v13, 1  ;;  %v2767_v16 = vadd.f32 %v2766_v14, %v2765_v12 }
 0x219   : > { %v2760_v17 = vadd.f32 %v2759_v15, %v2758_v13  ;;  %v2768_v18 = vrot.slane %v2767_v16, 1 }
 0x21b   : > { %v2762_v19 = vmul.f32 0.125, %v2760_v17  ;;  %v2769_v20 = vadd.f32 %v2768_v18, %v2767_v16 }
 0x21d   : > { %v2770_v21 = vmul.f32 0.125, %v2769_v20  ;;  %v2771_v22 = vmul.f32 %v2762_v19, %v2762_v19 }
 0x21f   : > { %v2772_v23 = vsub.f32 %v2770_v21, %v2771_v22 }
 0x221   : > { %v2773_v24 = vmax.f32 %v2772_v23, 0.0 }
 0x223   : > { %v2775_v25 = vadd.f32 1e-05, %v2773_v24 }
 0x225   : > { %3419 = vrsqrt.f32 %v2775_v25 }
 0x232   : > { %v3420_v30 = vpop.eup %3419 }
 0x233   : > { %v2777_v31 = vmul.f32 %v3420_v30, %v2774_v28 }
 0x235   : > { %v2779_v33 = vmul.f32 %v2777_v31, %v2762_v19  ;;  %v2785_v34 = vrot.slane %v2777_v31, %v2784_v29 }
 0x237   : > { %v2780_v35 = vsub.f32 %v2778_v32, %v2779_v33  ;;  %v2787_v36 = vmul.f32 %v2785_v34, %v2744_v6 }
 0x239   : > { %v2792_v37 = vrot.slane %v2780_v35, %v2784_v29 }
 0x23b   : > { %v2794_v38 = vadd.f32 %v2792_v37, %v2787_v36 }
 0x23d   : > { %vm2795_vm0 = vcmp.gt.f32.partialorder %v2794_v38, 0.0  ;;  %v2796_v39 = vmul.f32 0.2, %v2794_v38 }
 0x23f   : > { %v2797_v40 = vsel %vm2795_vm0, %v2794_v38, %v2796_v39 }
 0x240   : > { %v2798_v41 = vpack.c.bf16 %v2797_v40, %v2797_v40 }
 0x242   : > { %2799 = vst [vmem:[%s1333_s13] sm:$0xf] %v2798_v41 }
 0x243 PF: > { %s14_s19 = sadd.s32 1, %s3459_s19   ;;  %s4269_s15 = smov %s3447_s16 }
 0x244   : > { %p11_p10 = scmp.ge.s32.totalorder %s14_s19, 4   ;;  %s4270_s16 = smov %s3521_s23 }
 0x245   : > { %s4271_s17 = smov %s3455_s18  ;;  %s4272_s18 = smov %s4274_s20 }
 0x246   :  { %13 = sbr.rel (!%p11_p10) target bundleno = 3 (0x3), region = 129 }

</bundles_post_ra>
